<compile_context>
chip_gen: v7x
topology: tpu7x:2x2x1
jax: 0.10.0
libtpu: 0.0.40
codegen_flags: <defaults>
</compile_context>

<pallas_src>
import functools

import jax
import jax.numpy as jnp
from jax.experimental import pallas as pl
from jax.experimental.pallas import tpu as pltpu


# On real TPU hardware the MXU natively consumes bf16 operands with f32
# accumulation; the CPU/interpret execution path does not support that dot
# combination, so fall back to f32 operands there.
_ON_TPU = jax.default_backend() == "tpu"
_MXU_DTYPE = jnp.bfloat16 if _ON_TPU else jnp.float32
_SUBLANE = 16 if _ON_TPU else 8          # sublane packing of the patch-scratch dtype

# 3x3 taps, tap index k = (dh+1)*3 + (dw+1)
_TAPS = tuple((dh, dw) for dh in (-1, 0, 1) for dw in (-1, 0, 1))


# ----------------------------------------------------------------------------
# Fused stage kernel: all couplings of one stage in a single grid step
# ----------------------------------------------------------------------------
def _fused_stage_kernel(*refs, W, lane_len, layer_dims, cin_pads,
                        n_couplings, reverse_flags, checker):
    """One grid step = one lane tile of T whole images, channel-major (C, T*H*W).

    Ref order (inputs, outputs, scratch):
      masks  : (10, lane) f32   row 0 checkerboard, rows 1..9 tap validity masks
      x      : (C, lane)  f32   stage input (stays resident across couplings)
      per coupling: [w_l (cout, 9*cin_pad) mxu-dtype, b_l (cout,1) f32] * n_layers,
                    rescale (c_half, 1) f32
      x_out  : (C, lane)  f32
      ssum   : (1, lane)  f32   sum over couplings & channels of s (for sldj)
      pat    : (9*max_cin_pad, lane) mxu-dtype VMEM scratch (im2col patch matrix)
    """
    n_layers = len(layer_dims)

    idx = 0
    masks_ref = refs[idx]; idx += 1
    x_ref = refs[idx]; idx += 1
    coup_refs = []
    for _ in range(n_couplings):
        wbs = []
        for _ in range(n_layers):
            wbs.append((refs[idx], refs[idx + 1])); idx += 2
        rescale_ref = refs[idx]; idx += 1
        coup_refs.append((wbs, rescale_ref))
    x_out_ref = refs[idx]; idx += 1
    ssum_ref = refs[idx]; idx += 1
    pat_ref = refs[idx]; idx += 1

    masks = masks_ref[...]                      # (10, lane) f32, loaded once
    checker_base = masks[0:1, :]
    tap_masks = [masks[1 + k:2 + k, :] for k in range(9)]

    x = x_ref[...]                              # (C, lane) f32, resident
    ssum = jnp.zeros((1, lane_len), jnp.float32)

    for ci in range(n_couplings):
        wbs, rescale_ref = coup_refs[ci]
        rev = reverse_flags[ci]

        if checker:
            bmask = (1.0 - checker_base) if rev else checker_base
            minv = 1.0 - bmask
            x_tr = x
            x_id = None
            h = x * bmask                       # spatially-masked st-net input
        else:
            half = x.shape[0] // 2
            if rev:
                x_id, x_tr = x[:half, :], x[half:, :]
            else:
                x_tr, x_id = x[:half, :], x[half:, :]
            h = x_id
            minv = None

        # --- st-net: fused 3x3 conv stack.  Per layer: assemble the
        #     (9*cin_pad, lane) patch matrix via lane rolls (XLU) + boundary
        #     masks (zero "same" padding; also prevents cross-image bleed since
        #     the batch is folded into lanes), then ONE K = 9*cin_pad MXU matmul.
        for li, (cin, cout) in enumerate(layer_dims):
            cin_pad = cin_pads[li]
            pad_rows = cin_pad - cin
            zpad = (jnp.zeros((pad_rows, lane_len), pat_ref.dtype)
                    if pad_rows > 0 else None)
            for k, (dh, dw) in enumerate(_TAPS):
                off = dh * W + dw
                if off == 0:
                    shifted = h
                else:
                    shifted = pltpu.roll(h, shift=(-off) % lane_len, axis=1)
                    shifted = shifted * tap_masks[k]
                blk = shifted.astype(pat_ref.dtype)
                if zpad is not None:
                    blk = jnp.concatenate([blk, zpad], axis=0)
                # full-width, sublane-aligned store of the tap block
                pat_ref[k * cin_pad:(k + 1) * cin_pad, :] = blk
            w_ref, b_ref = wbs[li]
            y = jnp.dot(w_ref[...], pat_ref[0:9 * cin_pad, :],
                        preferred_element_type=jnp.float32)
            y = y + b_ref[...]
            if li < n_layers - 1:
                y = jnp.maximum(y, 0.0)
            h = y                               # (cout, lane) f32

        # --- affine coupling transform (f32):
        #     s = rescale * tanh(s_raw) [* (1-b)],  t = t_raw [* (1-b)]
        #     x' = (x + t) * exp(s),  dsldj += sum_c s
        c_half = layer_dims[-1][1] // 2
        s = rescale_ref[...] * jnp.tanh(h[0:c_half, :])
        t = h[c_half:2 * c_half, :]
        if checker:
            s = s * minv
            t = t * minv
        x_tr_new = (x_tr + t) * jnp.exp(s)
        if checker:
            x = x_tr_new
        else:
            if rev:
                x = jnp.concatenate([x_id, x_tr_new], axis=0)
            else:
                x = jnp.concatenate([x_tr_new, x_id], axis=0)
        ssum = ssum + jnp.sum(s, axis=0, keepdims=True)

    x_out_ref[...] = x
    ssum_ref[...] = ssum


# ----------------------------------------------------------------------------
# Wrapper: one pallas_call per _Flow stage (3-4 fused couplings)
# ----------------------------------------------------------------------------
def _to_cm(x_nchw):
    """(B,C,H,W) -> channel-major (C, B*H*W): lanes are B*H*W (lane-dense)."""
    B, C, H, W = x_nchw.shape
    return jnp.transpose(x_nchw, (1, 0, 2, 3)).reshape(C, B * H * W)


def _from_cm(x_cm, B, H, W):
    C = x_cm.shape[0]
    return jnp.transpose(x_cm.reshape(C, B, H, W), (1, 0, 2, 3))


def _make_masks(H, W, T):
    """(10, T*H*W): row 0 = checkerboard base, rows 1..9 = tap validity masks."""
    pix = jnp.arange(H * W, dtype=jnp.int32)
    row, col = pix // W, pix % W
    rows = [((row + col) % 2).astype(jnp.float32)]
    for dh, dw in _TAPS:
        valid = ((row + dh >= 0) & (row + dh < H) &
                 (col + dw >= 0) & (col + dw < W))
        rows.append(valid.astype(jnp.float32))
    m = jnp.stack(rows, axis=0)                    # (10, H*W)
    return jnp.tile(m, (1, T))                     # (10, T*H*W)


def _pick_tile(B, HW):
    """Smallest batch tile T (whole images) with B % T == 0 and T*HW % 128 == 0."""
    for t in range(1, B + 1):
        if B % t == 0 and (t * HW) % 128 == 0:
            return t
    return B


def _pack_weight(w, cin_pad):
    """(3,3,cin,cout) -> (cout, 9*cin_pad), K tap-major (k*cin_pad + ci),
    zero-padded channel rows so every tap block in the patch matrix is aligned."""
    cin, cout = w.shape[2], w.shape[3]
    w9 = w.reshape(9, cin, cout)
    if cin_pad > cin:
        w9 = jnp.pad(w9, ((0, 0), (0, cin_pad - cin), (0, 0)))
    return jnp.transpose(w9.reshape(9 * cin_pad, cout)).astype(_MXU_DTYPE)


def _fused_stage(x, sldj, couplings, *, checker):
    """Run all couplings of one stage in ONE pallas_call.  Returns (x_new, sldj)."""
    B, C, H, W = x.shape
    HW, BHW = H * W, B * H * W
    T = _pick_tile(B, HW)
    n_tiles = B // T
    lane = T * HW

    layer_dims = tuple((w.shape[2], w.shape[3]) for (w, _) in couplings[0]['convs'])
    cin_pads = tuple(-(-cin // _SUBLANE) * _SUBLANE for (cin, _) in layer_dims)
    c_half = layer_dims[-1][1] // 2

    inputs = [_make_masks(H, W, T), _to_cm(x)]
    in_specs = [pl.BlockSpec((10, lane), lambda i: (0, 0)),      # resident masks
                pl.BlockSpec((C, lane), lambda i: (0, i))]       # batch-tiled x
    for cp in couplings:
        for (w, b), cin_pad in zip(cp['convs'], cin_pads):
            w2 = _pack_weight(w, cin_pad)
            inputs += [w2, b.reshape(-1, 1).astype(jnp.float32)]
            in_specs += [pl.BlockSpec(w2.shape, lambda i: (0, 0)),
                         pl.BlockSpec((w.shape[3], 1), lambda i: (0, 0))]
        inputs.append(cp['scale'].reshape(c_half, 1).astype(jnp.float32))
        in_specs.append(pl.BlockSpec((c_half, 1), lambda i: (0, 0)))

    kernel = functools.partial(
        _fused_stage_kernel, W=W, lane_len=lane, layer_dims=layer_dims,
        cin_pads=cin_pads, n_couplings=len(couplings),
        reverse_flags=tuple(i % 2 == 1 for i in range(len(couplings))),
        checker=checker)

    x_out, ssum = pl.pallas_call(
        kernel,
        grid=(n_tiles,),
        in_specs=in_specs,
        out_specs=(pl.BlockSpec((C, lane), lambda i: (0, i)),
                   pl.BlockSpec((1, lane), lambda i: (0, i))),
        out_shape=(jax.ShapeDtypeStruct((C, BHW), jnp.float32),
                   jax.ShapeDtypeStruct((1, BHW), jnp.float32)),
        scratch_shapes=[pltpu.VMEM((9 * max(cin_pads), lane), _MXU_DTYPE)],
        compiler_params=pltpu.CompilerParams(
            dimension_semantics=("parallel",),
            vmem_limit_bytes=32 * 1024 * 1024),
    )(*inputs)

    dsldj = jnp.sum(ssum.reshape(B, HW), axis=1)   # tiny per-image reduce in JAX
    return _from_cm(x_out, B, H, W), sldj + dsldj


# ----------------------------------------------------------------------------
# squeeze_2x2 variants (pure index permutations -> plain JAX glue)
# ----------------------------------------------------------------------------
def squeeze_std(x):  # alt_order=False, forward
    b, c, h, w = x.shape
    x = jnp.transpose(x, (0, 2, 3, 1))
    x = x.reshape(b, h // 2, 2, w // 2, 2, c)
    x = jnp.transpose(x, (0, 1, 3, 5, 2, 4))
    x = x.reshape(b, h // 2, w // 2, c * 4)
    return jnp.transpose(x, (0, 3, 1, 2))


def unsqueeze_std(x):  # alt_order=False, reverse
    b, c, h, w = x.shape
    x = jnp.transpose(x, (0, 2, 3, 1))
    x = x.reshape(b, h, w, c // 4, 2, 2)
    x = jnp.transpose(x, (0, 1, 4, 2, 5, 3))
    x = x.reshape(b, 2 * h, 2 * w, c // 4)
    return jnp.transpose(x, (0, 3, 1, 2))


def squeeze_alt(x):  # alt_order=True, forward (conv2d with perm_weight, stride 2)
    a = x[:, :, 0::2, 0::2]
    b_ = x[:, :, 1::2, 1::2]
    c_ = x[:, :, 0::2, 1::2]
    d = x[:, :, 1::2, 0::2]
    return jnp.concatenate([a, b_, c_, d], axis=1)


def unsqueeze_alt(y):  # alt_order=True, reverse (conv_transpose2d)
    B, C4, H, W = y.shape
    C = C4 // 4
    a, b_, c_, d = y[:, :C], y[:, C:2 * C], y[:, 2 * C:3 * C], y[:, 3 * C:]
    x = jnp.zeros((B, C, 2 * H, 2 * W), y.dtype)
    x = x.at[:, :, 0::2, 0::2].set(a)
    x = x.at[:, :, 1::2, 1::2].set(b_)
    x = x.at[:, :, 0::2, 1::2].set(c_)
    x = x.at[:, :, 1::2, 0::2].set(d)
    return x


# ----------------------------------------------------------------------------
# _Flow forward (reverse=False path)
# ----------------------------------------------------------------------------
def flow_forward(x, sldj, params):
    x, sldj = _fused_stage(x, sldj, params['in_couplings'], checker=True)
    if params['next'] is not None:
        x = squeeze_std(x)
        x, sldj = _fused_stage(x, sldj, params['out_couplings'], checker=False)
        x = unsqueeze_std(x)
        x = squeeze_alt(x)
        half = x.shape[1] // 2
        x, x_split = x[:, :half], x[:, half:]
        x, sldj = flow_forward(x, sldj, params['next'])
        x = jnp.concatenate([x, x_split], axis=1)
        x = unsqueeze_alt(x)
    return x, sldj


# ----------------------------------------------------------------------------
# Deterministic parameter init
# ----------------------------------------------------------------------------
def init_conv(key, cin, cout):
    w = 0.05 * jax.random.normal(key, (3, 3, cin, cout), jnp.float32)
    b = jnp.zeros((cout,), jnp.float32)
    return (w, b)


def init_coupling(key, cin_st, mid, cout_st, c_scale, num_blocks):
    keys = jax.random.split(key, num_blocks + 2)
    convs = [init_conv(keys[0], cin_st, mid)]
    for i in range(num_blocks):
        convs.append(init_conv(keys[i + 1], mid, mid))
    convs.append(init_conv(keys[-1], mid, cout_st))
    # weight-normed Rescale initialized to ones -> identity scale
    return {'convs': convs, 'scale': jnp.ones((c_scale,), jnp.float32)}


def init_flow_params(key, scale_idx, num_scales, in_ch, mid_ch, num_blocks):
    is_last = (scale_idx == num_scales - 1)
    n_in = 4 if is_last else 3
    k_in, k_out, k_next = jax.random.split(key, 3)
    in_cp = [init_coupling(k, in_ch, mid_ch, 2 * in_ch, in_ch, num_blocks)
             for k in jax.random.split(k_in, n_in)]
    params = {'in_couplings': in_cp, 'out_couplings': None, 'next': None}
    if not is_last:
        half = 2 * in_ch
        params['out_couplings'] = [
            init_coupling(k, half, 2 * mid_ch, 4 * in_ch, half, num_blocks)
            for k in jax.random.split(k_out, 3)]
        params['next'] = init_flow_params(k_next, scale_idx + 1, num_scales,
                                          2 * in_ch, 2 * mid_ch, num_blocks)
    return params


# ----------------------------------------------------------------------------
if __name__ == "__main__":
    key = jax.random.PRNGKey(0)
    k_x, k_p = jax.random.split(key)

    B, C, H, W = 2, 4, 16, 16
    num_scales, mid_channels, num_blocks = 2, 8, 1

    x = jax.random.normal(k_x, (B, C, H, W), jnp.float32)
    sldj = jnp.zeros((B,), jnp.float32)

    params = init_flow_params(k_p, 0, num_scales, C, mid_channels, num_blocks)

    flow_fn = jax.jit(flow_forward)
    y, sldj_out = flow_fn(x, sldj, params)
    jax.block_until_ready((y, sldj_out))

    assert y.shape == (B, C, H, W)
    assert sldj_out.shape == (B,)
    print("KERNEL_OK")
</pallas_src>

<mosaic_0001>
module attributes {stable_mosaic.version = 11 : i64} {
  func.func @_fused_stage_kernel(%arg0: i32, %arg1: memref<10x256xf32, #tpu.memory_space<vmem>>, %arg2: memref<4x256xf32, #tpu.memory_space<vmem>>, %arg3: memref<8x72xf32, #tpu.memory_space<vmem>>, %arg4: memref<8x1xf32, #tpu.memory_space<vmem>>, %arg5: memref<8x72xf32, #tpu.memory_space<vmem>>, %arg6: memref<8x1xf32, #tpu.memory_space<vmem>>, %arg7: memref<8x72xf32, #tpu.memory_space<vmem>>, %arg8: memref<8x1xf32, #tpu.memory_space<vmem>>, %arg9: memref<4x1xf32, #tpu.memory_space<vmem>>, %arg10: memref<8x72xf32, #tpu.memory_space<vmem>>, %arg11: memref<8x1xf32, #tpu.memory_space<vmem>>, %arg12: memref<8x72xf32, #tpu.memory_space<vmem>>, %arg13: memref<8x1xf32, #tpu.memory_space<vmem>>, %arg14: memref<8x72xf32, #tpu.memory_space<vmem>>, %arg15: memref<8x1xf32, #tpu.memory_space<vmem>>, %arg16: memref<4x1xf32, #tpu.memory_space<vmem>>, %arg17: memref<8x72xf32, #tpu.memory_space<vmem>>, %arg18: memref<8x1xf32, #tpu.memory_space<vmem>>, %arg19: memref<8x72xf32, #tpu.memory_space<vmem>>, %arg20: memref<8x1xf32, #tpu.memory_space<vmem>>, %arg21: memref<8x72xf32, #tpu.memory_space<vmem>>, %arg22: memref<8x1xf32, #tpu.memory_space<vmem>>, %arg23: memref<4x1xf32, #tpu.memory_space<vmem>>, %arg24: memref<4x256xf32, #tpu.memory_space<vmem>>, %arg25: memref<1x256xf32, #tpu.memory_space<vmem>>, %arg26: memref<72x256xf32, #tpu.memory_space<vmem>>) attributes {dimension_semantics = [#tpu.dimension_semantics<parallel>], iteration_bounds = array<i64: 2>, scalar_prefetch = 0 : i64, scratch_operands = 1 : i64, tpu.core_type = #tpu.core_type<tc>, window_params = [{pipeline_mode = #tpu.pipeline_mode<synchronous>, transform_indices = @transform_0, window_bounds = array<i64: 10, 256>}, {transform_indices = @transform_1, window_bounds = array<i64: 4, 256>}, {pipeline_mode = #tpu.pipeline_mode<synchronous>, transform_indices = @transform_2, window_bounds = array<i64: 8, 72>}, {pipeline_mode = #tpu.pipeline_mode<synchronous>, transform_indices = @transform_3, window_bounds = array<i64: 8, 1>}, {pipeline_mode = #tpu.pipeline_mode<synchronous>, transform_indices = @transform_4, window_bounds = array<i64: 8, 72>}, {pipeline_mode = #tpu.pipeline_mode<synchronous>, transform_indices = @transform_5, window_bounds = array<i64: 8, 1>}, {pipeline_mode = #tpu.pipeline_mode<synchronous>, transform_indices = @transform_6, window_bounds = array<i64: 8, 72>}, {pipeline_mode = #tpu.pipeline_mode<synchronous>, transform_indices = @transform_7, window_bounds = array<i64: 8, 1>}, {pipeline_mode = #tpu.pipeline_mode<synchronous>, transform_indices = @transform_8, window_bounds = array<i64: 4, 1>}, {pipeline_mode = #tpu.pipeline_mode<synchronous>, transform_indices = @transform_9, window_bounds = array<i64: 8, 72>}, {pipeline_mode = #tpu.pipeline_mode<synchronous>, transform_indices = @transform_10, window_bounds = array<i64: 8, 1>}, {pipeline_mode = #tpu.pipeline_mode<synchronous>, transform_indices = @transform_11, window_bounds = array<i64: 8, 72>}, {pipeline_mode = #tpu.pipeline_mode<synchronous>, transform_indices = @transform_12, window_bounds = array<i64: 8, 1>}, {pipeline_mode = #tpu.pipeline_mode<synchronous>, transform_indices = @transform_13, window_bounds = array<i64: 8, 72>}, {pipeline_mode = #tpu.pipeline_mode<synchronous>, transform_indices = @transform_14, window_bounds = array<i64: 8, 1>}, {pipeline_mode = #tpu.pipeline_mode<synchronous>, transform_indices = @transform_15, window_bounds = array<i64: 4, 1>}, {pipeline_mode = #tpu.pipeline_mode<synchronous>, transform_indices = @transform_16, window_bounds = array<i64: 8, 72>}, {pipeline_mode = #tpu.pipeline_mode<synchronous>, transform_indices = @transform_17, window_bounds = array<i64: 8, 1>}, {pipeline_mode = #tpu.pipeline_mode<synchronous>, transform_indices = @transform_18, window_bounds = array<i64: 8, 72>}, {pipeline_mode = #tpu.pipeline_mode<synchronous>, transform_indices = @transform_19, window_bounds = array<i64: 8, 1>}, {pipeline_mode = #tpu.pipeline_mode<synchronous>, transform_indices = @transform_20, window_bounds = array<i64: 8, 72>}, {pipeline_mode = #tpu.pipeline_mode<synchronous>, transform_indices = @transform_21, window_bounds = array<i64: 8, 1>}, {pipeline_mode = #tpu.pipeline_mode<synchronous>, transform_indices = @transform_22, window_bounds = array<i64: 4, 1>}, {transform_indices = @transform_23, window_bounds = array<i64: 4, 256>}, {transform_indices = @transform_24, window_bounds = array<i64: 1, 256>}]} {
    %c0 = arith.constant 0 : index
    %c0_0 = arith.constant 0 : index
    %0 = vector.load %arg1[%c0, %c0_0] : memref<10x256xf32, #tpu.memory_space<vmem>>, vector<10x256xf32>
    %1 = vector.extract_strided_slice %0 {offsets = [0, 0], sizes = [1, 256], strides = [1, 1]} : vector<10x256xf32> to vector<1x256xf32>
    %2 = vector.extract_strided_slice %0 {offsets = [1, 0], sizes = [1, 256], strides = [1, 1]} : vector<10x256xf32> to vector<1x256xf32>
    %3 = vector.extract_strided_slice %0 {offsets = [2, 0], sizes = [1, 256], strides = [1, 1]} : vector<10x256xf32> to vector<1x256xf32>
    %4 = vector.extract_strided_slice %0 {offsets = [3, 0], sizes = [1, 256], strides = [1, 1]} : vector<10x256xf32> to vector<1x256xf32>
    %5 = vector.extract_strided_slice %0 {offsets = [4, 0], sizes = [1, 256], strides = [1, 1]} : vector<10x256xf32> to vector<1x256xf32>
    %6 = vector.extract_strided_slice %0 {offsets = [6, 0], sizes = [1, 256], strides = [1, 1]} : vector<10x256xf32> to vector<1x256xf32>
    %7 = vector.extract_strided_slice %0 {offsets = [7, 0], sizes = [1, 256], strides = [1, 1]} : vector<10x256xf32> to vector<1x256xf32>
    %8 = vector.extract_strided_slice %0 {offsets = [8, 0], sizes = [1, 256], strides = [1, 1]} : vector<10x256xf32> to vector<1x256xf32>
    %9 = vector.extract_strided_slice %0 {offsets = [9, 0], sizes = [1, 256], strides = [1, 1]} : vector<10x256xf32> to vector<1x256xf32>
    %c0_1 = arith.constant 0 : index
    %c0_2 = arith.constant 0 : index
    %10 = vector.load %arg2[%c0_1, %c0_2] : memref<4x256xf32, #tpu.memory_space<vmem>>, vector<4x256xf32>
    %cst = arith.constant 0.000000e+00 : f32
    %11 = vector.broadcast %cst : f32 to vector<1x256xf32>
    %cst_3 = arith.constant 1.000000e+00 : f32
    %12 = vector.broadcast %cst_3 : f32 to vector<1x256xf32>
    %13 = arith.subf %12, %1 : vector<1x256xf32>
    %14 = vector.broadcast %1 : vector<1x256xf32> to vector<4x256xf32>
    %15 = arith.mulf %10, %14 : vector<4x256xf32>
    %cst_4 = arith.constant 0.000000e+00 : f32
    %16 = vector.broadcast %cst_4 : f32 to vector<4x256xf32>
    %c17_i32 = arith.constant 17 : i32
    %17 = tpu.dynamic_rotate %15 by %c17_i32 dim 1 : vector<4x256xf32>, i32 -> vector<4x256xf32>
    %18 = vector.broadcast %2 : vector<1x256xf32> to vector<4x256xf32>
    %19 = arith.mulf %17, %18 : vector<4x256xf32>
    %20 = tpu.concatenate %19, %16 in 0 : vector<4x256xf32>, vector<4x256xf32> -> vector<8x256xf32>
    %c0_5 = arith.constant 0 : index
    %c0_6 = arith.constant 0 : index
    %21 = vector.load %arg26[%c0_5, %c0_6] : memref<72x256xf32, #tpu.memory_space<vmem>>, vector<8x256xf32>
    tpu.vector_store %arg26[%c0_5, %c0_6], %20 {strides = array<i32>} : memref<72x256xf32, #tpu.memory_space<vmem>>, vector<8x256xf32>,
    %c16_i32 = arith.constant 16 : i32
    %22 = tpu.dynamic_rotate %15 by %c16_i32 dim 1 : vector<4x256xf32>, i32 -> vector<4x256xf32>
    %23 = vector.broadcast %3 : vector<1x256xf32> to vector<4x256xf32>
    %24 = arith.mulf %22, %23 : vector<4x256xf32>
    %25 = tpu.concatenate %24, %16 in 0 : vector<4x256xf32>, vector<4x256xf32> -> vector<8x256xf32>
    %c8 = arith.constant 8 : index
    %c0_7 = arith.constant 0 : index
    %26 = vector.load %arg26[%c8, %c0_7] : memref<72x256xf32, #tpu.memory_space<vmem>>, vector<8x256xf32>
    tpu.vector_store %arg26[%c8, %c0_7], %25 {strides = array<i32>} : memref<72x256xf32, #tpu.memory_space<vmem>>, vector<8x256xf32>,
    %c15_i32 = arith.constant 15 : i32
    %27 = tpu.dynamic_rotate %15 by %c15_i32 dim 1 : vector<4x256xf32>, i32 -> vector<4x256xf32>
    %28 = vector.broadcast %4 : vector<1x256xf32> to vector<4x256xf32>
    %29 = arith.mulf %27, %28 : vector<4x256xf32>
    %30 = tpu.concatenate %29, %16 in 0 : vector<4x256xf32>, vector<4x256xf32> -> vector<8x256xf32>
    %c16 = arith.constant 16 : index
    %c0_8 = arith.constant 0 : index
    %31 = vector.load %arg26[%c16, %c0_8] : memref<72x256xf32, #tpu.memory_space<vmem>>, vector<8x256xf32>
    tpu.vector_store %arg26[%c16, %c0_8], %30 {strides = array<i32>} : memref<72x256xf32, #tpu.memory_space<vmem>>, vector<8x256xf32>,
    %c1_i32 = arith.constant 1 : i32
    %32 = tpu.dynamic_rotate %15 by %c1_i32 dim 1 : vector<4x256xf32>, i32 -> vector<4x256xf32>
    %33 = vector.broadcast %5 : vector<1x256xf32> to vector<4x256xf32>
    %34 = arith.mulf %32, %33 : vector<4x256xf32>
    %35 = tpu.concatenate %34, %16 in 0 : vector<4x256xf32>, vector<4x256xf32> -> vector<8x256xf32>
    %c24 = arith.constant 24 : index
    %c0_9 = arith.constant 0 : index
    %36 = vector.load %arg26[%c24, %c0_9] : memref<72x256xf32, #tpu.memory_space<vmem>>, vector<8x256xf32>
    tpu.vector_store %arg26[%c24, %c0_9], %35 {strides = array<i32>} : memref<72x256xf32, #tpu.memory_space<vmem>>, vector<8x256xf32>,
    %37 = tpu.concatenate %15, %16 in 0 : vector<4x256xf32>, vector<4x256xf32> -> vector<8x256xf32>
    %c32 = arith.constant 32 : index
    %c0_10 = arith.constant 0 : index
    %38 = vector.load %arg26[%c32, %c0_10] : memref<72x256xf32, #tpu.memory_space<vmem>>, vector<8x256xf32>
    tpu.vector_store %arg26[%c32, %c0_10], %37 {strides = array<i32>} : memref<72x256xf32, #tpu.memory_space<vmem>>, vector<8x256xf32>,
    %c255_i32 = arith.constant 255 : i32
    %39 = tpu.dynamic_rotate %15 by %c255_i32 dim 1 : vector<4x256xf32>, i32 -> vector<4x256xf32>
    %40 = vector.broadcast %6 : vector<1x256xf32> to vector<4x256xf32>
    %41 = arith.mulf %39, %40 : vector<4x256xf32>
    %42 = tpu.concatenate %41, %16 in 0 : vector<4x256xf32>, vector<4x256xf32> -> vector<8x256xf32>
    %c40 = arith.constant 40 : index
    %c0_11 = arith.constant 0 : index
    %43 = vector.load %arg26[%c40, %c0_11] : memref<72x256xf32, #tpu.memory_space<vmem>>, vector<8x256xf32>
    tpu.vector_store %arg26[%c40, %c0_11], %42 {strides = array<i32>} : memref<72x256xf32, #tpu.memory_space<vmem>>, vector<8x256xf32>,
    %c241_i32 = arith.constant 241 : i32
    %44 = tpu.dynamic_rotate %15 by %c241_i32 dim 1 : vector<4x256xf32>, i32 -> vector<4x256xf32>
    %45 = vector.broadcast %7 : vector<1x256xf32> to vector<4x256xf32>
    %46 = arith.mulf %44, %45 : vector<4x256xf32>
    %47 = tpu.concatenate %46, %16 in 0 : vector<4x256xf32>, vector<4x256xf32> -> vector<8x256xf32>
    %c48 = arith.constant 48 : index
    %c0_12 = arith.constant 0 : index
    %48 = vector.load %arg26[%c48, %c0_12] : memref<72x256xf32, #tpu.memory_space<vmem>>, vector<8x256xf32>
    tpu.vector_store %arg26[%c48, %c0_12], %47 {strides = array<i32>} : memref<72x256xf32, #tpu.memory_space<vmem>>, vector<8x256xf32>,
    %c240_i32 = arith.constant 240 : i32
    %49 = tpu.dynamic_rotate %15 by %c240_i32 dim 1 : vector<4x256xf32>, i32 -> vector<4x256xf32>
    %50 = vector.broadcast %8 : vector<1x256xf32> to vector<4x256xf32>
    %51 = arith.mulf %49, %50 : vector<4x256xf32>
    %52 = tpu.concatenate %51, %16 in 0 : vector<4x256xf32>, vector<4x256xf32> -> vector<8x256xf32>
    %c56 = arith.constant 56 : index
    %c0_13 = arith.constant 0 : index
    %53 = vector.load %arg26[%c56, %c0_13] : memref<72x256xf32, #tpu.memory_space<vmem>>, vector<8x256xf32>
    tpu.vector_store %arg26[%c56, %c0_13], %52 {strides = array<i32>} : memref<72x256xf32, #tpu.memory_space<vmem>>, vector<8x256xf32>,
    %c239_i32 = arith.constant 239 : i32
    %54 = tpu.dynamic_rotate %15 by %c239_i32 dim 1 : vector<4x256xf32>, i32 -> vector<4x256xf32>
    %55 = vector.broadcast %9 : vector<1x256xf32> to vector<4x256xf32>
    %56 = arith.mulf %54, %55 : vector<4x256xf32>
    %57 = tpu.concatenate %56, %16 in 0 : vector<4x256xf32>, vector<4x256xf32> -> vector<8x256xf32>
    %c64 = arith.constant 64 : index
    %c0_14 = arith.constant 0 : index
    %58 = vector.load %arg26[%c64, %c0_14] : memref<72x256xf32, #tpu.memory_space<vmem>>, vector<8x256xf32>
    tpu.vector_store %arg26[%c64, %c0_14], %57 {strides = array<i32>} : memref<72x256xf32, #tpu.memory_space<vmem>>, vector<8x256xf32>,
    %c0_15 = arith.constant 0 : index
    %c0_16 = arith.constant 0 : index
    %59 = vector.load %arg3[%c0_15, %c0_16] : memref<8x72xf32, #tpu.memory_space<vmem>>, vector<8x72xf32>
    %c0_17 = arith.constant 0 : index
    %c0_18 = arith.constant 0 : index
    %60 = vector.load %arg26[%c0_17, %c0_18] : memref<72x256xf32, #tpu.memory_space<vmem>>, vector<72x256xf32>
    %cst_19 = arith.constant dense<0.000000e+00> : vector<8x256xf32>
    %61 = tpu.matmul %59, %60, %cst_19 {dimension_numbers = #tpu.dot_dimension_numbers<[1], [0], [0], [1], [0, 0, 1, 1], [], []>} : vector<8x72xf32>, vector<72x256xf32>, vector<8x256xf32> -> vector<8x256xf32>
    %c0_20 = arith.constant 0 : index
    %c0_21 = arith.constant 0 : index
    %62 = vector.load %arg4[%c0_20, %c0_21] : memref<8x1xf32, #tpu.memory_space<vmem>>, vector<8x1xf32>
    %63 = vector.broadcast %62 : vector<8x1xf32> to vector<8x256xf32>
    %64 = arith.addf %61, %63 : vector<8x256xf32>
    %cst_22 = arith.constant 0.000000e+00 : f32
    %65 = vector.broadcast %cst_22 : f32 to vector<8x256xf32>
    %66 = arith.maximumf %64, %65 : vector<8x256xf32>
    %c17_i32_23 = arith.constant 17 : i32
    %67 = tpu.dynamic_rotate %66 by %c17_i32_23 dim 1 : vector<8x256xf32>, i32 -> vector<8x256xf32>
    %68 = vector.broadcast %2 : vector<1x256xf32> to vector<8x256xf32>
    %69 = arith.mulf %67, %68 : vector<8x256xf32>
    %c0_24 = arith.constant 0 : index
    %c0_25 = arith.constant 0 : index
    %70 = vector.load %arg26[%c0_24, %c0_25] : memref<72x256xf32, #tpu.memory_space<vmem>>, vector<8x256xf32>
    tpu.vector_store %arg26[%c0_24, %c0_25], %69 {strides = array<i32>} : memref<72x256xf32, #tpu.memory_space<vmem>>, vector<8x256xf32>,
    %c16_i32_26 = arith.constant 16 : i32
    %71 = tpu.dynamic_rotate %66 by %c16_i32_26 dim 1 : vector<8x256xf32>, i32 -> vector<8x256xf32>
    %72 = vector.broadcast %3 : vector<1x256xf32> to vector<8x256xf32>
    %73 = arith.mulf %71, %72 : vector<8x256xf32>
    %c8_27 = arith.constant 8 : index
    %c0_28 = arith.constant 0 : index
    %74 = vector.load %arg26[%c8_27, %c0_28] : memref<72x256xf32, #tpu.memory_space<vmem>>, vector<8x256xf32>
    tpu.vector_store %arg26[%c8_27, %c0_28], %73 {strides = array<i32>} : memref<72x256xf32, #tpu.memory_space<vmem>>, vector<8x256xf32>,
    %c15_i32_29 = arith.constant 15 : i32
    %75 = tpu.dynamic_rotate %66 by %c15_i32_29 dim 1 : vector<8x256xf32>, i32 -> vector<8x256xf32>
    %76 = vector.broadcast %4 : vector<1x256xf32> to vector<8x256xf32>
    %77 = arith.mulf %75, %76 : vector<8x256xf32>
    %c16_30 = arith.constant 16 : index
    %c0_31 = arith.constant 0 : index
    %78 = vector.load %arg26[%c16_30, %c0_31] : memref<72x256xf32, #tpu.memory_space<vmem>>, vector<8x256xf32>
    tpu.vector_store %arg26[%c16_30, %c0_31], %77 {strides = array<i32>} : memref<72x256xf32, #tpu.memory_space<vmem>>, vector<8x256xf32>,
    %c1_i32_32 = arith.constant 1 : i32
    %79 = tpu.dynamic_rotate %66 by %c1_i32_32 dim 1 : vector<8x256xf32>, i32 -> vector<8x256xf32>
    %80 = vector.broadcast %5 : vector<1x256xf32> to vector<8x256xf32>
    %81 = arith.mulf %79, %80 : vector<8x256xf32>
    %c24_33 = arith.constant 24 : index
    %c0_34 = arith.constant 0 : index
    %82 = vector.load %arg26[%c24_33, %c0_34] : memref<72x256xf32, #tpu.memory_space<vmem>>, vector<8x256xf32>
    tpu.vector_store %arg26[%c24_33, %c0_34], %81 {strides = array<i32>} : memref<72x256xf32, #tpu.memory_space<vmem>>, vector<8x256xf32>,
    %c32_35 = arith.constant 32 : index
    %c0_36 = arith.constant 0 : index
    %83 = vector.load %arg26[%c32_35, %c0_36] : memref<72x256xf32, #tpu.memory_space<vmem>>, vector<8x256xf32>
    tpu.vector_store %arg26[%c32_35, %c0_36], %66 {strides = array<i32>} : memref<72x256xf32, #tpu.memory_space<vmem>>, vector<8x256xf32>,
    %c255_i32_37 = arith.constant 255 : i32
    %84 = tpu.dynamic_rotate %66 by %c255_i32_37 dim 1 : vector<8x256xf32>, i32 -> vector<8x256xf32>
    %85 = vector.broadcast %6 : vector<1x256xf32> to vector<8x256xf32>
    %86 = arith.mulf %84, %85 : vector<8x256xf32>
    %c40_38 = arith.constant 40 : index
    %c0_39 = arith.constant 0 : index
    %87 = vector.load %arg26[%c40_38, %c0_39] : memref<72x256xf32, #tpu.memory_space<vmem>>, vector<8x256xf32>
    tpu.vector_store %arg26[%c40_38, %c0_39], %86 {strides = array<i32>} : memref<72x256xf32, #tpu.memory_space<vmem>>, vector<8x256xf32>,
    %c241_i32_40 = arith.constant 241 : i32
    %88 = tpu.dynamic_rotate %66 by %c241_i32_40 dim 1 : vector<8x256xf32>, i32 -> vector<8x256xf32>
    %89 = vector.broadcast %7 : vector<1x256xf32> to vector<8x256xf32>
    %90 = arith.mulf %88, %89 : vector<8x256xf32>
    %c48_41 = arith.constant 48 : index
    %c0_42 = arith.constant 0 : index
    %91 = vector.load %arg26[%c48_41, %c0_42] : memref<72x256xf32, #tpu.memory_space<vmem>>, vector<8x256xf32>
    tpu.vector_store %arg26[%c48_41, %c0_42], %90 {strides = array<i32>} : memref<72x256xf32, #tpu.memory_space<vmem>>, vector<8x256xf32>,
    %c240_i32_43 = arith.constant 240 : i32
    %92 = tpu.dynamic_rotate %66 by %c240_i32_43 dim 1 : vector<8x256xf32>, i32 -> vector<8x256xf32>
    %93 = vector.broadcast %8 : vector<1x256xf32> to vector<8x256xf32>
    %94 = arith.mulf %92, %93 : vector<8x256xf32>
    %c56_44 = arith.constant 56 : index
    %c0_45 = arith.constant 0 : index
    %95 = vector.load %arg26[%c56_44, %c0_45] : memref<72x256xf32, #tpu.memory_space<vmem>>, vector<8x256xf32>
    tpu.vector_store %arg26[%c56_44, %c0_45], %94 {strides = array<i32>} : memref<72x256xf32, #tpu.memory_space<vmem>>, vector<8x256xf32>,
    %c239_i32_46 = arith.constant 239 : i32
    %96 = tpu.dynamic_rotate %66 by %c239_i32_46 dim 1 : vector<8x256xf32>, i32 -> vector<8x256xf32>
    %97 = vector.broadcast %9 : vector<1x256xf32> to vector<8x256xf32>
    %98 = arith.mulf %96, %97 : vector<8x256xf32>
    %c64_47 = arith.constant 64 : index
    %c0_48 = arith.constant 0 : index
    %99 = vector.load %arg26[%c64_47, %c0_48] : memref<72x256xf32, #tpu.memory_space<vmem>>, vector<8x256xf32>
    tpu.vector_store %arg26[%c64_47, %c0_48], %98 {strides = array<i32>} : memref<72x256xf32, #tpu.memory_space<vmem>>, vector<8x256xf32>,
    %c0_49 = arith.constant 0 : index
    %c0_50 = arith.constant 0 : index
    %100 = vector.load %arg5[%c0_49, %c0_50] : memref<8x72xf32, #tpu.memory_space<vmem>>, vector<8x72xf32>
    %c0_51 = arith.constant 0 : index
    %c0_52 = arith.constant 0 : index
    %101 = vector.load %arg26[%c0_51, %c0_52] : memref<72x256xf32, #tpu.memory_space<vmem>>, vector<72x256xf32>
    %cst_53 = arith.constant dense<0.000000e+00> : vector<8x256xf32>
    %102 = tpu.matmul %100, %101, %cst_53 {dimension_numbers = #tpu.dot_dimension_numbers<[1], [0], [0], [1], [0, 0, 1, 1], [], []>} : vector<8x72xf32>, vector<72x256xf32>, vector<8x256xf32> -> vector<8x256xf32>
    %c0_54 = arith.constant 0 : index
    %c0_55 = arith.constant 0 : index
    %103 = vector.load %arg6[%c0_54, %c0_55] : memref<8x1xf32, #tpu.memory_space<vmem>>, vector<8x1xf32>
    %104 = vector.broadcast %103 : vector<8x1xf32> to vector<8x256xf32>
    %105 = arith.addf %102, %104 : vector<8x256xf32>
    %cst_56 = arith.constant 0.000000e+00 : f32
    %106 = vector.broadcast %cst_56 : f32 to vector<8x256xf32>
    %107 = arith.maximumf %105, %106 : vector<8x256xf32>
    %c17_i32_57 = arith.constant 17 : i32
    %108 = tpu.dynamic_rotate %107 by %c17_i32_57 dim 1 : vector<8x256xf32>, i32 -> vector<8x256xf32>
    %109 = vector.broadcast %2 : vector<1x256xf32> to vector<8x256xf32>
    %110 = arith.mulf %108, %109 : vector<8x256xf32>
    %c0_58 = arith.constant 0 : index
    %c0_59 = arith.constant 0 : index
    %111 = vector.load %arg26[%c0_58, %c0_59] : memref<72x256xf32, #tpu.memory_space<vmem>>, vector<8x256xf32>
    tpu.vector_store %arg26[%c0_58, %c0_59], %110 {strides = array<i32>} : memref<72x256xf32, #tpu.memory_space<vmem>>, vector<8x256xf32>,
    %c16_i32_60 = arith.constant 16 : i32
    %112 = tpu.dynamic_rotate %107 by %c16_i32_60 dim 1 : vector<8x256xf32>, i32 -> vector<8x256xf32>
    %113 = vector.broadcast %3 : vector<1x256xf32> to vector<8x256xf32>
    %114 = arith.mulf %112, %113 : vector<8x256xf32>
    %c8_61 = arith.constant 8 : index
    %c0_62 = arith.constant 0 : index
    %115 = vector.load %arg26[%c8_61, %c0_62] : memref<72x256xf32, #tpu.memory_space<vmem>>, vector<8x256xf32>
    tpu.vector_store %arg26[%c8_61, %c0_62], %114 {strides = array<i32>} : memref<72x256xf32, #tpu.memory_space<vmem>>, vector<8x256xf32>,
    %c15_i32_63 = arith.constant 15 : i32
    %116 = tpu.dynamic_rotate %107 by %c15_i32_63 dim 1 : vector<8x256xf32>, i32 -> vector<8x256xf32>
    %117 = vector.broadcast %4 : vector<1x256xf32> to vector<8x256xf32>
    %118 = arith.mulf %116, %117 : vector<8x256xf32>
    %c16_64 = arith.constant 16 : index
    %c0_65 = arith.constant 0 : index
    %119 = vector.load %arg26[%c16_64, %c0_65] : memref<72x256xf32, #tpu.memory_space<vmem>>, vector<8x256xf32>
    tpu.vector_store %arg26[%c16_64, %c0_65], %118 {strides = array<i32>} : memref<72x256xf32, #tpu.memory_space<vmem>>, vector<8x256xf32>,
    %c1_i32_66 = arith.constant 1 : i32
    %120 = tpu.dynamic_rotate %107 by %c1_i32_66 dim 1 : vector<8x256xf32>, i32 -> vector<8x256xf32>
    %121 = vector.broadcast %5 : vector<1x256xf32> to vector<8x256xf32>
    %122 = arith.mulf %120, %121 : vector<8x256xf32>
    %c24_67 = arith.constant 24 : index
    %c0_68 = arith.constant 0 : index
    %123 = vector.load %arg26[%c24_67, %c0_68] : memref<72x256xf32, #tpu.memory_space<vmem>>, vector<8x256xf32>
    tpu.vector_store %arg26[%c24_67, %c0_68], %122 {strides = array<i32>} : memref<72x256xf32, #tpu.memory_space<vmem>>, vector<8x256xf32>,
    %c32_69 = arith.constant 32 : index
    %c0_70 = arith.constant 0 : index
    %124 = vector.load %arg26[%c32_69, %c0_70] : memref<72x256xf32, #tpu.memory_space<vmem>>, vector<8x256xf32>
    tpu.vector_store %arg26[%c32_69, %c0_70], %107 {strides = array<i32>} : memref<72x256xf32, #tpu.memory_space<vmem>>, vector<8x256xf32>,
    %c255_i32_71 = arith.constant 255 : i32
    %125 = tpu.dynamic_rotate %107 by %c255_i32_71 dim 1 : vector<8x256xf32>, i32 -> vector<8x256xf32>
    %126 = vector.broadcast %6 : vector<1x256xf32> to vector<8x256xf32>
    %127 = arith.mulf %125, %126 : vector<8x256xf32>
    %c40_72 = arith.constant 40 : index
    %c0_73 = arith.constant 0 : index
    %128 = vector.load %arg26[%c40_72, %c0_73] : memref<72x256xf32, #tpu.memory_space<vmem>>, vector<8x256xf32>
    tpu.vector_store %arg26[%c40_72, %c0_73], %127 {strides = array<i32>} : memref<72x256xf32, #tpu.memory_space<vmem>>, vector<8x256xf32>,
    %c241_i32_74 = arith.constant 241 : i32
    %129 = tpu.dynamic_rotate %107 by %c241_i32_74 dim 1 : vector<8x256xf32>, i32 -> vector<8x256xf32>
    %130 = vector.broadcast %7 : vector<1x256xf32> to vector<8x256xf32>
    %131 = arith.mulf %129, %130 : vector<8x256xf32>
    %c48_75 = arith.constant 48 : index
    %c0_76 = arith.constant 0 : index
    %132 = vector.load %arg26[%c48_75, %c0_76] : memref<72x256xf32, #tpu.memory_space<vmem>>, vector<8x256xf32>
    tpu.vector_store %arg26[%c48_75, %c0_76], %131 {strides = array<i32>} : memref<72x256xf32, #tpu.memory_space<vmem>>, vector<8x256xf32>,
    %c240_i32_77 = arith.constant 240 : i32
    %133 = tpu.dynamic_rotate %107 by %c240_i32_77 dim 1 : vector<8x256xf32>, i32 -> vector<8x256xf32>
    %134 = vector.broadcast %8 : vector<1x256xf32> to vector<8x256xf32>
    %135 = arith.mulf %133, %134 : vector<8x256xf32>
    %c56_78 = arith.constant 56 : index
    %c0_79 = arith.constant 0 : index
    %136 = vector.load %arg26[%c56_78, %c0_79] : memref<72x256xf32, #tpu.memory_space<vmem>>, vector<8x256xf32>
    tpu.vector_store %arg26[%c56_78, %c0_79], %135 {strides = array<i32>} : memref<72x256xf32, #tpu.memory_space<vmem>>, vector<8x256xf32>,
    %c239_i32_80 = arith.constant 239 : i32
    %137 = tpu.dynamic_rotate %107 by %c239_i32_80 dim 1 : vector<8x256xf32>, i32 -> vector<8x256xf32>
    %138 = vector.broadcast %9 : vector<1x256xf32> to vector<8x256xf32>
    %139 = arith.mulf %137, %138 : vector<8x256xf32>
    %c64_81 = arith.constant 64 : index
    %c0_82 = arith.constant 0 : index
    %140 = vector.load %arg26[%c64_81, %c0_82] : memref<72x256xf32, #tpu.memory_space<vmem>>, vector<8x256xf32>
    tpu.vector_store %arg26[%c64_81, %c0_82], %139 {strides = array<i32>} : memref<72x256xf32, #tpu.memory_space<vmem>>, vector<8x256xf32>,
    %c0_83 = arith.constant 0 : index
    %c0_84 = arith.constant 0 : index
    %141 = vector.load %arg7[%c0_83, %c0_84] : memref<8x72xf32, #tpu.memory_space<vmem>>, vector<8x72xf32>
    %c0_85 = arith.constant 0 : index
    %c0_86 = arith.constant 0 : index
    %142 = vector.load %arg26[%c0_85, %c0_86] : memref<72x256xf32, #tpu.memory_space<vmem>>, vector<72x256xf32>
    %cst_87 = arith.constant dense<0.000000e+00> : vector<8x256xf32>
    %143 = tpu.matmul %141, %142, %cst_87 {dimension_numbers = #tpu.dot_dimension_numbers<[1], [0], [0], [1], [0, 0, 1, 1], [], []>} : vector<8x72xf32>, vector<72x256xf32>, vector<8x256xf32> -> vector<8x256xf32>
    %c0_88 = arith.constant 0 : index
    %c0_89 = arith.constant 0 : index
    %144 = vector.load %arg8[%c0_88, %c0_89] : memref<8x1xf32, #tpu.memory_space<vmem>>, vector<8x1xf32>
    %145 = vector.broadcast %144 : vector<8x1xf32> to vector<8x256xf32>
    %146 = arith.addf %143, %145 : vector<8x256xf32>
    %c0_90 = arith.constant 0 : index
    %c0_91 = arith.constant 0 : index
    %147 = vector.load %arg9[%c0_90, %c0_91] : memref<4x1xf32, #tpu.memory_space<vmem>>, vector<4x1xf32>
    %148 = vector.extract_strided_slice %146 {offsets = [0, 0], sizes = [4, 256], strides = [1, 1]} : vector<8x256xf32> to vector<4x256xf32>
    %149 = math.tanh %148 : vector<4x256xf32>
    %150 = vector.broadcast %147 : vector<4x1xf32> to vector<4x256xf32>
    %151 = arith.mulf %150, %149 : vector<4x256xf32>
    %152 = vector.extract_strided_slice %146 {offsets = [4, 0], sizes = [4, 256], strides = [1, 1]} : vector<8x256xf32> to vector<4x256xf32>
    %153 = vector.broadcast %13 : vector<1x256xf32> to vector<4x256xf32>
    %154 = arith.mulf %151, %153 : vector<4x256xf32>
    %155 = vector.broadcast %13 : vector<1x256xf32> to vector<4x256xf32>
    %156 = arith.mulf %152, %155 : vector<4x256xf32>
    %157 = arith.addf %10, %156 : vector<4x256xf32>
    %158 = math.exp %154 : vector<4x256xf32>
    %159 = arith.mulf %157, %158 : vector<4x256xf32>
    %cst_92 = arith.constant dense<0.000000e+00> : vector<256xf32>
    %160 = vector.multi_reduction <add>, %154, %cst_92 [0] : vector<4x256xf32> to vector<256xf32>
    %161 = vector.shape_cast %160 : vector<256xf32> to vector<1x256xf32>
    %162 = arith.addf %11, %161 : vector<1x256xf32>
    %cst_93 = arith.constant 1.000000e+00 : f32
    %163 = vector.broadcast %cst_93 : f32 to vector<1x256xf32>
    %164 = arith.subf %163, %1 : vector<1x256xf32>
    %cst_94 = arith.constant 1.000000e+00 : f32
    %165 = vector.broadcast %cst_94 : f32 to vector<1x256xf32>
    %166 = arith.subf %165, %164 : vector<1x256xf32>
    %167 = vector.broadcast %164 : vector<1x256xf32> to vector<4x256xf32>
    %168 = arith.mulf %159, %167 : vector<4x256xf32>
    %cst_95 = arith.constant 0.000000e+00 : f32
    %169 = vector.broadcast %cst_95 : f32 to vector<4x256xf32>
    %c17_i32_96 = arith.constant 17 : i32
    %170 = tpu.dynamic_rotate %168 by %c17_i32_96 dim 1 : vector<4x256xf32>, i32 -> vector<4x256xf32>
    %171 = vector.broadcast %2 : vector<1x256xf32> to vector<4x256xf32>
    %172 = arith.mulf %170, %171 : vector<4x256xf32>
    %173 = tpu.concatenate %172, %169 in 0 : vector<4x256xf32>, vector<4x256xf32> -> vector<8x256xf32>
    %c0_97 = arith.constant 0 : index
    %c0_98 = arith.constant 0 : index
    %174 = vector.load %arg26[%c0_97, %c0_98] : memref<72x256xf32, #tpu.memory_space<vmem>>, vector<8x256xf32>
    tpu.vector_store %arg26[%c0_97, %c0_98], %173 {strides = array<i32>} : memref<72x256xf32, #tpu.memory_space<vmem>>, vector<8x256xf32>,
    %c16_i32_99 = arith.constant 16 : i32
    %175 = tpu.dynamic_rotate %168 by %c16_i32_99 dim 1 : vector<4x256xf32>, i32 -> vector<4x256xf32>
    %176 = vector.broadcast %3 : vector<1x256xf32> to vector<4x256xf32>
    %177 = arith.mulf %175, %176 : vector<4x256xf32>
    %178 = tpu.concatenate %177, %169 in 0 : vector<4x256xf32>, vector<4x256xf32> -> vector<8x256xf32>
    %c8_100 = arith.constant 8 : index
    %c0_101 = arith.constant 0 : index
    %179 = vector.load %arg26[%c8_100, %c0_101] : memref<72x256xf32, #tpu.memory_space<vmem>>, vector<8x256xf32>
    tpu.vector_store %arg26[%c8_100, %c0_101], %178 {strides = array<i32>} : memref<72x256xf32, #tpu.memory_space<vmem>>, vector<8x256xf32>,
    %c15_i32_102 = arith.constant 15 : i32
    %180 = tpu.dynamic_rotate %168 by %c15_i32_102 dim 1 : vector<4x256xf32>, i32 -> vector<4x256xf32>
    %181 = vector.broadcast %4 : vector<1x256xf32> to vector<4x256xf32>
    %182 = arith.mulf %180, %181 : vector<4x256xf32>
    %183 = tpu.concatenate %182, %169 in 0 : vector<4x256xf32>, vector<4x256xf32> -> vector<8x256xf32>
    %c16_103 = arith.constant 16 : index
    %c0_104 = arith.constant 0 : index
    %184 = vector.load %arg26[%c16_103, %c0_104] : memref<72x256xf32, #tpu.memory_space<vmem>>, vector<8x256xf32>
    tpu.vector_store %arg26[%c16_103, %c0_104], %183 {strides = array<i32>} : memref<72x256xf32, #tpu.memory_space<vmem>>, vector<8x256xf32>,
    %c1_i32_105 = arith.constant 1 : i32
    %185 = tpu.dynamic_rotate %168 by %c1_i32_105 dim 1 : vector<4x256xf32>, i32 -> vector<4x256xf32>
    %186 = vector.broadcast %5 : vector<1x256xf32> to vector<4x256xf32>
    %187 = arith.mulf %185, %186 : vector<4x256xf32>
    %188 = tpu.concatenate %187, %169 in 0 : vector<4x256xf32>, vector<4x256xf32> -> vector<8x256xf32>
    %c24_106 = arith.constant 24 : index
    %c0_107 = arith.constant 0 : index
    %189 = vector.load %arg26[%c24_106, %c0_107] : memref<72x256xf32, #tpu.memory_space<vmem>>, vector<8x256xf32>
    tpu.vector_store %arg26[%c24_106, %c0_107], %188 {strides = array<i32>} : memref<72x256xf32, #tpu.memory_space<vmem>>, vector<8x256xf32>,
    %190 = tpu.concatenate %168, %169 in 0 : vector<4x256xf32>, vector<4x256xf32> -> vector<8x256xf32>
    %c32_108 = arith.constant 32 : index
    %c0_109 = arith.constant 0 : index
    %191 = vector.load %arg26[%c32_108, %c0_109] : memref<72x256xf32, #tpu.memory_space<vmem>>, vector<8x256xf32>
    tpu.vector_store %arg26[%c32_108, %c0_109], %190 {strides = array<i32>} : memref<72x256xf32, #tpu.memory_space<vmem>>, vector<8x256xf32>,
    %c255_i32_110 = arith.constant 255 : i32
    %192 = tpu.dynamic_rotate %168 by %c255_i32_110 dim 1 : vector<4x256xf32>, i32 -> vector<4x256xf32>
    %193 = vector.broadcast %6 : vector<1x256xf32> to vector<4x256xf32>
    %194 = arith.mulf %192, %193 : vector<4x256xf32>
    %195 = tpu.concatenate %194, %169 in 0 : vector<4x256xf32>, vector<4x256xf32> -> vector<8x256xf32>
    %c40_111 = arith.constant 40 : index
    %c0_112 = arith.constant 0 : index
    %196 = vector.load %arg26[%c40_111, %c0_112] : memref<72x256xf32, #tpu.memory_space<vmem>>, vector<8x256xf32>
    tpu.vector_store %arg26[%c40_111, %c0_112], %195 {strides = array<i32>} : memref<72x256xf32, #tpu.memory_space<vmem>>, vector<8x256xf32>,
    %c241_i32_113 = arith.constant 241 : i32
    %197 = tpu.dynamic_rotate %168 by %c241_i32_113 dim 1 : vector<4x256xf32>, i32 -> vector<4x256xf32>
    %198 = vector.broadcast %7 : vector<1x256xf32> to vector<4x256xf32>
    %199 = arith.mulf %197, %198 : vector<4x256xf32>
    %200 = tpu.concatenate %199, %169 in 0 : vector<4x256xf32>, vector<4x256xf32> -> vector<8x256xf32>
    %c48_114 = arith.constant 48 : index
    %c0_115 = arith.constant 0 : index
    %201 = vector.load %arg26[%c48_114, %c0_115] : memref<72x256xf32, #tpu.memory_space<vmem>>, vector<8x256xf32>
    tpu.vector_store %arg26[%c48_114, %c0_115], %200 {strides = array<i32>} : memref<72x256xf32, #tpu.memory_space<vmem>>, vector<8x256xf32>,
    %c240_i32_116 = arith.constant 240 : i32
    %202 = tpu.dynamic_rotate %168 by %c240_i32_116 dim 1 : vector<4x256xf32>, i32 -> vector<4x256xf32>
    %203 = vector.broadcast %8 : vector<1x256xf32> to vector<4x256xf32>
    %204 = arith.mulf %202, %203 : vector<4x256xf32>
    %205 = tpu.concatenate %204, %169 in 0 : vector<4x256xf32>, vector<4x256xf32> -> vector<8x256xf32>
    %c56_117 = arith.constant 56 : index
    %c0_118 = arith.constant 0 : index
    %206 = vector.load %arg26[%c56_117, %c0_118] : memref<72x256xf32, #tpu.memory_space<vmem>>, vector<8x256xf32>
    tpu.vector_store %arg26[%c56_117, %c0_118], %205 {strides = array<i32>} : memref<72x256xf32, #tpu.memory_space<vmem>>, vector<8x256xf32>,
    %c239_i32_119 = arith.constant 239 : i32
    %207 = tpu.dynamic_rotate %168 by %c239_i32_119 dim 1 : vector<4x256xf32>, i32 -> vector<4x256xf32>
    %208 = vector.broadcast %9 : vector<1x256xf32> to vector<4x256xf32>
    %209 = arith.mulf %207, %208 : vector<4x256xf32>
    %210 = tpu.concatenate %209, %169 in 0 : vector<4x256xf32>, vector<4x256xf32> -> vector<8x256xf32>
    %c64_120 = arith.constant 64 : index
    %c0_121 = arith.constant 0 : index
    %211 = vector.load %arg26[%c64_120, %c0_121] : memref<72x256xf32, #tpu.memory_space<vmem>>, vector<8x256xf32>
    tpu.vector_store %arg26[%c64_120, %c0_121], %210 {strides = array<i32>} : memref<72x256xf32, #tpu.memory_space<vmem>>, vector<8x256xf32>,
    %c0_122 = arith.constant 0 : index
    %c0_123 = arith.constant 0 : index
    %212 = vector.load %arg10[%c0_122, %c0_123] : memref<8x72xf32, #tpu.memory_space<vmem>>, vector<8x72xf32>
    %c0_124 = arith.constant 0 : index
    %c0_125 = arith.constant 0 : index
    %213 = vector.load %arg26[%c0_124, %c0_125] : memref<72x256xf32, #tpu.memory_space<vmem>>, vector<72x256xf32>
    %cst_126 = arith.constant dense<0.000000e+00> : vector<8x256xf32>
    %214 = tpu.matmul %212, %213, %cst_126 {dimension_numbers = #tpu.dot_dimension_numbers<[1], [0], [0], [1], [0, 0, 1, 1], [], []>} : vector<8x72xf32>, vector<72x256xf32>, vector<8x256xf32> -> vector<8x256xf32>
    %c0_127 = arith.constant 0 : index
    %c0_128 = arith.constant 0 : index
    %215 = vector.load %arg11[%c0_127, %c0_128] : memref<8x1xf32, #tpu.memory_space<vmem>>, vector<8x1xf32>
    %216 = vector.broadcast %215 : vector<8x1xf32> to vector<8x256xf32>
    %217 = arith.addf %214, %216 : vector<8x256xf32>
    %cst_129 = arith.constant 0.000000e+00 : f32
    %218 = vector.broadcast %cst_129 : f32 to vector<8x256xf32>
    %219 = arith.maximumf %217, %218 : vector<8x256xf32>
    %c17_i32_130 = arith.constant 17 : i32
    %220 = tpu.dynamic_rotate %219 by %c17_i32_130 dim 1 : vector<8x256xf32>, i32 -> vector<8x256xf32>
    %221 = vector.broadcast %2 : vector<1x256xf32> to vector<8x256xf32>
    %222 = arith.mulf %220, %221 : vector<8x256xf32>
    %c0_131 = arith.constant 0 : index
    %c0_132 = arith.constant 0 : index
    %223 = vector.load %arg26[%c0_131, %c0_132] : memref<72x256xf32, #tpu.memory_space<vmem>>, vector<8x256xf32>
    tpu.vector_store %arg26[%c0_131, %c0_132], %222 {strides = array<i32>} : memref<72x256xf32, #tpu.memory_space<vmem>>, vector<8x256xf32>,
    %c16_i32_133 = arith.constant 16 : i32
    %224 = tpu.dynamic_rotate %219 by %c16_i32_133 dim 1 : vector<8x256xf32>, i32 -> vector<8x256xf32>
    %225 = vector.broadcast %3 : vector<1x256xf32> to vector<8x256xf32>
    %226 = arith.mulf %224, %225 : vector<8x256xf32>
    %c8_134 = arith.constant 8 : index
    %c0_135 = arith.constant 0 : index
    %227 = vector.load %arg26[%c8_134, %c0_135] : memref<72x256xf32, #tpu.memory_space<vmem>>, vector<8x256xf32>
    tpu.vector_store %arg26[%c8_134, %c0_135], %226 {strides = array<i32>} : memref<72x256xf32, #tpu.memory_space<vmem>>, vector<8x256xf32>,
    %c15_i32_136 = arith.constant 15 : i32
    %228 = tpu.dynamic_rotate %219 by %c15_i32_136 dim 1 : vector<8x256xf32>, i32 -> vector<8x256xf32>
    %229 = vector.broadcast %4 : vector<1x256xf32> to vector<8x256xf32>
    %230 = arith.mulf %228, %229 : vector<8x256xf32>
    %c16_137 = arith.constant 16 : index
    %c0_138 = arith.constant 0 : index
    %231 = vector.load %arg26[%c16_137, %c0_138] : memref<72x256xf32, #tpu.memory_space<vmem>>, vector<8x256xf32>
    tpu.vector_store %arg26[%c16_137, %c0_138], %230 {strides = array<i32>} : memref<72x256xf32, #tpu.memory_space<vmem>>, vector<8x256xf32>,
    %c1_i32_139 = arith.constant 1 : i32
    %232 = tpu.dynamic_rotate %219 by %c1_i32_139 dim 1 : vector<8x256xf32>, i32 -> vector<8x256xf32>
    %233 = vector.broadcast %5 : vector<1x256xf32> to vector<8x256xf32>
    %234 = arith.mulf %232, %233 : vector<8x256xf32>
    %c24_140 = arith.constant 24 : index
    %c0_141 = arith.constant 0 : index
    %235 = vector.load %arg26[%c24_140, %c0_141] : memref<72x256xf32, #tpu.memory_space<vmem>>, vector<8x256xf32>
    tpu.vector_store %arg26[%c24_140, %c0_141], %234 {strides = array<i32>} : memref<72x256xf32, #tpu.memory_space<vmem>>, vector<8x256xf32>,
    %c32_142 = arith.constant 32 : index
    %c0_143 = arith.constant 0 : index
    %236 = vector.load %arg26[%c32_142, %c0_143] : memref<72x256xf32, #tpu.memory_space<vmem>>, vector<8x256xf32>
    tpu.vector_store %arg26[%c32_142, %c0_143], %219 {strides = array<i32>} : memref<72x256xf32, #tpu.memory_space<vmem>>, vector<8x256xf32>,
    %c255_i32_144 = arith.constant 255 : i32
    %237 = tpu.dynamic_rotate %219 by %c255_i32_144 dim 1 : vector<8x256xf32>, i32 -> vector<8x256xf32>
    %238 = vector.broadcast %6 : vector<1x256xf32> to vector<8x256xf32>
    %239 = arith.mulf %237, %238 : vector<8x256xf32>
    %c40_145 = arith.constant 40 : index
    %c0_146 = arith.constant 0 : index
    %240 = vector.load %arg26[%c40_145, %c0_146] : memref<72x256xf32, #tpu.memory_space<vmem>>, vector<8x256xf32>
    tpu.vector_store %arg26[%c40_145, %c0_146], %239 {strides = array<i32>} : memref<72x256xf32, #tpu.memory_space<vmem>>, vector<8x256xf32>,
    %c241_i32_147 = arith.constant 241 : i32
    %241 = tpu.dynamic_rotate %219 by %c241_i32_147 dim 1 : vector<8x256xf32>, i32 -> vector<8x256xf32>
    %242 = vector.broadcast %7 : vector<1x256xf32> to vector<8x256xf32>
    %243 = arith.mulf %241, %242 : vector<8x256xf32>
    %c48_148 = arith.constant 48 : index
    %c0_149 = arith.constant 0 : index
    %244 = vector.load %arg26[%c48_148, %c0_149] : memref<72x256xf32, #tpu.memory_space<vmem>>, vector<8x256xf32>
    tpu.vector_store %arg26[%c48_148, %c0_149], %243 {strides = array<i32>} : memref<72x256xf32, #tpu.memory_space<vmem>>, vector<8x256xf32>,
    %c240_i32_150 = arith.constant 240 : i32
    %245 = tpu.dynamic_rotate %219 by %c240_i32_150 dim 1 : vector<8x256xf32>, i32 -> vector<8x256xf32>
    %246 = vector.broadcast %8 : vector<1x256xf32> to vector<8x256xf32>
    %247 = arith.mulf %245, %246 : vector<8x256xf32>
    %c56_151 = arith.constant 56 : index
    %c0_152 = arith.constant 0 : index
    %248 = vector.load %arg26[%c56_151, %c0_152] : memref<72x256xf32, #tpu.memory_space<vmem>>, vector<8x256xf32>
    tpu.vector_store %arg26[%c56_151, %c0_152], %247 {strides = array<i32>} : memref<72x256xf32, #tpu.memory_space<vmem>>, vector<8x256xf32>,
    %c239_i32_153 = arith.constant 239 : i32
    %249 = tpu.dynamic_rotate %219 by %c239_i32_153 dim 1 : vector<8x256xf32>, i32 -> vector<8x256xf32>
    %250 = vector.broadcast %9 : vector<1x256xf32> to vector<8x256xf32>
    %251 = arith.mulf %249, %250 : vector<8x256xf32>
    %c64_154 = arith.constant 64 : index
    %c0_155 = arith.constant 0 : index
    %252 = vector.load %arg26[%c64_154, %c0_155] : memref<72x256xf32, #tpu.memory_space<vmem>>, vector<8x256xf32>
    tpu.vector_store %arg26[%c64_154, %c0_155], %251 {strides = array<i32>} : memref<72x256xf32, #tpu.memory_space<vmem>>, vector<8x256xf32>,
    %c0_156 = arith.constant 0 : index
    %c0_157 = arith.constant 0 : index
    %253 = vector.load %arg12[%c0_156, %c0_157] : memref<8x72xf32, #tpu.memory_space<vmem>>, vector<8x72xf32>
    %c0_158 = arith.constant 0 : index
    %c0_159 = arith.constant 0 : index
    %254 = vector.load %arg26[%c0_158, %c0_159] : memref<72x256xf32, #tpu.memory_space<vmem>>, vector<72x256xf32>
    %cst_160 = arith.constant dense<0.000000e+00> : vector<8x256xf32>
    %255 = tpu.matmul %253, %254, %cst_160 {dimension_numbers = #tpu.dot_dimension_numbers<[1], [0], [0], [1], [0, 0, 1, 1], [], []>} : vector<8x72xf32>, vector<72x256xf32>, vector<8x256xf32> -> vector<8x256xf32>
    %c0_161 = arith.constant 0 : index
    %c0_162 = arith.constant 0 : index
    %256 = vector.load %arg13[%c0_161, %c0_162] : memref<8x1xf32, #tpu.memory_space<vmem>>, vector<8x1xf32>
    %257 = vector.broadcast %256 : vector<8x1xf32> to vector<8x256xf32>
    %258 = arith.addf %255, %257 : vector<8x256xf32>
    %cst_163 = arith.constant 0.000000e+00 : f32
    %259 = vector.broadcast %cst_163 : f32 to vector<8x256xf32>
    %260 = arith.maximumf %258, %259 : vector<8x256xf32>
    %c17_i32_164 = arith.constant 17 : i32
    %261 = tpu.dynamic_rotate %260 by %c17_i32_164 dim 1 : vector<8x256xf32>, i32 -> vector<8x256xf32>
    %262 = vector.broadcast %2 : vector<1x256xf32> to vector<8x256xf32>
    %263 = arith.mulf %261, %262 : vector<8x256xf32>
    %c0_165 = arith.constant 0 : index
    %c0_166 = arith.constant 0 : index
    %264 = vector.load %arg26[%c0_165, %c0_166] : memref<72x256xf32, #tpu.memory_space<vmem>>, vector<8x256xf32>
    tpu.vector_store %arg26[%c0_165, %c0_166], %263 {strides = array<i32>} : memref<72x256xf32, #tpu.memory_space<vmem>>, vector<8x256xf32>,
    %c16_i32_167 = arith.constant 16 : i32
    %265 = tpu.dynamic_rotate %260 by %c16_i32_167 dim 1 : vector<8x256xf32>, i32 -> vector<8x256xf32>
    %266 = vector.broadcast %3 : vector<1x256xf32> to vector<8x256xf32>
    %267 = arith.mulf %265, %266 : vector<8x256xf32>
    %c8_168 = arith.constant 8 : index
    %c0_169 = arith.constant 0 : index
    %268 = vector.load %arg26[%c8_168, %c0_169] : memref<72x256xf32, #tpu.memory_space<vmem>>, vector<8x256xf32>
    tpu.vector_store %arg26[%c8_168, %c0_169], %267 {strides = array<i32>} : memref<72x256xf32, #tpu.memory_space<vmem>>, vector<8x256xf32>,
    %c15_i32_170 = arith.constant 15 : i32
    %269 = tpu.dynamic_rotate %260 by %c15_i32_170 dim 1 : vector<8x256xf32>, i32 -> vector<8x256xf32>
    %270 = vector.broadcast %4 : vector<1x256xf32> to vector<8x256xf32>
    %271 = arith.mulf %269, %270 : vector<8x256xf32>
    %c16_171 = arith.constant 16 : index
    %c0_172 = arith.constant 0 : index
    %272 = vector.load %arg26[%c16_171, %c0_172] : memref<72x256xf32, #tpu.memory_space<vmem>>, vector<8x256xf32>
    tpu.vector_store %arg26[%c16_171, %c0_172], %271 {strides = array<i32>} : memref<72x256xf32, #tpu.memory_space<vmem>>, vector<8x256xf32>,
    %c1_i32_173 = arith.constant 1 : i32
    %273 = tpu.dynamic_rotate %260 by %c1_i32_173 dim 1 : vector<8x256xf32>, i32 -> vector<8x256xf32>
    %274 = vector.broadcast %5 : vector<1x256xf32> to vector<8x256xf32>
    %275 = arith.mulf %273, %274 : vector<8x256xf32>
    %c24_174 = arith.constant 24 : index
    %c0_175 = arith.constant 0 : index
    %276 = vector.load %arg26[%c24_174, %c0_175] : memref<72x256xf32, #tpu.memory_space<vmem>>, vector<8x256xf32>
    tpu.vector_store %arg26[%c24_174, %c0_175], %275 {strides = array<i32>} : memref<72x256xf32, #tpu.memory_space<vmem>>, vector<8x256xf32>,
    %c32_176 = arith.constant 32 : index
    %c0_177 = arith.constant 0 : index
    %277 = vector.load %arg26[%c32_176, %c0_177] : memref<72x256xf32, #tpu.memory_space<vmem>>, vector<8x256xf32>
    tpu.vector_store %arg26[%c32_176, %c0_177], %260 {strides = array<i32>} : memref<72x256xf32, #tpu.memory_space<vmem>>, vector<8x256xf32>,
    %c255_i32_178 = arith.constant 255 : i32
    %278 = tpu.dynamic_rotate %260 by %c255_i32_178 dim 1 : vector<8x256xf32>, i32 -> vector<8x256xf32>
    %279 = vector.broadcast %6 : vector<1x256xf32> to vector<8x256xf32>
    %280 = arith.mulf %278, %279 : vector<8x256xf32>
    %c40_179 = arith.constant 40 : index
    %c0_180 = arith.constant 0 : index
    %281 = vector.load %arg26[%c40_179, %c0_180] : memref<72x256xf32, #tpu.memory_space<vmem>>, vector<8x256xf32>
    tpu.vector_store %arg26[%c40_179, %c0_180], %280 {strides = array<i32>} : memref<72x256xf32, #tpu.memory_space<vmem>>, vector<8x256xf32>,
    %c241_i32_181 = arith.constant 241 : i32
    %282 = tpu.dynamic_rotate %260 by %c241_i32_181 dim 1 : vector<8x256xf32>, i32 -> vector<8x256xf32>
    %283 = vector.broadcast %7 : vector<1x256xf32> to vector<8x256xf32>
    %284 = arith.mulf %282, %283 : vector<8x256xf32>
    %c48_182 = arith.constant 48 : index
    %c0_183 = arith.constant 0 : index
    %285 = vector.load %arg26[%c48_182, %c0_183] : memref<72x256xf32, #tpu.memory_space<vmem>>, vector<8x256xf32>
    tpu.vector_store %arg26[%c48_182, %c0_183], %284 {strides = array<i32>} : memref<72x256xf32, #tpu.memory_space<vmem>>, vector<8x256xf32>,
    %c240_i32_184 = arith.constant 240 : i32
    %286 = tpu.dynamic_rotate %260 by %c240_i32_184 dim 1 : vector<8x256xf32>, i32 -> vector<8x256xf32>
    %287 = vector.broadcast %8 : vector<1x256xf32> to vector<8x256xf32>
    %288 = arith.mulf %286, %287 : vector<8x256xf32>
    %c56_185 = arith.constant 56 : index
    %c0_186 = arith.constant 0 : index
    %289 = vector.load %arg26[%c56_185, %c0_186] : memref<72x256xf32, #tpu.memory_space<vmem>>, vector<8x256xf32>
    tpu.vector_store %arg26[%c56_185, %c0_186], %288 {strides = array<i32>} : memref<72x256xf32, #tpu.memory_space<vmem>>, vector<8x256xf32>,
    %c239_i32_187 = arith.constant 239 : i32
    %290 = tpu.dynamic_rotate %260 by %c239_i32_187 dim 1 : vector<8x256xf32>, i32 -> vector<8x256xf32>
    %291 = vector.broadcast %9 : vector<1x256xf32> to vector<8x256xf32>
    %292 = arith.mulf %290, %291 : vector<8x256xf32>
    %c64_188 = arith.constant 64 : index
    %c0_189 = arith.constant 0 : index
    %293 = vector.load %arg26[%c64_188, %c0_189] : memref<72x256xf32, #tpu.memory_space<vmem>>, vector<8x256xf32>
    tpu.vector_store %arg26[%c64_188, %c0_189], %292 {strides = array<i32>} : memref<72x256xf32, #tpu.memory_space<vmem>>, vector<8x256xf32>,
    %c0_190 = arith.constant 0 : index
    %c0_191 = arith.constant 0 : index
    %294 = vector.load %arg14[%c0_190, %c0_191] : memref<8x72xf32, #tpu.memory_space<vmem>>, vector<8x72xf32>
    %c0_192 = arith.constant 0 : index
    %c0_193 = arith.constant 0 : index
    %295 = vector.load %arg26[%c0_192, %c0_193] : memref<72x256xf32, #tpu.memory_space<vmem>>, vector<72x256xf32>
    %cst_194 = arith.constant dense<0.000000e+00> : vector<8x256xf32>
    %296 = tpu.matmul %294, %295, %cst_194 {dimension_numbers = #tpu.dot_dimension_numbers<[1], [0], [0], [1], [0, 0, 1, 1], [], []>} : vector<8x72xf32>, vector<72x256xf32>, vector<8x256xf32> -> vector<8x256xf32>
    %c0_195 = arith.constant 0 : index
    %c0_196 = arith.constant 0 : index
    %297 = vector.load %arg15[%c0_195, %c0_196] : memref<8x1xf32, #tpu.memory_space<vmem>>, vector<8x1xf32>
    %298 = vector.broadcast %297 : vector<8x1xf32> to vector<8x256xf32>
    %299 = arith.addf %296, %298 : vector<8x256xf32>
    %c0_197 = arith.constant 0 : index
    %c0_198 = arith.constant 0 : index
    %300 = vector.load %arg16[%c0_197, %c0_198] : memref<4x1xf32, #tpu.memory_space<vmem>>, vector<4x1xf32>
    %301 = vector.extract_strided_slice %299 {offsets = [0, 0], sizes = [4, 256], strides = [1, 1]} : vector<8x256xf32> to vector<4x256xf32>
    %302 = math.tanh %301 : vector<4x256xf32>
    %303 = vector.broadcast %300 : vector<4x1xf32> to vector<4x256xf32>
    %304 = arith.mulf %303, %302 : vector<4x256xf32>
    %305 = vector.extract_strided_slice %299 {offsets = [4, 0], sizes = [4, 256], strides = [1, 1]} : vector<8x256xf32> to vector<4x256xf32>
    %306 = vector.broadcast %166 : vector<1x256xf32> to vector<4x256xf32>
    %307 = arith.mulf %304, %306 : vector<4x256xf32>
    %308 = vector.broadcast %166 : vector<1x256xf32> to vector<4x256xf32>
    %309 = arith.mulf %305, %308 : vector<4x256xf32>
    %310 = arith.addf %159, %309 : vector<4x256xf32>
    %311 = math.exp %307 : vector<4x256xf32>
    %312 = arith.mulf %310, %311 : vector<4x256xf32>
    %cst_199 = arith.constant dense<0.000000e+00> : vector<256xf32>
    %313 = vector.multi_reduction <add>, %307, %cst_199 [0] : vector<4x256xf32> to vector<256xf32>
    %314 = vector.shape_cast %313 : vector<256xf32> to vector<1x256xf32>
    %315 = arith.addf %162, %314 : vector<1x256xf32>
    %cst_200 = arith.constant 1.000000e+00 : f32
    %316 = vector.broadcast %cst_200 : f32 to vector<1x256xf32>
    %317 = arith.subf %316, %1 : vector<1x256xf32>
    %318 = vector.broadcast %1 : vector<1x256xf32> to vector<4x256xf32>
    %319 = arith.mulf %312, %318 : vector<4x256xf32>
    %cst_201 = arith.constant 0.000000e+00 : f32
    %320 = vector.broadcast %cst_201 : f32 to vector<4x256xf32>
    %c17_i32_202 = arith.constant 17 : i32
    %321 = tpu.dynamic_rotate %319 by %c17_i32_202 dim 1 : vector<4x256xf32>, i32 -> vector<4x256xf32>
    %322 = vector.broadcast %2 : vector<1x256xf32> to vector<4x256xf32>
    %323 = arith.mulf %321, %322 : vector<4x256xf32>
    %324 = tpu.concatenate %323, %320 in 0 : vector<4x256xf32>, vector<4x256xf32> -> vector<8x256xf32>
    %c0_203 = arith.constant 0 : index
    %c0_204 = arith.constant 0 : index
    %325 = vector.load %arg26[%c0_203, %c0_204] : memref<72x256xf32, #tpu.memory_space<vmem>>, vector<8x256xf32>
    tpu.vector_store %arg26[%c0_203, %c0_204], %324 {strides = array<i32>} : memref<72x256xf32, #tpu.memory_space<vmem>>, vector<8x256xf32>,
    %c16_i32_205 = arith.constant 16 : i32
    %326 = tpu.dynamic_rotate %319 by %c16_i32_205 dim 1 : vector<4x256xf32>, i32 -> vector<4x256xf32>
    %327 = vector.broadcast %3 : vector<1x256xf32> to vector<4x256xf32>
    %328 = arith.mulf %326, %327 : vector<4x256xf32>
    %329 = tpu.concatenate %328, %320 in 0 : vector<4x256xf32>, vector<4x256xf32> -> vector<8x256xf32>
    %c8_206 = arith.constant 8 : index
    %c0_207 = arith.constant 0 : index
    %330 = vector.load %arg26[%c8_206, %c0_207] : memref<72x256xf32, #tpu.memory_space<vmem>>, vector<8x256xf32>
    tpu.vector_store %arg26[%c8_206, %c0_207], %329 {strides = array<i32>} : memref<72x256xf32, #tpu.memory_space<vmem>>, vector<8x256xf32>,
    %c15_i32_208 = arith.constant 15 : i32
    %331 = tpu.dynamic_rotate %319 by %c15_i32_208 dim 1 : vector<4x256xf32>, i32 -> vector<4x256xf32>
    %332 = vector.broadcast %4 : vector<1x256xf32> to vector<4x256xf32>
    %333 = arith.mulf %331, %332 : vector<4x256xf32>
    %334 = tpu.concatenate %333, %320 in 0 : vector<4x256xf32>, vector<4x256xf32> -> vector<8x256xf32>
    %c16_209 = arith.constant 16 : index
    %c0_210 = arith.constant 0 : index
    %335 = vector.load %arg26[%c16_209, %c0_210] : memref<72x256xf32, #tpu.memory_space<vmem>>, vector<8x256xf32>
    tpu.vector_store %arg26[%c16_209, %c0_210], %334 {strides = array<i32>} : memref<72x256xf32, #tpu.memory_space<vmem>>, vector<8x256xf32>,
    %c1_i32_211 = arith.constant 1 : i32
    %336 = tpu.dynamic_rotate %319 by %c1_i32_211 dim 1 : vector<4x256xf32>, i32 -> vector<4x256xf32>
    %337 = vector.broadcast %5 : vector<1x256xf32> to vector<4x256xf32>
    %338 = arith.mulf %336, %337 : vector<4x256xf32>
    %339 = tpu.concatenate %338, %320 in 0 : vector<4x256xf32>, vector<4x256xf32> -> vector<8x256xf32>
    %c24_212 = arith.constant 24 : index
    %c0_213 = arith.constant 0 : index
    %340 = vector.load %arg26[%c24_212, %c0_213] : memref<72x256xf32, #tpu.memory_space<vmem>>, vector<8x256xf32>
    tpu.vector_store %arg26[%c24_212, %c0_213], %339 {strides = array<i32>} : memref<72x256xf32, #tpu.memory_space<vmem>>, vector<8x256xf32>,
    %341 = tpu.concatenate %319, %320 in 0 : vector<4x256xf32>, vector<4x256xf32> -> vector<8x256xf32>
    %c32_214 = arith.constant 32 : index
    %c0_215 = arith.constant 0 : index
    %342 = vector.load %arg26[%c32_214, %c0_215] : memref<72x256xf32, #tpu.memory_space<vmem>>, vector<8x256xf32>
    tpu.vector_store %arg26[%c32_214, %c0_215], %341 {strides = array<i32>} : memref<72x256xf32, #tpu.memory_space<vmem>>, vector<8x256xf32>,
    %c255_i32_216 = arith.constant 255 : i32
    %343 = tpu.dynamic_rotate %319 by %c255_i32_216 dim 1 : vector<4x256xf32>, i32 -> vector<4x256xf32>
    %344 = vector.broadcast %6 : vector<1x256xf32> to vector<4x256xf32>
    %345 = arith.mulf %343, %344 : vector<4x256xf32>
    %346 = tpu.concatenate %345, %320 in 0 : vector<4x256xf32>, vector<4x256xf32> -> vector<8x256xf32>
    %c40_217 = arith.constant 40 : index
    %c0_218 = arith.constant 0 : index
    %347 = vector.load %arg26[%c40_217, %c0_218] : memref<72x256xf32, #tpu.memory_space<vmem>>, vector<8x256xf32>
    tpu.vector_store %arg26[%c40_217, %c0_218], %346 {strides = array<i32>} : memref<72x256xf32, #tpu.memory_space<vmem>>, vector<8x256xf32>,
    %c241_i32_219 = arith.constant 241 : i32
    %348 = tpu.dynamic_rotate %319 by %c241_i32_219 dim 1 : vector<4x256xf32>, i32 -> vector<4x256xf32>
    %349 = vector.broadcast %7 : vector<1x256xf32> to vector<4x256xf32>
    %350 = arith.mulf %348, %349 : vector<4x256xf32>
    %351 = tpu.concatenate %350, %320 in 0 : vector<4x256xf32>, vector<4x256xf32> -> vector<8x256xf32>
    %c48_220 = arith.constant 48 : index
    %c0_221 = arith.constant 0 : index
    %352 = vector.load %arg26[%c48_220, %c0_221] : memref<72x256xf32, #tpu.memory_space<vmem>>, vector<8x256xf32>
    tpu.vector_store %arg26[%c48_220, %c0_221], %351 {strides = array<i32>} : memref<72x256xf32, #tpu.memory_space<vmem>>, vector<8x256xf32>,
    %c240_i32_222 = arith.constant 240 : i32
    %353 = tpu.dynamic_rotate %319 by %c240_i32_222 dim 1 : vector<4x256xf32>, i32 -> vector<4x256xf32>
    %354 = vector.broadcast %8 : vector<1x256xf32> to vector<4x256xf32>
    %355 = arith.mulf %353, %354 : vector<4x256xf32>
    %356 = tpu.concatenate %355, %320 in 0 : vector<4x256xf32>, vector<4x256xf32> -> vector<8x256xf32>
    %c56_223 = arith.constant 56 : index
    %c0_224 = arith.constant 0 : index
    %357 = vector.load %arg26[%c56_223, %c0_224] : memref<72x256xf32, #tpu.memory_space<vmem>>, vector<8x256xf32>
    tpu.vector_store %arg26[%c56_223, %c0_224], %356 {strides = array<i32>} : memref<72x256xf32, #tpu.memory_space<vmem>>, vector<8x256xf32>,
    %c239_i32_225 = arith.constant 239 : i32
    %358 = tpu.dynamic_rotate %319 by %c239_i32_225 dim 1 : vector<4x256xf32>, i32 -> vector<4x256xf32>
    %359 = vector.broadcast %9 : vector<1x256xf32> to vector<4x256xf32>
    %360 = arith.mulf %358, %359 : vector<4x256xf32>
    %361 = tpu.concatenate %360, %320 in 0 : vector<4x256xf32>, vector<4x256xf32> -> vector<8x256xf32>
    %c64_226 = arith.constant 64 : index
    %c0_227 = arith.constant 0 : index
    %362 = vector.load %arg26[%c64_226, %c0_227] : memref<72x256xf32, #tpu.memory_space<vmem>>, vector<8x256xf32>
    tpu.vector_store %arg26[%c64_226, %c0_227], %361 {strides = array<i32>} : memref<72x256xf32, #tpu.memory_space<vmem>>, vector<8x256xf32>,
    %c0_228 = arith.constant 0 : index
    %c0_229 = arith.constant 0 : index
    %363 = vector.load %arg17[%c0_228, %c0_229] : memref<8x72xf32, #tpu.memory_space<vmem>>, vector<8x72xf32>
    %c0_230 = arith.constant 0 : index
    %c0_231 = arith.constant 0 : index
    %364 = vector.load %arg26[%c0_230, %c0_231] : memref<72x256xf32, #tpu.memory_space<vmem>>, vector<72x256xf32>
    %cst_232 = arith.constant dense<0.000000e+00> : vector<8x256xf32>
    %365 = tpu.matmul %363, %364, %cst_232 {dimension_numbers = #tpu.dot_dimension_numbers<[1], [0], [0], [1], [0, 0, 1, 1], [], []>} : vector<8x72xf32>, vector<72x256xf32>, vector<8x256xf32> -> vector<8x256xf32>
    %c0_233 = arith.constant 0 : index
    %c0_234 = arith.constant 0 : index
    %366 = vector.load %arg18[%c0_233, %c0_234] : memref<8x1xf32, #tpu.memory_space<vmem>>, vector<8x1xf32>
    %367 = vector.broadcast %366 : vector<8x1xf32> to vector<8x256xf32>
    %368 = arith.addf %365, %367 : vector<8x256xf32>
    %cst_235 = arith.constant 0.000000e+00 : f32
    %369 = vector.broadcast %cst_235 : f32 to vector<8x256xf32>
    %370 = arith.maximumf %368, %369 : vector<8x256xf32>
    %c17_i32_236 = arith.constant 17 : i32
    %371 = tpu.dynamic_rotate %370 by %c17_i32_236 dim 1 : vector<8x256xf32>, i32 -> vector<8x256xf32>
    %372 = vector.broadcast %2 : vector<1x256xf32> to vector<8x256xf32>
    %373 = arith.mulf %371, %372 : vector<8x256xf32>
    %c0_237 = arith.constant 0 : index
    %c0_238 = arith.constant 0 : index
    %374 = vector.load %arg26[%c0_237, %c0_238] : memref<72x256xf32, #tpu.memory_space<vmem>>, vector<8x256xf32>
    tpu.vector_store %arg26[%c0_237, %c0_238], %373 {strides = array<i32>} : memref<72x256xf32, #tpu.memory_space<vmem>>, vector<8x256xf32>,
    %c16_i32_239 = arith.constant 16 : i32
    %375 = tpu.dynamic_rotate %370 by %c16_i32_239 dim 1 : vector<8x256xf32>, i32 -> vector<8x256xf32>
    %376 = vector.broadcast %3 : vector<1x256xf32> to vector<8x256xf32>
    %377 = arith.mulf %375, %376 : vector<8x256xf32>
    %c8_240 = arith.constant 8 : index
    %c0_241 = arith.constant 0 : index
    %378 = vector.load %arg26[%c8_240, %c0_241] : memref<72x256xf32, #tpu.memory_space<vmem>>, vector<8x256xf32>
    tpu.vector_store %arg26[%c8_240, %c0_241], %377 {strides = array<i32>} : memref<72x256xf32, #tpu.memory_space<vmem>>, vector<8x256xf32>,
    %c15_i32_242 = arith.constant 15 : i32
    %379 = tpu.dynamic_rotate %370 by %c15_i32_242 dim 1 : vector<8x256xf32>, i32 -> vector<8x256xf32>
    %380 = vector.broadcast %4 : vector<1x256xf32> to vector<8x256xf32>
    %381 = arith.mulf %379, %380 : vector<8x256xf32>
    %c16_243 = arith.constant 16 : index
    %c0_244 = arith.constant 0 : index
    %382 = vector.load %arg26[%c16_243, %c0_244] : memref<72x256xf32, #tpu.memory_space<vmem>>, vector<8x256xf32>
    tpu.vector_store %arg26[%c16_243, %c0_244], %381 {strides = array<i32>} : memref<72x256xf32, #tpu.memory_space<vmem>>, vector<8x256xf32>,
    %c1_i32_245 = arith.constant 1 : i32
    %383 = tpu.dynamic_rotate %370 by %c1_i32_245 dim 1 : vector<8x256xf32>, i32 -> vector<8x256xf32>
    %384 = vector.broadcast %5 : vector<1x256xf32> to vector<8x256xf32>
    %385 = arith.mulf %383, %384 : vector<8x256xf32>
    %c24_246 = arith.constant 24 : index
    %c0_247 = arith.constant 0 : index
    %386 = vector.load %arg26[%c24_246, %c0_247] : memref<72x256xf32, #tpu.memory_space<vmem>>, vector<8x256xf32>
    tpu.vector_store %arg26[%c24_246, %c0_247], %385 {strides = array<i32>} : memref<72x256xf32, #tpu.memory_space<vmem>>, vector<8x256xf32>,
    %c32_248 = arith.constant 32 : index
    %c0_249 = arith.constant 0 : index
    %387 = vector.load %arg26[%c32_248, %c0_249] : memref<72x256xf32, #tpu.memory_space<vmem>>, vector<8x256xf32>
    tpu.vector_store %arg26[%c32_248, %c0_249], %370 {strides = array<i32>} : memref<72x256xf32, #tpu.memory_space<vmem>>, vector<8x256xf32>,
    %c255_i32_250 = arith.constant 255 : i32
    %388 = tpu.dynamic_rotate %370 by %c255_i32_250 dim 1 : vector<8x256xf32>, i32 -> vector<8x256xf32>
    %389 = vector.broadcast %6 : vector<1x256xf32> to vector<8x256xf32>
    %390 = arith.mulf %388, %389 : vector<8x256xf32>
    %c40_251 = arith.constant 40 : index
    %c0_252 = arith.constant 0 : index
    %391 = vector.load %arg26[%c40_251, %c0_252] : memref<72x256xf32, #tpu.memory_space<vmem>>, vector<8x256xf32>
    tpu.vector_store %arg26[%c40_251, %c0_252], %390 {strides = array<i32>} : memref<72x256xf32, #tpu.memory_space<vmem>>, vector<8x256xf32>,
    %c241_i32_253 = arith.constant 241 : i32
    %392 = tpu.dynamic_rotate %370 by %c241_i32_253 dim 1 : vector<8x256xf32>, i32 -> vector<8x256xf32>
    %393 = vector.broadcast %7 : vector<1x256xf32> to vector<8x256xf32>
    %394 = arith.mulf %392, %393 : vector<8x256xf32>
    %c48_254 = arith.constant 48 : index
    %c0_255 = arith.constant 0 : index
    %395 = vector.load %arg26[%c48_254, %c0_255] : memref<72x256xf32, #tpu.memory_space<vmem>>, vector<8x256xf32>
    tpu.vector_store %arg26[%c48_254, %c0_255], %394 {strides = array<i32>} : memref<72x256xf32, #tpu.memory_space<vmem>>, vector<8x256xf32>,
    %c240_i32_256 = arith.constant 240 : i32
    %396 = tpu.dynamic_rotate %370 by %c240_i32_256 dim 1 : vector<8x256xf32>, i32 -> vector<8x256xf32>
    %397 = vector.broadcast %8 : vector<1x256xf32> to vector<8x256xf32>
    %398 = arith.mulf %396, %397 : vector<8x256xf32>
    %c56_257 = arith.constant 56 : index
    %c0_258 = arith.constant 0 : index
    %399 = vector.load %arg26[%c56_257, %c0_258] : memref<72x256xf32, #tpu.memory_space<vmem>>, vector<8x256xf32>
    tpu.vector_store %arg26[%c56_257, %c0_258], %398 {strides = array<i32>} : memref<72x256xf32, #tpu.memory_space<vmem>>, vector<8x256xf32>,
    %c239_i32_259 = arith.constant 239 : i32
    %400 = tpu.dynamic_rotate %370 by %c239_i32_259 dim 1 : vector<8x256xf32>, i32 -> vector<8x256xf32>
    %401 = vector.broadcast %9 : vector<1x256xf32> to vector<8x256xf32>
    %402 = arith.mulf %400, %401 : vector<8x256xf32>
    %c64_260 = arith.constant 64 : index
    %c0_261 = arith.constant 0 : index
    %403 = vector.load %arg26[%c64_260, %c0_261] : memref<72x256xf32, #tpu.memory_space<vmem>>, vector<8x256xf32>
    tpu.vector_store %arg26[%c64_260, %c0_261], %402 {strides = array<i32>} : memref<72x256xf32, #tpu.memory_space<vmem>>, vector<8x256xf32>,
    %c0_262 = arith.constant 0 : index
    %c0_263 = arith.constant 0 : index
    %404 = vector.load %arg19[%c0_262, %c0_263] : memref<8x72xf32, #tpu.memory_space<vmem>>, vector<8x72xf32>
    %c0_264 = arith.constant 0 : index
    %c0_265 = arith.constant 0 : index
    %405 = vector.load %arg26[%c0_264, %c0_265] : memref<72x256xf32, #tpu.memory_space<vmem>>, vector<72x256xf32>
    %cst_266 = arith.constant dense<0.000000e+00> : vector<8x256xf32>
    %406 = tpu.matmul %404, %405, %cst_266 {dimension_numbers = #tpu.dot_dimension_numbers<[1], [0], [0], [1], [0, 0, 1, 1], [], []>} : vector<8x72xf32>, vector<72x256xf32>, vector<8x256xf32> -> vector<8x256xf32>
    %c0_267 = arith.constant 0 : index
    %c0_268 = arith.constant 0 : index
    %407 = vector.load %arg20[%c0_267, %c0_268] : memref<8x1xf32, #tpu.memory_space<vmem>>, vector<8x1xf32>
    %408 = vector.broadcast %407 : vector<8x1xf32> to vector<8x256xf32>
    %409 = arith.addf %406, %408 : vector<8x256xf32>
    %cst_269 = arith.constant 0.000000e+00 : f32
    %410 = vector.broadcast %cst_269 : f32 to vector<8x256xf32>
    %411 = arith.maximumf %409, %410 : vector<8x256xf32>
    %c17_i32_270 = arith.constant 17 : i32
    %412 = tpu.dynamic_rotate %411 by %c17_i32_270 dim 1 : vector<8x256xf32>, i32 -> vector<8x256xf32>
    %413 = vector.broadcast %2 : vector<1x256xf32> to vector<8x256xf32>
    %414 = arith.mulf %412, %413 : vector<8x256xf32>
    %c0_271 = arith.constant 0 : index
    %c0_272 = arith.constant 0 : index
    %415 = vector.load %arg26[%c0_271, %c0_272] : memref<72x256xf32, #tpu.memory_space<vmem>>, vector<8x256xf32>
    tpu.vector_store %arg26[%c0_271, %c0_272], %414 {strides = array<i32>} : memref<72x256xf32, #tpu.memory_space<vmem>>, vector<8x256xf32>,
    %c16_i32_273 = arith.constant 16 : i32
    %416 = tpu.dynamic_rotate %411 by %c16_i32_273 dim 1 : vector<8x256xf32>, i32 -> vector<8x256xf32>
    %417 = vector.broadcast %3 : vector<1x256xf32> to vector<8x256xf32>
    %418 = arith.mulf %416, %417 : vector<8x256xf32>
    %c8_274 = arith.constant 8 : index
    %c0_275 = arith.constant 0 : index
    %419 = vector.load %arg26[%c8_274, %c0_275] : memref<72x256xf32, #tpu.memory_space<vmem>>, vector<8x256xf32>
    tpu.vector_store %arg26[%c8_274, %c0_275], %418 {strides = array<i32>} : memref<72x256xf32, #tpu.memory_space<vmem>>, vector<8x256xf32>,
    %c15_i32_276 = arith.constant 15 : i32
    %420 = tpu.dynamic_rotate %411 by %c15_i32_276 dim 1 : vector<8x256xf32>, i32 -> vector<8x256xf32>
    %421 = vector.broadcast %4 : vector<1x256xf32> to vector<8x256xf32>
    %422 = arith.mulf %420, %421 : vector<8x256xf32>
    %c16_277 = arith.constant 16 : index
    %c0_278 = arith.constant 0 : index
    %423 = vector.load %arg26[%c16_277, %c0_278] : memref<72x256xf32, #tpu.memory_space<vmem>>, vector<8x256xf32>
    tpu.vector_store %arg26[%c16_277, %c0_278], %422 {strides = array<i32>} : memref<72x256xf32, #tpu.memory_space<vmem>>, vector<8x256xf32>,
    %c1_i32_279 = arith.constant 1 : i32
    %424 = tpu.dynamic_rotate %411 by %c1_i32_279 dim 1 : vector<8x256xf32>, i32 -> vector<8x256xf32>
    %425 = vector.broadcast %5 : vector<1x256xf32> to vector<8x256xf32>
    %426 = arith.mulf %424, %425 : vector<8x256xf32>
    %c24_280 = arith.constant 24 : index
    %c0_281 = arith.constant 0 : index
    %427 = vector.load %arg26[%c24_280, %c0_281] : memref<72x256xf32, #tpu.memory_space<vmem>>, vector<8x256xf32>
    tpu.vector_store %arg26[%c24_280, %c0_281], %426 {strides = array<i32>} : memref<72x256xf32, #tpu.memory_space<vmem>>, vector<8x256xf32>,
    %c32_282 = arith.constant 32 : index
    %c0_283 = arith.constant 0 : index
    %428 = vector.load %arg26[%c32_282, %c0_283] : memref<72x256xf32, #tpu.memory_space<vmem>>, vector<8x256xf32>
    tpu.vector_store %arg26[%c32_282, %c0_283], %411 {strides = array<i32>} : memref<72x256xf32, #tpu.memory_space<vmem>>, vector<8x256xf32>,
    %c255_i32_284 = arith.constant 255 : i32
    %429 = tpu.dynamic_rotate %411 by %c255_i32_284 dim 1 : vector<8x256xf32>, i32 -> vector<8x256xf32>
    %430 = vector.broadcast %6 : vector<1x256xf32> to vector<8x256xf32>
    %431 = arith.mulf %429, %430 : vector<8x256xf32>
    %c40_285 = arith.constant 40 : index
    %c0_286 = arith.constant 0 : index
    %432 = vector.load %arg26[%c40_285, %c0_286] : memref<72x256xf32, #tpu.memory_space<vmem>>, vector<8x256xf32>
    tpu.vector_store %arg26[%c40_285, %c0_286], %431 {strides = array<i32>} : memref<72x256xf32, #tpu.memory_space<vmem>>, vector<8x256xf32>,
    %c241_i32_287 = arith.constant 241 : i32
    %433 = tpu.dynamic_rotate %411 by %c241_i32_287 dim 1 : vector<8x256xf32>, i32 -> vector<8x256xf32>
    %434 = vector.broadcast %7 : vector<1x256xf32> to vector<8x256xf32>
    %435 = arith.mulf %433, %434 : vector<8x256xf32>
    %c48_288 = arith.constant 48 : index
    %c0_289 = arith.constant 0 : index
    %436 = vector.load %arg26[%c48_288, %c0_289] : memref<72x256xf32, #tpu.memory_space<vmem>>, vector<8x256xf32>
    tpu.vector_store %arg26[%c48_288, %c0_289], %435 {strides = array<i32>} : memref<72x256xf32, #tpu.memory_space<vmem>>, vector<8x256xf32>,
    %c240_i32_290 = arith.constant 240 : i32
    %437 = tpu.dynamic_rotate %411 by %c240_i32_290 dim 1 : vector<8x256xf32>, i32 -> vector<8x256xf32>
    %438 = vector.broadcast %8 : vector<1x256xf32> to vector<8x256xf32>
    %439 = arith.mulf %437, %438 : vector<8x256xf32>
    %c56_291 = arith.constant 56 : index
    %c0_292 = arith.constant 0 : index
    %440 = vector.load %arg26[%c56_291, %c0_292] : memref<72x256xf32, #tpu.memory_space<vmem>>, vector<8x256xf32>
    tpu.vector_store %arg26[%c56_291, %c0_292], %439 {strides = array<i32>} : memref<72x256xf32, #tpu.memory_space<vmem>>, vector<8x256xf32>,
    %c239_i32_293 = arith.constant 239 : i32
    %441 = tpu.dynamic_rotate %411 by %c239_i32_293 dim 1 : vector<8x256xf32>, i32 -> vector<8x256xf32>
    %442 = vector.broadcast %9 : vector<1x256xf32> to vector<8x256xf32>
    %443 = arith.mulf %441, %442 : vector<8x256xf32>
    %c64_294 = arith.constant 64 : index
    %c0_295 = arith.constant 0 : index
    %444 = vector.load %arg26[%c64_294, %c0_295] : memref<72x256xf32, #tpu.memory_space<vmem>>, vector<8x256xf32>
    tpu.vector_store %arg26[%c64_294, %c0_295], %443 {strides = array<i32>} : memref<72x256xf32, #tpu.memory_space<vmem>>, vector<8x256xf32>,
    %c0_296 = arith.constant 0 : index
    %c0_297 = arith.constant 0 : index
    %445 = vector.load %arg21[%c0_296, %c0_297] : memref<8x72xf32, #tpu.memory_space<vmem>>, vector<8x72xf32>
    %c0_298 = arith.constant 0 : index
    %c0_299 = arith.constant 0 : index
    %446 = vector.load %arg26[%c0_298, %c0_299] : memref<72x256xf32, #tpu.memory_space<vmem>>, vector<72x256xf32>
    %cst_300 = arith.constant dense<0.000000e+00> : vector<8x256xf32>
    %447 = tpu.matmul %445, %446, %cst_300 {dimension_numbers = #tpu.dot_dimension_numbers<[1], [0], [0], [1], [0, 0, 1, 1], [], []>} : vector<8x72xf32>, vector<72x256xf32>, vector<8x256xf32> -> vector<8x256xf32>
    %c0_301 = arith.constant 0 : index
    %c0_302 = arith.constant 0 : index
    %448 = vector.load %arg22[%c0_301, %c0_302] : memref<8x1xf32, #tpu.memory_space<vmem>>, vector<8x1xf32>
    %449 = vector.broadcast %448 : vector<8x1xf32> to vector<8x256xf32>
    %450 = arith.addf %447, %449 : vector<8x256xf32>
    %c0_303 = arith.constant 0 : index
    %c0_304 = arith.constant 0 : index
    %451 = vector.load %arg23[%c0_303, %c0_304] : memref<4x1xf32, #tpu.memory_space<vmem>>, vector<4x1xf32>
    %452 = vector.extract_strided_slice %450 {offsets = [0, 0], sizes = [4, 256], strides = [1, 1]} : vector<8x256xf32> to vector<4x256xf32>
    %453 = math.tanh %452 : vector<4x256xf32>
    %454 = vector.broadcast %451 : vector<4x1xf32> to vector<4x256xf32>
    %455 = arith.mulf %454, %453 : vector<4x256xf32>
    %456 = vector.extract_strided_slice %450 {offsets = [4, 0], sizes = [4, 256], strides = [1, 1]} : vector<8x256xf32> to vector<4x256xf32>
    %457 = vector.broadcast %317 : vector<1x256xf32> to vector<4x256xf32>
    %458 = arith.mulf %455, %457 : vector<4x256xf32>
    %459 = vector.broadcast %317 : vector<1x256xf32> to vector<4x256xf32>
    %460 = arith.mulf %456, %459 : vector<4x256xf32>
    %461 = arith.addf %312, %460 : vector<4x256xf32>
    %462 = math.exp %458 : vector<4x256xf32>
    %463 = arith.mulf %461, %462 : vector<4x256xf32>
    %cst_305 = arith.constant dense<0.000000e+00> : vector<256xf32>
    %464 = vector.multi_reduction <add>, %458, %cst_305 [0] : vector<4x256xf32> to vector<256xf32>
    %465 = vector.shape_cast %464 : vector<256xf32> to vector<1x256xf32>
    %466 = arith.addf %315, %465 : vector<1x256xf32>
    %c0_306 = arith.constant 0 : index
    %c0_307 = arith.constant 0 : index
    %467 = vector.load %arg24[%c0_306, %c0_307] : memref<4x256xf32, #tpu.memory_space<vmem>>, vector<4x256xf32>
    tpu.vector_store %arg24[%c0_306, %c0_307], %463 {strides = array<i32>} : memref<4x256xf32, #tpu.memory_space<vmem>>, vector<4x256xf32>,
    %c0_308 = arith.constant 0 : index
    %c0_309 = arith.constant 0 : index
    %468 = vector.load %arg25[%c0_308, %c0_309] : memref<1x256xf32, #tpu.memory_space<vmem>>, vector<1x256xf32>
    tpu.vector_store %arg25[%c0_308, %c0_309], %466 {strides = array<i32>} : memref<1x256xf32, #tpu.memory_space<vmem>>, vector<1x256xf32>,
    return
  }
  func.func @transform_0(%arg0: i32) -> (i32, i32) {
    %c0_i32 = arith.constant 0 : i32
    %c0_i32_0 = arith.constant 0 : i32
    %c0_i32_1 = arith.constant 0 : i32
    return %c0_i32, %c0_i32_0 : i32, i32
  }
  func.func @transform_1(%arg0: i32) -> (i32, i32) {
    %c0_i32 = arith.constant 0 : i32
    %c0_i32_0 = arith.constant 0 : i32
    return %c0_i32, %arg0 : i32, i32
  }
  func.func @transform_2(%arg0: i32) -> (i32, i32) {
    %c0_i32 = arith.constant 0 : i32
    %c0_i32_0 = arith.constant 0 : i32
    %c0_i32_1 = arith.constant 0 : i32
    return %c0_i32, %c0_i32_0 : i32, i32
  }
  func.func @transform_3(%arg0: i32) -> (i32, i32) {
    %c0_i32 = arith.constant 0 : i32
    %c0_i32_0 = arith.constant 0 : i32
    %c0_i32_1 = arith.constant 0 : i32
    return %c0_i32, %c0_i32_0 : i32, i32
  }
  func.func @transform_4(%arg0: i32) -> (i32, i32) {
    %c0_i32 = arith.constant 0 : i32
    %c0_i32_0 = arith.constant 0 : i32
    %c0_i32_1 = arith.constant 0 : i32
    return %c0_i32, %c0_i32_0 : i32, i32
  }
  func.func @transform_5(%arg0: i32) -> (i32, i32) {
    %c0_i32 = arith.constant 0 : i32
    %c0_i32_0 = arith.constant 0 : i32
    %c0_i32_1 = arith.constant 0 : i32
    return %c0_i32, %c0_i32_0 : i32, i32
  }
  func.func @transform_6(%arg0: i32) -> (i32, i32) {
    %c0_i32 = arith.constant 0 : i32
    %c0_i32_0 = arith.constant 0 : i32
    %c0_i32_1 = arith.constant 0 : i32
    return %c0_i32, %c0_i32_0 : i32, i32
  }
  func.func @transform_7(%arg0: i32) -> (i32, i32) {
    %c0_i32 = arith.constant 0 : i32
    %c0_i32_0 = arith.constant 0 : i32
    %c0_i32_1 = arith.constant 0 : i32
    return %c0_i32, %c0_i32_0 : i32, i32
  }
  func.func @transform_8(%arg0: i32) -> (i32, i32) {
    %c0_i32 = arith.constant 0 : i32
    %c0_i32_0 = arith.constant 0 : i32
    %c0_i32_1 = arith.constant 0 : i32
    return %c0_i32, %c0_i32_0 : i32, i32
  }
  func.func @transform_9(%arg0: i32) -> (i32, i32) {
    %c0_i32 = arith.constant 0 : i32
    %c0_i32_0 = arith.constant 0 : i32
    %c0_i32_1 = arith.constant 0 : i32
    return %c0_i32, %c0_i32_0 : i32, i32
  }
  func.func @transform_10(%arg0: i32) -> (i32, i32) {
    %c0_i32 = arith.constant 0 : i32
    %c0_i32_0 = arith.constant 0 : i32
    %c0_i32_1 = arith.constant 0 : i32
    return %c0_i32, %c0_i32_0 : i32, i32
  }
  func.func @transform_11(%arg0: i32) -> (i32, i32) {
    %c0_i32 = arith.constant 0 : i32
    %c0_i32_0 = arith.constant 0 : i32
    %c0_i32_1 = arith.constant 0 : i32
    return %c0_i32, %c0_i32_0 : i32, i32
  }
  func.func @transform_12(%arg0: i32) -> (i32, i32) {
    %c0_i32 = arith.constant 0 : i32
    %c0_i32_0 = arith.constant 0 : i32
    %c0_i32_1 = arith.constant 0 : i32
    return %c0_i32, %c0_i32_0 : i32, i32
  }
  func.func @transform_13(%arg0: i32) -> (i32, i32) {
    %c0_i32 = arith.constant 0 : i32
    %c0_i32_0 = arith.constant 0 : i32
    %c0_i32_1 = arith.constant 0 : i32
    return %c0_i32, %c0_i32_0 : i32, i32
  }
  func.func @transform_14(%arg0: i32) -> (i32, i32) {
    %c0_i32 = arith.constant 0 : i32
    %c0_i32_0 = arith.constant 0 : i32
    %c0_i32_1 = arith.constant 0 : i32
    return %c0_i32, %c0_i32_0 : i32, i32
  }
  func.func @transform_15(%arg0: i32) -> (i32, i32) {
    %c0_i32 = arith.constant 0 : i32
    %c0_i32_0 = arith.constant 0 : i32
    %c0_i32_1 = arith.constant 0 : i32
    return %c0_i32, %c0_i32_0 : i32, i32
  }
  func.func @transform_16(%arg0: i32) -> (i32, i32) {
    %c0_i32 = arith.constant 0 : i32
    %c0_i32_0 = arith.constant 0 : i32
    %c0_i32_1 = arith.constant 0 : i32
    return %c0_i32, %c0_i32_0 : i32, i32
  }
  func.func @transform_17(%arg0: i32) -> (i32, i32) {
    %c0_i32 = arith.constant 0 : i32
    %c0_i32_0 = arith.constant 0 : i32
    %c0_i32_1 = arith.constant 0 : i32
    return %c0_i32, %c0_i32_0 : i32, i32
  }
  func.func @transform_18(%arg0: i32) -> (i32, i32) {
    %c0_i32 = arith.constant 0 : i32
    %c0_i32_0 = arith.constant 0 : i32
    %c0_i32_1 = arith.constant 0 : i32
    return %c0_i32, %c0_i32_0 : i32, i32
  }
  func.func @transform_19(%arg0: i32) -> (i32, i32) {
    %c0_i32 = arith.constant 0 : i32
    %c0_i32_0 = arith.constant 0 : i32
    %c0_i32_1 = arith.constant 0 : i32
    return %c0_i32, %c0_i32_0 : i32, i32
  }
  func.func @transform_20(%arg0: i32) -> (i32, i32) {
    %c0_i32 = arith.constant 0 : i32
    %c0_i32_0 = arith.constant 0 : i32
    %c0_i32_1 = arith.constant 0 : i32
    return %c0_i32, %c0_i32_0 : i32, i32
  }
  func.func @transform_21(%arg0: i32) -> (i32, i32) {
    %c0_i32 = arith.constant 0 : i32
    %c0_i32_0 = arith.constant 0 : i32
    %c0_i32_1 = arith.constant 0 : i32
    return %c0_i32, %c0_i32_0 : i32, i32
  }
  func.func @transform_22(%arg0: i32) -> (i32, i32) {
    %c0_i32 = arith.constant 0 : i32
    %c0_i32_0 = arith.constant 0 : i32
    %c0_i32_1 = arith.constant 0 : i32
    return %c0_i32, %c0_i32_0 : i32, i32
  }
  func.func @transform_23(%arg0: i32) -> (i32, i32) {
    %c0_i32 = arith.constant 0 : i32
    %c0_i32_0 = arith.constant 0 : i32
    return %c0_i32, %arg0 : i32, i32
  }
  func.func @transform_24(%arg0: i32) -> (i32, i32) {
    %c0_i32 = arith.constant 0 : i32
    %c0_i32_0 = arith.constant 0 : i32
    return %c0_i32, %arg0 : i32, i32
  }
}

module attributes {stable_mosaic.version = 11 : i64} {
  func.func @_fused_stage_kernel(%arg0: i32, %arg1: memref<10x128xf32, #tpu.memory_space<vmem>>, %arg2: memref<16x128xf32, #tpu.memory_space<vmem>>, %arg3: memref<16x72xf32, #tpu.memory_space<vmem>>, %arg4: memref<16x1xf32, #tpu.memory_space<vmem>>, %arg5: memref<16x144xf32, #tpu.memory_space<vmem>>, %arg6: memref<16x1xf32, #tpu.memory_space<vmem>>, %arg7: memref<16x144xf32, #tpu.memory_space<vmem>>, %arg8: memref<16x1xf32, #tpu.memory_space<vmem>>, %arg9: memref<8x1xf32, #tpu.memory_space<vmem>>, %arg10: memref<16x72xf32, #tpu.memory_space<vmem>>, %arg11: memref<16x1xf32, #tpu.memory_space<vmem>>, %arg12: memref<16x144xf32, #tpu.memory_space<vmem>>, %arg13: memref<16x1xf32, #tpu.memory_space<vmem>>, %arg14: memref<16x144xf32, #tpu.memory_space<vmem>>, %arg15: memref<16x1xf32, #tpu.memory_space<vmem>>, %arg16: memref<8x1xf32, #tpu.memory_space<vmem>>, %arg17: memref<16x72xf32, #tpu.memory_space<vmem>>, %arg18: memref<16x1xf32, #tpu.memory_space<vmem>>, %arg19: memref<16x144xf32, #tpu.memory_space<vmem>>, %arg20: memref<16x1xf32, #tpu.memory_space<vmem>>, %arg21: memref<16x144xf32, #tpu.memory_space<vmem>>, %arg22: memref<16x1xf32, #tpu.memory_space<vmem>>, %arg23: memref<8x1xf32, #tpu.memory_space<vmem>>, %arg24: memref<16x128xf32, #tpu.memory_space<vmem>>, %arg25: memref<1x128xf32, #tpu.memory_space<vmem>>, %arg26: memref<144x128xf32, #tpu.memory_space<vmem>>) attributes {dimension_semantics = [#tpu.dimension_semantics<parallel>], iteration_bounds = array<i64: 1>, scalar_prefetch = 0 : i64, scratch_operands = 1 : i64, tpu.core_type = #tpu.core_type<tc>, window_params = [{pipeline_mode = #tpu.pipeline_mode<synchronous>, transform_indices = @transform_0, window_bounds = array<i64: 10, 128>}, {transform_indices = @transform_1, window_bounds = array<i64: 16, 128>}, {pipeline_mode = #tpu.pipeline_mode<synchronous>, transform_indices = @transform_2, window_bounds = array<i64: 16, 72>}, {pipeline_mode = #tpu.pipeline_mode<synchronous>, transform_indices = @transform_3, window_bounds = array<i64: 16, 1>}, {pipeline_mode = #tpu.pipeline_mode<synchronous>, transform_indices = @transform_4, window_bounds = array<i64: 16, 144>}, {pipeline_mode = #tpu.pipeline_mode<synchronous>, transform_indices = @transform_5, window_bounds = array<i64: 16, 1>}, {pipeline_mode = #tpu.pipeline_mode<synchronous>, transform_indices = @transform_6, window_bounds = array<i64: 16, 144>}, {pipeline_mode = #tpu.pipeline_mode<synchronous>, transform_indices = @transform_7, window_bounds = array<i64: 16, 1>}, {pipeline_mode = #tpu.pipeline_mode<synchronous>, transform_indices = @transform_8, window_bounds = array<i64: 8, 1>}, {pipeline_mode = #tpu.pipeline_mode<synchronous>, transform_indices = @transform_9, window_bounds = array<i64: 16, 72>}, {pipeline_mode = #tpu.pipeline_mode<synchronous>, transform_indices = @transform_10, window_bounds = array<i64: 16, 1>}, {pipeline_mode = #tpu.pipeline_mode<synchronous>, transform_indices = @transform_11, window_bounds = array<i64: 16, 144>}, {pipeline_mode = #tpu.pipeline_mode<synchronous>, transform_indices = @transform_12, window_bounds = array<i64: 16, 1>}, {pipeline_mode = #tpu.pipeline_mode<synchronous>, transform_indices = @transform_13, window_bounds = array<i64: 16, 144>}, {pipeline_mode = #tpu.pipeline_mode<synchronous>, transform_indices = @transform_14, window_bounds = array<i64: 16, 1>}, {pipeline_mode = #tpu.pipeline_mode<synchronous>, transform_indices = @transform_15, window_bounds = array<i64: 8, 1>}, {pipeline_mode = #tpu.pipeline_mode<synchronous>, transform_indices = @transform_16, window_bounds = array<i64: 16, 72>}, {pipeline_mode = #tpu.pipeline_mode<synchronous>, transform_indices = @transform_17, window_bounds = array<i64: 16, 1>}, {pipeline_mode = #tpu.pipeline_mode<synchronous>, transform_indices = @transform_18, window_bounds = array<i64: 16, 144>}, {pipeline_mode = #tpu.pipeline_mode<synchronous>, transform_indices = @transform_19, window_bounds = array<i64: 16, 1>}, {pipeline_mode = #tpu.pipeline_mode<synchronous>, transform_indices = @transform_20, window_bounds = array<i64: 16, 144>}, {pipeline_mode = #tpu.pipeline_mode<synchronous>, transform_indices = @transform_21, window_bounds = array<i64: 16, 1>}, {pipeline_mode = #tpu.pipeline_mode<synchronous>, transform_indices = @transform_22, window_bounds = array<i64: 8, 1>}, {transform_indices = @transform_23, window_bounds = array<i64: 16, 128>}, {transform_indices = @transform_24, window_bounds = array<i64: 1, 128>}]} {
    %c0 = arith.constant 0 : index
    %c0_0 = arith.constant 0 : index
    %0 = vector.load %arg1[%c0, %c0_0] : memref<10x128xf32, #tpu.memory_space<vmem>>, vector<10x128xf32>
    %1 = vector.extract_strided_slice %0 {offsets = [1, 0], sizes = [1, 128], strides = [1, 1]} : vector<10x128xf32> to vector<1x128xf32>
    %2 = vector.extract_strided_slice %0 {offsets = [2, 0], sizes = [1, 128], strides = [1, 1]} : vector<10x128xf32> to vector<1x128xf32>
    %3 = vector.extract_strided_slice %0 {offsets = [3, 0], sizes = [1, 128], strides = [1, 1]} : vector<10x128xf32> to vector<1x128xf32>
    %4 = vector.extract_strided_slice %0 {offsets = [4, 0], sizes = [1, 128], strides = [1, 1]} : vector<10x128xf32> to vector<1x128xf32>
    %5 = vector.extract_strided_slice %0 {offsets = [6, 0], sizes = [1, 128], strides = [1, 1]} : vector<10x128xf32> to vector<1x128xf32>
    %6 = vector.extract_strided_slice %0 {offsets = [7, 0], sizes = [1, 128], strides = [1, 1]} : vector<10x128xf32> to vector<1x128xf32>
    %7 = vector.extract_strided_slice %0 {offsets = [8, 0], sizes = [1, 128], strides = [1, 1]} : vector<10x128xf32> to vector<1x128xf32>
    %8 = vector.extract_strided_slice %0 {offsets = [9, 0], sizes = [1, 128], strides = [1, 1]} : vector<10x128xf32> to vector<1x128xf32>
    %c0_1 = arith.constant 0 : index
    %c0_2 = arith.constant 0 : index
    %9 = vector.load %arg2[%c0_1, %c0_2] : memref<16x128xf32, #tpu.memory_space<vmem>>, vector<16x128xf32>
    %cst = arith.constant 0.000000e+00 : f32
    %10 = vector.broadcast %cst : f32 to vector<1x128xf32>
    %11 = vector.extract_strided_slice %9 {offsets = [0, 0], sizes = [8, 128], strides = [1, 1]} : vector<16x128xf32> to vector<8x128xf32>
    %12 = vector.extract_strided_slice %9 {offsets = [8, 0], sizes = [8, 128], strides = [1, 1]} : vector<16x128xf32> to vector<8x128xf32>
    %c9_i32 = arith.constant 9 : i32
    %13 = tpu.dynamic_rotate %12 by %c9_i32 dim 1 : vector<8x128xf32>, i32 -> vector<8x128xf32>
    %14 = vector.broadcast %1 : vector<1x128xf32> to vector<8x128xf32>
    %15 = arith.mulf %13, %14 : vector<8x128xf32>
    %c0_3 = arith.constant 0 : index
    %c0_4 = arith.constant 0 : index
    %16 = vector.load %arg26[%c0_3, %c0_4] : memref<144x128xf32, #tpu.memory_space<vmem>>, vector<8x128xf32>
    tpu.vector_store %arg26[%c0_3, %c0_4], %15 {strides = array<i32>} : memref<144x128xf32, #tpu.memory_space<vmem>>, vector<8x128xf32>,
    %c8_i32 = arith.constant 8 : i32
    %17 = tpu.dynamic_rotate %12 by %c8_i32 dim 1 : vector<8x128xf32>, i32 -> vector<8x128xf32>
    %18 = vector.broadcast %2 : vector<1x128xf32> to vector<8x128xf32>
    %19 = arith.mulf %17, %18 : vector<8x128xf32>
    %c8 = arith.constant 8 : index
    %c0_5 = arith.constant 0 : index
    %20 = vector.load %arg26[%c8, %c0_5] : memref<144x128xf32, #tpu.memory_space<vmem>>, vector<8x128xf32>
    tpu.vector_store %arg26[%c8, %c0_5], %19 {strides = array<i32>} : memref<144x128xf32, #tpu.memory_space<vmem>>, vector<8x128xf32>,
    %c7_i32 = arith.constant 7 : i32
    %21 = tpu.dynamic_rotate %12 by %c7_i32 dim 1 : vector<8x128xf32>, i32 -> vector<8x128xf32>
    %22 = vector.broadcast %3 : vector<1x128xf32> to vector<8x128xf32>
    %23 = arith.mulf %21, %22 : vector<8x128xf32>
    %c16 = arith.constant 16 : index
    %c0_6 = arith.constant 0 : index
    %24 = vector.load %arg26[%c16, %c0_6] : memref<144x128xf32, #tpu.memory_space<vmem>>, vector<8x128xf32>
    tpu.vector_store %arg26[%c16, %c0_6], %23 {strides = array<i32>} : memref<144x128xf32, #tpu.memory_space<vmem>>, vector<8x128xf32>,
    %c1_i32 = arith.constant 1 : i32
    %25 = tpu.dynamic_rotate %12 by %c1_i32 dim 1 : vector<8x128xf32>, i32 -> vector<8x128xf32>
    %26 = vector.broadcast %4 : vector<1x128xf32> to vector<8x128xf32>
    %27 = arith.mulf %25, %26 : vector<8x128xf32>
    %c24 = arith.constant 24 : index
    %c0_7 = arith.constant 0 : index
    %28 = vector.load %arg26[%c24, %c0_7] : memref<144x128xf32, #tpu.memory_space<vmem>>, vector<8x128xf32>
    tpu.vector_store %arg26[%c24, %c0_7], %27 {strides = array<i32>} : memref<144x128xf32, #tpu.memory_space<vmem>>, vector<8x128xf32>,
    %c32 = arith.constant 32 : index
    %c0_8 = arith.constant 0 : index
    %29 = vector.load %arg26[%c32, %c0_8] : memref<144x128xf32, #tpu.memory_space<vmem>>, vector<8x128xf32>
    tpu.vector_store %arg26[%c32, %c0_8], %12 {strides = array<i32>} : memref<144x128xf32, #tpu.memory_space<vmem>>, vector<8x128xf32>,
    %c127_i32 = arith.constant 127 : i32
    %30 = tpu.dynamic_rotate %12 by %c127_i32 dim 1 : vector<8x128xf32>, i32 -> vector<8x128xf32>
    %31 = vector.broadcast %5 : vector<1x128xf32> to vector<8x128xf32>
    %32 = arith.mulf %30, %31 : vector<8x128xf32>
    %c40 = arith.constant 40 : index
    %c0_9 = arith.constant 0 : index
    %33 = vector.load %arg26[%c40, %c0_9] : memref<144x128xf32, #tpu.memory_space<vmem>>, vector<8x128xf32>
    tpu.vector_store %arg26[%c40, %c0_9], %32 {strides = array<i32>} : memref<144x128xf32, #tpu.memory_space<vmem>>, vector<8x128xf32>,
    %c121_i32 = arith.constant 121 : i32
    %34 = tpu.dynamic_rotate %12 by %c121_i32 dim 1 : vector<8x128xf32>, i32 -> vector<8x128xf32>
    %35 = vector.broadcast %6 : vector<1x128xf32> to vector<8x128xf32>
    %36 = arith.mulf %34, %35 : vector<8x128xf32>
    %c48 = arith.constant 48 : index
    %c0_10 = arith.constant 0 : index
    %37 = vector.load %arg26[%c48, %c0_10] : memref<144x128xf32, #tpu.memory_space<vmem>>, vector<8x128xf32>
    tpu.vector_store %arg26[%c48, %c0_10], %36 {strides = array<i32>} : memref<144x128xf32, #tpu.memory_space<vmem>>, vector<8x128xf32>,
    %c120_i32 = arith.constant 120 : i32
    %38 = tpu.dynamic_rotate %12 by %c120_i32 dim 1 : vector<8x128xf32>, i32 -> vector<8x128xf32>
    %39 = vector.broadcast %7 : vector<1x128xf32> to vector<8x128xf32>
    %40 = arith.mulf %38, %39 : vector<8x128xf32>
    %c56 = arith.constant 56 : index
    %c0_11 = arith.constant 0 : index
    %41 = vector.load %arg26[%c56, %c0_11] : memref<144x128xf32, #tpu.memory_space<vmem>>, vector<8x128xf32>
    tpu.vector_store %arg26[%c56, %c0_11], %40 {strides = array<i32>} : memref<144x128xf32, #tpu.memory_space<vmem>>, vector<8x128xf32>,
    %c119_i32 = arith.constant 119 : i32
    %42 = tpu.dynamic_rotate %12 by %c119_i32 dim 1 : vector<8x128xf32>, i32 -> vector<8x128xf32>
    %43 = vector.broadcast %8 : vector<1x128xf32> to vector<8x128xf32>
    %44 = arith.mulf %42, %43 : vector<8x128xf32>
    %c64 = arith.constant 64 : index
    %c0_12 = arith.constant 0 : index
    %45 = vector.load %arg26[%c64, %c0_12] : memref<144x128xf32, #tpu.memory_space<vmem>>, vector<8x128xf32>
    tpu.vector_store %arg26[%c64, %c0_12], %44 {strides = array<i32>} : memref<144x128xf32, #tpu.memory_space<vmem>>, vector<8x128xf32>,
    %c0_13 = arith.constant 0 : index
    %c0_14 = arith.constant 0 : index
    %46 = vector.load %arg3[%c0_13, %c0_14] : memref<16x72xf32, #tpu.memory_space<vmem>>, vector<16x72xf32>
    %c0_15 = arith.constant 0 : index
    %c0_16 = arith.constant 0 : index
    %47 = vector.load %arg26[%c0_15, %c0_16] : memref<144x128xf32, #tpu.memory_space<vmem>>, vector<72x128xf32>
    %cst_17 = arith.constant dense<0.000000e+00> : vector<16x128xf32>
    %48 = tpu.matmul %46, %47, %cst_17 {dimension_numbers = #tpu.dot_dimension_numbers<[1], [0], [0], [1], [0, 0, 1, 1], [], []>} : vector<16x72xf32>, vector<72x128xf32>, vector<16x128xf32> -> vector<16x128xf32>
    %c0_18 = arith.constant 0 : index
    %c0_19 = arith.constant 0 : index
    %49 = vector.load %arg4[%c0_18, %c0_19] : memref<16x1xf32, #tpu.memory_space<vmem>>, vector<16x1xf32>
    %50 = vector.broadcast %49 : vector<16x1xf32> to vector<16x128xf32>
    %51 = arith.addf %48, %50 : vector<16x128xf32>
    %cst_20 = arith.constant 0.000000e+00 : f32
    %52 = vector.broadcast %cst_20 : f32 to vector<16x128xf32>
    %53 = arith.maximumf %51, %52 : vector<16x128xf32>
    %c9_i32_21 = arith.constant 9 : i32
    %54 = tpu.dynamic_rotate %53 by %c9_i32_21 dim 1 : vector<16x128xf32>, i32 -> vector<16x128xf32>
    %55 = vector.broadcast %1 : vector<1x128xf32> to vector<16x128xf32>
    %56 = arith.mulf %54, %55 : vector<16x128xf32>
    %c0_22 = arith.constant 0 : index
    %c0_23 = arith.constant 0 : index
    %57 = vector.load %arg26[%c0_22, %c0_23] : memref<144x128xf32, #tpu.memory_space<vmem>>, vector<16x128xf32>
    tpu.vector_store %arg26[%c0_22, %c0_23], %56 {strides = array<i32>} : memref<144x128xf32, #tpu.memory_space<vmem>>, vector<16x128xf32>,
    %c8_i32_24 = arith.constant 8 : i32
    %58 = tpu.dynamic_rotate %53 by %c8_i32_24 dim 1 : vector<16x128xf32>, i32 -> vector<16x128xf32>
    %59 = vector.broadcast %2 : vector<1x128xf32> to vector<16x128xf32>
    %60 = arith.mulf %58, %59 : vector<16x128xf32>
    %c16_25 = arith.constant 16 : index
    %c0_26 = arith.constant 0 : index
    %61 = vector.load %arg26[%c16_25, %c0_26] : memref<144x128xf32, #tpu.memory_space<vmem>>, vector<16x128xf32>
    tpu.vector_store %arg26[%c16_25, %c0_26], %60 {strides = array<i32>} : memref<144x128xf32, #tpu.memory_space<vmem>>, vector<16x128xf32>,
    %c7_i32_27 = arith.constant 7 : i32
    %62 = tpu.dynamic_rotate %53 by %c7_i32_27 dim 1 : vector<16x128xf32>, i32 -> vector<16x128xf32>
    %63 = vector.broadcast %3 : vector<1x128xf32> to vector<16x128xf32>
    %64 = arith.mulf %62, %63 : vector<16x128xf32>
    %c32_28 = arith.constant 32 : index
    %c0_29 = arith.constant 0 : index
    %65 = vector.load %arg26[%c32_28, %c0_29] : memref<144x128xf32, #tpu.memory_space<vmem>>, vector<16x128xf32>
    tpu.vector_store %arg26[%c32_28, %c0_29], %64 {strides = array<i32>} : memref<144x128xf32, #tpu.memory_space<vmem>>, vector<16x128xf32>,
    %c1_i32_30 = arith.constant 1 : i32
    %66 = tpu.dynamic_rotate %53 by %c1_i32_30 dim 1 : vector<16x128xf32>, i32 -> vector<16x128xf32>
    %67 = vector.broadcast %4 : vector<1x128xf32> to vector<16x128xf32>
    %68 = arith.mulf %66, %67 : vector<16x128xf32>
    %c48_31 = arith.constant 48 : index
    %c0_32 = arith.constant 0 : index
    %69 = vector.load %arg26[%c48_31, %c0_32] : memref<144x128xf32, #tpu.memory_space<vmem>>, vector<16x128xf32>
    tpu.vector_store %arg26[%c48_31, %c0_32], %68 {strides = array<i32>} : memref<144x128xf32, #tpu.memory_space<vmem>>, vector<16x128xf32>,
    %c64_33 = arith.constant 64 : index
    %c0_34 = arith.constant 0 : index
    %70 = vector.load %arg26[%c64_33, %c0_34] : memref<144x128xf32, #tpu.memory_space<vmem>>, vector<16x128xf32>
    tpu.vector_store %arg26[%c64_33, %c0_34], %53 {strides = array<i32>} : memref<144x128xf32, #tpu.memory_space<vmem>>, vector<16x128xf32>,
    %c127_i32_35 = arith.constant 127 : i32
    %71 = tpu.dynamic_rotate %53 by %c127_i32_35 dim 1 : vector<16x128xf32>, i32 -> vector<16x128xf32>
    %72 = vector.broadcast %5 : vector<1x128xf32> to vector<16x128xf32>
    %73 = arith.mulf %71, %72 : vector<16x128xf32>
    %c80 = arith.constant 80 : index
    %c0_36 = arith.constant 0 : index
    %74 = vector.load %arg26[%c80, %c0_36] : memref<144x128xf32, #tpu.memory_space<vmem>>, vector<16x128xf32>
    tpu.vector_store %arg26[%c80, %c0_36], %73 {strides = array<i32>} : memref<144x128xf32, #tpu.memory_space<vmem>>, vector<16x128xf32>,
    %c121_i32_37 = arith.constant 121 : i32
    %75 = tpu.dynamic_rotate %53 by %c121_i32_37 dim 1 : vector<16x128xf32>, i32 -> vector<16x128xf32>
    %76 = vector.broadcast %6 : vector<1x128xf32> to vector<16x128xf32>
    %77 = arith.mulf %75, %76 : vector<16x128xf32>
    %c96 = arith.constant 96 : index
    %c0_38 = arith.constant 0 : index
    %78 = vector.load %arg26[%c96, %c0_38] : memref<144x128xf32, #tpu.memory_space<vmem>>, vector<16x128xf32>
    tpu.vector_store %arg26[%c96, %c0_38], %77 {strides = array<i32>} : memref<144x128xf32, #tpu.memory_space<vmem>>, vector<16x128xf32>,
    %c120_i32_39 = arith.constant 120 : i32
    %79 = tpu.dynamic_rotate %53 by %c120_i32_39 dim 1 : vector<16x128xf32>, i32 -> vector<16x128xf32>
    %80 = vector.broadcast %7 : vector<1x128xf32> to vector<16x128xf32>
    %81 = arith.mulf %79, %80 : vector<16x128xf32>
    %c112 = arith.constant 112 : index
    %c0_40 = arith.constant 0 : index
    %82 = vector.load %arg26[%c112, %c0_40] : memref<144x128xf32, #tpu.memory_space<vmem>>, vector<16x128xf32>
    tpu.vector_store %arg26[%c112, %c0_40], %81 {strides = array<i32>} : memref<144x128xf32, #tpu.memory_space<vmem>>, vector<16x128xf32>,
    %c119_i32_41 = arith.constant 119 : i32
    %83 = tpu.dynamic_rotate %53 by %c119_i32_41 dim 1 : vector<16x128xf32>, i32 -> vector<16x128xf32>
    %84 = vector.broadcast %8 : vector<1x128xf32> to vector<16x128xf32>
    %85 = arith.mulf %83, %84 : vector<16x128xf32>
    %c128 = arith.constant 128 : index
    %c0_42 = arith.constant 0 : index
    %86 = vector.load %arg26[%c128, %c0_42] : memref<144x128xf32, #tpu.memory_space<vmem>>, vector<16x128xf32>
    tpu.vector_store %arg26[%c128, %c0_42], %85 {strides = array<i32>} : memref<144x128xf32, #tpu.memory_space<vmem>>, vector<16x128xf32>,
    %c0_43 = arith.constant 0 : index
    %c0_44 = arith.constant 0 : index
    %87 = vector.load %arg5[%c0_43, %c0_44] : memref<16x144xf32, #tpu.memory_space<vmem>>, vector<16x144xf32>
    %c0_45 = arith.constant 0 : index
    %c0_46 = arith.constant 0 : index
    %88 = vector.load %arg26[%c0_45, %c0_46] : memref<144x128xf32, #tpu.memory_space<vmem>>, vector<144x128xf32>
    %cst_47 = arith.constant dense<0.000000e+00> : vector<16x128xf32>
    %89 = tpu.matmul %87, %88, %cst_47 {dimension_numbers = #tpu.dot_dimension_numbers<[1], [0], [0], [1], [0, 0, 1, 1], [], []>} : vector<16x144xf32>, vector<144x128xf32>, vector<16x128xf32> -> vector<16x128xf32>
    %c0_48 = arith.constant 0 : index
    %c0_49 = arith.constant 0 : index
    %90 = vector.load %arg6[%c0_48, %c0_49] : memref<16x1xf32, #tpu.memory_space<vmem>>, vector<16x1xf32>
    %91 = vector.broadcast %90 : vector<16x1xf32> to vector<16x128xf32>
    %92 = arith.addf %89, %91 : vector<16x128xf32>
    %cst_50 = arith.constant 0.000000e+00 : f32
    %93 = vector.broadcast %cst_50 : f32 to vector<16x128xf32>
    %94 = arith.maximumf %92, %93 : vector<16x128xf32>
    %c9_i32_51 = arith.constant 9 : i32
    %95 = tpu.dynamic_rotate %94 by %c9_i32_51 dim 1 : vector<16x128xf32>, i32 -> vector<16x128xf32>
    %96 = vector.broadcast %1 : vector<1x128xf32> to vector<16x128xf32>
    %97 = arith.mulf %95, %96 : vector<16x128xf32>
    %c0_52 = arith.constant 0 : index
    %c0_53 = arith.constant 0 : index
    %98 = vector.load %arg26[%c0_52, %c0_53] : memref<144x128xf32, #tpu.memory_space<vmem>>, vector<16x128xf32>
    tpu.vector_store %arg26[%c0_52, %c0_53], %97 {strides = array<i32>} : memref<144x128xf32, #tpu.memory_space<vmem>>, vector<16x128xf32>,
    %c8_i32_54 = arith.constant 8 : i32
    %99 = tpu.dynamic_rotate %94 by %c8_i32_54 dim 1 : vector<16x128xf32>, i32 -> vector<16x128xf32>
    %100 = vector.broadcast %2 : vector<1x128xf32> to vector<16x128xf32>
    %101 = arith.mulf %99, %100 : vector<16x128xf32>
    %c16_55 = arith.constant 16 : index
    %c0_56 = arith.constant 0 : index
    %102 = vector.load %arg26[%c16_55, %c0_56] : memref<144x128xf32, #tpu.memory_space<vmem>>, vector<16x128xf32>
    tpu.vector_store %arg26[%c16_55, %c0_56], %101 {strides = array<i32>} : memref<144x128xf32, #tpu.memory_space<vmem>>, vector<16x128xf32>,
    %c7_i32_57 = arith.constant 7 : i32
    %103 = tpu.dynamic_rotate %94 by %c7_i32_57 dim 1 : vector<16x128xf32>, i32 -> vector<16x128xf32>
    %104 = vector.broadcast %3 : vector<1x128xf32> to vector<16x128xf32>
    %105 = arith.mulf %103, %104 : vector<16x128xf32>
    %c32_58 = arith.constant 32 : index
    %c0_59 = arith.constant 0 : index
    %106 = vector.load %arg26[%c32_58, %c0_59] : memref<144x128xf32, #tpu.memory_space<vmem>>, vector<16x128xf32>
    tpu.vector_store %arg26[%c32_58, %c0_59], %105 {strides = array<i32>} : memref<144x128xf32, #tpu.memory_space<vmem>>, vector<16x128xf32>,
    %c1_i32_60 = arith.constant 1 : i32
    %107 = tpu.dynamic_rotate %94 by %c1_i32_60 dim 1 : vector<16x128xf32>, i32 -> vector<16x128xf32>
    %108 = vector.broadcast %4 : vector<1x128xf32> to vector<16x128xf32>
    %109 = arith.mulf %107, %108 : vector<16x128xf32>
    %c48_61 = arith.constant 48 : index
    %c0_62 = arith.constant 0 : index
    %110 = vector.load %arg26[%c48_61, %c0_62] : memref<144x128xf32, #tpu.memory_space<vmem>>, vector<16x128xf32>
    tpu.vector_store %arg26[%c48_61, %c0_62], %109 {strides = array<i32>} : memref<144x128xf32, #tpu.memory_space<vmem>>, vector<16x128xf32>,
    %c64_63 = arith.constant 64 : index
    %c0_64 = arith.constant 0 : index
    %111 = vector.load %arg26[%c64_63, %c0_64] : memref<144x128xf32, #tpu.memory_space<vmem>>, vector<16x128xf32>
    tpu.vector_store %arg26[%c64_63, %c0_64], %94 {strides = array<i32>} : memref<144x128xf32, #tpu.memory_space<vmem>>, vector<16x128xf32>,
    %c127_i32_65 = arith.constant 127 : i32
    %112 = tpu.dynamic_rotate %94 by %c127_i32_65 dim 1 : vector<16x128xf32>, i32 -> vector<16x128xf32>
    %113 = vector.broadcast %5 : vector<1x128xf32> to vector<16x128xf32>
    %114 = arith.mulf %112, %113 : vector<16x128xf32>
    %c80_66 = arith.constant 80 : index
    %c0_67 = arith.constant 0 : index
    %115 = vector.load %arg26[%c80_66, %c0_67] : memref<144x128xf32, #tpu.memory_space<vmem>>, vector<16x128xf32>
    tpu.vector_store %arg26[%c80_66, %c0_67], %114 {strides = array<i32>} : memref<144x128xf32, #tpu.memory_space<vmem>>, vector<16x128xf32>,
    %c121_i32_68 = arith.constant 121 : i32
    %116 = tpu.dynamic_rotate %94 by %c121_i32_68 dim 1 : vector<16x128xf32>, i32 -> vector<16x128xf32>
    %117 = vector.broadcast %6 : vector<1x128xf32> to vector<16x128xf32>
    %118 = arith.mulf %116, %117 : vector<16x128xf32>
    %c96_69 = arith.constant 96 : index
    %c0_70 = arith.constant 0 : index
    %119 = vector.load %arg26[%c96_69, %c0_70] : memref<144x128xf32, #tpu.memory_space<vmem>>, vector<16x128xf32>
    tpu.vector_store %arg26[%c96_69, %c0_70], %118 {strides = array<i32>} : memref<144x128xf32, #tpu.memory_space<vmem>>, vector<16x128xf32>,
    %c120_i32_71 = arith.constant 120 : i32
    %120 = tpu.dynamic_rotate %94 by %c120_i32_71 dim 1 : vector<16x128xf32>, i32 -> vector<16x128xf32>
    %121 = vector.broadcast %7 : vector<1x128xf32> to vector<16x128xf32>
    %122 = arith.mulf %120, %121 : vector<16x128xf32>
    %c112_72 = arith.constant 112 : index
    %c0_73 = arith.constant 0 : index
    %123 = vector.load %arg26[%c112_72, %c0_73] : memref<144x128xf32, #tpu.memory_space<vmem>>, vector<16x128xf32>
    tpu.vector_store %arg26[%c112_72, %c0_73], %122 {strides = array<i32>} : memref<144x128xf32, #tpu.memory_space<vmem>>, vector<16x128xf32>,
    %c119_i32_74 = arith.constant 119 : i32
    %124 = tpu.dynamic_rotate %94 by %c119_i32_74 dim 1 : vector<16x128xf32>, i32 -> vector<16x128xf32>
    %125 = vector.broadcast %8 : vector<1x128xf32> to vector<16x128xf32>
    %126 = arith.mulf %124, %125 : vector<16x128xf32>
    %c128_75 = arith.constant 128 : index
    %c0_76 = arith.constant 0 : index
    %127 = vector.load %arg26[%c128_75, %c0_76] : memref<144x128xf32, #tpu.memory_space<vmem>>, vector<16x128xf32>
    tpu.vector_store %arg26[%c128_75, %c0_76], %126 {strides = array<i32>} : memref<144x128xf32, #tpu.memory_space<vmem>>, vector<16x128xf32>,
    %c0_77 = arith.constant 0 : index
    %c0_78 = arith.constant 0 : index
    %128 = vector.load %arg7[%c0_77, %c0_78] : memref<16x144xf32, #tpu.memory_space<vmem>>, vector<16x144xf32>
    %c0_79 = arith.constant 0 : index
    %c0_80 = arith.constant 0 : index
    %129 = vector.load %arg26[%c0_79, %c0_80] : memref<144x128xf32, #tpu.memory_space<vmem>>, vector<144x128xf32>
    %cst_81 = arith.constant dense<0.000000e+00> : vector<16x128xf32>
    %130 = tpu.matmul %128, %129, %cst_81 {dimension_numbers = #tpu.dot_dimension_numbers<[1], [0], [0], [1], [0, 0, 1, 1], [], []>} : vector<16x144xf32>, vector<144x128xf32>, vector<16x128xf32> -> vector<16x128xf32>
    %c0_82 = arith.constant 0 : index
    %c0_83 = arith.constant 0 : index
    %131 = vector.load %arg8[%c0_82, %c0_83] : memref<16x1xf32, #tpu.memory_space<vmem>>, vector<16x1xf32>
    %132 = vector.broadcast %131 : vector<16x1xf32> to vector<16x128xf32>
    %133 = arith.addf %130, %132 : vector<16x128xf32>
    %c0_84 = arith.constant 0 : index
    %c0_85 = arith.constant 0 : index
    %134 = vector.load %arg9[%c0_84, %c0_85] : memref<8x1xf32, #tpu.memory_space<vmem>>, vector<8x1xf32>
    %135 = vector.extract_strided_slice %133 {offsets = [0, 0], sizes = [8, 128], strides = [1, 1]} : vector<16x128xf32> to vector<8x128xf32>
    %136 = math.tanh %135 : vector<8x128xf32>
    %137 = vector.broadcast %134 : vector<8x1xf32> to vector<8x128xf32>
    %138 = arith.mulf %137, %136 : vector<8x128xf32>
    %139 = vector.extract_strided_slice %133 {offsets = [8, 0], sizes = [8, 128], strides = [1, 1]} : vector<16x128xf32> to vector<8x128xf32>
    %140 = arith.addf %11, %139 : vector<8x128xf32>
    %141 = math.exp %138 : vector<8x128xf32>
    %142 = arith.mulf %140, %141 : vector<8x128xf32>
    %143 = tpu.concatenate %142, %12 in 0 : vector<8x128xf32>, vector<8x128xf32> -> vector<16x128xf32>
    %cst_86 = arith.constant dense<0.000000e+00> : vector<128xf32>
    %144 = vector.multi_reduction <add>, %138, %cst_86 [0] : vector<8x128xf32> to vector<128xf32>
    %145 = vector.shape_cast %144 : vector<128xf32> to vector<1x128xf32>
    %146 = arith.addf %10, %145 : vector<1x128xf32>
    %147 = vector.extract_strided_slice %143 {offsets = [0, 0], sizes = [8, 128], strides = [1, 1]} : vector<16x128xf32> to vector<8x128xf32>
    %148 = vector.extract_strided_slice %143 {offsets = [8, 0], sizes = [8, 128], strides = [1, 1]} : vector<16x128xf32> to vector<8x128xf32>
    %c9_i32_87 = arith.constant 9 : i32
    %149 = tpu.dynamic_rotate %147 by %c9_i32_87 dim 1 : vector<8x128xf32>, i32 -> vector<8x128xf32>
    %150 = vector.broadcast %1 : vector<1x128xf32> to vector<8x128xf32>
    %151 = arith.mulf %149, %150 : vector<8x128xf32>
    %c0_88 = arith.constant 0 : index
    %c0_89 = arith.constant 0 : index
    %152 = vector.load %arg26[%c0_88, %c0_89] : memref<144x128xf32, #tpu.memory_space<vmem>>, vector<8x128xf32>
    tpu.vector_store %arg26[%c0_88, %c0_89], %151 {strides = array<i32>} : memref<144x128xf32, #tpu.memory_space<vmem>>, vector<8x128xf32>,
    %c8_i32_90 = arith.constant 8 : i32
    %153 = tpu.dynamic_rotate %147 by %c8_i32_90 dim 1 : vector<8x128xf32>, i32 -> vector<8x128xf32>
    %154 = vector.broadcast %2 : vector<1x128xf32> to vector<8x128xf32>
    %155 = arith.mulf %153, %154 : vector<8x128xf32>
    %c8_91 = arith.constant 8 : index
    %c0_92 = arith.constant 0 : index
    %156 = vector.load %arg26[%c8_91, %c0_92] : memref<144x128xf32, #tpu.memory_space<vmem>>, vector<8x128xf32>
    tpu.vector_store %arg26[%c8_91, %c0_92], %155 {strides = array<i32>} : memref<144x128xf32, #tpu.memory_space<vmem>>, vector<8x128xf32>,
    %c7_i32_93 = arith.constant 7 : i32
    %157 = tpu.dynamic_rotate %147 by %c7_i32_93 dim 1 : vector<8x128xf32>, i32 -> vector<8x128xf32>
    %158 = vector.broadcast %3 : vector<1x128xf32> to vector<8x128xf32>
    %159 = arith.mulf %157, %158 : vector<8x128xf32>
    %c16_94 = arith.constant 16 : index
    %c0_95 = arith.constant 0 : index
    %160 = vector.load %arg26[%c16_94, %c0_95] : memref<144x128xf32, #tpu.memory_space<vmem>>, vector<8x128xf32>
    tpu.vector_store %arg26[%c16_94, %c0_95], %159 {strides = array<i32>} : memref<144x128xf32, #tpu.memory_space<vmem>>, vector<8x128xf32>,
    %c1_i32_96 = arith.constant 1 : i32
    %161 = tpu.dynamic_rotate %147 by %c1_i32_96 dim 1 : vector<8x128xf32>, i32 -> vector<8x128xf32>
    %162 = vector.broadcast %4 : vector<1x128xf32> to vector<8x128xf32>
    %163 = arith.mulf %161, %162 : vector<8x128xf32>
    %c24_97 = arith.constant 24 : index
    %c0_98 = arith.constant 0 : index
    %164 = vector.load %arg26[%c24_97, %c0_98] : memref<144x128xf32, #tpu.memory_space<vmem>>, vector<8x128xf32>
    tpu.vector_store %arg26[%c24_97, %c0_98], %163 {strides = array<i32>} : memref<144x128xf32, #tpu.memory_space<vmem>>, vector<8x128xf32>,
    %c32_99 = arith.constant 32 : index
    %c0_100 = arith.constant 0 : index
    %165 = vector.load %arg26[%c32_99, %c0_100] : memref<144x128xf32, #tpu.memory_space<vmem>>, vector<8x128xf32>
    tpu.vector_store %arg26[%c32_99, %c0_100], %147 {strides = array<i32>} : memref<144x128xf32, #tpu.memory_space<vmem>>, vector<8x128xf32>,
    %c127_i32_101 = arith.constant 127 : i32
    %166 = tpu.dynamic_rotate %147 by %c127_i32_101 dim 1 : vector<8x128xf32>, i32 -> vector<8x128xf32>
    %167 = vector.broadcast %5 : vector<1x128xf32> to vector<8x128xf32>
    %168 = arith.mulf %166, %167 : vector<8x128xf32>
    %c40_102 = arith.constant 40 : index
    %c0_103 = arith.constant 0 : index
    %169 = vector.load %arg26[%c40_102, %c0_103] : memref<144x128xf32, #tpu.memory_space<vmem>>, vector<8x128xf32>
    tpu.vector_store %arg26[%c40_102, %c0_103], %168 {strides = array<i32>} : memref<144x128xf32, #tpu.memory_space<vmem>>, vector<8x128xf32>,
    %c121_i32_104 = arith.constant 121 : i32
    %170 = tpu.dynamic_rotate %147 by %c121_i32_104 dim 1 : vector<8x128xf32>, i32 -> vector<8x128xf32>
    %171 = vector.broadcast %6 : vector<1x128xf32> to vector<8x128xf32>
    %172 = arith.mulf %170, %171 : vector<8x128xf32>
    %c48_105 = arith.constant 48 : index
    %c0_106 = arith.constant 0 : index
    %173 = vector.load %arg26[%c48_105, %c0_106] : memref<144x128xf32, #tpu.memory_space<vmem>>, vector<8x128xf32>
    tpu.vector_store %arg26[%c48_105, %c0_106], %172 {strides = array<i32>} : memref<144x128xf32, #tpu.memory_space<vmem>>, vector<8x128xf32>,
    %c120_i32_107 = arith.constant 120 : i32
    %174 = tpu.dynamic_rotate %147 by %c120_i32_107 dim 1 : vector<8x128xf32>, i32 -> vector<8x128xf32>
    %175 = vector.broadcast %7 : vector<1x128xf32> to vector<8x128xf32>
    %176 = arith.mulf %174, %175 : vector<8x128xf32>
    %c56_108 = arith.constant 56 : index
    %c0_109 = arith.constant 0 : index
    %177 = vector.load %arg26[%c56_108, %c0_109] : memref<144x128xf32, #tpu.memory_space<vmem>>, vector<8x128xf32>
    tpu.vector_store %arg26[%c56_108, %c0_109], %176 {strides = array<i32>} : memref<144x128xf32, #tpu.memory_space<vmem>>, vector<8x128xf32>,
    %c119_i32_110 = arith.constant 119 : i32
    %178 = tpu.dynamic_rotate %147 by %c119_i32_110 dim 1 : vector<8x128xf32>, i32 -> vector<8x128xf32>
    %179 = vector.broadcast %8 : vector<1x128xf32> to vector<8x128xf32>
    %180 = arith.mulf %178, %179 : vector<8x128xf32>
    %c64_111 = arith.constant 64 : index
    %c0_112 = arith.constant 0 : index
    %181 = vector.load %arg26[%c64_111, %c0_112] : memref<144x128xf32, #tpu.memory_space<vmem>>, vector<8x128xf32>
    tpu.vector_store %arg26[%c64_111, %c0_112], %180 {strides = array<i32>} : memref<144x128xf32, #tpu.memory_space<vmem>>, vector<8x128xf32>,
    %c0_113 = arith.constant 0 : index
    %c0_114 = arith.constant 0 : index
    %182 = vector.load %arg10[%c0_113, %c0_114] : memref<16x72xf32, #tpu.memory_space<vmem>>, vector<16x72xf32>
    %c0_115 = arith.constant 0 : index
    %c0_116 = arith.constant 0 : index
    %183 = vector.load %arg26[%c0_115, %c0_116] : memref<144x128xf32, #tpu.memory_space<vmem>>, vector<72x128xf32>
    %cst_117 = arith.constant dense<0.000000e+00> : vector<16x128xf32>
    %184 = tpu.matmul %182, %183, %cst_117 {dimension_numbers = #tpu.dot_dimension_numbers<[1], [0], [0], [1], [0, 0, 1, 1], [], []>} : vector<16x72xf32>, vector<72x128xf32>, vector<16x128xf32> -> vector<16x128xf32>
    %c0_118 = arith.constant 0 : index
    %c0_119 = arith.constant 0 : index
    %185 = vector.load %arg11[%c0_118, %c0_119] : memref<16x1xf32, #tpu.memory_space<vmem>>, vector<16x1xf32>
    %186 = vector.broadcast %185 : vector<16x1xf32> to vector<16x128xf32>
    %187 = arith.addf %184, %186 : vector<16x128xf32>
    %cst_120 = arith.constant 0.000000e+00 : f32
    %188 = vector.broadcast %cst_120 : f32 to vector<16x128xf32>
    %189 = arith.maximumf %187, %188 : vector<16x128xf32>
    %c9_i32_121 = arith.constant 9 : i32
    %190 = tpu.dynamic_rotate %189 by %c9_i32_121 dim 1 : vector<16x128xf32>, i32 -> vector<16x128xf32>
    %191 = vector.broadcast %1 : vector<1x128xf32> to vector<16x128xf32>
    %192 = arith.mulf %190, %191 : vector<16x128xf32>
    %c0_122 = arith.constant 0 : index
    %c0_123 = arith.constant 0 : index
    %193 = vector.load %arg26[%c0_122, %c0_123] : memref<144x128xf32, #tpu.memory_space<vmem>>, vector<16x128xf32>
    tpu.vector_store %arg26[%c0_122, %c0_123], %192 {strides = array<i32>} : memref<144x128xf32, #tpu.memory_space<vmem>>, vector<16x128xf32>,
    %c8_i32_124 = arith.constant 8 : i32
    %194 = tpu.dynamic_rotate %189 by %c8_i32_124 dim 1 : vector<16x128xf32>, i32 -> vector<16x128xf32>
    %195 = vector.broadcast %2 : vector<1x128xf32> to vector<16x128xf32>
    %196 = arith.mulf %194, %195 : vector<16x128xf32>
    %c16_125 = arith.constant 16 : index
    %c0_126 = arith.constant 0 : index
    %197 = vector.load %arg26[%c16_125, %c0_126] : memref<144x128xf32, #tpu.memory_space<vmem>>, vector<16x128xf32>
    tpu.vector_store %arg26[%c16_125, %c0_126], %196 {strides = array<i32>} : memref<144x128xf32, #tpu.memory_space<vmem>>, vector<16x128xf32>,
    %c7_i32_127 = arith.constant 7 : i32
    %198 = tpu.dynamic_rotate %189 by %c7_i32_127 dim 1 : vector<16x128xf32>, i32 -> vector<16x128xf32>
    %199 = vector.broadcast %3 : vector<1x128xf32> to vector<16x128xf32>
    %200 = arith.mulf %198, %199 : vector<16x128xf32>
    %c32_128 = arith.constant 32 : index
    %c0_129 = arith.constant 0 : index
    %201 = vector.load %arg26[%c32_128, %c0_129] : memref<144x128xf32, #tpu.memory_space<vmem>>, vector<16x128xf32>
    tpu.vector_store %arg26[%c32_128, %c0_129], %200 {strides = array<i32>} : memref<144x128xf32, #tpu.memory_space<vmem>>, vector<16x128xf32>,
    %c1_i32_130 = arith.constant 1 : i32
    %202 = tpu.dynamic_rotate %189 by %c1_i32_130 dim 1 : vector<16x128xf32>, i32 -> vector<16x128xf32>
    %203 = vector.broadcast %4 : vector<1x128xf32> to vector<16x128xf32>
    %204 = arith.mulf %202, %203 : vector<16x128xf32>
    %c48_131 = arith.constant 48 : index
    %c0_132 = arith.constant 0 : index
    %205 = vector.load %arg26[%c48_131, %c0_132] : memref<144x128xf32, #tpu.memory_space<vmem>>, vector<16x128xf32>
    tpu.vector_store %arg26[%c48_131, %c0_132], %204 {strides = array<i32>} : memref<144x128xf32, #tpu.memory_space<vmem>>, vector<16x128xf32>,
    %c64_133 = arith.constant 64 : index
    %c0_134 = arith.constant 0 : index
    %206 = vector.load %arg26[%c64_133, %c0_134] : memref<144x128xf32, #tpu.memory_space<vmem>>, vector<16x128xf32>
    tpu.vector_store %arg26[%c64_133, %c0_134], %189 {strides = array<i32>} : memref<144x128xf32, #tpu.memory_space<vmem>>, vector<16x128xf32>,
    %c127_i32_135 = arith.constant 127 : i32
    %207 = tpu.dynamic_rotate %189 by %c127_i32_135 dim 1 : vector<16x128xf32>, i32 -> vector<16x128xf32>
    %208 = vector.broadcast %5 : vector<1x128xf32> to vector<16x128xf32>
    %209 = arith.mulf %207, %208 : vector<16x128xf32>
    %c80_136 = arith.constant 80 : index
    %c0_137 = arith.constant 0 : index
    %210 = vector.load %arg26[%c80_136, %c0_137] : memref<144x128xf32, #tpu.memory_space<vmem>>, vector<16x128xf32>
    tpu.vector_store %arg26[%c80_136, %c0_137], %209 {strides = array<i32>} : memref<144x128xf32, #tpu.memory_space<vmem>>, vector<16x128xf32>,
    %c121_i32_138 = arith.constant 121 : i32
    %211 = tpu.dynamic_rotate %189 by %c121_i32_138 dim 1 : vector<16x128xf32>, i32 -> vector<16x128xf32>
    %212 = vector.broadcast %6 : vector<1x128xf32> to vector<16x128xf32>
    %213 = arith.mulf %211, %212 : vector<16x128xf32>
    %c96_139 = arith.constant 96 : index
    %c0_140 = arith.constant 0 : index
    %214 = vector.load %arg26[%c96_139, %c0_140] : memref<144x128xf32, #tpu.memory_space<vmem>>, vector<16x128xf32>
    tpu.vector_store %arg26[%c96_139, %c0_140], %213 {strides = array<i32>} : memref<144x128xf32, #tpu.memory_space<vmem>>, vector<16x128xf32>,
    %c120_i32_141 = arith.constant 120 : i32
    %215 = tpu.dynamic_rotate %189 by %c120_i32_141 dim 1 : vector<16x128xf32>, i32 -> vector<16x128xf32>
    %216 = vector.broadcast %7 : vector<1x128xf32> to vector<16x128xf32>
    %217 = arith.mulf %215, %216 : vector<16x128xf32>
    %c112_142 = arith.constant 112 : index
    %c0_143 = arith.constant 0 : index
    %218 = vector.load %arg26[%c112_142, %c0_143] : memref<144x128xf32, #tpu.memory_space<vmem>>, vector<16x128xf32>
    tpu.vector_store %arg26[%c112_142, %c0_143], %217 {strides = array<i32>} : memref<144x128xf32, #tpu.memory_space<vmem>>, vector<16x128xf32>,
    %c119_i32_144 = arith.constant 119 : i32
    %219 = tpu.dynamic_rotate %189 by %c119_i32_144 dim 1 : vector<16x128xf32>, i32 -> vector<16x128xf32>
    %220 = vector.broadcast %8 : vector<1x128xf32> to vector<16x128xf32>
    %221 = arith.mulf %219, %220 : vector<16x128xf32>
    %c128_145 = arith.constant 128 : index
    %c0_146 = arith.constant 0 : index
    %222 = vector.load %arg26[%c128_145, %c0_146] : memref<144x128xf32, #tpu.memory_space<vmem>>, vector<16x128xf32>
    tpu.vector_store %arg26[%c128_145, %c0_146], %221 {strides = array<i32>} : memref<144x128xf32, #tpu.memory_space<vmem>>, vector<16x128xf32>,
    %c0_147 = arith.constant 0 : index
    %c0_148 = arith.constant 0 : index
    %223 = vector.load %arg12[%c0_147, %c0_148] : memref<16x144xf32, #tpu.memory_space<vmem>>, vector<16x144xf32>
    %c0_149 = arith.constant 0 : index
    %c0_150 = arith.constant 0 : index
    %224 = vector.load %arg26[%c0_149, %c0_150] : memref<144x128xf32, #tpu.memory_space<vmem>>, vector<144x128xf32>
    %cst_151 = arith.constant dense<0.000000e+00> : vector<16x128xf32>
    %225 = tpu.matmul %223, %224, %cst_151 {dimension_numbers = #tpu.dot_dimension_numbers<[1], [0], [0], [1], [0, 0, 1, 1], [], []>} : vector<16x144xf32>, vector<144x128xf32>, vector<16x128xf32> -> vector<16x128xf32>
    %c0_152 = arith.constant 0 : index
    %c0_153 = arith.constant 0 : index
    %226 = vector.load %arg13[%c0_152, %c0_153] : memref<16x1xf32, #tpu.memory_space<vmem>>, vector<16x1xf32>
    %227 = vector.broadcast %226 : vector<16x1xf32> to vector<16x128xf32>
    %228 = arith.addf %225, %227 : vector<16x128xf32>
    %cst_154 = arith.constant 0.000000e+00 : f32
    %229 = vector.broadcast %cst_154 : f32 to vector<16x128xf32>
    %230 = arith.maximumf %228, %229 : vector<16x128xf32>
    %c9_i32_155 = arith.constant 9 : i32
    %231 = tpu.dynamic_rotate %230 by %c9_i32_155 dim 1 : vector<16x128xf32>, i32 -> vector<16x128xf32>
    %232 = vector.broadcast %1 : vector<1x128xf32> to vector<16x128xf32>
    %233 = arith.mulf %231, %232 : vector<16x128xf32>
    %c0_156 = arith.constant 0 : index
    %c0_157 = arith.constant 0 : index
    %234 = vector.load %arg26[%c0_156, %c0_157] : memref<144x128xf32, #tpu.memory_space<vmem>>, vector<16x128xf32>
    tpu.vector_store %arg26[%c0_156, %c0_157], %233 {strides = array<i32>} : memref<144x128xf32, #tpu.memory_space<vmem>>, vector<16x128xf32>,
    %c8_i32_158 = arith.constant 8 : i32
    %235 = tpu.dynamic_rotate %230 by %c8_i32_158 dim 1 : vector<16x128xf32>, i32 -> vector<16x128xf32>
    %236 = vector.broadcast %2 : vector<1x128xf32> to vector<16x128xf32>
    %237 = arith.mulf %235, %236 : vector<16x128xf32>
    %c16_159 = arith.constant 16 : index
    %c0_160 = arith.constant 0 : index
    %238 = vector.load %arg26[%c16_159, %c0_160] : memref<144x128xf32, #tpu.memory_space<vmem>>, vector<16x128xf32>
    tpu.vector_store %arg26[%c16_159, %c0_160], %237 {strides = array<i32>} : memref<144x128xf32, #tpu.memory_space<vmem>>, vector<16x128xf32>,
    %c7_i32_161 = arith.constant 7 : i32
    %239 = tpu.dynamic_rotate %230 by %c7_i32_161 dim 1 : vector<16x128xf32>, i32 -> vector<16x128xf32>
    %240 = vector.broadcast %3 : vector<1x128xf32> to vector<16x128xf32>
    %241 = arith.mulf %239, %240 : vector<16x128xf32>
    %c32_162 = arith.constant 32 : index
    %c0_163 = arith.constant 0 : index
    %242 = vector.load %arg26[%c32_162, %c0_163] : memref<144x128xf32, #tpu.memory_space<vmem>>, vector<16x128xf32>
    tpu.vector_store %arg26[%c32_162, %c0_163], %241 {strides = array<i32>} : memref<144x128xf32, #tpu.memory_space<vmem>>, vector<16x128xf32>,
    %c1_i32_164 = arith.constant 1 : i32
    %243 = tpu.dynamic_rotate %230 by %c1_i32_164 dim 1 : vector<16x128xf32>, i32 -> vector<16x128xf32>
    %244 = vector.broadcast %4 : vector<1x128xf32> to vector<16x128xf32>
    %245 = arith.mulf %243, %244 : vector<16x128xf32>
    %c48_165 = arith.constant 48 : index
    %c0_166 = arith.constant 0 : index
    %246 = vector.load %arg26[%c48_165, %c0_166] : memref<144x128xf32, #tpu.memory_space<vmem>>, vector<16x128xf32>
    tpu.vector_store %arg26[%c48_165, %c0_166], %245 {strides = array<i32>} : memref<144x128xf32, #tpu.memory_space<vmem>>, vector<16x128xf32>,
    %c64_167 = arith.constant 64 : index
    %c0_168 = arith.constant 0 : index
    %247 = vector.load %arg26[%c64_167, %c0_168] : memref<144x128xf32, #tpu.memory_space<vmem>>, vector<16x128xf32>
    tpu.vector_store %arg26[%c64_167, %c0_168], %230 {strides = array<i32>} : memref<144x128xf32, #tpu.memory_space<vmem>>, vector<16x128xf32>,
    %c127_i32_169 = arith.constant 127 : i32
    %248 = tpu.dynamic_rotate %230 by %c127_i32_169 dim 1 : vector<16x128xf32>, i32 -> vector<16x128xf32>
    %249 = vector.broadcast %5 : vector<1x128xf32> to vector<16x128xf32>
    %250 = arith.mulf %248, %249 : vector<16x128xf32>
    %c80_170 = arith.constant 80 : index
    %c0_171 = arith.constant 0 : index
    %251 = vector.load %arg26[%c80_170, %c0_171] : memref<144x128xf32, #tpu.memory_space<vmem>>, vector<16x128xf32>
    tpu.vector_store %arg26[%c80_170, %c0_171], %250 {strides = array<i32>} : memref<144x128xf32, #tpu.memory_space<vmem>>, vector<16x128xf32>,
    %c121_i32_172 = arith.constant 121 : i32
    %252 = tpu.dynamic_rotate %230 by %c121_i32_172 dim 1 : vector<16x128xf32>, i32 -> vector<16x128xf32>
    %253 = vector.broadcast %6 : vector<1x128xf32> to vector<16x128xf32>
    %254 = arith.mulf %252, %253 : vector<16x128xf32>
    %c96_173 = arith.constant 96 : index
    %c0_174 = arith.constant 0 : index
    %255 = vector.load %arg26[%c96_173, %c0_174] : memref<144x128xf32, #tpu.memory_space<vmem>>, vector<16x128xf32>
    tpu.vector_store %arg26[%c96_173, %c0_174], %254 {strides = array<i32>} : memref<144x128xf32, #tpu.memory_space<vmem>>, vector<16x128xf32>,
    %c120_i32_175 = arith.constant 120 : i32
    %256 = tpu.dynamic_rotate %230 by %c120_i32_175 dim 1 : vector<16x128xf32>, i32 -> vector<16x128xf32>
    %257 = vector.broadcast %7 : vector<1x128xf32> to vector<16x128xf32>
    %258 = arith.mulf %256, %257 : vector<16x128xf32>
    %c112_176 = arith.constant 112 : index
    %c0_177 = arith.constant 0 : index
    %259 = vector.load %arg26[%c112_176, %c0_177] : memref<144x128xf32, #tpu.memory_space<vmem>>, vector<16x128xf32>
    tpu.vector_store %arg26[%c112_176, %c0_177], %258 {strides = array<i32>} : memref<144x128xf32, #tpu.memory_space<vmem>>, vector<16x128xf32>,
    %c119_i32_178 = arith.constant 119 : i32
    %260 = tpu.dynamic_rotate %230 by %c119_i32_178 dim 1 : vector<16x128xf32>, i32 -> vector<16x128xf32>
    %261 = vector.broadcast %8 : vector<1x128xf32> to vector<16x128xf32>
    %262 = arith.mulf %260, %261 : vector<16x128xf32>
    %c128_179 = arith.constant 128 : index
    %c0_180 = arith.constant 0 : index
    %263 = vector.load %arg26[%c128_179, %c0_180] : memref<144x128xf32, #tpu.memory_space<vmem>>, vector<16x128xf32>
    tpu.vector_store %arg26[%c128_179, %c0_180], %262 {strides = array<i32>} : memref<144x128xf32, #tpu.memory_space<vmem>>, vector<16x128xf32>,
    %c0_181 = arith.constant 0 : index
    %c0_182 = arith.constant 0 : index
    %264 = vector.load %arg14[%c0_181, %c0_182] : memref<16x144xf32, #tpu.memory_space<vmem>>, vector<16x144xf32>
    %c0_183 = arith.constant 0 : index
    %c0_184 = arith.constant 0 : index
    %265 = vector.load %arg26[%c0_183, %c0_184] : memref<144x128xf32, #tpu.memory_space<vmem>>, vector<144x128xf32>
    %cst_185 = arith.constant dense<0.000000e+00> : vector<16x128xf32>
    %266 = tpu.matmul %264, %265, %cst_185 {dimension_numbers = #tpu.dot_dimension_numbers<[1], [0], [0], [1], [0, 0, 1, 1], [], []>} : vector<16x144xf32>, vector<144x128xf32>, vector<16x128xf32> -> vector<16x128xf32>
    %c0_186 = arith.constant 0 : index
    %c0_187 = arith.constant 0 : index
    %267 = vector.load %arg15[%c0_186, %c0_187] : memref<16x1xf32, #tpu.memory_space<vmem>>, vector<16x1xf32>
    %268 = vector.broadcast %267 : vector<16x1xf32> to vector<16x128xf32>
    %269 = arith.addf %266, %268 : vector<16x128xf32>
    %c0_188 = arith.constant 0 : index
    %c0_189 = arith.constant 0 : index
    %270 = vector.load %arg16[%c0_188, %c0_189] : memref<8x1xf32, #tpu.memory_space<vmem>>, vector<8x1xf32>
    %271 = vector.extract_strided_slice %269 {offsets = [0, 0], sizes = [8, 128], strides = [1, 1]} : vector<16x128xf32> to vector<8x128xf32>
    %272 = math.tanh %271 : vector<8x128xf32>
    %273 = vector.broadcast %270 : vector<8x1xf32> to vector<8x128xf32>
    %274 = arith.mulf %273, %272 : vector<8x128xf32>
    %275 = vector.extract_strided_slice %269 {offsets = [8, 0], sizes = [8, 128], strides = [1, 1]} : vector<16x128xf32> to vector<8x128xf32>
    %276 = arith.addf %148, %275 : vector<8x128xf32>
    %277 = math.exp %274 : vector<8x128xf32>
    %278 = arith.mulf %276, %277 : vector<8x128xf32>
    %279 = tpu.concatenate %147, %278 in 0 : vector<8x128xf32>, vector<8x128xf32> -> vector<16x128xf32>
    %cst_190 = arith.constant dense<0.000000e+00> : vector<128xf32>
    %280 = vector.multi_reduction <add>, %274, %cst_190 [0] : vector<8x128xf32> to vector<128xf32>
    %281 = vector.shape_cast %280 : vector<128xf32> to vector<1x128xf32>
    %282 = arith.addf %146, %281 : vector<1x128xf32>
    %283 = vector.extract_strided_slice %279 {offsets = [0, 0], sizes = [8, 128], strides = [1, 1]} : vector<16x128xf32> to vector<8x128xf32>
    %284 = vector.extract_strided_slice %279 {offsets = [8, 0], sizes = [8, 128], strides = [1, 1]} : vector<16x128xf32> to vector<8x128xf32>
    %c9_i32_191 = arith.constant 9 : i32
    %285 = tpu.dynamic_rotate %284 by %c9_i32_191 dim 1 : vector<8x128xf32>, i32 -> vector<8x128xf32>
    %286 = vector.broadcast %1 : vector<1x128xf32> to vector<8x128xf32>
    %287 = arith.mulf %285, %286 : vector<8x128xf32>
    %c0_192 = arith.constant 0 : index
    %c0_193 = arith.constant 0 : index
    %288 = vector.load %arg26[%c0_192, %c0_193] : memref<144x128xf32, #tpu.memory_space<vmem>>, vector<8x128xf32>
    tpu.vector_store %arg26[%c0_192, %c0_193], %287 {strides = array<i32>} : memref<144x128xf32, #tpu.memory_space<vmem>>, vector<8x128xf32>,
    %c8_i32_194 = arith.constant 8 : i32
    %289 = tpu.dynamic_rotate %284 by %c8_i32_194 dim 1 : vector<8x128xf32>, i32 -> vector<8x128xf32>
    %290 = vector.broadcast %2 : vector<1x128xf32> to vector<8x128xf32>
    %291 = arith.mulf %289, %290 : vector<8x128xf32>
    %c8_195 = arith.constant 8 : index
    %c0_196 = arith.constant 0 : index
    %292 = vector.load %arg26[%c8_195, %c0_196] : memref<144x128xf32, #tpu.memory_space<vmem>>, vector<8x128xf32>
    tpu.vector_store %arg26[%c8_195, %c0_196], %291 {strides = array<i32>} : memref<144x128xf32, #tpu.memory_space<vmem>>, vector<8x128xf32>,
    %c7_i32_197 = arith.constant 7 : i32
    %293 = tpu.dynamic_rotate %284 by %c7_i32_197 dim 1 : vector<8x128xf32>, i32 -> vector<8x128xf32>
    %294 = vector.broadcast %3 : vector<1x128xf32> to vector<8x128xf32>
    %295 = arith.mulf %293, %294 : vector<8x128xf32>
    %c16_198 = arith.constant 16 : index
    %c0_199 = arith.constant 0 : index
    %296 = vector.load %arg26[%c16_198, %c0_199] : memref<144x128xf32, #tpu.memory_space<vmem>>, vector<8x128xf32>
    tpu.vector_store %arg26[%c16_198, %c0_199], %295 {strides = array<i32>} : memref<144x128xf32, #tpu.memory_space<vmem>>, vector<8x128xf32>,
    %c1_i32_200 = arith.constant 1 : i32
    %297 = tpu.dynamic_rotate %284 by %c1_i32_200 dim 1 : vector<8x128xf32>, i32 -> vector<8x128xf32>
    %298 = vector.broadcast %4 : vector<1x128xf32> to vector<8x128xf32>
    %299 = arith.mulf %297, %298 : vector<8x128xf32>
    %c24_201 = arith.constant 24 : index
    %c0_202 = arith.constant 0 : index
    %300 = vector.load %arg26[%c24_201, %c0_202] : memref<144x128xf32, #tpu.memory_space<vmem>>, vector<8x128xf32>
    tpu.vector_store %arg26[%c24_201, %c0_202], %299 {strides = array<i32>} : memref<144x128xf32, #tpu.memory_space<vmem>>, vector<8x128xf32>,
    %c32_203 = arith.constant 32 : index
    %c0_204 = arith.constant 0 : index
    %301 = vector.load %arg26[%c32_203, %c0_204] : memref<144x128xf32, #tpu.memory_space<vmem>>, vector<8x128xf32>
    tpu.vector_store %arg26[%c32_203, %c0_204], %284 {strides = array<i32>} : memref<144x128xf32, #tpu.memory_space<vmem>>, vector<8x128xf32>,
    %c127_i32_205 = arith.constant 127 : i32
    %302 = tpu.dynamic_rotate %284 by %c127_i32_205 dim 1 : vector<8x128xf32>, i32 -> vector<8x128xf32>
    %303 = vector.broadcast %5 : vector<1x128xf32> to vector<8x128xf32>
    %304 = arith.mulf %302, %303 : vector<8x128xf32>
    %c40_206 = arith.constant 40 : index
    %c0_207 = arith.constant 0 : index
    %305 = vector.load %arg26[%c40_206, %c0_207] : memref<144x128xf32, #tpu.memory_space<vmem>>, vector<8x128xf32>
    tpu.vector_store %arg26[%c40_206, %c0_207], %304 {strides = array<i32>} : memref<144x128xf32, #tpu.memory_space<vmem>>, vector<8x128xf32>,
    %c121_i32_208 = arith.constant 121 : i32
    %306 = tpu.dynamic_rotate %284 by %c121_i32_208 dim 1 : vector<8x128xf32>, i32 -> vector<8x128xf32>
    %307 = vector.broadcast %6 : vector<1x128xf32> to vector<8x128xf32>
    %308 = arith.mulf %306, %307 : vector<8x128xf32>
    %c48_209 = arith.constant 48 : index
    %c0_210 = arith.constant 0 : index
    %309 = vector.load %arg26[%c48_209, %c0_210] : memref<144x128xf32, #tpu.memory_space<vmem>>, vector<8x128xf32>
    tpu.vector_store %arg26[%c48_209, %c0_210], %308 {strides = array<i32>} : memref<144x128xf32, #tpu.memory_space<vmem>>, vector<8x128xf32>,
    %c120_i32_211 = arith.constant 120 : i32
    %310 = tpu.dynamic_rotate %284 by %c120_i32_211 dim 1 : vector<8x128xf32>, i32 -> vector<8x128xf32>
    %311 = vector.broadcast %7 : vector<1x128xf32> to vector<8x128xf32>
    %312 = arith.mulf %310, %311 : vector<8x128xf32>
    %c56_212 = arith.constant 56 : index
    %c0_213 = arith.constant 0 : index
    %313 = vector.load %arg26[%c56_212, %c0_213] : memref<144x128xf32, #tpu.memory_space<vmem>>, vector<8x128xf32>
    tpu.vector_store %arg26[%c56_212, %c0_213], %312 {strides = array<i32>} : memref<144x128xf32, #tpu.memory_space<vmem>>, vector<8x128xf32>,
    %c119_i32_214 = arith.constant 119 : i32
    %314 = tpu.dynamic_rotate %284 by %c119_i32_214 dim 1 : vector<8x128xf32>, i32 -> vector<8x128xf32>
    %315 = vector.broadcast %8 : vector<1x128xf32> to vector<8x128xf32>
    %316 = arith.mulf %314, %315 : vector<8x128xf32>
    %c64_215 = arith.constant 64 : index
    %c0_216 = arith.constant 0 : index
    %317 = vector.load %arg26[%c64_215, %c0_216] : memref<144x128xf32, #tpu.memory_space<vmem>>, vector<8x128xf32>
    tpu.vector_store %arg26[%c64_215, %c0_216], %316 {strides = array<i32>} : memref<144x128xf32, #tpu.memory_space<vmem>>, vector<8x128xf32>,
    %c0_217 = arith.constant 0 : index
    %c0_218 = arith.constant 0 : index
    %318 = vector.load %arg17[%c0_217, %c0_218] : memref<16x72xf32, #tpu.memory_space<vmem>>, vector<16x72xf32>
    %c0_219 = arith.constant 0 : index
    %c0_220 = arith.constant 0 : index
    %319 = vector.load %arg26[%c0_219, %c0_220] : memref<144x128xf32, #tpu.memory_space<vmem>>, vector<72x128xf32>
    %cst_221 = arith.constant dense<0.000000e+00> : vector<16x128xf32>
    %320 = tpu.matmul %318, %319, %cst_221 {dimension_numbers = #tpu.dot_dimension_numbers<[1], [0], [0], [1], [0, 0, 1, 1], [], []>} : vector<16x72xf32>, vector<72x128xf32>, vector<16x128xf32> -> vector<16x128xf32>
    %c0_222 = arith.constant 0 : index
    %c0_223 = arith.constant 0 : index
    %321 = vector.load %arg18[%c0_222, %c0_223] : memref<16x1xf32, #tpu.memory_space<vmem>>, vector<16x1xf32>
    %322 = vector.broadcast %321 : vector<16x1xf32> to vector<16x128xf32>
    %323 = arith.addf %320, %322 : vector<16x128xf32>
    %cst_224 = arith.constant 0.000000e+00 : f32
    %324 = vector.broadcast %cst_224 : f32 to vector<16x128xf32>
    %325 = arith.maximumf %323, %324 : vector<16x128xf32>
    %c9_i32_225 = arith.constant 9 : i32
    %326 = tpu.dynamic_rotate %325 by %c9_i32_225 dim 1 : vector<16x128xf32>, i32 -> vector<16x128xf32>
    %327 = vector.broadcast %1 : vector<1x128xf32> to vector<16x128xf32>
    %328 = arith.mulf %326, %327 : vector<16x128xf32>
    %c0_226 = arith.constant 0 : index
    %c0_227 = arith.constant 0 : index
    %329 = vector.load %arg26[%c0_226, %c0_227] : memref<144x128xf32, #tpu.memory_space<vmem>>, vector<16x128xf32>
    tpu.vector_store %arg26[%c0_226, %c0_227], %328 {strides = array<i32>} : memref<144x128xf32, #tpu.memory_space<vmem>>, vector<16x128xf32>,
    %c8_i32_228 = arith.constant 8 : i32
    %330 = tpu.dynamic_rotate %325 by %c8_i32_228 dim 1 : vector<16x128xf32>, i32 -> vector<16x128xf32>
    %331 = vector.broadcast %2 : vector<1x128xf32> to vector<16x128xf32>
    %332 = arith.mulf %330, %331 : vector<16x128xf32>
    %c16_229 = arith.constant 16 : index
    %c0_230 = arith.constant 0 : index
    %333 = vector.load %arg26[%c16_229, %c0_230] : memref<144x128xf32, #tpu.memory_space<vmem>>, vector<16x128xf32>
    tpu.vector_store %arg26[%c16_229, %c0_230], %332 {strides = array<i32>} : memref<144x128xf32, #tpu.memory_space<vmem>>, vector<16x128xf32>,
    %c7_i32_231 = arith.constant 7 : i32
    %334 = tpu.dynamic_rotate %325 by %c7_i32_231 dim 1 : vector<16x128xf32>, i32 -> vector<16x128xf32>
    %335 = vector.broadcast %3 : vector<1x128xf32> to vector<16x128xf32>
    %336 = arith.mulf %334, %335 : vector<16x128xf32>
    %c32_232 = arith.constant 32 : index
    %c0_233 = arith.constant 0 : index
    %337 = vector.load %arg26[%c32_232, %c0_233] : memref<144x128xf32, #tpu.memory_space<vmem>>, vector<16x128xf32>
    tpu.vector_store %arg26[%c32_232, %c0_233], %336 {strides = array<i32>} : memref<144x128xf32, #tpu.memory_space<vmem>>, vector<16x128xf32>,
    %c1_i32_234 = arith.constant 1 : i32
    %338 = tpu.dynamic_rotate %325 by %c1_i32_234 dim 1 : vector<16x128xf32>, i32 -> vector<16x128xf32>
    %339 = vector.broadcast %4 : vector<1x128xf32> to vector<16x128xf32>
    %340 = arith.mulf %338, %339 : vector<16x128xf32>
    %c48_235 = arith.constant 48 : index
    %c0_236 = arith.constant 0 : index
    %341 = vector.load %arg26[%c48_235, %c0_236] : memref<144x128xf32, #tpu.memory_space<vmem>>, vector<16x128xf32>
    tpu.vector_store %arg26[%c48_235, %c0_236], %340 {strides = array<i32>} : memref<144x128xf32, #tpu.memory_space<vmem>>, vector<16x128xf32>,
    %c64_237 = arith.constant 64 : index
    %c0_238 = arith.constant 0 : index
    %342 = vector.load %arg26[%c64_237, %c0_238] : memref<144x128xf32, #tpu.memory_space<vmem>>, vector<16x128xf32>
    tpu.vector_store %arg26[%c64_237, %c0_238], %325 {strides = array<i32>} : memref<144x128xf32, #tpu.memory_space<vmem>>, vector<16x128xf32>,
    %c127_i32_239 = arith.constant 127 : i32
    %343 = tpu.dynamic_rotate %325 by %c127_i32_239 dim 1 : vector<16x128xf32>, i32 -> vector<16x128xf32>
    %344 = vector.broadcast %5 : vector<1x128xf32> to vector<16x128xf32>
    %345 = arith.mulf %343, %344 : vector<16x128xf32>
    %c80_240 = arith.constant 80 : index
    %c0_241 = arith.constant 0 : index
    %346 = vector.load %arg26[%c80_240, %c0_241] : memref<144x128xf32, #tpu.memory_space<vmem>>, vector<16x128xf32>
    tpu.vector_store %arg26[%c80_240, %c0_241], %345 {strides = array<i32>} : memref<144x128xf32, #tpu.memory_space<vmem>>, vector<16x128xf32>,
    %c121_i32_242 = arith.constant 121 : i32
    %347 = tpu.dynamic_rotate %325 by %c121_i32_242 dim 1 : vector<16x128xf32>, i32 -> vector<16x128xf32>
    %348 = vector.broadcast %6 : vector<1x128xf32> to vector<16x128xf32>
    %349 = arith.mulf %347, %348 : vector<16x128xf32>
    %c96_243 = arith.constant 96 : index
    %c0_244 = arith.constant 0 : index
    %350 = vector.load %arg26[%c96_243, %c0_244] : memref<144x128xf32, #tpu.memory_space<vmem>>, vector<16x128xf32>
    tpu.vector_store %arg26[%c96_243, %c0_244], %349 {strides = array<i32>} : memref<144x128xf32, #tpu.memory_space<vmem>>, vector<16x128xf32>,
    %c120_i32_245 = arith.constant 120 : i32
    %351 = tpu.dynamic_rotate %325 by %c120_i32_245 dim 1 : vector<16x128xf32>, i32 -> vector<16x128xf32>
    %352 = vector.broadcast %7 : vector<1x128xf32> to vector<16x128xf32>
    %353 = arith.mulf %351, %352 : vector<16x128xf32>
    %c112_246 = arith.constant 112 : index
    %c0_247 = arith.constant 0 : index
    %354 = vector.load %arg26[%c112_246, %c0_247] : memref<144x128xf32, #tpu.memory_space<vmem>>, vector<16x128xf32>
    tpu.vector_store %arg26[%c112_246, %c0_247], %353 {strides = array<i32>} : memref<144x128xf32, #tpu.memory_space<vmem>>, vector<16x128xf32>,
    %c119_i32_248 = arith.constant 119 : i32
    %355 = tpu.dynamic_rotate %325 by %c119_i32_248 dim 1 : vector<16x128xf32>, i32 -> vector<16x128xf32>
    %356 = vector.broadcast %8 : vector<1x128xf32> to vector<16x128xf32>
    %357 = arith.mulf %355, %356 : vector<16x128xf32>
    %c128_249 = arith.constant 128 : index
    %c0_250 = arith.constant 0 : index
    %358 = vector.load %arg26[%c128_249, %c0_250] : memref<144x128xf32, #tpu.memory_space<vmem>>, vector<16x128xf32>
    tpu.vector_store %arg26[%c128_249, %c0_250], %357 {strides = array<i32>} : memref<144x128xf32, #tpu.memory_space<vmem>>, vector<16x128xf32>,
    %c0_251 = arith.constant 0 : index
    %c0_252 = arith.constant 0 : index
    %359 = vector.load %arg19[%c0_251, %c0_252] : memref<16x144xf32, #tpu.memory_space<vmem>>, vector<16x144xf32>
    %c0_253 = arith.constant 0 : index
    %c0_254 = arith.constant 0 : index
    %360 = vector.load %arg26[%c0_253, %c0_254] : memref<144x128xf32, #tpu.memory_space<vmem>>, vector<144x128xf32>
    %cst_255 = arith.constant dense<0.000000e+00> : vector<16x128xf32>
    %361 = tpu.matmul %359, %360, %cst_255 {dimension_numbers = #tpu.dot_dimension_numbers<[1], [0], [0], [1], [0, 0, 1, 1], [], []>} : vector<16x144xf32>, vector<144x128xf32>, vector<16x128xf32> -> vector<16x128xf32>
    %c0_256 = arith.constant 0 : index
    %c0_257 = arith.constant 0 : index
    %362 = vector.load %arg20[%c0_256, %c0_257] : memref<16x1xf32, #tpu.memory_space<vmem>>, vector<16x1xf32>
    %363 = vector.broadcast %362 : vector<16x1xf32> to vector<16x128xf32>
    %364 = arith.addf %361, %363 : vector<16x128xf32>
    %cst_258 = arith.constant 0.000000e+00 : f32
    %365 = vector.broadcast %cst_258 : f32 to vector<16x128xf32>
    %366 = arith.maximumf %364, %365 : vector<16x128xf32>
    %c9_i32_259 = arith.constant 9 : i32
    %367 = tpu.dynamic_rotate %366 by %c9_i32_259 dim 1 : vector<16x128xf32>, i32 -> vector<16x128xf32>
    %368 = vector.broadcast %1 : vector<1x128xf32> to vector<16x128xf32>
    %369 = arith.mulf %367, %368 : vector<16x128xf32>
    %c0_260 = arith.constant 0 : index
    %c0_261 = arith.constant 0 : index
    %370 = vector.load %arg26[%c0_260, %c0_261] : memref<144x128xf32, #tpu.memory_space<vmem>>, vector<16x128xf32>
    tpu.vector_store %arg26[%c0_260, %c0_261], %369 {strides = array<i32>} : memref<144x128xf32, #tpu.memory_space<vmem>>, vector<16x128xf32>,
    %c8_i32_262 = arith.constant 8 : i32
    %371 = tpu.dynamic_rotate %366 by %c8_i32_262 dim 1 : vector<16x128xf32>, i32 -> vector<16x128xf32>
    %372 = vector.broadcast %2 : vector<1x128xf32> to vector<16x128xf32>
    %373 = arith.mulf %371, %372 : vector<16x128xf32>
    %c16_263 = arith.constant 16 : index
    %c0_264 = arith.constant 0 : index
    %374 = vector.load %arg26[%c16_263, %c0_264] : memref<144x128xf32, #tpu.memory_space<vmem>>, vector<16x128xf32>
    tpu.vector_store %arg26[%c16_263, %c0_264], %373 {strides = array<i32>} : memref<144x128xf32, #tpu.memory_space<vmem>>, vector<16x128xf32>,
    %c7_i32_265 = arith.constant 7 : i32
    %375 = tpu.dynamic_rotate %366 by %c7_i32_265 dim 1 : vector<16x128xf32>, i32 -> vector<16x128xf32>
    %376 = vector.broadcast %3 : vector<1x128xf32> to vector<16x128xf32>
    %377 = arith.mulf %375, %376 : vector<16x128xf32>
    %c32_266 = arith.constant 32 : index
    %c0_267 = arith.constant 0 : index
    %378 = vector.load %arg26[%c32_266, %c0_267] : memref<144x128xf32, #tpu.memory_space<vmem>>, vector<16x128xf32>
    tpu.vector_store %arg26[%c32_266, %c0_267], %377 {strides = array<i32>} : memref<144x128xf32, #tpu.memory_space<vmem>>, vector<16x128xf32>,
    %c1_i32_268 = arith.constant 1 : i32
    %379 = tpu.dynamic_rotate %366 by %c1_i32_268 dim 1 : vector<16x128xf32>, i32 -> vector<16x128xf32>
    %380 = vector.broadcast %4 : vector<1x128xf32> to vector<16x128xf32>
    %381 = arith.mulf %379, %380 : vector<16x128xf32>
    %c48_269 = arith.constant 48 : index
    %c0_270 = arith.constant 0 : index
    %382 = vector.load %arg26[%c48_269, %c0_270] : memref<144x128xf32, #tpu.memory_space<vmem>>, vector<16x128xf32>
    tpu.vector_store %arg26[%c48_269, %c0_270], %381 {strides = array<i32>} : memref<144x128xf32, #tpu.memory_space<vmem>>, vector<16x128xf32>,
    %c64_271 = arith.constant 64 : index
    %c0_272 = arith.constant 0 : index
    %383 = vector.load %arg26[%c64_271, %c0_272] : memref<144x128xf32, #tpu.memory_space<vmem>>, vector<16x128xf32>
    tpu.vector_store %arg26[%c64_271, %c0_272], %366 {strides = array<i32>} : memref<144x128xf32, #tpu.memory_space<vmem>>, vector<16x128xf32>,
    %c127_i32_273 = arith.constant 127 : i32
    %384 = tpu.dynamic_rotate %366 by %c127_i32_273 dim 1 : vector<16x128xf32>, i32 -> vector<16x128xf32>
    %385 = vector.broadcast %5 : vector<1x128xf32> to vector<16x128xf32>
    %386 = arith.mulf %384, %385 : vector<16x128xf32>
    %c80_274 = arith.constant 80 : index
    %c0_275 = arith.constant 0 : index
    %387 = vector.load %arg26[%c80_274, %c0_275] : memref<144x128xf32, #tpu.memory_space<vmem>>, vector<16x128xf32>
    tpu.vector_store %arg26[%c80_274, %c0_275], %386 {strides = array<i32>} : memref<144x128xf32, #tpu.memory_space<vmem>>, vector<16x128xf32>,
    %c121_i32_276 = arith.constant 121 : i32
    %388 = tpu.dynamic_rotate %366 by %c121_i32_276 dim 1 : vector<16x128xf32>, i32 -> vector<16x128xf32>
    %389 = vector.broadcast %6 : vector<1x128xf32> to vector<16x128xf32>
    %390 = arith.mulf %388, %389 : vector<16x128xf32>
    %c96_277 = arith.constant 96 : index
    %c0_278 = arith.constant 0 : index
    %391 = vector.load %arg26[%c96_277, %c0_278] : memref<144x128xf32, #tpu.memory_space<vmem>>, vector<16x128xf32>
    tpu.vector_store %arg26[%c96_277, %c0_278], %390 {strides = array<i32>} : memref<144x128xf32, #tpu.memory_space<vmem>>, vector<16x128xf32>,
    %c120_i32_279 = arith.constant 120 : i32
    %392 = tpu.dynamic_rotate %366 by %c120_i32_279 dim 1 : vector<16x128xf32>, i32 -> vector<16x128xf32>
    %393 = vector.broadcast %7 : vector<1x128xf32> to vector<16x128xf32>
    %394 = arith.mulf %392, %393 : vector<16x128xf32>
    %c112_280 = arith.constant 112 : index
    %c0_281 = arith.constant 0 : index
    %395 = vector.load %arg26[%c112_280, %c0_281] : memref<144x128xf32, #tpu.memory_space<vmem>>, vector<16x128xf32>
    tpu.vector_store %arg26[%c112_280, %c0_281], %394 {strides = array<i32>} : memref<144x128xf32, #tpu.memory_space<vmem>>, vector<16x128xf32>,
    %c119_i32_282 = arith.constant 119 : i32
    %396 = tpu.dynamic_rotate %366 by %c119_i32_282 dim 1 : vector<16x128xf32>, i32 -> vector<16x128xf32>
    %397 = vector.broadcast %8 : vector<1x128xf32> to vector<16x128xf32>
    %398 = arith.mulf %396, %397 : vector<16x128xf32>
    %c128_283 = arith.constant 128 : index
    %c0_284 = arith.constant 0 : index
    %399 = vector.load %arg26[%c128_283, %c0_284] : memref<144x128xf32, #tpu.memory_space<vmem>>, vector<16x128xf32>
    tpu.vector_store %arg26[%c128_283, %c0_284], %398 {strides = array<i32>} : memref<144x128xf32, #tpu.memory_space<vmem>>, vector<16x128xf32>,
    %c0_285 = arith.constant 0 : index
    %c0_286 = arith.constant 0 : index
    %400 = vector.load %arg21[%c0_285, %c0_286] : memref<16x144xf32, #tpu.memory_space<vmem>>, vector<16x144xf32>
    %c0_287 = arith.constant 0 : index
    %c0_288 = arith.constant 0 : index
    %401 = vector.load %arg26[%c0_287, %c0_288] : memref<144x128xf32, #tpu.memory_space<vmem>>, vector<144x128xf32>
    %cst_289 = arith.constant dense<0.000000e+00> : vector<16x128xf32>
    %402 = tpu.matmul %400, %401, %cst_289 {dimension_numbers = #tpu.dot_dimension_numbers<[1], [0], [0], [1], [0, 0, 1, 1], [], []>} : vector<16x144xf32>, vector<144x128xf32>, vector<16x128xf32> -> vector<16x128xf32>
    %c0_290 = arith.constant 0 : index
    %c0_291 = arith.constant 0 : index
    %403 = vector.load %arg22[%c0_290, %c0_291] : memref<16x1xf32, #tpu.memory_space<vmem>>, vector<16x1xf32>
    %404 = vector.broadcast %403 : vector<16x1xf32> to vector<16x128xf32>
    %405 = arith.addf %402, %404 : vector<16x128xf32>
    %c0_292 = arith.constant 0 : index
    %c0_293 = arith.constant 0 : index
    %406 = vector.load %arg23[%c0_292, %c0_293] : memref<8x1xf32, #tpu.memory_space<vmem>>, vector<8x1xf32>
    %407 = vector.extract_strided_slice %405 {offsets = [0, 0], sizes = [8, 128], strides = [1, 1]} : vector<16x128xf32> to vector<8x128xf32>
    %408 = math.tanh %407 : vector<8x128xf32>
    %409 = vector.broadcast %406 : vector<8x1xf32> to vector<8x128xf32>
    %410 = arith.mulf %409, %408 : vector<8x128xf32>
    %411 = vector.extract_strided_slice %405 {offsets = [8, 0], sizes = [8, 128], strides = [1, 1]} : vector<16x128xf32> to vector<8x128xf32>
    %412 = arith.addf %283, %411 : vector<8x128xf32>
    %413 = math.exp %410 : vector<8x128xf32>
    %414 = arith.mulf %412, %413 : vector<8x128xf32>
    %415 = tpu.concatenate %414, %284 in 0 : vector<8x128xf32>, vector<8x128xf32> -> vector<16x128xf32>
    %cst_294 = arith.constant dense<0.000000e+00> : vector<128xf32>
    %416 = vector.multi_reduction <add>, %410, %cst_294 [0] : vector<8x128xf32> to vector<128xf32>
    %417 = vector.shape_cast %416 : vector<128xf32> to vector<1x128xf32>
    %418 = arith.addf %282, %417 : vector<1x128xf32>
    %c0_295 = arith.constant 0 : index
    %c0_296 = arith.constant 0 : index
    %419 = vector.load %arg24[%c0_295, %c0_296] : memref<16x128xf32, #tpu.memory_space<vmem>>, vector<16x128xf32>
    tpu.vector_store %arg24[%c0_295, %c0_296], %415 {strides = array<i32>} : memref<16x128xf32, #tpu.memory_space<vmem>>, vector<16x128xf32>,
    %c0_297 = arith.constant 0 : index
    %c0_298 = arith.constant 0 : index
    %420 = vector.load %arg25[%c0_297, %c0_298] : memref<1x128xf32, #tpu.memory_space<vmem>>, vector<1x128xf32>
    tpu.vector_store %arg25[%c0_297, %c0_298], %418 {strides = array<i32>} : memref<1x128xf32, #tpu.memory_space<vmem>>, vector<1x128xf32>,
    return
  }
  func.func @transform_0(%arg0: i32) -> (i32, i32) {
    %c0_i32 = arith.constant 0 : i32
    %c0_i32_0 = arith.constant 0 : i32
    %c0_i32_1 = arith.constant 0 : i32
    return %c0_i32, %c0_i32_0 : i32, i32
  }
  func.func @transform_1(%arg0: i32) -> (i32, i32) {
    %c0_i32 = arith.constant 0 : i32
    %c0_i32_0 = arith.constant 0 : i32
    return %c0_i32, %arg0 : i32, i32
  }
  func.func @transform_2(%arg0: i32) -> (i32, i32) {
    %c0_i32 = arith.constant 0 : i32
    %c0_i32_0 = arith.constant 0 : i32
    %c0_i32_1 = arith.constant 0 : i32
    return %c0_i32, %c0_i32_0 : i32, i32
  }
  func.func @transform_3(%arg0: i32) -> (i32, i32) {
    %c0_i32 = arith.constant 0 : i32
    %c0_i32_0 = arith.constant 0 : i32
    %c0_i32_1 = arith.constant 0 : i32
    return %c0_i32, %c0_i32_0 : i32, i32
  }
  func.func @transform_4(%arg0: i32) -> (i32, i32) {
    %c0_i32 = arith.constant 0 : i32
    %c0_i32_0 = arith.constant 0 : i32
    %c0_i32_1 = arith.constant 0 : i32
    return %c0_i32, %c0_i32_0 : i32, i32
  }
  func.func @transform_5(%arg0: i32) -> (i32, i32) {
    %c0_i32 = arith.constant 0 : i32
    %c0_i32_0 = arith.constant 0 : i32
    %c0_i32_1 = arith.constant 0 : i32
    return %c0_i32, %c0_i32_0 : i32, i32
  }
  func.func @transform_6(%arg0: i32) -> (i32, i32) {
    %c0_i32 = arith.constant 0 : i32
    %c0_i32_0 = arith.constant 0 : i32
    %c0_i32_1 = arith.constant 0 : i32
    return %c0_i32, %c0_i32_0 : i32, i32
  }
  func.func @transform_7(%arg0: i32) -> (i32, i32) {
    %c0_i32 = arith.constant 0 : i32
    %c0_i32_0 = arith.constant 0 : i32
    %c0_i32_1 = arith.constant 0 : i32
    return %c0_i32, %c0_i32_0 : i32, i32
  }
  func.func @transform_8(%arg0: i32) -> (i32, i32) {
    %c0_i32 = arith.constant 0 : i32
    %c0_i32_0 = arith.constant 0 : i32
    %c0_i32_1 = arith.constant 0 : i32
    return %c0_i32, %c0_i32_0 : i32, i32
  }
  func.func @transform_9(%arg0: i32) -> (i32, i32) {
    %c0_i32 = arith.constant 0 : i32
    %c0_i32_0 = arith.constant 0 : i32
    %c0_i32_1 = arith.constant 0 : i32
    return %c0_i32, %c0_i32_0 : i32, i32
  }
  func.func @transform_10(%arg0: i32) -> (i32, i32) {
    %c0_i32 = arith.constant 0 : i32
    %c0_i32_0 = arith.constant 0 : i32
    %c0_i32_1 = arith.constant 0 : i32
    return %c0_i32, %c0_i32_0 : i32, i32
  }
  func.func @transform_11(%arg0: i32) -> (i32, i32) {
    %c0_i32 = arith.constant 0 : i32
    %c0_i32_0 = arith.constant 0 : i32
    %c0_i32_1 = arith.constant 0 : i32
    return %c0_i32, %c0_i32_0 : i32, i32
  }
  func.func @transform_12(%arg0: i32) -> (i32, i32) {
    %c0_i32 = arith.constant 0 : i32
    %c0_i32_0 = arith.constant 0 : i32
    %c0_i32_1 = arith.constant 0 : i32
    return %c0_i32, %c0_i32_0 : i32, i32
  }
  func.func @transform_13(%arg0: i32) -> (i32, i32) {
    %c0_i32 = arith.constant 0 : i32
    %c0_i32_0 = arith.constant 0 : i32
    %c0_i32_1 = arith.constant 0 : i32
    return %c0_i32, %c0_i32_0 : i32, i32
  }
  func.func @transform_14(%arg0: i32) -> (i32, i32) {
    %c0_i32 = arith.constant 0 : i32
    %c0_i32_0 = arith.constant 0 : i32
    %c0_i32_1 = arith.constant 0 : i32
    return %c0_i32, %c0_i32_0 : i32, i32
  }
  func.func @transform_15(%arg0: i32) -> (i32, i32) {
    %c0_i32 = arith.constant 0 : i32
    %c0_i32_0 = arith.constant 0 : i32
    %c0_i32_1 = arith.constant 0 : i32
    return %c0_i32, %c0_i32_0 : i32, i32
  }
  func.func @transform_16(%arg0: i32) -> (i32, i32) {
    %c0_i32 = arith.constant 0 : i32
    %c0_i32_0 = arith.constant 0 : i32
    %c0_i32_1 = arith.constant 0 : i32
    return %c0_i32, %c0_i32_0 : i32, i32
  }
  func.func @transform_17(%arg0: i32) -> (i32, i32) {
    %c0_i32 = arith.constant 0 : i32
    %c0_i32_0 = arith.constant 0 : i32
    %c0_i32_1 = arith.constant 0 : i32
    return %c0_i32, %c0_i32_0 : i32, i32
  }
  func.func @transform_18(%arg0: i32) -> (i32, i32) {
    %c0_i32 = arith.constant 0 : i32
    %c0_i32_0 = arith.constant 0 : i32
    %c0_i32_1 = arith.constant 0 : i32
    return %c0_i32, %c0_i32_0 : i32, i32
  }
  func.func @transform_19(%arg0: i32) -> (i32, i32) {
    %c0_i32 = arith.constant 0 : i32
    %c0_i32_0 = arith.constant 0 : i32
    %c0_i32_1 = arith.constant 0 : i32
    return %c0_i32, %c0_i32_0 : i32, i32
  }
  func.func @transform_20(%arg0: i32) -> (i32, i32) {
    %c0_i32 = arith.constant 0 : i32
    %c0_i32_0 = arith.constant 0 : i32
    %c0_i32_1 = arith.constant 0 : i32
    return %c0_i32, %c0_i32_0 : i32, i32
  }
  func.func @transform_21(%arg0: i32) -> (i32, i32) {
    %c0_i32 = arith.constant 0 : i32
    %c0_i32_0 = arith.constant 0 : i32
    %c0_i32_1 = arith.constant 0 : i32
    return %c0_i32, %c0_i32_0 : i32, i32
  }
  func.func @transform_22(%arg0: i32) -> (i32, i32) {
    %c0_i32 = arith.constant 0 : i32
    %c0_i32_0 = arith.constant 0 : i32
    %c0_i32_1 = arith.constant 0 : i32
    return %c0_i32, %c0_i32_0 : i32, i32
  }
  func.func @transform_23(%arg0: i32) -> (i32, i32) {
    %c0_i32 = arith.constant 0 : i32
    %c0_i32_0 = arith.constant 0 : i32
    return %c0_i32, %arg0 : i32, i32
  }
  func.func @transform_24(%arg0: i32) -> (i32, i32) {
    %c0_i32 = arith.constant 0 : i32
    %c0_i32_0 = arith.constant 0 : i32
    return %c0_i32, %arg0 : i32, i32
  }
}

module attributes {stable_mosaic.version = 11 : i64} {
  func.func @_fused_stage_kernel(%arg0: i32, %arg1: memref<10x128xf32, #tpu.memory_space<vmem>>, %arg2: memref<8x128xf32, #tpu.memory_space<vmem>>, %arg3: memref<16x72xf32, #tpu.memory_space<vmem>>, %arg4: memref<16x1xf32, #tpu.memory_space<vmem>>, %arg5: memref<16x144xf32, #tpu.memory_space<vmem>>, %arg6: memref<16x1xf32, #tpu.memory_space<vmem>>, %arg7: memref<16x144xf32, #tpu.memory_space<vmem>>, %arg8: memref<16x1xf32, #tpu.memory_space<vmem>>, %arg9: memref<8x1xf32, #tpu.memory_space<vmem>>, %arg10: memref<16x72xf32, #tpu.memory_space<vmem>>, %arg11: memref<16x1xf32, #tpu.memory_space<vmem>>, %arg12: memref<16x144xf32, #tpu.memory_space<vmem>>, %arg13: memref<16x1xf32, #tpu.memory_space<vmem>>, %arg14: memref<16x144xf32, #tpu.memory_space<vmem>>, %arg15: memref<16x1xf32, #tpu.memory_space<vmem>>, %arg16: memref<8x1xf32, #tpu.memory_space<vmem>>, %arg17: memref<16x72xf32, #tpu.memory_space<vmem>>, %arg18: memref<16x1xf32, #tpu.memory_space<vmem>>, %arg19: memref<16x144xf32, #tpu.memory_space<vmem>>, %arg20: memref<16x1xf32, #tpu.memory_space<vmem>>, %arg21: memref<16x144xf32, #tpu.memory_space<vmem>>, %arg22: memref<16x1xf32, #tpu.memory_space<vmem>>, %arg23: memref<8x1xf32, #tpu.memory_space<vmem>>, %arg24: memref<16x72xf32, #tpu.memory_space<vmem>>, %arg25: memref<16x1xf32, #tpu.memory_space<vmem>>, %arg26: memref<16x144xf32, #tpu.memory_space<vmem>>, %arg27: memref<16x1xf32, #tpu.memory_space<vmem>>, %arg28: memref<16x144xf32, #tpu.memory_space<vmem>>, %arg29: memref<16x1xf32, #tpu.memory_space<vmem>>, %arg30: memref<8x1xf32, #tpu.memory_space<vmem>>, %arg31: memref<8x128xf32, #tpu.memory_space<vmem>>, %arg32: memref<1x128xf32, #tpu.memory_space<vmem>>, %arg33: memref<144x128xf32, #tpu.memory_space<vmem>>) attributes {dimension_semantics = [#tpu.dimension_semantics<parallel>], iteration_bounds = array<i64: 1>, scalar_prefetch = 0 : i64, scratch_operands = 1 : i64, tpu.core_type = #tpu.core_type<tc>, window_params = [{pipeline_mode = #tpu.pipeline_mode<synchronous>, transform_indices = @transform_0, window_bounds = array<i64: 10, 128>}, {transform_indices = @transform_1, window_bounds = array<i64: 8, 128>}, {pipeline_mode = #tpu.pipeline_mode<synchronous>, transform_indices = @transform_2, window_bounds = array<i64: 16, 72>}, {pipeline_mode = #tpu.pipeline_mode<synchronous>, transform_indices = @transform_3, window_bounds = array<i64: 16, 1>}, {pipeline_mode = #tpu.pipeline_mode<synchronous>, transform_indices = @transform_4, window_bounds = array<i64: 16, 144>}, {pipeline_mode = #tpu.pipeline_mode<synchronous>, transform_indices = @transform_5, window_bounds = array<i64: 16, 1>}, {pipeline_mode = #tpu.pipeline_mode<synchronous>, transform_indices = @transform_6, window_bounds = array<i64: 16, 144>}, {pipeline_mode = #tpu.pipeline_mode<synchronous>, transform_indices = @transform_7, window_bounds = array<i64: 16, 1>}, {pipeline_mode = #tpu.pipeline_mode<synchronous>, transform_indices = @transform_8, window_bounds = array<i64: 8, 1>}, {pipeline_mode = #tpu.pipeline_mode<synchronous>, transform_indices = @transform_9, window_bounds = array<i64: 16, 72>}, {pipeline_mode = #tpu.pipeline_mode<synchronous>, transform_indices = @transform_10, window_bounds = array<i64: 16, 1>}, {pipeline_mode = #tpu.pipeline_mode<synchronous>, transform_indices = @transform_11, window_bounds = array<i64: 16, 144>}, {pipeline_mode = #tpu.pipeline_mode<synchronous>, transform_indices = @transform_12, window_bounds = array<i64: 16, 1>}, {pipeline_mode = #tpu.pipeline_mode<synchronous>, transform_indices = @transform_13, window_bounds = array<i64: 16, 144>}, {pipeline_mode = #tpu.pipeline_mode<synchronous>, transform_indices = @transform_14, window_bounds = array<i64: 16, 1>}, {pipeline_mode = #tpu.pipeline_mode<synchronous>, transform_indices = @transform_15, window_bounds = array<i64: 8, 1>}, {pipeline_mode = #tpu.pipeline_mode<synchronous>, transform_indices = @transform_16, window_bounds = array<i64: 16, 72>}, {pipeline_mode = #tpu.pipeline_mode<synchronous>, transform_indices = @transform_17, window_bounds = array<i64: 16, 1>}, {pipeline_mode = #tpu.pipeline_mode<synchronous>, transform_indices = @transform_18, window_bounds = array<i64: 16, 144>}, {pipeline_mode = #tpu.pipeline_mode<synchronous>, transform_indices = @transform_19, window_bounds = array<i64: 16, 1>}, {pipeline_mode = #tpu.pipeline_mode<synchronous>, transform_indices = @transform_20, window_bounds = array<i64: 16, 144>}, {pipeline_mode = #tpu.pipeline_mode<synchronous>, transform_indices = @transform_21, window_bounds = array<i64: 16, 1>}, {pipeline_mode = #tpu.pipeline_mode<synchronous>, transform_indices = @transform_22, window_bounds = array<i64: 8, 1>}, {pipeline_mode = #tpu.pipeline_mode<synchronous>, transform_indices = @transform_23, window_bounds = array<i64: 16, 72>}, {pipeline_mode = #tpu.pipeline_mode<synchronous>, transform_indices = @transform_24, window_bounds = array<i64: 16, 1>}, {pipeline_mode = #tpu.pipeline_mode<synchronous>, transform_indices = @transform_25, window_bounds = array<i64: 16, 144>}, {pipeline_mode = #tpu.pipeline_mode<synchronous>, transform_indices = @transform_26, window_bounds = array<i64: 16, 1>}, {pipeline_mode = #tpu.pipeline_mode<synchronous>, transform_indices = @transform_27, window_bounds = array<i64: 16, 144>}, {pipeline_mode = #tpu.pipeline_mode<synchronous>, transform_indices = @transform_28, window_bounds = array<i64: 16, 1>}, {pipeline_mode = #tpu.pipeline_mode<synchronous>, transform_indices = @transform_29, window_bounds = array<i64: 8, 1>}, {transform_indices = @transform_30, window_bounds = array<i64: 8, 128>}, {transform_indices = @transform_31, window_bounds = array<i64: 1, 128>}]} {
    %c0 = arith.constant 0 : index
    %c0_0 = arith.constant 0 : index
    %0 = vector.load %arg1[%c0, %c0_0] : memref<10x128xf32, #tpu.memory_space<vmem>>, vector<10x128xf32>
    %1 = vector.extract_strided_slice %0 {offsets = [0, 0], sizes = [1, 128], strides = [1, 1]} : vector<10x128xf32> to vector<1x128xf32>
    %2 = vector.extract_strided_slice %0 {offsets = [1, 0], sizes = [1, 128], strides = [1, 1]} : vector<10x128xf32> to vector<1x128xf32>
    %3 = vector.extract_strided_slice %0 {offsets = [2, 0], sizes = [1, 128], strides = [1, 1]} : vector<10x128xf32> to vector<1x128xf32>
    %4 = vector.extract_strided_slice %0 {offsets = [3, 0], sizes = [1, 128], strides = [1, 1]} : vector<10x128xf32> to vector<1x128xf32>
    %5 = vector.extract_strided_slice %0 {offsets = [4, 0], sizes = [1, 128], strides = [1, 1]} : vector<10x128xf32> to vector<1x128xf32>
    %6 = vector.extract_strided_slice %0 {offsets = [6, 0], sizes = [1, 128], strides = [1, 1]} : vector<10x128xf32> to vector<1x128xf32>
    %7 = vector.extract_strided_slice %0 {offsets = [7, 0], sizes = [1, 128], strides = [1, 1]} : vector<10x128xf32> to vector<1x128xf32>
    %8 = vector.extract_strided_slice %0 {offsets = [8, 0], sizes = [1, 128], strides = [1, 1]} : vector<10x128xf32> to vector<1x128xf32>
    %9 = vector.extract_strided_slice %0 {offsets = [9, 0], sizes = [1, 128], strides = [1, 1]} : vector<10x128xf32> to vector<1x128xf32>
    %c0_1 = arith.constant 0 : index
    %c0_2 = arith.constant 0 : index
    %10 = vector.load %arg2[%c0_1, %c0_2] : memref<8x128xf32, #tpu.memory_space<vmem>>, vector<8x128xf32>
    %cst = arith.constant 0.000000e+00 : f32
    %11 = vector.broadcast %cst : f32 to vector<1x128xf32>
    %cst_3 = arith.constant 1.000000e+00 : f32
    %12 = vector.broadcast %cst_3 : f32 to vector<1x128xf32>
    %13 = arith.subf %12, %1 : vector<1x128xf32>
    %14 = vector.broadcast %1 : vector<1x128xf32> to vector<8x128xf32>
    %15 = arith.mulf %10, %14 : vector<8x128xf32>
    %c9_i32 = arith.constant 9 : i32
    %16 = tpu.dynamic_rotate %15 by %c9_i32 dim 1 : vector<8x128xf32>, i32 -> vector<8x128xf32>
    %17 = vector.broadcast %2 : vector<1x128xf32> to vector<8x128xf32>
    %18 = arith.mulf %16, %17 : vector<8x128xf32>
    %c0_4 = arith.constant 0 : index
    %c0_5 = arith.constant 0 : index
    %19 = vector.load %arg33[%c0_4, %c0_5] : memref<144x128xf32, #tpu.memory_space<vmem>>, vector<8x128xf32>
    tpu.vector_store %arg33[%c0_4, %c0_5], %18 {strides = array<i32>} : memref<144x128xf32, #tpu.memory_space<vmem>>, vector<8x128xf32>,
    %c8_i32 = arith.constant 8 : i32
    %20 = tpu.dynamic_rotate %15 by %c8_i32 dim 1 : vector<8x128xf32>, i32 -> vector<8x128xf32>
    %21 = vector.broadcast %3 : vector<1x128xf32> to vector<8x128xf32>
    %22 = arith.mulf %20, %21 : vector<8x128xf32>
    %c8 = arith.constant 8 : index
    %c0_6 = arith.constant 0 : index
    %23 = vector.load %arg33[%c8, %c0_6] : memref<144x128xf32, #tpu.memory_space<vmem>>, vector<8x128xf32>
    tpu.vector_store %arg33[%c8, %c0_6], %22 {strides = array<i32>} : memref<144x128xf32, #tpu.memory_space<vmem>>, vector<8x128xf32>,
    %c7_i32 = arith.constant 7 : i32
    %24 = tpu.dynamic_rotate %15 by %c7_i32 dim 1 : vector<8x128xf32>, i32 -> vector<8x128xf32>
    %25 = vector.broadcast %4 : vector<1x128xf32> to vector<8x128xf32>
    %26 = arith.mulf %24, %25 : vector<8x128xf32>
    %c16 = arith.constant 16 : index
    %c0_7 = arith.constant 0 : index
    %27 = vector.load %arg33[%c16, %c0_7] : memref<144x128xf32, #tpu.memory_space<vmem>>, vector<8x128xf32>
    tpu.vector_store %arg33[%c16, %c0_7], %26 {strides = array<i32>} : memref<144x128xf32, #tpu.memory_space<vmem>>, vector<8x128xf32>,
    %c1_i32 = arith.constant 1 : i32
    %28 = tpu.dynamic_rotate %15 by %c1_i32 dim 1 : vector<8x128xf32>, i32 -> vector<8x128xf32>
    %29 = vector.broadcast %5 : vector<1x128xf32> to vector<8x128xf32>
    %30 = arith.mulf %28, %29 : vector<8x128xf32>
    %c24 = arith.constant 24 : index
    %c0_8 = arith.constant 0 : index
    %31 = vector.load %arg33[%c24, %c0_8] : memref<144x128xf32, #tpu.memory_space<vmem>>, vector<8x128xf32>
    tpu.vector_store %arg33[%c24, %c0_8], %30 {strides = array<i32>} : memref<144x128xf32, #tpu.memory_space<vmem>>, vector<8x128xf32>,
    %c32 = arith.constant 32 : index
    %c0_9 = arith.constant 0 : index
    %32 = vector.load %arg33[%c32, %c0_9] : memref<144x128xf32, #tpu.memory_space<vmem>>, vector<8x128xf32>
    tpu.vector_store %arg33[%c32, %c0_9], %15 {strides = array<i32>} : memref<144x128xf32, #tpu.memory_space<vmem>>, vector<8x128xf32>,
    %c127_i32 = arith.constant 127 : i32
    %33 = tpu.dynamic_rotate %15 by %c127_i32 dim 1 : vector<8x128xf32>, i32 -> vector<8x128xf32>
    %34 = vector.broadcast %6 : vector<1x128xf32> to vector<8x128xf32>
    %35 = arith.mulf %33, %34 : vector<8x128xf32>
    %c40 = arith.constant 40 : index
    %c0_10 = arith.constant 0 : index
    %36 = vector.load %arg33[%c40, %c0_10] : memref<144x128xf32, #tpu.memory_space<vmem>>, vector<8x128xf32>
    tpu.vector_store %arg33[%c40, %c0_10], %35 {strides = array<i32>} : memref<144x128xf32, #tpu.memory_space<vmem>>, vector<8x128xf32>,
    %c121_i32 = arith.constant 121 : i32
    %37 = tpu.dynamic_rotate %15 by %c121_i32 dim 1 : vector<8x128xf32>, i32 -> vector<8x128xf32>
    %38 = vector.broadcast %7 : vector<1x128xf32> to vector<8x128xf32>
    %39 = arith.mulf %37, %38 : vector<8x128xf32>
    %c48 = arith.constant 48 : index
    %c0_11 = arith.constant 0 : index
    %40 = vector.load %arg33[%c48, %c0_11] : memref<144x128xf32, #tpu.memory_space<vmem>>, vector<8x128xf32>
    tpu.vector_store %arg33[%c48, %c0_11], %39 {strides = array<i32>} : memref<144x128xf32, #tpu.memory_space<vmem>>, vector<8x128xf32>,
    %c120_i32 = arith.constant 120 : i32
    %41 = tpu.dynamic_rotate %15 by %c120_i32 dim 1 : vector<8x128xf32>, i32 -> vector<8x128xf32>
    %42 = vector.broadcast %8 : vector<1x128xf32> to vector<8x128xf32>
    %43 = arith.mulf %41, %42 : vector<8x128xf32>
    %c56 = arith.constant 56 : index
    %c0_12 = arith.constant 0 : index
    %44 = vector.load %arg33[%c56, %c0_12] : memref<144x128xf32, #tpu.memory_space<vmem>>, vector<8x128xf32>
    tpu.vector_store %arg33[%c56, %c0_12], %43 {strides = array<i32>} : memref<144x128xf32, #tpu.memory_space<vmem>>, vector<8x128xf32>,
    %c119_i32 = arith.constant 119 : i32
    %45 = tpu.dynamic_rotate %15 by %c119_i32 dim 1 : vector<8x128xf32>, i32 -> vector<8x128xf32>
    %46 = vector.broadcast %9 : vector<1x128xf32> to vector<8x128xf32>
    %47 = arith.mulf %45, %46 : vector<8x128xf32>
    %c64 = arith.constant 64 : index
    %c0_13 = arith.constant 0 : index
    %48 = vector.load %arg33[%c64, %c0_13] : memref<144x128xf32, #tpu.memory_space<vmem>>, vector<8x128xf32>
    tpu.vector_store %arg33[%c64, %c0_13], %47 {strides = array<i32>} : memref<144x128xf32, #tpu.memory_space<vmem>>, vector<8x128xf32>,
    %c0_14 = arith.constant 0 : index
    %c0_15 = arith.constant 0 : index
    %49 = vector.load %arg3[%c0_14, %c0_15] : memref<16x72xf32, #tpu.memory_space<vmem>>, vector<16x72xf32>
    %c0_16 = arith.constant 0 : index
    %c0_17 = arith.constant 0 : index
    %50 = vector.load %arg33[%c0_16, %c0_17] : memref<144x128xf32, #tpu.memory_space<vmem>>, vector<72x128xf32>
    %cst_18 = arith.constant dense<0.000000e+00> : vector<16x128xf32>
    %51 = tpu.matmul %49, %50, %cst_18 {dimension_numbers = #tpu.dot_dimension_numbers<[1], [0], [0], [1], [0, 0, 1, 1], [], []>} : vector<16x72xf32>, vector<72x128xf32>, vector<16x128xf32> -> vector<16x128xf32>
    %c0_19 = arith.constant 0 : index
    %c0_20 = arith.constant 0 : index
    %52 = vector.load %arg4[%c0_19, %c0_20] : memref<16x1xf32, #tpu.memory_space<vmem>>, vector<16x1xf32>
    %53 = vector.broadcast %52 : vector<16x1xf32> to vector<16x128xf32>
    %54 = arith.addf %51, %53 : vector<16x128xf32>
    %cst_21 = arith.constant 0.000000e+00 : f32
    %55 = vector.broadcast %cst_21 : f32 to vector<16x128xf32>
    %56 = arith.maximumf %54, %55 : vector<16x128xf32>
    %c9_i32_22 = arith.constant 9 : i32
    %57 = tpu.dynamic_rotate %56 by %c9_i32_22 dim 1 : vector<16x128xf32>, i32 -> vector<16x128xf32>
    %58 = vector.broadcast %2 : vector<1x128xf32> to vector<16x128xf32>
    %59 = arith.mulf %57, %58 : vector<16x128xf32>
    %c0_23 = arith.constant 0 : index
    %c0_24 = arith.constant 0 : index
    %60 = vector.load %arg33[%c0_23, %c0_24] : memref<144x128xf32, #tpu.memory_space<vmem>>, vector<16x128xf32>
    tpu.vector_store %arg33[%c0_23, %c0_24], %59 {strides = array<i32>} : memref<144x128xf32, #tpu.memory_space<vmem>>, vector<16x128xf32>,
    %c8_i32_25 = arith.constant 8 : i32
    %61 = tpu.dynamic_rotate %56 by %c8_i32_25 dim 1 : vector<16x128xf32>, i32 -> vector<16x128xf32>
    %62 = vector.broadcast %3 : vector<1x128xf32> to vector<16x128xf32>
    %63 = arith.mulf %61, %62 : vector<16x128xf32>
    %c16_26 = arith.constant 16 : index
    %c0_27 = arith.constant 0 : index
    %64 = vector.load %arg33[%c16_26, %c0_27] : memref<144x128xf32, #tpu.memory_space<vmem>>, vector<16x128xf32>
    tpu.vector_store %arg33[%c16_26, %c0_27], %63 {strides = array<i32>} : memref<144x128xf32, #tpu.memory_space<vmem>>, vector<16x128xf32>,
    %c7_i32_28 = arith.constant 7 : i32
    %65 = tpu.dynamic_rotate %56 by %c7_i32_28 dim 1 : vector<16x128xf32>, i32 -> vector<16x128xf32>
    %66 = vector.broadcast %4 : vector<1x128xf32> to vector<16x128xf32>
    %67 = arith.mulf %65, %66 : vector<16x128xf32>
    %c32_29 = arith.constant 32 : index
    %c0_30 = arith.constant 0 : index
    %68 = vector.load %arg33[%c32_29, %c0_30] : memref<144x128xf32, #tpu.memory_space<vmem>>, vector<16x128xf32>
    tpu.vector_store %arg33[%c32_29, %c0_30], %67 {strides = array<i32>} : memref<144x128xf32, #tpu.memory_space<vmem>>, vector<16x128xf32>,
    %c1_i32_31 = arith.constant 1 : i32
    %69 = tpu.dynamic_rotate %56 by %c1_i32_31 dim 1 : vector<16x128xf32>, i32 -> vector<16x128xf32>
    %70 = vector.broadcast %5 : vector<1x128xf32> to vector<16x128xf32>
    %71 = arith.mulf %69, %70 : vector<16x128xf32>
    %c48_32 = arith.constant 48 : index
    %c0_33 = arith.constant 0 : index
    %72 = vector.load %arg33[%c48_32, %c0_33] : memref<144x128xf32, #tpu.memory_space<vmem>>, vector<16x128xf32>
    tpu.vector_store %arg33[%c48_32, %c0_33], %71 {strides = array<i32>} : memref<144x128xf32, #tpu.memory_space<vmem>>, vector<16x128xf32>,
    %c64_34 = arith.constant 64 : index
    %c0_35 = arith.constant 0 : index
    %73 = vector.load %arg33[%c64_34, %c0_35] : memref<144x128xf32, #tpu.memory_space<vmem>>, vector<16x128xf32>
    tpu.vector_store %arg33[%c64_34, %c0_35], %56 {strides = array<i32>} : memref<144x128xf32, #tpu.memory_space<vmem>>, vector<16x128xf32>,
    %c127_i32_36 = arith.constant 127 : i32
    %74 = tpu.dynamic_rotate %56 by %c127_i32_36 dim 1 : vector<16x128xf32>, i32 -> vector<16x128xf32>
    %75 = vector.broadcast %6 : vector<1x128xf32> to vector<16x128xf32>
    %76 = arith.mulf %74, %75 : vector<16x128xf32>
    %c80 = arith.constant 80 : index
    %c0_37 = arith.constant 0 : index
    %77 = vector.load %arg33[%c80, %c0_37] : memref<144x128xf32, #tpu.memory_space<vmem>>, vector<16x128xf32>
    tpu.vector_store %arg33[%c80, %c0_37], %76 {strides = array<i32>} : memref<144x128xf32, #tpu.memory_space<vmem>>, vector<16x128xf32>,
    %c121_i32_38 = arith.constant 121 : i32
    %78 = tpu.dynamic_rotate %56 by %c121_i32_38 dim 1 : vector<16x128xf32>, i32 -> vector<16x128xf32>
    %79 = vector.broadcast %7 : vector<1x128xf32> to vector<16x128xf32>
    %80 = arith.mulf %78, %79 : vector<16x128xf32>
    %c96 = arith.constant 96 : index
    %c0_39 = arith.constant 0 : index
    %81 = vector.load %arg33[%c96, %c0_39] : memref<144x128xf32, #tpu.memory_space<vmem>>, vector<16x128xf32>
    tpu.vector_store %arg33[%c96, %c0_39], %80 {strides = array<i32>} : memref<144x128xf32, #tpu.memory_space<vmem>>, vector<16x128xf32>,
    %c120_i32_40 = arith.constant 120 : i32
    %82 = tpu.dynamic_rotate %56 by %c120_i32_40 dim 1 : vector<16x128xf32>, i32 -> vector<16x128xf32>
    %83 = vector.broadcast %8 : vector<1x128xf32> to vector<16x128xf32>
    %84 = arith.mulf %82, %83 : vector<16x128xf32>
    %c112 = arith.constant 112 : index
    %c0_41 = arith.constant 0 : index
    %85 = vector.load %arg33[%c112, %c0_41] : memref<144x128xf32, #tpu.memory_space<vmem>>, vector<16x128xf32>
    tpu.vector_store %arg33[%c112, %c0_41], %84 {strides = array<i32>} : memref<144x128xf32, #tpu.memory_space<vmem>>, vector<16x128xf32>,
    %c119_i32_42 = arith.constant 119 : i32
    %86 = tpu.dynamic_rotate %56 by %c119_i32_42 dim 1 : vector<16x128xf32>, i32 -> vector<16x128xf32>
    %87 = vector.broadcast %9 : vector<1x128xf32> to vector<16x128xf32>
    %88 = arith.mulf %86, %87 : vector<16x128xf32>
    %c128 = arith.constant 128 : index
    %c0_43 = arith.constant 0 : index
    %89 = vector.load %arg33[%c128, %c0_43] : memref<144x128xf32, #tpu.memory_space<vmem>>, vector<16x128xf32>
    tpu.vector_store %arg33[%c128, %c0_43], %88 {strides = array<i32>} : memref<144x128xf32, #tpu.memory_space<vmem>>, vector<16x128xf32>,
    %c0_44 = arith.constant 0 : index
    %c0_45 = arith.constant 0 : index
    %90 = vector.load %arg5[%c0_44, %c0_45] : memref<16x144xf32, #tpu.memory_space<vmem>>, vector<16x144xf32>
    %c0_46 = arith.constant 0 : index
    %c0_47 = arith.constant 0 : index
    %91 = vector.load %arg33[%c0_46, %c0_47] : memref<144x128xf32, #tpu.memory_space<vmem>>, vector<144x128xf32>
    %cst_48 = arith.constant dense<0.000000e+00> : vector<16x128xf32>
    %92 = tpu.matmul %90, %91, %cst_48 {dimension_numbers = #tpu.dot_dimension_numbers<[1], [0], [0], [1], [0, 0, 1, 1], [], []>} : vector<16x144xf32>, vector<144x128xf32>, vector<16x128xf32> -> vector<16x128xf32>
    %c0_49 = arith.constant 0 : index
    %c0_50 = arith.constant 0 : index
    %93 = vector.load %arg6[%c0_49, %c0_50] : memref<16x1xf32, #tpu.memory_space<vmem>>, vector<16x1xf32>
    %94 = vector.broadcast %93 : vector<16x1xf32> to vector<16x128xf32>
    %95 = arith.addf %92, %94 : vector<16x128xf32>
    %cst_51 = arith.constant 0.000000e+00 : f32
    %96 = vector.broadcast %cst_51 : f32 to vector<16x128xf32>
    %97 = arith.maximumf %95, %96 : vector<16x128xf32>
    %c9_i32_52 = arith.constant 9 : i32
    %98 = tpu.dynamic_rotate %97 by %c9_i32_52 dim 1 : vector<16x128xf32>, i32 -> vector<16x128xf32>
    %99 = vector.broadcast %2 : vector<1x128xf32> to vector<16x128xf32>
    %100 = arith.mulf %98, %99 : vector<16x128xf32>
    %c0_53 = arith.constant 0 : index
    %c0_54 = arith.constant 0 : index
    %101 = vector.load %arg33[%c0_53, %c0_54] : memref<144x128xf32, #tpu.memory_space<vmem>>, vector<16x128xf32>
    tpu.vector_store %arg33[%c0_53, %c0_54], %100 {strides = array<i32>} : memref<144x128xf32, #tpu.memory_space<vmem>>, vector<16x128xf32>,
    %c8_i32_55 = arith.constant 8 : i32
    %102 = tpu.dynamic_rotate %97 by %c8_i32_55 dim 1 : vector<16x128xf32>, i32 -> vector<16x128xf32>
    %103 = vector.broadcast %3 : vector<1x128xf32> to vector<16x128xf32>
    %104 = arith.mulf %102, %103 : vector<16x128xf32>
    %c16_56 = arith.constant 16 : index
    %c0_57 = arith.constant 0 : index
    %105 = vector.load %arg33[%c16_56, %c0_57] : memref<144x128xf32, #tpu.memory_space<vmem>>, vector<16x128xf32>
    tpu.vector_store %arg33[%c16_56, %c0_57], %104 {strides = array<i32>} : memref<144x128xf32, #tpu.memory_space<vmem>>, vector<16x128xf32>,
    %c7_i32_58 = arith.constant 7 : i32
    %106 = tpu.dynamic_rotate %97 by %c7_i32_58 dim 1 : vector<16x128xf32>, i32 -> vector<16x128xf32>
    %107 = vector.broadcast %4 : vector<1x128xf32> to vector<16x128xf32>
    %108 = arith.mulf %106, %107 : vector<16x128xf32>
    %c32_59 = arith.constant 32 : index
    %c0_60 = arith.constant 0 : index
    %109 = vector.load %arg33[%c32_59, %c0_60] : memref<144x128xf32, #tpu.memory_space<vmem>>, vector<16x128xf32>
    tpu.vector_store %arg33[%c32_59, %c0_60], %108 {strides = array<i32>} : memref<144x128xf32, #tpu.memory_space<vmem>>, vector<16x128xf32>,
    %c1_i32_61 = arith.constant 1 : i32
    %110 = tpu.dynamic_rotate %97 by %c1_i32_61 dim 1 : vector<16x128xf32>, i32 -> vector<16x128xf32>
    %111 = vector.broadcast %5 : vector<1x128xf32> to vector<16x128xf32>
    %112 = arith.mulf %110, %111 : vector<16x128xf32>
    %c48_62 = arith.constant 48 : index
    %c0_63 = arith.constant 0 : index
    %113 = vector.load %arg33[%c48_62, %c0_63] : memref<144x128xf32, #tpu.memory_space<vmem>>, vector<16x128xf32>
    tpu.vector_store %arg33[%c48_62, %c0_63], %112 {strides = array<i32>} : memref<144x128xf32, #tpu.memory_space<vmem>>, vector<16x128xf32>,
    %c64_64 = arith.constant 64 : index
    %c0_65 = arith.constant 0 : index
    %114 = vector.load %arg33[%c64_64, %c0_65] : memref<144x128xf32, #tpu.memory_space<vmem>>, vector<16x128xf32>
    tpu.vector_store %arg33[%c64_64, %c0_65], %97 {strides = array<i32>} : memref<144x128xf32, #tpu.memory_space<vmem>>, vector<16x128xf32>,
    %c127_i32_66 = arith.constant 127 : i32
    %115 = tpu.dynamic_rotate %97 by %c127_i32_66 dim 1 : vector<16x128xf32>, i32 -> vector<16x128xf32>
    %116 = vector.broadcast %6 : vector<1x128xf32> to vector<16x128xf32>
    %117 = arith.mulf %115, %116 : vector<16x128xf32>
    %c80_67 = arith.constant 80 : index
    %c0_68 = arith.constant 0 : index
    %118 = vector.load %arg33[%c80_67, %c0_68] : memref<144x128xf32, #tpu.memory_space<vmem>>, vector<16x128xf32>
    tpu.vector_store %arg33[%c80_67, %c0_68], %117 {strides = array<i32>} : memref<144x128xf32, #tpu.memory_space<vmem>>, vector<16x128xf32>,
    %c121_i32_69 = arith.constant 121 : i32
    %119 = tpu.dynamic_rotate %97 by %c121_i32_69 dim 1 : vector<16x128xf32>, i32 -> vector<16x128xf32>
    %120 = vector.broadcast %7 : vector<1x128xf32> to vector<16x128xf32>
    %121 = arith.mulf %119, %120 : vector<16x128xf32>
    %c96_70 = arith.constant 96 : index
    %c0_71 = arith.constant 0 : index
    %122 = vector.load %arg33[%c96_70, %c0_71] : memref<144x128xf32, #tpu.memory_space<vmem>>, vector<16x128xf32>
    tpu.vector_store %arg33[%c96_70, %c0_71], %121 {strides = array<i32>} : memref<144x128xf32, #tpu.memory_space<vmem>>, vector<16x128xf32>,
    %c120_i32_72 = arith.constant 120 : i32
    %123 = tpu.dynamic_rotate %97 by %c120_i32_72 dim 1 : vector<16x128xf32>, i32 -> vector<16x128xf32>
    %124 = vector.broadcast %8 : vector<1x128xf32> to vector<16x128xf32>
    %125 = arith.mulf %123, %124 : vector<16x128xf32>
    %c112_73 = arith.constant 112 : index
    %c0_74 = arith.constant 0 : index
    %126 = vector.load %arg33[%c112_73, %c0_74] : memref<144x128xf32, #tpu.memory_space<vmem>>, vector<16x128xf32>
    tpu.vector_store %arg33[%c112_73, %c0_74], %125 {strides = array<i32>} : memref<144x128xf32, #tpu.memory_space<vmem>>, vector<16x128xf32>,
    %c119_i32_75 = arith.constant 119 : i32
    %127 = tpu.dynamic_rotate %97 by %c119_i32_75 dim 1 : vector<16x128xf32>, i32 -> vector<16x128xf32>
    %128 = vector.broadcast %9 : vector<1x128xf32> to vector<16x128xf32>
    %129 = arith.mulf %127, %128 : vector<16x128xf32>
    %c128_76 = arith.constant 128 : index
    %c0_77 = arith.constant 0 : index
    %130 = vector.load %arg33[%c128_76, %c0_77] : memref<144x128xf32, #tpu.memory_space<vmem>>, vector<16x128xf32>
    tpu.vector_store %arg33[%c128_76, %c0_77], %129 {strides = array<i32>} : memref<144x128xf32, #tpu.memory_space<vmem>>, vector<16x128xf32>,
    %c0_78 = arith.constant 0 : index
    %c0_79 = arith.constant 0 : index
    %131 = vector.load %arg7[%c0_78, %c0_79] : memref<16x144xf32, #tpu.memory_space<vmem>>, vector<16x144xf32>
    %c0_80 = arith.constant 0 : index
    %c0_81 = arith.constant 0 : index
    %132 = vector.load %arg33[%c0_80, %c0_81] : memref<144x128xf32, #tpu.memory_space<vmem>>, vector<144x128xf32>
    %cst_82 = arith.constant dense<0.000000e+00> : vector<16x128xf32>
    %133 = tpu.matmul %131, %132, %cst_82 {dimension_numbers = #tpu.dot_dimension_numbers<[1], [0], [0], [1], [0, 0, 1, 1], [], []>} : vector<16x144xf32>, vector<144x128xf32>, vector<16x128xf32> -> vector<16x128xf32>
    %c0_83 = arith.constant 0 : index
    %c0_84 = arith.constant 0 : index
    %134 = vector.load %arg8[%c0_83, %c0_84] : memref<16x1xf32, #tpu.memory_space<vmem>>, vector<16x1xf32>
    %135 = vector.broadcast %134 : vector<16x1xf32> to vector<16x128xf32>
    %136 = arith.addf %133, %135 : vector<16x128xf32>
    %c0_85 = arith.constant 0 : index
    %c0_86 = arith.constant 0 : index
    %137 = vector.load %arg9[%c0_85, %c0_86] : memref<8x1xf32, #tpu.memory_space<vmem>>, vector<8x1xf32>
    %138 = vector.extract_strided_slice %136 {offsets = [0, 0], sizes = [8, 128], strides = [1, 1]} : vector<16x128xf32> to vector<8x128xf32>
    %139 = math.tanh %138 : vector<8x128xf32>
    %140 = vector.broadcast %137 : vector<8x1xf32> to vector<8x128xf32>
    %141 = arith.mulf %140, %139 : vector<8x128xf32>
    %142 = vector.extract_strided_slice %136 {offsets = [8, 0], sizes = [8, 128], strides = [1, 1]} : vector<16x128xf32> to vector<8x128xf32>
    %143 = vector.broadcast %13 : vector<1x128xf32> to vector<8x128xf32>
    %144 = arith.mulf %141, %143 : vector<8x128xf32>
    %145 = vector.broadcast %13 : vector<1x128xf32> to vector<8x128xf32>
    %146 = arith.mulf %142, %145 : vector<8x128xf32>
    %147 = arith.addf %10, %146 : vector<8x128xf32>
    %148 = math.exp %144 : vector<8x128xf32>
    %149 = arith.mulf %147, %148 : vector<8x128xf32>
    %cst_87 = arith.constant dense<0.000000e+00> : vector<128xf32>
    %150 = vector.multi_reduction <add>, %144, %cst_87 [0] : vector<8x128xf32> to vector<128xf32>
    %151 = vector.shape_cast %150 : vector<128xf32> to vector<1x128xf32>
    %152 = arith.addf %11, %151 : vector<1x128xf32>
    %cst_88 = arith.constant 1.000000e+00 : f32
    %153 = vector.broadcast %cst_88 : f32 to vector<1x128xf32>
    %154 = arith.subf %153, %1 : vector<1x128xf32>
    %cst_89 = arith.constant 1.000000e+00 : f32
    %155 = vector.broadcast %cst_89 : f32 to vector<1x128xf32>
    %156 = arith.subf %155, %154 : vector<1x128xf32>
    %157 = vector.broadcast %154 : vector<1x128xf32> to vector<8x128xf32>
    %158 = arith.mulf %149, %157 : vector<8x128xf32>
    %c9_i32_90 = arith.constant 9 : i32
    %159 = tpu.dynamic_rotate %158 by %c9_i32_90 dim 1 : vector<8x128xf32>, i32 -> vector<8x128xf32>
    %160 = vector.broadcast %2 : vector<1x128xf32> to vector<8x128xf32>
    %161 = arith.mulf %159, %160 : vector<8x128xf32>
    %c0_91 = arith.constant 0 : index
    %c0_92 = arith.constant 0 : index
    %162 = vector.load %arg33[%c0_91, %c0_92] : memref<144x128xf32, #tpu.memory_space<vmem>>, vector<8x128xf32>
    tpu.vector_store %arg33[%c0_91, %c0_92], %161 {strides = array<i32>} : memref<144x128xf32, #tpu.memory_space<vmem>>, vector<8x128xf32>,
    %c8_i32_93 = arith.constant 8 : i32
    %163 = tpu.dynamic_rotate %158 by %c8_i32_93 dim 1 : vector<8x128xf32>, i32 -> vector<8x128xf32>
    %164 = vector.broadcast %3 : vector<1x128xf32> to vector<8x128xf32>
    %165 = arith.mulf %163, %164 : vector<8x128xf32>
    %c8_94 = arith.constant 8 : index
    %c0_95 = arith.constant 0 : index
    %166 = vector.load %arg33[%c8_94, %c0_95] : memref<144x128xf32, #tpu.memory_space<vmem>>, vector<8x128xf32>
    tpu.vector_store %arg33[%c8_94, %c0_95], %165 {strides = array<i32>} : memref<144x128xf32, #tpu.memory_space<vmem>>, vector<8x128xf32>,
    %c7_i32_96 = arith.constant 7 : i32
    %167 = tpu.dynamic_rotate %158 by %c7_i32_96 dim 1 : vector<8x128xf32>, i32 -> vector<8x128xf32>
    %168 = vector.broadcast %4 : vector<1x128xf32> to vector<8x128xf32>
    %169 = arith.mulf %167, %168 : vector<8x128xf32>
    %c16_97 = arith.constant 16 : index
    %c0_98 = arith.constant 0 : index
    %170 = vector.load %arg33[%c16_97, %c0_98] : memref<144x128xf32, #tpu.memory_space<vmem>>, vector<8x128xf32>
    tpu.vector_store %arg33[%c16_97, %c0_98], %169 {strides = array<i32>} : memref<144x128xf32, #tpu.memory_space<vmem>>, vector<8x128xf32>,
    %c1_i32_99 = arith.constant 1 : i32
    %171 = tpu.dynamic_rotate %158 by %c1_i32_99 dim 1 : vector<8x128xf32>, i32 -> vector<8x128xf32>
    %172 = vector.broadcast %5 : vector<1x128xf32> to vector<8x128xf32>
    %173 = arith.mulf %171, %172 : vector<8x128xf32>
    %c24_100 = arith.constant 24 : index
    %c0_101 = arith.constant 0 : index
    %174 = vector.load %arg33[%c24_100, %c0_101] : memref<144x128xf32, #tpu.memory_space<vmem>>, vector<8x128xf32>
    tpu.vector_store %arg33[%c24_100, %c0_101], %173 {strides = array<i32>} : memref<144x128xf32, #tpu.memory_space<vmem>>, vector<8x128xf32>,
    %c32_102 = arith.constant 32 : index
    %c0_103 = arith.constant 0 : index
    %175 = vector.load %arg33[%c32_102, %c0_103] : memref<144x128xf32, #tpu.memory_space<vmem>>, vector<8x128xf32>
    tpu.vector_store %arg33[%c32_102, %c0_103], %158 {strides = array<i32>} : memref<144x128xf32, #tpu.memory_space<vmem>>, vector<8x128xf32>,
    %c127_i32_104 = arith.constant 127 : i32
    %176 = tpu.dynamic_rotate %158 by %c127_i32_104 dim 1 : vector<8x128xf32>, i32 -> vector<8x128xf32>
    %177 = vector.broadcast %6 : vector<1x128xf32> to vector<8x128xf32>
    %178 = arith.mulf %176, %177 : vector<8x128xf32>
    %c40_105 = arith.constant 40 : index
    %c0_106 = arith.constant 0 : index
    %179 = vector.load %arg33[%c40_105, %c0_106] : memref<144x128xf32, #tpu.memory_space<vmem>>, vector<8x128xf32>
    tpu.vector_store %arg33[%c40_105, %c0_106], %178 {strides = array<i32>} : memref<144x128xf32, #tpu.memory_space<vmem>>, vector<8x128xf32>,
    %c121_i32_107 = arith.constant 121 : i32
    %180 = tpu.dynamic_rotate %158 by %c121_i32_107 dim 1 : vector<8x128xf32>, i32 -> vector<8x128xf32>
    %181 = vector.broadcast %7 : vector<1x128xf32> to vector<8x128xf32>
    %182 = arith.mulf %180, %181 : vector<8x128xf32>
    %c48_108 = arith.constant 48 : index
    %c0_109 = arith.constant 0 : index
    %183 = vector.load %arg33[%c48_108, %c0_109] : memref<144x128xf32, #tpu.memory_space<vmem>>, vector<8x128xf32>
    tpu.vector_store %arg33[%c48_108, %c0_109], %182 {strides = array<i32>} : memref<144x128xf32, #tpu.memory_space<vmem>>, vector<8x128xf32>,
    %c120_i32_110 = arith.constant 120 : i32
    %184 = tpu.dynamic_rotate %158 by %c120_i32_110 dim 1 : vector<8x128xf32>, i32 -> vector<8x128xf32>
    %185 = vector.broadcast %8 : vector<1x128xf32> to vector<8x128xf32>
    %186 = arith.mulf %184, %185 : vector<8x128xf32>
    %c56_111 = arith.constant 56 : index
    %c0_112 = arith.constant 0 : index
    %187 = vector.load %arg33[%c56_111, %c0_112] : memref<144x128xf32, #tpu.memory_space<vmem>>, vector<8x128xf32>
    tpu.vector_store %arg33[%c56_111, %c0_112], %186 {strides = array<i32>} : memref<144x128xf32, #tpu.memory_space<vmem>>, vector<8x128xf32>,
    %c119_i32_113 = arith.constant 119 : i32
    %188 = tpu.dynamic_rotate %158 by %c119_i32_113 dim 1 : vector<8x128xf32>, i32 -> vector<8x128xf32>
    %189 = vector.broadcast %9 : vector<1x128xf32> to vector<8x128xf32>
    %190 = arith.mulf %188, %189 : vector<8x128xf32>
    %c64_114 = arith.constant 64 : index
    %c0_115 = arith.constant 0 : index
    %191 = vector.load %arg33[%c64_114, %c0_115] : memref<144x128xf32, #tpu.memory_space<vmem>>, vector<8x128xf32>
    tpu.vector_store %arg33[%c64_114, %c0_115], %190 {strides = array<i32>} : memref<144x128xf32, #tpu.memory_space<vmem>>, vector<8x128xf32>,
    %c0_116 = arith.constant 0 : index
    %c0_117 = arith.constant 0 : index
    %192 = vector.load %arg10[%c0_116, %c0_117] : memref<16x72xf32, #tpu.memory_space<vmem>>, vector<16x72xf32>
    %c0_118 = arith.constant 0 : index
    %c0_119 = arith.constant 0 : index
    %193 = vector.load %arg33[%c0_118, %c0_119] : memref<144x128xf32, #tpu.memory_space<vmem>>, vector<72x128xf32>
    %cst_120 = arith.constant dense<0.000000e+00> : vector<16x128xf32>
    %194 = tpu.matmul %192, %193, %cst_120 {dimension_numbers = #tpu.dot_dimension_numbers<[1], [0], [0], [1], [0, 0, 1, 1], [], []>} : vector<16x72xf32>, vector<72x128xf32>, vector<16x128xf32> -> vector<16x128xf32>
    %c0_121 = arith.constant 0 : index
    %c0_122 = arith.constant 0 : index
    %195 = vector.load %arg11[%c0_121, %c0_122] : memref<16x1xf32, #tpu.memory_space<vmem>>, vector<16x1xf32>
    %196 = vector.broadcast %195 : vector<16x1xf32> to vector<16x128xf32>
    %197 = arith.addf %194, %196 : vector<16x128xf32>
    %cst_123 = arith.constant 0.000000e+00 : f32
    %198 = vector.broadcast %cst_123 : f32 to vector<16x128xf32>
    %199 = arith.maximumf %197, %198 : vector<16x128xf32>
    %c9_i32_124 = arith.constant 9 : i32
    %200 = tpu.dynamic_rotate %199 by %c9_i32_124 dim 1 : vector<16x128xf32>, i32 -> vector<16x128xf32>
    %201 = vector.broadcast %2 : vector<1x128xf32> to vector<16x128xf32>
    %202 = arith.mulf %200, %201 : vector<16x128xf32>
    %c0_125 = arith.constant 0 : index
    %c0_126 = arith.constant 0 : index
    %203 = vector.load %arg33[%c0_125, %c0_126] : memref<144x128xf32, #tpu.memory_space<vmem>>, vector<16x128xf32>
    tpu.vector_store %arg33[%c0_125, %c0_126], %202 {strides = array<i32>} : memref<144x128xf32, #tpu.memory_space<vmem>>, vector<16x128xf32>,
    %c8_i32_127 = arith.constant 8 : i32
    %204 = tpu.dynamic_rotate %199 by %c8_i32_127 dim 1 : vector<16x128xf32>, i32 -> vector<16x128xf32>
    %205 = vector.broadcast %3 : vector<1x128xf32> to vector<16x128xf32>
    %206 = arith.mulf %204, %205 : vector<16x128xf32>
    %c16_128 = arith.constant 16 : index
    %c0_129 = arith.constant 0 : index
    %207 = vector.load %arg33[%c16_128, %c0_129] : memref<144x128xf32, #tpu.memory_space<vmem>>, vector<16x128xf32>
    tpu.vector_store %arg33[%c16_128, %c0_129], %206 {strides = array<i32>} : memref<144x128xf32, #tpu.memory_space<vmem>>, vector<16x128xf32>,
    %c7_i32_130 = arith.constant 7 : i32
    %208 = tpu.dynamic_rotate %199 by %c7_i32_130 dim 1 : vector<16x128xf32>, i32 -> vector<16x128xf32>
    %209 = vector.broadcast %4 : vector<1x128xf32> to vector<16x128xf32>
    %210 = arith.mulf %208, %209 : vector<16x128xf32>
    %c32_131 = arith.constant 32 : index
    %c0_132 = arith.constant 0 : index
    %211 = vector.load %arg33[%c32_131, %c0_132] : memref<144x128xf32, #tpu.memory_space<vmem>>, vector<16x128xf32>
    tpu.vector_store %arg33[%c32_131, %c0_132], %210 {strides = array<i32>} : memref<144x128xf32, #tpu.memory_space<vmem>>, vector<16x128xf32>,
    %c1_i32_133 = arith.constant 1 : i32
    %212 = tpu.dynamic_rotate %199 by %c1_i32_133 dim 1 : vector<16x128xf32>, i32 -> vector<16x128xf32>
    %213 = vector.broadcast %5 : vector<1x128xf32> to vector<16x128xf32>
    %214 = arith.mulf %212, %213 : vector<16x128xf32>
    %c48_134 = arith.constant 48 : index
    %c0_135 = arith.constant 0 : index
    %215 = vector.load %arg33[%c48_134, %c0_135] : memref<144x128xf32, #tpu.memory_space<vmem>>, vector<16x128xf32>
    tpu.vector_store %arg33[%c48_134, %c0_135], %214 {strides = array<i32>} : memref<144x128xf32, #tpu.memory_space<vmem>>, vector<16x128xf32>,
    %c64_136 = arith.constant 64 : index
    %c0_137 = arith.constant 0 : index
    %216 = vector.load %arg33[%c64_136, %c0_137] : memref<144x128xf32, #tpu.memory_space<vmem>>, vector<16x128xf32>
    tpu.vector_store %arg33[%c64_136, %c0_137], %199 {strides = array<i32>} : memref<144x128xf32, #tpu.memory_space<vmem>>, vector<16x128xf32>,
    %c127_i32_138 = arith.constant 127 : i32
    %217 = tpu.dynamic_rotate %199 by %c127_i32_138 dim 1 : vector<16x128xf32>, i32 -> vector<16x128xf32>
    %218 = vector.broadcast %6 : vector<1x128xf32> to vector<16x128xf32>
    %219 = arith.mulf %217, %218 : vector<16x128xf32>
    %c80_139 = arith.constant 80 : index
    %c0_140 = arith.constant 0 : index
    %220 = vector.load %arg33[%c80_139, %c0_140] : memref<144x128xf32, #tpu.memory_space<vmem>>, vector<16x128xf32>
    tpu.vector_store %arg33[%c80_139, %c0_140], %219 {strides = array<i32>} : memref<144x128xf32, #tpu.memory_space<vmem>>, vector<16x128xf32>,
    %c121_i32_141 = arith.constant 121 : i32
    %221 = tpu.dynamic_rotate %199 by %c121_i32_141 dim 1 : vector<16x128xf32>, i32 -> vector<16x128xf32>
    %222 = vector.broadcast %7 : vector<1x128xf32> to vector<16x128xf32>
    %223 = arith.mulf %221, %222 : vector<16x128xf32>
    %c96_142 = arith.constant 96 : index
    %c0_143 = arith.constant 0 : index
    %224 = vector.load %arg33[%c96_142, %c0_143] : memref<144x128xf32, #tpu.memory_space<vmem>>, vector<16x128xf32>
    tpu.vector_store %arg33[%c96_142, %c0_143], %223 {strides = array<i32>} : memref<144x128xf32, #tpu.memory_space<vmem>>, vector<16x128xf32>,
    %c120_i32_144 = arith.constant 120 : i32
    %225 = tpu.dynamic_rotate %199 by %c120_i32_144 dim 1 : vector<16x128xf32>, i32 -> vector<16x128xf32>
    %226 = vector.broadcast %8 : vector<1x128xf32> to vector<16x128xf32>
    %227 = arith.mulf %225, %226 : vector<16x128xf32>
    %c112_145 = arith.constant 112 : index
    %c0_146 = arith.constant 0 : index
    %228 = vector.load %arg33[%c112_145, %c0_146] : memref<144x128xf32, #tpu.memory_space<vmem>>, vector<16x128xf32>
    tpu.vector_store %arg33[%c112_145, %c0_146], %227 {strides = array<i32>} : memref<144x128xf32, #tpu.memory_space<vmem>>, vector<16x128xf32>,
    %c119_i32_147 = arith.constant 119 : i32
    %229 = tpu.dynamic_rotate %199 by %c119_i32_147 dim 1 : vector<16x128xf32>, i32 -> vector<16x128xf32>
    %230 = vector.broadcast %9 : vector<1x128xf32> to vector<16x128xf32>
    %231 = arith.mulf %229, %230 : vector<16x128xf32>
    %c128_148 = arith.constant 128 : index
    %c0_149 = arith.constant 0 : index
    %232 = vector.load %arg33[%c128_148, %c0_149] : memref<144x128xf32, #tpu.memory_space<vmem>>, vector<16x128xf32>
    tpu.vector_store %arg33[%c128_148, %c0_149], %231 {strides = array<i32>} : memref<144x128xf32, #tpu.memory_space<vmem>>, vector<16x128xf32>,
    %c0_150 = arith.constant 0 : index
    %c0_151 = arith.constant 0 : index
    %233 = vector.load %arg12[%c0_150, %c0_151] : memref<16x144xf32, #tpu.memory_space<vmem>>, vector<16x144xf32>
    %c0_152 = arith.constant 0 : index
    %c0_153 = arith.constant 0 : index
    %234 = vector.load %arg33[%c0_152, %c0_153] : memref<144x128xf32, #tpu.memory_space<vmem>>, vector<144x128xf32>
    %cst_154 = arith.constant dense<0.000000e+00> : vector<16x128xf32>
    %235 = tpu.matmul %233, %234, %cst_154 {dimension_numbers = #tpu.dot_dimension_numbers<[1], [0], [0], [1], [0, 0, 1, 1], [], []>} : vector<16x144xf32>, vector<144x128xf32>, vector<16x128xf32> -> vector<16x128xf32>
    %c0_155 = arith.constant 0 : index
    %c0_156 = arith.constant 0 : index
    %236 = vector.load %arg13[%c0_155, %c0_156] : memref<16x1xf32, #tpu.memory_space<vmem>>, vector<16x1xf32>
    %237 = vector.broadcast %236 : vector<16x1xf32> to vector<16x128xf32>
    %238 = arith.addf %235, %237 : vector<16x128xf32>
    %cst_157 = arith.constant 0.000000e+00 : f32
    %239 = vector.broadcast %cst_157 : f32 to vector<16x128xf32>
    %240 = arith.maximumf %238, %239 : vector<16x128xf32>
    %c9_i32_158 = arith.constant 9 : i32
    %241 = tpu.dynamic_rotate %240 by %c9_i32_158 dim 1 : vector<16x128xf32>, i32 -> vector<16x128xf32>
    %242 = vector.broadcast %2 : vector<1x128xf32> to vector<16x128xf32>
    %243 = arith.mulf %241, %242 : vector<16x128xf32>
    %c0_159 = arith.constant 0 : index
    %c0_160 = arith.constant 0 : index
    %244 = vector.load %arg33[%c0_159, %c0_160] : memref<144x128xf32, #tpu.memory_space<vmem>>, vector<16x128xf32>
    tpu.vector_store %arg33[%c0_159, %c0_160], %243 {strides = array<i32>} : memref<144x128xf32, #tpu.memory_space<vmem>>, vector<16x128xf32>,
    %c8_i32_161 = arith.constant 8 : i32
    %245 = tpu.dynamic_rotate %240 by %c8_i32_161 dim 1 : vector<16x128xf32>, i32 -> vector<16x128xf32>
    %246 = vector.broadcast %3 : vector<1x128xf32> to vector<16x128xf32>
    %247 = arith.mulf %245, %246 : vector<16x128xf32>
    %c16_162 = arith.constant 16 : index
    %c0_163 = arith.constant 0 : index
    %248 = vector.load %arg33[%c16_162, %c0_163] : memref<144x128xf32, #tpu.memory_space<vmem>>, vector<16x128xf32>
    tpu.vector_store %arg33[%c16_162, %c0_163], %247 {strides = array<i32>} : memref<144x128xf32, #tpu.memory_space<vmem>>, vector<16x128xf32>,
    %c7_i32_164 = arith.constant 7 : i32
    %249 = tpu.dynamic_rotate %240 by %c7_i32_164 dim 1 : vector<16x128xf32>, i32 -> vector<16x128xf32>
    %250 = vector.broadcast %4 : vector<1x128xf32> to vector<16x128xf32>
    %251 = arith.mulf %249, %250 : vector<16x128xf32>
    %c32_165 = arith.constant 32 : index
    %c0_166 = arith.constant 0 : index
    %252 = vector.load %arg33[%c32_165, %c0_166] : memref<144x128xf32, #tpu.memory_space<vmem>>, vector<16x128xf32>
    tpu.vector_store %arg33[%c32_165, %c0_166], %251 {strides = array<i32>} : memref<144x128xf32, #tpu.memory_space<vmem>>, vector<16x128xf32>,
    %c1_i32_167 = arith.constant 1 : i32
    %253 = tpu.dynamic_rotate %240 by %c1_i32_167 dim 1 : vector<16x128xf32>, i32 -> vector<16x128xf32>
    %254 = vector.broadcast %5 : vector<1x128xf32> to vector<16x128xf32>
    %255 = arith.mulf %253, %254 : vector<16x128xf32>
    %c48_168 = arith.constant 48 : index
    %c0_169 = arith.constant 0 : index
    %256 = vector.load %arg33[%c48_168, %c0_169] : memref<144x128xf32, #tpu.memory_space<vmem>>, vector<16x128xf32>
    tpu.vector_store %arg33[%c48_168, %c0_169], %255 {strides = array<i32>} : memref<144x128xf32, #tpu.memory_space<vmem>>, vector<16x128xf32>,
    %c64_170 = arith.constant 64 : index
    %c0_171 = arith.constant 0 : index
    %257 = vector.load %arg33[%c64_170, %c0_171] : memref<144x128xf32, #tpu.memory_space<vmem>>, vector<16x128xf32>
    tpu.vector_store %arg33[%c64_170, %c0_171], %240 {strides = array<i32>} : memref<144x128xf32, #tpu.memory_space<vmem>>, vector<16x128xf32>,
    %c127_i32_172 = arith.constant 127 : i32
    %258 = tpu.dynamic_rotate %240 by %c127_i32_172 dim 1 : vector<16x128xf32>, i32 -> vector<16x128xf32>
    %259 = vector.broadcast %6 : vector<1x128xf32> to vector<16x128xf32>
    %260 = arith.mulf %258, %259 : vector<16x128xf32>
    %c80_173 = arith.constant 80 : index
    %c0_174 = arith.constant 0 : index
    %261 = vector.load %arg33[%c80_173, %c0_174] : memref<144x128xf32, #tpu.memory_space<vmem>>, vector<16x128xf32>
    tpu.vector_store %arg33[%c80_173, %c0_174], %260 {strides = array<i32>} : memref<144x128xf32, #tpu.memory_space<vmem>>, vector<16x128xf32>,
    %c121_i32_175 = arith.constant 121 : i32
    %262 = tpu.dynamic_rotate %240 by %c121_i32_175 dim 1 : vector<16x128xf32>, i32 -> vector<16x128xf32>
    %263 = vector.broadcast %7 : vector<1x128xf32> to vector<16x128xf32>
    %264 = arith.mulf %262, %263 : vector<16x128xf32>
    %c96_176 = arith.constant 96 : index
    %c0_177 = arith.constant 0 : index
    %265 = vector.load %arg33[%c96_176, %c0_177] : memref<144x128xf32, #tpu.memory_space<vmem>>, vector<16x128xf32>
    tpu.vector_store %arg33[%c96_176, %c0_177], %264 {strides = array<i32>} : memref<144x128xf32, #tpu.memory_space<vmem>>, vector<16x128xf32>,
    %c120_i32_178 = arith.constant 120 : i32
    %266 = tpu.dynamic_rotate %240 by %c120_i32_178 dim 1 : vector<16x128xf32>, i32 -> vector<16x128xf32>
    %267 = vector.broadcast %8 : vector<1x128xf32> to vector<16x128xf32>
    %268 = arith.mulf %266, %267 : vector<16x128xf32>
    %c112_179 = arith.constant 112 : index
    %c0_180 = arith.constant 0 : index
    %269 = vector.load %arg33[%c112_179, %c0_180] : memref<144x128xf32, #tpu.memory_space<vmem>>, vector<16x128xf32>
    tpu.vector_store %arg33[%c112_179, %c0_180], %268 {strides = array<i32>} : memref<144x128xf32, #tpu.memory_space<vmem>>, vector<16x128xf32>,
    %c119_i32_181 = arith.constant 119 : i32
    %270 = tpu.dynamic_rotate %240 by %c119_i32_181 dim 1 : vector<16x128xf32>, i32 -> vector<16x128xf32>
    %271 = vector.broadcast %9 : vector<1x128xf32> to vector<16x128xf32>
    %272 = arith.mulf %270, %271 : vector<16x128xf32>
    %c128_182 = arith.constant 128 : index
    %c0_183 = arith.constant 0 : index
    %273 = vector.load %arg33[%c128_182, %c0_183] : memref<144x128xf32, #tpu.memory_space<vmem>>, vector<16x128xf32>
    tpu.vector_store %arg33[%c128_182, %c0_183], %272 {strides = array<i32>} : memref<144x128xf32, #tpu.memory_space<vmem>>, vector<16x128xf32>,
    %c0_184 = arith.constant 0 : index
    %c0_185 = arith.constant 0 : index
    %274 = vector.load %arg14[%c0_184, %c0_185] : memref<16x144xf32, #tpu.memory_space<vmem>>, vector<16x144xf32>
    %c0_186 = arith.constant 0 : index
    %c0_187 = arith.constant 0 : index
    %275 = vector.load %arg33[%c0_186, %c0_187] : memref<144x128xf32, #tpu.memory_space<vmem>>, vector<144x128xf32>
    %cst_188 = arith.constant dense<0.000000e+00> : vector<16x128xf32>
    %276 = tpu.matmul %274, %275, %cst_188 {dimension_numbers = #tpu.dot_dimension_numbers<[1], [0], [0], [1], [0, 0, 1, 1], [], []>} : vector<16x144xf32>, vector<144x128xf32>, vector<16x128xf32> -> vector<16x128xf32>
    %c0_189 = arith.constant 0 : index
    %c0_190 = arith.constant 0 : index
    %277 = vector.load %arg15[%c0_189, %c0_190] : memref<16x1xf32, #tpu.memory_space<vmem>>, vector<16x1xf32>
    %278 = vector.broadcast %277 : vector<16x1xf32> to vector<16x128xf32>
    %279 = arith.addf %276, %278 : vector<16x128xf32>
    %c0_191 = arith.constant 0 : index
    %c0_192 = arith.constant 0 : index
    %280 = vector.load %arg16[%c0_191, %c0_192] : memref<8x1xf32, #tpu.memory_space<vmem>>, vector<8x1xf32>
    %281 = vector.extract_strided_slice %279 {offsets = [0, 0], sizes = [8, 128], strides = [1, 1]} : vector<16x128xf32> to vector<8x128xf32>
    %282 = math.tanh %281 : vector<8x128xf32>
    %283 = vector.broadcast %280 : vector<8x1xf32> to vector<8x128xf32>
    %284 = arith.mulf %283, %282 : vector<8x128xf32>
    %285 = vector.extract_strided_slice %279 {offsets = [8, 0], sizes = [8, 128], strides = [1, 1]} : vector<16x128xf32> to vector<8x128xf32>
    %286 = vector.broadcast %156 : vector<1x128xf32> to vector<8x128xf32>
    %287 = arith.mulf %284, %286 : vector<8x128xf32>
    %288 = vector.broadcast %156 : vector<1x128xf32> to vector<8x128xf32>
    %289 = arith.mulf %285, %288 : vector<8x128xf32>
    %290 = arith.addf %149, %289 : vector<8x128xf32>
    %291 = math.exp %287 : vector<8x128xf32>
    %292 = arith.mulf %290, %291 : vector<8x128xf32>
    %cst_193 = arith.constant dense<0.000000e+00> : vector<128xf32>
    %293 = vector.multi_reduction <add>, %287, %cst_193 [0] : vector<8x128xf32> to vector<128xf32>
    %294 = vector.shape_cast %293 : vector<128xf32> to vector<1x128xf32>
    %295 = arith.addf %152, %294 : vector<1x128xf32>
    %cst_194 = arith.constant 1.000000e+00 : f32
    %296 = vector.broadcast %cst_194 : f32 to vector<1x128xf32>
    %297 = arith.subf %296, %1 : vector<1x128xf32>
    %298 = vector.broadcast %1 : vector<1x128xf32> to vector<8x128xf32>
    %299 = arith.mulf %292, %298 : vector<8x128xf32>
    %c9_i32_195 = arith.constant 9 : i32
    %300 = tpu.dynamic_rotate %299 by %c9_i32_195 dim 1 : vector<8x128xf32>, i32 -> vector<8x128xf32>
    %301 = vector.broadcast %2 : vector<1x128xf32> to vector<8x128xf32>
    %302 = arith.mulf %300, %301 : vector<8x128xf32>
    %c0_196 = arith.constant 0 : index
    %c0_197 = arith.constant 0 : index
    %303 = vector.load %arg33[%c0_196, %c0_197] : memref<144x128xf32, #tpu.memory_space<vmem>>, vector<8x128xf32>
    tpu.vector_store %arg33[%c0_196, %c0_197], %302 {strides = array<i32>} : memref<144x128xf32, #tpu.memory_space<vmem>>, vector<8x128xf32>,
    %c8_i32_198 = arith.constant 8 : i32
    %304 = tpu.dynamic_rotate %299 by %c8_i32_198 dim 1 : vector<8x128xf32>, i32 -> vector<8x128xf32>
    %305 = vector.broadcast %3 : vector<1x128xf32> to vector<8x128xf32>
    %306 = arith.mulf %304, %305 : vector<8x128xf32>
    %c8_199 = arith.constant 8 : index
    %c0_200 = arith.constant 0 : index
    %307 = vector.load %arg33[%c8_199, %c0_200] : memref<144x128xf32, #tpu.memory_space<vmem>>, vector<8x128xf32>
    tpu.vector_store %arg33[%c8_199, %c0_200], %306 {strides = array<i32>} : memref<144x128xf32, #tpu.memory_space<vmem>>, vector<8x128xf32>,
    %c7_i32_201 = arith.constant 7 : i32
    %308 = tpu.dynamic_rotate %299 by %c7_i32_201 dim 1 : vector<8x128xf32>, i32 -> vector<8x128xf32>
    %309 = vector.broadcast %4 : vector<1x128xf32> to vector<8x128xf32>
    %310 = arith.mulf %308, %309 : vector<8x128xf32>
    %c16_202 = arith.constant 16 : index
    %c0_203 = arith.constant 0 : index
    %311 = vector.load %arg33[%c16_202, %c0_203] : memref<144x128xf32, #tpu.memory_space<vmem>>, vector<8x128xf32>
    tpu.vector_store %arg33[%c16_202, %c0_203], %310 {strides = array<i32>} : memref<144x128xf32, #tpu.memory_space<vmem>>, vector<8x128xf32>,
    %c1_i32_204 = arith.constant 1 : i32
    %312 = tpu.dynamic_rotate %299 by %c1_i32_204 dim 1 : vector<8x128xf32>, i32 -> vector<8x128xf32>
    %313 = vector.broadcast %5 : vector<1x128xf32> to vector<8x128xf32>
    %314 = arith.mulf %312, %313 : vector<8x128xf32>
    %c24_205 = arith.constant 24 : index
    %c0_206 = arith.constant 0 : index
    %315 = vector.load %arg33[%c24_205, %c0_206] : memref<144x128xf32, #tpu.memory_space<vmem>>, vector<8x128xf32>
    tpu.vector_store %arg33[%c24_205, %c0_206], %314 {strides = array<i32>} : memref<144x128xf32, #tpu.memory_space<vmem>>, vector<8x128xf32>,
    %c32_207 = arith.constant 32 : index
    %c0_208 = arith.constant 0 : index
    %316 = vector.load %arg33[%c32_207, %c0_208] : memref<144x128xf32, #tpu.memory_space<vmem>>, vector<8x128xf32>
    tpu.vector_store %arg33[%c32_207, %c0_208], %299 {strides = array<i32>} : memref<144x128xf32, #tpu.memory_space<vmem>>, vector<8x128xf32>,
    %c127_i32_209 = arith.constant 127 : i32
    %317 = tpu.dynamic_rotate %299 by %c127_i32_209 dim 1 : vector<8x128xf32>, i32 -> vector<8x128xf32>
    %318 = vector.broadcast %6 : vector<1x128xf32> to vector<8x128xf32>
    %319 = arith.mulf %317, %318 : vector<8x128xf32>
    %c40_210 = arith.constant 40 : index
    %c0_211 = arith.constant 0 : index
    %320 = vector.load %arg33[%c40_210, %c0_211] : memref<144x128xf32, #tpu.memory_space<vmem>>, vector<8x128xf32>
    tpu.vector_store %arg33[%c40_210, %c0_211], %319 {strides = array<i32>} : memref<144x128xf32, #tpu.memory_space<vmem>>, vector<8x128xf32>,
    %c121_i32_212 = arith.constant 121 : i32
    %321 = tpu.dynamic_rotate %299 by %c121_i32_212 dim 1 : vector<8x128xf32>, i32 -> vector<8x128xf32>
    %322 = vector.broadcast %7 : vector<1x128xf32> to vector<8x128xf32>
    %323 = arith.mulf %321, %322 : vector<8x128xf32>
    %c48_213 = arith.constant 48 : index
    %c0_214 = arith.constant 0 : index
    %324 = vector.load %arg33[%c48_213, %c0_214] : memref<144x128xf32, #tpu.memory_space<vmem>>, vector<8x128xf32>
    tpu.vector_store %arg33[%c48_213, %c0_214], %323 {strides = array<i32>} : memref<144x128xf32, #tpu.memory_space<vmem>>, vector<8x128xf32>,
    %c120_i32_215 = arith.constant 120 : i32
    %325 = tpu.dynamic_rotate %299 by %c120_i32_215 dim 1 : vector<8x128xf32>, i32 -> vector<8x128xf32>
    %326 = vector.broadcast %8 : vector<1x128xf32> to vector<8x128xf32>
    %327 = arith.mulf %325, %326 : vector<8x128xf32>
    %c56_216 = arith.constant 56 : index
    %c0_217 = arith.constant 0 : index
    %328 = vector.load %arg33[%c56_216, %c0_217] : memref<144x128xf32, #tpu.memory_space<vmem>>, vector<8x128xf32>
    tpu.vector_store %arg33[%c56_216, %c0_217], %327 {strides = array<i32>} : memref<144x128xf32, #tpu.memory_space<vmem>>, vector<8x128xf32>,
    %c119_i32_218 = arith.constant 119 : i32
    %329 = tpu.dynamic_rotate %299 by %c119_i32_218 dim 1 : vector<8x128xf32>, i32 -> vector<8x128xf32>
    %330 = vector.broadcast %9 : vector<1x128xf32> to vector<8x128xf32>
    %331 = arith.mulf %329, %330 : vector<8x128xf32>
    %c64_219 = arith.constant 64 : index
    %c0_220 = arith.constant 0 : index
    %332 = vector.load %arg33[%c64_219, %c0_220] : memref<144x128xf32, #tpu.memory_space<vmem>>, vector<8x128xf32>
    tpu.vector_store %arg33[%c64_219, %c0_220], %331 {strides = array<i32>} : memref<144x128xf32, #tpu.memory_space<vmem>>, vector<8x128xf32>,
    %c0_221 = arith.constant 0 : index
    %c0_222 = arith.constant 0 : index
    %333 = vector.load %arg17[%c0_221, %c0_222] : memref<16x72xf32, #tpu.memory_space<vmem>>, vector<16x72xf32>
    %c0_223 = arith.constant 0 : index
    %c0_224 = arith.constant 0 : index
    %334 = vector.load %arg33[%c0_223, %c0_224] : memref<144x128xf32, #tpu.memory_space<vmem>>, vector<72x128xf32>
    %cst_225 = arith.constant dense<0.000000e+00> : vector<16x128xf32>
    %335 = tpu.matmul %333, %334, %cst_225 {dimension_numbers = #tpu.dot_dimension_numbers<[1], [0], [0], [1], [0, 0, 1, 1], [], []>} : vector<16x72xf32>, vector<72x128xf32>, vector<16x128xf32> -> vector<16x128xf32>
    %c0_226 = arith.constant 0 : index
    %c0_227 = arith.constant 0 : index
    %336 = vector.load %arg18[%c0_226, %c0_227] : memref<16x1xf32, #tpu.memory_space<vmem>>, vector<16x1xf32>
    %337 = vector.broadcast %336 : vector<16x1xf32> to vector<16x128xf32>
    %338 = arith.addf %335, %337 : vector<16x128xf32>
    %cst_228 = arith.constant 0.000000e+00 : f32
    %339 = vector.broadcast %cst_228 : f32 to vector<16x128xf32>
    %340 = arith.maximumf %338, %339 : vector<16x128xf32>
    %c9_i32_229 = arith.constant 9 : i32
    %341 = tpu.dynamic_rotate %340 by %c9_i32_229 dim 1 : vector<16x128xf32>, i32 -> vector<16x128xf32>
    %342 = vector.broadcast %2 : vector<1x128xf32> to vector<16x128xf32>
    %343 = arith.mulf %341, %342 : vector<16x128xf32>
    %c0_230 = arith.constant 0 : index
    %c0_231 = arith.constant 0 : index
    %344 = vector.load %arg33[%c0_230, %c0_231] : memref<144x128xf32, #tpu.memory_space<vmem>>, vector<16x128xf32>
    tpu.vector_store %arg33[%c0_230, %c0_231], %343 {strides = array<i32>} : memref<144x128xf32, #tpu.memory_space<vmem>>, vector<16x128xf32>,
    %c8_i32_232 = arith.constant 8 : i32
    %345 = tpu.dynamic_rotate %340 by %c8_i32_232 dim 1 : vector<16x128xf32>, i32 -> vector<16x128xf32>
    %346 = vector.broadcast %3 : vector<1x128xf32> to vector<16x128xf32>
    %347 = arith.mulf %345, %346 : vector<16x128xf32>
    %c16_233 = arith.constant 16 : index
    %c0_234 = arith.constant 0 : index
    %348 = vector.load %arg33[%c16_233, %c0_234] : memref<144x128xf32, #tpu.memory_space<vmem>>, vector<16x128xf32>
    tpu.vector_store %arg33[%c16_233, %c0_234], %347 {strides = array<i32>} : memref<144x128xf32, #tpu.memory_space<vmem>>, vector<16x128xf32>,
    %c7_i32_235 = arith.constant 7 : i32
    %349 = tpu.dynamic_rotate %340 by %c7_i32_235 dim 1 : vector<16x128xf32>, i32 -> vector<16x128xf32>
    %350 = vector.broadcast %4 : vector<1x128xf32> to vector<16x128xf32>
    %351 = arith.mulf %349, %350 : vector<16x128xf32>
    %c32_236 = arith.constant 32 : index
    %c0_237 = arith.constant 0 : index
    %352 = vector.load %arg33[%c32_236, %c0_237] : memref<144x128xf32, #tpu.memory_space<vmem>>, vector<16x128xf32>
    tpu.vector_store %arg33[%c32_236, %c0_237], %351 {strides = array<i32>} : memref<144x128xf32, #tpu.memory_space<vmem>>, vector<16x128xf32>,
    %c1_i32_238 = arith.constant 1 : i32
    %353 = tpu.dynamic_rotate %340 by %c1_i32_238 dim 1 : vector<16x128xf32>, i32 -> vector<16x128xf32>
    %354 = vector.broadcast %5 : vector<1x128xf32> to vector<16x128xf32>
    %355 = arith.mulf %353, %354 : vector<16x128xf32>
    %c48_239 = arith.constant 48 : index
    %c0_240 = arith.constant 0 : index
    %356 = vector.load %arg33[%c48_239, %c0_240] : memref<144x128xf32, #tpu.memory_space<vmem>>, vector<16x128xf32>
    tpu.vector_store %arg33[%c48_239, %c0_240], %355 {strides = array<i32>} : memref<144x128xf32, #tpu.memory_space<vmem>>, vector<16x128xf32>,
    %c64_241 = arith.constant 64 : index
    %c0_242 = arith.constant 0 : index
    %357 = vector.load %arg33[%c64_241, %c0_242] : memref<144x128xf32, #tpu.memory_space<vmem>>, vector<16x128xf32>
    tpu.vector_store %arg33[%c64_241, %c0_242], %340 {strides = array<i32>} : memref<144x128xf32, #tpu.memory_space<vmem>>, vector<16x128xf32>,
    %c127_i32_243 = arith.constant 127 : i32
    %358 = tpu.dynamic_rotate %340 by %c127_i32_243 dim 1 : vector<16x128xf32>, i32 -> vector<16x128xf32>
    %359 = vector.broadcast %6 : vector<1x128xf32> to vector<16x128xf32>
    %360 = arith.mulf %358, %359 : vector<16x128xf32>
    %c80_244 = arith.constant 80 : index
    %c0_245 = arith.constant 0 : index
    %361 = vector.load %arg33[%c80_244, %c0_245] : memref<144x128xf32, #tpu.memory_space<vmem>>, vector<16x128xf32>
    tpu.vector_store %arg33[%c80_244, %c0_245], %360 {strides = array<i32>} : memref<144x128xf32, #tpu.memory_space<vmem>>, vector<16x128xf32>,
    %c121_i32_246 = arith.constant 121 : i32
    %362 = tpu.dynamic_rotate %340 by %c121_i32_246 dim 1 : vector<16x128xf32>, i32 -> vector<16x128xf32>
    %363 = vector.broadcast %7 : vector<1x128xf32> to vector<16x128xf32>
    %364 = arith.mulf %362, %363 : vector<16x128xf32>
    %c96_247 = arith.constant 96 : index
    %c0_248 = arith.constant 0 : index
    %365 = vector.load %arg33[%c96_247, %c0_248] : memref<144x128xf32, #tpu.memory_space<vmem>>, vector<16x128xf32>
    tpu.vector_store %arg33[%c96_247, %c0_248], %364 {strides = array<i32>} : memref<144x128xf32, #tpu.memory_space<vmem>>, vector<16x128xf32>,
    %c120_i32_249 = arith.constant 120 : i32
    %366 = tpu.dynamic_rotate %340 by %c120_i32_249 dim 1 : vector<16x128xf32>, i32 -> vector<16x128xf32>
    %367 = vector.broadcast %8 : vector<1x128xf32> to vector<16x128xf32>
    %368 = arith.mulf %366, %367 : vector<16x128xf32>
    %c112_250 = arith.constant 112 : index
    %c0_251 = arith.constant 0 : index
    %369 = vector.load %arg33[%c112_250, %c0_251] : memref<144x128xf32, #tpu.memory_space<vmem>>, vector<16x128xf32>
    tpu.vector_store %arg33[%c112_250, %c0_251], %368 {strides = array<i32>} : memref<144x128xf32, #tpu.memory_space<vmem>>, vector<16x128xf32>,
    %c119_i32_252 = arith.constant 119 : i32
    %370 = tpu.dynamic_rotate %340 by %c119_i32_252 dim 1 : vector<16x128xf32>, i32 -> vector<16x128xf32>
    %371 = vector.broadcast %9 : vector<1x128xf32> to vector<16x128xf32>
    %372 = arith.mulf %370, %371 : vector<16x128xf32>
    %c128_253 = arith.constant 128 : index
    %c0_254 = arith.constant 0 : index
    %373 = vector.load %arg33[%c128_253, %c0_254] : memref<144x128xf32, #tpu.memory_space<vmem>>, vector<16x128xf32>
    tpu.vector_store %arg33[%c128_253, %c0_254], %372 {strides = array<i32>} : memref<144x128xf32, #tpu.memory_space<vmem>>, vector<16x128xf32>,
    %c0_255 = arith.constant 0 : index
    %c0_256 = arith.constant 0 : index
    %374 = vector.load %arg19[%c0_255, %c0_256] : memref<16x144xf32, #tpu.memory_space<vmem>>, vector<16x144xf32>
    %c0_257 = arith.constant 0 : index
    %c0_258 = arith.constant 0 : index
    %375 = vector.load %arg33[%c0_257, %c0_258] : memref<144x128xf32, #tpu.memory_space<vmem>>, vector<144x128xf32>
    %cst_259 = arith.constant dense<0.000000e+00> : vector<16x128xf32>
    %376 = tpu.matmul %374, %375, %cst_259 {dimension_numbers = #tpu.dot_dimension_numbers<[1], [0], [0], [1], [0, 0, 1, 1], [], []>} : vector<16x144xf32>, vector<144x128xf32>, vector<16x128xf32> -> vector<16x128xf32>
    %c0_260 = arith.constant 0 : index
    %c0_261 = arith.constant 0 : index
    %377 = vector.load %arg20[%c0_260, %c0_261] : memref<16x1xf32, #tpu.memory_space<vmem>>, vector<16x1xf32>
    %378 = vector.broadcast %377 : vector<16x1xf32> to vector<16x128xf32>
    %379 = arith.addf %376, %378 : vector<16x128xf32>
    %cst_262 = arith.constant 0.000000e+00 : f32
    %380 = vector.broadcast %cst_262 : f32 to vector<16x128xf32>
    %381 = arith.maximumf %379, %380 : vector<16x128xf32>
    %c9_i32_263 = arith.constant 9 : i32
    %382 = tpu.dynamic_rotate %381 by %c9_i32_263 dim 1 : vector<16x128xf32>, i32 -> vector<16x128xf32>
    %383 = vector.broadcast %2 : vector<1x128xf32> to vector<16x128xf32>
    %384 = arith.mulf %382, %383 : vector<16x128xf32>
    %c0_264 = arith.constant 0 : index
    %c0_265 = arith.constant 0 : index
    %385 = vector.load %arg33[%c0_264, %c0_265] : memref<144x128xf32, #tpu.memory_space<vmem>>, vector<16x128xf32>
    tpu.vector_store %arg33[%c0_264, %c0_265], %384 {strides = array<i32>} : memref<144x128xf32, #tpu.memory_space<vmem>>, vector<16x128xf32>,
    %c8_i32_266 = arith.constant 8 : i32
    %386 = tpu.dynamic_rotate %381 by %c8_i32_266 dim 1 : vector<16x128xf32>, i32 -> vector<16x128xf32>
    %387 = vector.broadcast %3 : vector<1x128xf32> to vector<16x128xf32>
    %388 = arith.mulf %386, %387 : vector<16x128xf32>
    %c16_267 = arith.constant 16 : index
    %c0_268 = arith.constant 0 : index
    %389 = vector.load %arg33[%c16_267, %c0_268] : memref<144x128xf32, #tpu.memory_space<vmem>>, vector<16x128xf32>
    tpu.vector_store %arg33[%c16_267, %c0_268], %388 {strides = array<i32>} : memref<144x128xf32, #tpu.memory_space<vmem>>, vector<16x128xf32>,
    %c7_i32_269 = arith.constant 7 : i32
    %390 = tpu.dynamic_rotate %381 by %c7_i32_269 dim 1 : vector<16x128xf32>, i32 -> vector<16x128xf32>
    %391 = vector.broadcast %4 : vector<1x128xf32> to vector<16x128xf32>
    %392 = arith.mulf %390, %391 : vector<16x128xf32>
    %c32_270 = arith.constant 32 : index
    %c0_271 = arith.constant 0 : index
    %393 = vector.load %arg33[%c32_270, %c0_271] : memref<144x128xf32, #tpu.memory_space<vmem>>, vector<16x128xf32>
    tpu.vector_store %arg33[%c32_270, %c0_271], %392 {strides = array<i32>} : memref<144x128xf32, #tpu.memory_space<vmem>>, vector<16x128xf32>,
    %c1_i32_272 = arith.constant 1 : i32
    %394 = tpu.dynamic_rotate %381 by %c1_i32_272 dim 1 : vector<16x128xf32>, i32 -> vector<16x128xf32>
    %395 = vector.broadcast %5 : vector<1x128xf32> to vector<16x128xf32>
    %396 = arith.mulf %394, %395 : vector<16x128xf32>
    %c48_273 = arith.constant 48 : index
    %c0_274 = arith.constant 0 : index
    %397 = vector.load %arg33[%c48_273, %c0_274] : memref<144x128xf32, #tpu.memory_space<vmem>>, vector<16x128xf32>
    tpu.vector_store %arg33[%c48_273, %c0_274], %396 {strides = array<i32>} : memref<144x128xf32, #tpu.memory_space<vmem>>, vector<16x128xf32>,
    %c64_275 = arith.constant 64 : index
    %c0_276 = arith.constant 0 : index
    %398 = vector.load %arg33[%c64_275, %c0_276] : memref<144x128xf32, #tpu.memory_space<vmem>>, vector<16x128xf32>
    tpu.vector_store %arg33[%c64_275, %c0_276], %381 {strides = array<i32>} : memref<144x128xf32, #tpu.memory_space<vmem>>, vector<16x128xf32>,
    %c127_i32_277 = arith.constant 127 : i32
    %399 = tpu.dynamic_rotate %381 by %c127_i32_277 dim 1 : vector<16x128xf32>, i32 -> vector<16x128xf32>
    %400 = vector.broadcast %6 : vector<1x128xf32> to vector<16x128xf32>
    %401 = arith.mulf %399, %400 : vector<16x128xf32>
    %c80_278 = arith.constant 80 : index
    %c0_279 = arith.constant 0 : index
    %402 = vector.load %arg33[%c80_278, %c0_279] : memref<144x128xf32, #tpu.memory_space<vmem>>, vector<16x128xf32>
    tpu.vector_store %arg33[%c80_278, %c0_279], %401 {strides = array<i32>} : memref<144x128xf32, #tpu.memory_space<vmem>>, vector<16x128xf32>,
    %c121_i32_280 = arith.constant 121 : i32
    %403 = tpu.dynamic_rotate %381 by %c121_i32_280 dim 1 : vector<16x128xf32>, i32 -> vector<16x128xf32>
    %404 = vector.broadcast %7 : vector<1x128xf32> to vector<16x128xf32>
    %405 = arith.mulf %403, %404 : vector<16x128xf32>
    %c96_281 = arith.constant 96 : index
    %c0_282 = arith.constant 0 : index
    %406 = vector.load %arg33[%c96_281, %c0_282] : memref<144x128xf32, #tpu.memory_space<vmem>>, vector<16x128xf32>
    tpu.vector_store %arg33[%c96_281, %c0_282], %405 {strides = array<i32>} : memref<144x128xf32, #tpu.memory_space<vmem>>, vector<16x128xf32>,
    %c120_i32_283 = arith.constant 120 : i32
    %407 = tpu.dynamic_rotate %381 by %c120_i32_283 dim 1 : vector<16x128xf32>, i32 -> vector<16x128xf32>
    %408 = vector.broadcast %8 : vector<1x128xf32> to vector<16x128xf32>
    %409 = arith.mulf %407, %408 : vector<16x128xf32>
    %c112_284 = arith.constant 112 : index
    %c0_285 = arith.constant 0 : index
    %410 = vector.load %arg33[%c112_284, %c0_285] : memref<144x128xf32, #tpu.memory_space<vmem>>, vector<16x128xf32>
    tpu.vector_store %arg33[%c112_284, %c0_285], %409 {strides = array<i32>} : memref<144x128xf32, #tpu.memory_space<vmem>>, vector<16x128xf32>,
    %c119_i32_286 = arith.constant 119 : i32
    %411 = tpu.dynamic_rotate %381 by %c119_i32_286 dim 1 : vector<16x128xf32>, i32 -> vector<16x128xf32>
    %412 = vector.broadcast %9 : vector<1x128xf32> to vector<16x128xf32>
    %413 = arith.mulf %411, %412 : vector<16x128xf32>
    %c128_287 = arith.constant 128 : index
    %c0_288 = arith.constant 0 : index
    %414 = vector.load %arg33[%c128_287, %c0_288] : memref<144x128xf32, #tpu.memory_space<vmem>>, vector<16x128xf32>
    tpu.vector_store %arg33[%c128_287, %c0_288], %413 {strides = array<i32>} : memref<144x128xf32, #tpu.memory_space<vmem>>, vector<16x128xf32>,
    %c0_289 = arith.constant 0 : index
    %c0_290 = arith.constant 0 : index
    %415 = vector.load %arg21[%c0_289, %c0_290] : memref<16x144xf32, #tpu.memory_space<vmem>>, vector<16x144xf32>
    %c0_291 = arith.constant 0 : index
    %c0_292 = arith.constant 0 : index
    %416 = vector.load %arg33[%c0_291, %c0_292] : memref<144x128xf32, #tpu.memory_space<vmem>>, vector<144x128xf32>
    %cst_293 = arith.constant dense<0.000000e+00> : vector<16x128xf32>
    %417 = tpu.matmul %415, %416, %cst_293 {dimension_numbers = #tpu.dot_dimension_numbers<[1], [0], [0], [1], [0, 0, 1, 1], [], []>} : vector<16x144xf32>, vector<144x128xf32>, vector<16x128xf32> -> vector<16x128xf32>
    %c0_294 = arith.constant 0 : index
    %c0_295 = arith.constant 0 : index
    %418 = vector.load %arg22[%c0_294, %c0_295] : memref<16x1xf32, #tpu.memory_space<vmem>>, vector<16x1xf32>
    %419 = vector.broadcast %418 : vector<16x1xf32> to vector<16x128xf32>
    %420 = arith.addf %417, %419 : vector<16x128xf32>
    %c0_296 = arith.constant 0 : index
    %c0_297 = arith.constant 0 : index
    %421 = vector.load %arg23[%c0_296, %c0_297] : memref<8x1xf32, #tpu.memory_space<vmem>>, vector<8x1xf32>
    %422 = vector.extract_strided_slice %420 {offsets = [0, 0], sizes = [8, 128], strides = [1, 1]} : vector<16x128xf32> to vector<8x128xf32>
    %423 = math.tanh %422 : vector<8x128xf32>
    %424 = vector.broadcast %421 : vector<8x1xf32> to vector<8x128xf32>
    %425 = arith.mulf %424, %423 : vector<8x128xf32>
    %426 = vector.extract_strided_slice %420 {offsets = [8, 0], sizes = [8, 128], strides = [1, 1]} : vector<16x128xf32> to vector<8x128xf32>
    %427 = vector.broadcast %297 : vector<1x128xf32> to vector<8x128xf32>
    %428 = arith.mulf %425, %427 : vector<8x128xf32>
    %429 = vector.broadcast %297 : vector<1x128xf32> to vector<8x128xf32>
    %430 = arith.mulf %426, %429 : vector<8x128xf32>
    %431 = arith.addf %292, %430 : vector<8x128xf32>
    %432 = math.exp %428 : vector<8x128xf32>
    %433 = arith.mulf %431, %432 : vector<8x128xf32>
    %cst_298 = arith.constant dense<0.000000e+00> : vector<128xf32>
    %434 = vector.multi_reduction <add>, %428, %cst_298 [0] : vector<8x128xf32> to vector<128xf32>
    %435 = vector.shape_cast %434 : vector<128xf32> to vector<1x128xf32>
    %436 = arith.addf %295, %435 : vector<1x128xf32>
    %cst_299 = arith.constant 1.000000e+00 : f32
    %437 = vector.broadcast %cst_299 : f32 to vector<1x128xf32>
    %438 = arith.subf %437, %1 : vector<1x128xf32>
    %cst_300 = arith.constant 1.000000e+00 : f32
    %439 = vector.broadcast %cst_300 : f32 to vector<1x128xf32>
    %440 = arith.subf %439, %438 : vector<1x128xf32>
    %441 = vector.broadcast %438 : vector<1x128xf32> to vector<8x128xf32>
    %442 = arith.mulf %433, %441 : vector<8x128xf32>
    %c9_i32_301 = arith.constant 9 : i32
    %443 = tpu.dynamic_rotate %442 by %c9_i32_301 dim 1 : vector<8x128xf32>, i32 -> vector<8x128xf32>
    %444 = vector.broadcast %2 : vector<1x128xf32> to vector<8x128xf32>
    %445 = arith.mulf %443, %444 : vector<8x128xf32>
    %c0_302 = arith.constant 0 : index
    %c0_303 = arith.constant 0 : index
    %446 = vector.load %arg33[%c0_302, %c0_303] : memref<144x128xf32, #tpu.memory_space<vmem>>, vector<8x128xf32>
    tpu.vector_store %arg33[%c0_302, %c0_303], %445 {strides = array<i32>} : memref<144x128xf32, #tpu.memory_space<vmem>>, vector<8x128xf32>,
    %c8_i32_304 = arith.constant 8 : i32
    %447 = tpu.dynamic_rotate %442 by %c8_i32_304 dim 1 : vector<8x128xf32>, i32 -> vector<8x128xf32>
    %448 = vector.broadcast %3 : vector<1x128xf32> to vector<8x128xf32>
    %449 = arith.mulf %447, %448 : vector<8x128xf32>
    %c8_305 = arith.constant 8 : index
    %c0_306 = arith.constant 0 : index
    %450 = vector.load %arg33[%c8_305, %c0_306] : memref<144x128xf32, #tpu.memory_space<vmem>>, vector<8x128xf32>
    tpu.vector_store %arg33[%c8_305, %c0_306], %449 {strides = array<i32>} : memref<144x128xf32, #tpu.memory_space<vmem>>, vector<8x128xf32>,
    %c7_i32_307 = arith.constant 7 : i32
    %451 = tpu.dynamic_rotate %442 by %c7_i32_307 dim 1 : vector<8x128xf32>, i32 -> vector<8x128xf32>
    %452 = vector.broadcast %4 : vector<1x128xf32> to vector<8x128xf32>
    %453 = arith.mulf %451, %452 : vector<8x128xf32>
    %c16_308 = arith.constant 16 : index
    %c0_309 = arith.constant 0 : index
    %454 = vector.load %arg33[%c16_308, %c0_309] : memref<144x128xf32, #tpu.memory_space<vmem>>, vector<8x128xf32>
    tpu.vector_store %arg33[%c16_308, %c0_309], %453 {strides = array<i32>} : memref<144x128xf32, #tpu.memory_space<vmem>>, vector<8x128xf32>,
    %c1_i32_310 = arith.constant 1 : i32
    %455 = tpu.dynamic_rotate %442 by %c1_i32_310 dim 1 : vector<8x128xf32>, i32 -> vector<8x128xf32>
    %456 = vector.broadcast %5 : vector<1x128xf32> to vector<8x128xf32>
    %457 = arith.mulf %455, %456 : vector<8x128xf32>
    %c24_311 = arith.constant 24 : index
    %c0_312 = arith.constant 0 : index
    %458 = vector.load %arg33[%c24_311, %c0_312] : memref<144x128xf32, #tpu.memory_space<vmem>>, vector<8x128xf32>
    tpu.vector_store %arg33[%c24_311, %c0_312], %457 {strides = array<i32>} : memref<144x128xf32, #tpu.memory_space<vmem>>, vector<8x128xf32>,
    %c32_313 = arith.constant 32 : index
    %c0_314 = arith.constant 0 : index
    %459 = vector.load %arg33[%c32_313, %c0_314] : memref<144x128xf32, #tpu.memory_space<vmem>>, vector<8x128xf32>
    tpu.vector_store %arg33[%c32_313, %c0_314], %442 {strides = array<i32>} : memref<144x128xf32, #tpu.memory_space<vmem>>, vector<8x128xf32>,
    %c127_i32_315 = arith.constant 127 : i32
    %460 = tpu.dynamic_rotate %442 by %c127_i32_315 dim 1 : vector<8x128xf32>, i32 -> vector<8x128xf32>
    %461 = vector.broadcast %6 : vector<1x128xf32> to vector<8x128xf32>
    %462 = arith.mulf %460, %461 : vector<8x128xf32>
    %c40_316 = arith.constant 40 : index
    %c0_317 = arith.constant 0 : index
    %463 = vector.load %arg33[%c40_316, %c0_317] : memref<144x128xf32, #tpu.memory_space<vmem>>, vector<8x128xf32>
    tpu.vector_store %arg33[%c40_316, %c0_317], %462 {strides = array<i32>} : memref<144x128xf32, #tpu.memory_space<vmem>>, vector<8x128xf32>,
    %c121_i32_318 = arith.constant 121 : i32
    %464 = tpu.dynamic_rotate %442 by %c121_i32_318 dim 1 : vector<8x128xf32>, i32 -> vector<8x128xf32>
    %465 = vector.broadcast %7 : vector<1x128xf32> to vector<8x128xf32>
    %466 = arith.mulf %464, %465 : vector<8x128xf32>
    %c48_319 = arith.constant 48 : index
    %c0_320 = arith.constant 0 : index
    %467 = vector.load %arg33[%c48_319, %c0_320] : memref<144x128xf32, #tpu.memory_space<vmem>>, vector<8x128xf32>
    tpu.vector_store %arg33[%c48_319, %c0_320], %466 {strides = array<i32>} : memref<144x128xf32, #tpu.memory_space<vmem>>, vector<8x128xf32>,
    %c120_i32_321 = arith.constant 120 : i32
    %468 = tpu.dynamic_rotate %442 by %c120_i32_321 dim 1 : vector<8x128xf32>, i32 -> vector<8x128xf32>
    %469 = vector.broadcast %8 : vector<1x128xf32> to vector<8x128xf32>
    %470 = arith.mulf %468, %469 : vector<8x128xf32>
    %c56_322 = arith.constant 56 : index
    %c0_323 = arith.constant 0 : index
    %471 = vector.load %arg33[%c56_322, %c0_323] : memref<144x128xf32, #tpu.memory_space<vmem>>, vector<8x128xf32>
    tpu.vector_store %arg33[%c56_322, %c0_323], %470 {strides = array<i32>} : memref<144x128xf32, #tpu.memory_space<vmem>>, vector<8x128xf32>,
    %c119_i32_324 = arith.constant 119 : i32
    %472 = tpu.dynamic_rotate %442 by %c119_i32_324 dim 1 : vector<8x128xf32>, i32 -> vector<8x128xf32>
    %473 = vector.broadcast %9 : vector<1x128xf32> to vector<8x128xf32>
    %474 = arith.mulf %472, %473 : vector<8x128xf32>
    %c64_325 = arith.constant 64 : index
    %c0_326 = arith.constant 0 : index
    %475 = vector.load %arg33[%c64_325, %c0_326] : memref<144x128xf32, #tpu.memory_space<vmem>>, vector<8x128xf32>
    tpu.vector_store %arg33[%c64_325, %c0_326], %474 {strides = array<i32>} : memref<144x128xf32, #tpu.memory_space<vmem>>, vector<8x128xf32>,
    %c0_327 = arith.constant 0 : index
    %c0_328 = arith.constant 0 : index
    %476 = vector.load %arg24[%c0_327, %c0_328] : memref<16x72xf32, #tpu.memory_space<vmem>>, vector<16x72xf32>
    %c0_329 = arith.constant 0 : index
    %c0_330 = arith.constant 0 : index
    %477 = vector.load %arg33[%c0_329, %c0_330] : memref<144x128xf32, #tpu.memory_space<vmem>>, vector<72x128xf32>
    %cst_331 = arith.constant dense<0.000000e+00> : vector<16x128xf32>
    %478 = tpu.matmul %476, %477, %cst_331 {dimension_numbers = #tpu.dot_dimension_numbers<[1], [0], [0], [1], [0, 0, 1, 1], [], []>} : vector<16x72xf32>, vector<72x128xf32>, vector<16x128xf32> -> vector<16x128xf32>
    %c0_332 = arith.constant 0 : index
    %c0_333 = arith.constant 0 : index
    %479 = vector.load %arg25[%c0_332, %c0_333] : memref<16x1xf32, #tpu.memory_space<vmem>>, vector<16x1xf32>
    %480 = vector.broadcast %479 : vector<16x1xf32> to vector<16x128xf32>
    %481 = arith.addf %478, %480 : vector<16x128xf32>
    %cst_334 = arith.constant 0.000000e+00 : f32
    %482 = vector.broadcast %cst_334 : f32 to vector<16x128xf32>
    %483 = arith.maximumf %481, %482 : vector<16x128xf32>
    %c9_i32_335 = arith.constant 9 : i32
    %484 = tpu.dynamic_rotate %483 by %c9_i32_335 dim 1 : vector<16x128xf32>, i32 -> vector<16x128xf32>
    %485 = vector.broadcast %2 : vector<1x128xf32> to vector<16x128xf32>
    %486 = arith.mulf %484, %485 : vector<16x128xf32>
    %c0_336 = arith.constant 0 : index
    %c0_337 = arith.constant 0 : index
    %487 = vector.load %arg33[%c0_336, %c0_337] : memref<144x128xf32, #tpu.memory_space<vmem>>, vector<16x128xf32>
    tpu.vector_store %arg33[%c0_336, %c0_337], %486 {strides = array<i32>} : memref<144x128xf32, #tpu.memory_space<vmem>>, vector<16x128xf32>,
    %c8_i32_338 = arith.constant 8 : i32
    %488 = tpu.dynamic_rotate %483 by %c8_i32_338 dim 1 : vector<16x128xf32>, i32 -> vector<16x128xf32>
    %489 = vector.broadcast %3 : vector<1x128xf32> to vector<16x128xf32>
    %490 = arith.mulf %488, %489 : vector<16x128xf32>
    %c16_339 = arith.constant 16 : index
    %c0_340 = arith.constant 0 : index
    %491 = vector.load %arg33[%c16_339, %c0_340] : memref<144x128xf32, #tpu.memory_space<vmem>>, vector<16x128xf32>
    tpu.vector_store %arg33[%c16_339, %c0_340], %490 {strides = array<i32>} : memref<144x128xf32, #tpu.memory_space<vmem>>, vector<16x128xf32>,
    %c7_i32_341 = arith.constant 7 : i32
    %492 = tpu.dynamic_rotate %483 by %c7_i32_341 dim 1 : vector<16x128xf32>, i32 -> vector<16x128xf32>
    %493 = vector.broadcast %4 : vector<1x128xf32> to vector<16x128xf32>
    %494 = arith.mulf %492, %493 : vector<16x128xf32>
    %c32_342 = arith.constant 32 : index
    %c0_343 = arith.constant 0 : index
    %495 = vector.load %arg33[%c32_342, %c0_343] : memref<144x128xf32, #tpu.memory_space<vmem>>, vector<16x128xf32>
    tpu.vector_store %arg33[%c32_342, %c0_343], %494 {strides = array<i32>} : memref<144x128xf32, #tpu.memory_space<vmem>>, vector<16x128xf32>,
    %c1_i32_344 = arith.constant 1 : i32
    %496 = tpu.dynamic_rotate %483 by %c1_i32_344 dim 1 : vector<16x128xf32>, i32 -> vector<16x128xf32>
    %497 = vector.broadcast %5 : vector<1x128xf32> to vector<16x128xf32>
    %498 = arith.mulf %496, %497 : vector<16x128xf32>
    %c48_345 = arith.constant 48 : index
    %c0_346 = arith.constant 0 : index
    %499 = vector.load %arg33[%c48_345, %c0_346] : memref<144x128xf32, #tpu.memory_space<vmem>>, vector<16x128xf32>
    tpu.vector_store %arg33[%c48_345, %c0_346], %498 {strides = array<i32>} : memref<144x128xf32, #tpu.memory_space<vmem>>, vector<16x128xf32>,
    %c64_347 = arith.constant 64 : index
    %c0_348 = arith.constant 0 : index
    %500 = vector.load %arg33[%c64_347, %c0_348] : memref<144x128xf32, #tpu.memory_space<vmem>>, vector<16x128xf32>
    tpu.vector_store %arg33[%c64_347, %c0_348], %483 {strides = array<i32>} : memref<144x128xf32, #tpu.memory_space<vmem>>, vector<16x128xf32>,
    %c127_i32_349 = arith.constant 127 : i32
    %501 = tpu.dynamic_rotate %483 by %c127_i32_349 dim 1 : vector<16x128xf32>, i32 -> vector<16x128xf32>
    %502 = vector.broadcast %6 : vector<1x128xf32> to vector<16x128xf32>
    %503 = arith.mulf %501, %502 : vector<16x128xf32>
    %c80_350 = arith.constant 80 : index
    %c0_351 = arith.constant 0 : index
    %504 = vector.load %arg33[%c80_350, %c0_351] : memref<144x128xf32, #tpu.memory_space<vmem>>, vector<16x128xf32>
    tpu.vector_store %arg33[%c80_350, %c0_351], %503 {strides = array<i32>} : memref<144x128xf32, #tpu.memory_space<vmem>>, vector<16x128xf32>,
    %c121_i32_352 = arith.constant 121 : i32
    %505 = tpu.dynamic_rotate %483 by %c121_i32_352 dim 1 : vector<16x128xf32>, i32 -> vector<16x128xf32>
    %506 = vector.broadcast %7 : vector<1x128xf32> to vector<16x128xf32>
    %507 = arith.mulf %505, %506 : vector<16x128xf32>
    %c96_353 = arith.constant 96 : index
    %c0_354 = arith.constant 0 : index
    %508 = vector.load %arg33[%c96_353, %c0_354] : memref<144x128xf32, #tpu.memory_space<vmem>>, vector<16x128xf32>
    tpu.vector_store %arg33[%c96_353, %c0_354], %507 {strides = array<i32>} : memref<144x128xf32, #tpu.memory_space<vmem>>, vector<16x128xf32>,
    %c120_i32_355 = arith.constant 120 : i32
    %509 = tpu.dynamic_rotate %483 by %c120_i32_355 dim 1 : vector<16x128xf32>, i32 -> vector<16x128xf32>
    %510 = vector.broadcast %8 : vector<1x128xf32> to vector<16x128xf32>
    %511 = arith.mulf %509, %510 : vector<16x128xf32>
    %c112_356 = arith.constant 112 : index
    %c0_357 = arith.constant 0 : index
    %512 = vector.load %arg33[%c112_356, %c0_357] : memref<144x128xf32, #tpu.memory_space<vmem>>, vector<16x128xf32>
    tpu.vector_store %arg33[%c112_356, %c0_357], %511 {strides = array<i32>} : memref<144x128xf32, #tpu.memory_space<vmem>>, vector<16x128xf32>,
    %c119_i32_358 = arith.constant 119 : i32
    %513 = tpu.dynamic_rotate %483 by %c119_i32_358 dim 1 : vector<16x128xf32>, i32 -> vector<16x128xf32>
    %514 = vector.broadcast %9 : vector<1x128xf32> to vector<16x128xf32>
    %515 = arith.mulf %513, %514 : vector<16x128xf32>
    %c128_359 = arith.constant 128 : index
    %c0_360 = arith.constant 0 : index
    %516 = vector.load %arg33[%c128_359, %c0_360] : memref<144x128xf32, #tpu.memory_space<vmem>>, vector<16x128xf32>
    tpu.vector_store %arg33[%c128_359, %c0_360], %515 {strides = array<i32>} : memref<144x128xf32, #tpu.memory_space<vmem>>, vector<16x128xf32>,
    %c0_361 = arith.constant 0 : index
    %c0_362 = arith.constant 0 : index
    %517 = vector.load %arg26[%c0_361, %c0_362] : memref<16x144xf32, #tpu.memory_space<vmem>>, vector<16x144xf32>
    %c0_363 = arith.constant 0 : index
    %c0_364 = arith.constant 0 : index
    %518 = vector.load %arg33[%c0_363, %c0_364] : memref<144x128xf32, #tpu.memory_space<vmem>>, vector<144x128xf32>
    %cst_365 = arith.constant dense<0.000000e+00> : vector<16x128xf32>
    %519 = tpu.matmul %517, %518, %cst_365 {dimension_numbers = #tpu.dot_dimension_numbers<[1], [0], [0], [1], [0, 0, 1, 1], [], []>} : vector<16x144xf32>, vector<144x128xf32>, vector<16x128xf32> -> vector<16x128xf32>
    %c0_366 = arith.constant 0 : index
    %c0_367 = arith.constant 0 : index
    %520 = vector.load %arg27[%c0_366, %c0_367] : memref<16x1xf32, #tpu.memory_space<vmem>>, vector<16x1xf32>
    %521 = vector.broadcast %520 : vector<16x1xf32> to vector<16x128xf32>
    %522 = arith.addf %519, %521 : vector<16x128xf32>
    %cst_368 = arith.constant 0.000000e+00 : f32
    %523 = vector.broadcast %cst_368 : f32 to vector<16x128xf32>
    %524 = arith.maximumf %522, %523 : vector<16x128xf32>
    %c9_i32_369 = arith.constant 9 : i32
    %525 = tpu.dynamic_rotate %524 by %c9_i32_369 dim 1 : vector<16x128xf32>, i32 -> vector<16x128xf32>
    %526 = vector.broadcast %2 : vector<1x128xf32> to vector<16x128xf32>
    %527 = arith.mulf %525, %526 : vector<16x128xf32>
    %c0_370 = arith.constant 0 : index
    %c0_371 = arith.constant 0 : index
    %528 = vector.load %arg33[%c0_370, %c0_371] : memref<144x128xf32, #tpu.memory_space<vmem>>, vector<16x128xf32>
    tpu.vector_store %arg33[%c0_370, %c0_371], %527 {strides = array<i32>} : memref<144x128xf32, #tpu.memory_space<vmem>>, vector<16x128xf32>,
    %c8_i32_372 = arith.constant 8 : i32
    %529 = tpu.dynamic_rotate %524 by %c8_i32_372 dim 1 : vector<16x128xf32>, i32 -> vector<16x128xf32>
    %530 = vector.broadcast %3 : vector<1x128xf32> to vector<16x128xf32>
    %531 = arith.mulf %529, %530 : vector<16x128xf32>
    %c16_373 = arith.constant 16 : index
    %c0_374 = arith.constant 0 : index
    %532 = vector.load %arg33[%c16_373, %c0_374] : memref<144x128xf32, #tpu.memory_space<vmem>>, vector<16x128xf32>
    tpu.vector_store %arg33[%c16_373, %c0_374], %531 {strides = array<i32>} : memref<144x128xf32, #tpu.memory_space<vmem>>, vector<16x128xf32>,
    %c7_i32_375 = arith.constant 7 : i32
    %533 = tpu.dynamic_rotate %524 by %c7_i32_375 dim 1 : vector<16x128xf32>, i32 -> vector<16x128xf32>
    %534 = vector.broadcast %4 : vector<1x128xf32> to vector<16x128xf32>
    %535 = arith.mulf %533, %534 : vector<16x128xf32>
    %c32_376 = arith.constant 32 : index
    %c0_377 = arith.constant 0 : index
    %536 = vector.load %arg33[%c32_376, %c0_377] : memref<144x128xf32, #tpu.memory_space<vmem>>, vector<16x128xf32>
    tpu.vector_store %arg33[%c32_376, %c0_377], %535 {strides = array<i32>} : memref<144x128xf32, #tpu.memory_space<vmem>>, vector<16x128xf32>,
    %c1_i32_378 = arith.constant 1 : i32
    %537 = tpu.dynamic_rotate %524 by %c1_i32_378 dim 1 : vector<16x128xf32>, i32 -> vector<16x128xf32>
    %538 = vector.broadcast %5 : vector<1x128xf32> to vector<16x128xf32>
    %539 = arith.mulf %537, %538 : vector<16x128xf32>
    %c48_379 = arith.constant 48 : index
    %c0_380 = arith.constant 0 : index
    %540 = vector.load %arg33[%c48_379, %c0_380] : memref<144x128xf32, #tpu.memory_space<vmem>>, vector<16x128xf32>
    tpu.vector_store %arg33[%c48_379, %c0_380], %539 {strides = array<i32>} : memref<144x128xf32, #tpu.memory_space<vmem>>, vector<16x128xf32>,
    %c64_381 = arith.constant 64 : index
    %c0_382 = arith.constant 0 : index
    %541 = vector.load %arg33[%c64_381, %c0_382] : memref<144x128xf32, #tpu.memory_space<vmem>>, vector<16x128xf32>
    tpu.vector_store %arg33[%c64_381, %c0_382], %524 {strides = array<i32>} : memref<144x128xf32, #tpu.memory_space<vmem>>, vector<16x128xf32>,
    %c127_i32_383 = arith.constant 127 : i32
    %542 = tpu.dynamic_rotate %524 by %c127_i32_383 dim 1 : vector<16x128xf32>, i32 -> vector<16x128xf32>
    %543 = vector.broadcast %6 : vector<1x128xf32> to vector<16x128xf32>
    %544 = arith.mulf %542, %543 : vector<16x128xf32>
    %c80_384 = arith.constant 80 : index
    %c0_385 = arith.constant 0 : index
    %545 = vector.load %arg33[%c80_384, %c0_385] : memref<144x128xf32, #tpu.memory_space<vmem>>, vector<16x128xf32>
    tpu.vector_store %arg33[%c80_384, %c0_385], %544 {strides = array<i32>} : memref<144x128xf32, #tpu.memory_space<vmem>>, vector<16x128xf32>,
    %c121_i32_386 = arith.constant 121 : i32
    %546 = tpu.dynamic_rotate %524 by %c121_i32_386 dim 1 : vector<16x128xf32>, i32 -> vector<16x128xf32>
    %547 = vector.broadcast %7 : vector<1x128xf32> to vector<16x128xf32>
    %548 = arith.mulf %546, %547 : vector<16x128xf32>
    %c96_387 = arith.constant 96 : index
    %c0_388 = arith.constant 0 : index
    %549 = vector.load %arg33[%c96_387, %c0_388] : memref<144x128xf32, #tpu.memory_space<vmem>>, vector<16x128xf32>
    tpu.vector_store %arg33[%c96_387, %c0_388], %548 {strides = array<i32>} : memref<144x128xf32, #tpu.memory_space<vmem>>, vector<16x128xf32>,
    %c120_i32_389 = arith.constant 120 : i32
    %550 = tpu.dynamic_rotate %524 by %c120_i32_389 dim 1 : vector<16x128xf32>, i32 -> vector<16x128xf32>
    %551 = vector.broadcast %8 : vector<1x128xf32> to vector<16x128xf32>
    %552 = arith.mulf %550, %551 : vector<16x128xf32>
    %c112_390 = arith.constant 112 : index
    %c0_391 = arith.constant 0 : index
    %553 = vector.load %arg33[%c112_390, %c0_391] : memref<144x128xf32, #tpu.memory_space<vmem>>, vector<16x128xf32>
    tpu.vector_store %arg33[%c112_390, %c0_391], %552 {strides = array<i32>} : memref<144x128xf32, #tpu.memory_space<vmem>>, vector<16x128xf32>,
    %c119_i32_392 = arith.constant 119 : i32
    %554 = tpu.dynamic_rotate %524 by %c119_i32_392 dim 1 : vector<16x128xf32>, i32 -> vector<16x128xf32>
    %555 = vector.broadcast %9 : vector<1x128xf32> to vector<16x128xf32>
    %556 = arith.mulf %554, %555 : vector<16x128xf32>
    %c128_393 = arith.constant 128 : index
    %c0_394 = arith.constant 0 : index
    %557 = vector.load %arg33[%c128_393, %c0_394] : memref<144x128xf32, #tpu.memory_space<vmem>>, vector<16x128xf32>
    tpu.vector_store %arg33[%c128_393, %c0_394], %556 {strides = array<i32>} : memref<144x128xf32, #tpu.memory_space<vmem>>, vector<16x128xf32>,
    %c0_395 = arith.constant 0 : index
    %c0_396 = arith.constant 0 : index
    %558 = vector.load %arg28[%c0_395, %c0_396] : memref<16x144xf32, #tpu.memory_space<vmem>>, vector<16x144xf32>
    %c0_397 = arith.constant 0 : index
    %c0_398 = arith.constant 0 : index
    %559 = vector.load %arg33[%c0_397, %c0_398] : memref<144x128xf32, #tpu.memory_space<vmem>>, vector<144x128xf32>
    %cst_399 = arith.constant dense<0.000000e+00> : vector<16x128xf32>
    %560 = tpu.matmul %558, %559, %cst_399 {dimension_numbers = #tpu.dot_dimension_numbers<[1], [0], [0], [1], [0, 0, 1, 1], [], []>} : vector<16x144xf32>, vector<144x128xf32>, vector<16x128xf32> -> vector<16x128xf32>
    %c0_400 = arith.constant 0 : index
    %c0_401 = arith.constant 0 : index
    %561 = vector.load %arg29[%c0_400, %c0_401] : memref<16x1xf32, #tpu.memory_space<vmem>>, vector<16x1xf32>
    %562 = vector.broadcast %561 : vector<16x1xf32> to vector<16x128xf32>
    %563 = arith.addf %560, %562 : vector<16x128xf32>
    %c0_402 = arith.constant 0 : index
    %c0_403 = arith.constant 0 : index
    %564 = vector.load %arg30[%c0_402, %c0_403] : memref<8x1xf32, #tpu.memory_space<vmem>>, vector<8x1xf32>
    %565 = vector.extract_strided_slice %563 {offsets = [0, 0], sizes = [8, 128], strides = [1, 1]} : vector<16x128xf32> to vector<8x128xf32>
    %566 = math.tanh %565 : vector<8x128xf32>
    %567 = vector.broadcast %564 : vector<8x1xf32> to vector<8x128xf32>
    %568 = arith.mulf %567, %566 : vector<8x128xf32>
    %569 = vector.extract_strided_slice %563 {offsets = [8, 0], sizes = [8, 128], strides = [1, 1]} : vector<16x128xf32> to vector<8x128xf32>
    %570 = vector.broadcast %440 : vector<1x128xf32> to vector<8x128xf32>
    %571 = arith.mulf %568, %570 : vector<8x128xf32>
    %572 = vector.broadcast %440 : vector<1x128xf32> to vector<8x128xf32>
    %573 = arith.mulf %569, %572 : vector<8x128xf32>
    %574 = arith.addf %433, %573 : vector<8x128xf32>
    %575 = math.exp %571 : vector<8x128xf32>
    %576 = arith.mulf %574, %575 : vector<8x128xf32>
    %cst_404 = arith.constant dense<0.000000e+00> : vector<128xf32>
    %577 = vector.multi_reduction <add>, %571, %cst_404 [0] : vector<8x128xf32> to vector<128xf32>
    %578 = vector.shape_cast %577 : vector<128xf32> to vector<1x128xf32>
    %579 = arith.addf %436, %578 : vector<1x128xf32>
    %c0_405 = arith.constant 0 : index
    %c0_406 = arith.constant 0 : index
    %580 = vector.load %arg31[%c0_405, %c0_406] : memref<8x128xf32, #tpu.memory_space<vmem>>, vector<8x128xf32>
    tpu.vector_store %arg31[%c0_405, %c0_406], %576 {strides = array<i32>} : memref<8x128xf32, #tpu.memory_space<vmem>>, vector<8x128xf32>,
    %c0_407 = arith.constant 0 : index
    %c0_408 = arith.constant 0 : index
    %581 = vector.load %arg32[%c0_407, %c0_408] : memref<1x128xf32, #tpu.memory_space<vmem>>, vector<1x128xf32>
    tpu.vector_store %arg32[%c0_407, %c0_408], %579 {strides = array<i32>} : memref<1x128xf32, #tpu.memory_space<vmem>>, vector<1x128xf32>,
    return
  }
  func.func @transform_0(%arg0: i32) -> (i32, i32) {
    %c0_i32 = arith.constant 0 : i32
    %c0_i32_0 = arith.constant 0 : i32
    %c0_i32_1 = arith.constant 0 : i32
    return %c0_i32, %c0_i32_0 : i32, i32
  }
  func.func @transform_1(%arg0: i32) -> (i32, i32) {
    %c0_i32 = arith.constant 0 : i32
    %c0_i32_0 = arith.constant 0 : i32
    return %c0_i32, %arg0 : i32, i32
  }
  func.func @transform_2(%arg0: i32) -> (i32, i32) {
    %c0_i32 = arith.constant 0 : i32
    %c0_i32_0 = arith.constant 0 : i32
    %c0_i32_1 = arith.constant 0 : i32
    return %c0_i32, %c0_i32_0 : i32, i32
  }
  func.func @transform_3(%arg0: i32) -> (i32, i32) {
    %c0_i32 = arith.constant 0 : i32
    %c0_i32_0 = arith.constant 0 : i32
    %c0_i32_1 = arith.constant 0 : i32
    return %c0_i32, %c0_i32_0 : i32, i32
  }
  func.func @transform_4(%arg0: i32) -> (i32, i32) {
    %c0_i32 = arith.constant 0 : i32
    %c0_i32_0 = arith.constant 0 : i32
    %c0_i32_1 = arith.constant 0 : i32
    return %c0_i32, %c0_i32_0 : i32, i32
  }
  func.func @transform_5(%arg0: i32) -> (i32, i32) {
    %c0_i32 = arith.constant 0 : i32
    %c0_i32_0 = arith.constant 0 : i32
    %c0_i32_1 = arith.constant 0 : i32
    return %c0_i32, %c0_i32_0 : i32, i32
  }
  func.func @transform_6(%arg0: i32) -> (i32, i32) {
    %c0_i32 = arith.constant 0 : i32
    %c0_i32_0 = arith.constant 0 : i32
    %c0_i32_1 = arith.constant 0 : i32
    return %c0_i32, %c0_i32_0 : i32, i32
  }
  func.func @transform_7(%arg0: i32) -> (i32, i32) {
    %c0_i32 = arith.constant 0 : i32
    %c0_i32_0 = arith.constant 0 : i32
    %c0_i32_1 = arith.constant 0 : i32
    return %c0_i32, %c0_i32_0 : i32, i32
  }
  func.func @transform_8(%arg0: i32) -> (i32, i32) {
    %c0_i32 = arith.constant 0 : i32
    %c0_i32_0 = arith.constant 0 : i32
    %c0_i32_1 = arith.constant 0 : i32
    return %c0_i32, %c0_i32_0 : i32, i32
  }
  func.func @transform_9(%arg0: i32) -> (i32, i32) {
    %c0_i32 = arith.constant 0 : i32
    %c0_i32_0 = arith.constant 0 : i32
    %c0_i32_1 = arith.constant 0 : i32
    return %c0_i32, %c0_i32_0 : i32, i32
  }
  func.func @transform_10(%arg0: i32) -> (i32, i32) {
    %c0_i32 = arith.constant 0 : i32
    %c0_i32_0 = arith.constant 0 : i32
    %c0_i32_1 = arith.constant 0 : i32
    return %c0_i32, %c0_i32_0 : i32, i32
  }
  func.func @transform_11(%arg0: i32) -> (i32, i32) {
    %c0_i32 = arith.constant 0 : i32
    %c0_i32_0 = arith.constant 0 : i32
    %c0_i32_1 = arith.constant 0 : i32
    return %c0_i32, %c0_i32_0 : i32, i32
  }
  func.func @transform_12(%arg0: i32) -> (i32, i32) {
    %c0_i32 = arith.constant 0 : i32
    %c0_i32_0 = arith.constant 0 : i32
    %c0_i32_1 = arith.constant 0 : i32
    return %c0_i32, %c0_i32_0 : i32, i32
  }
  func.func @transform_13(%arg0: i32) -> (i32, i32) {
    %c0_i32 = arith.constant 0 : i32
    %c0_i32_0 = arith.constant 0 : i32
    %c0_i32_1 = arith.constant 0 : i32
    return %c0_i32, %c0_i32_0 : i32, i32
  }
  func.func @transform_14(%arg0: i32) -> (i32, i32) {
    %c0_i32 = arith.constant 0 : i32
    %c0_i32_0 = arith.constant 0 : i32
    %c0_i32_1 = arith.constant 0 : i32
    return %c0_i32, %c0_i32_0 : i32, i32
  }
  func.func @transform_15(%arg0: i32) -> (i32, i32) {
    %c0_i32 = arith.constant 0 : i32
    %c0_i32_0 = arith.constant 0 : i32
    %c0_i32_1 = arith.constant 0 : i32
    return %c0_i32, %c0_i32_0 : i32, i32
  }
  func.func @transform_16(%arg0: i32) -> (i32, i32) {
    %c0_i32 = arith.constant 0 : i32
    %c0_i32_0 = arith.constant 0 : i32
    %c0_i32_1 = arith.constant 0 : i32
    return %c0_i32, %c0_i32_0 : i32, i32
  }
  func.func @transform_17(%arg0: i32) -> (i32, i32) {
    %c0_i32 = arith.constant 0 : i32
    %c0_i32_0 = arith.constant 0 : i32
    %c0_i32_1 = arith.constant 0 : i32
    return %c0_i32, %c0_i32_0 : i32, i32
  }
  func.func @transform_18(%arg0: i32) -> (i32, i32) {
    %c0_i32 = arith.constant 0 : i32
    %c0_i32_0 = arith.constant 0 : i32
    %c0_i32_1 = arith.constant 0 : i32
    return %c0_i32, %c0_i32_0 : i32, i32
  }
  func.func @transform_19(%arg0: i32) -> (i32, i32) {
    %c0_i32 = arith.constant 0 : i32
    %c0_i32_0 = arith.constant 0 : i32
    %c0_i32_1 = arith.constant 0 : i32
    return %c0_i32, %c0_i32_0 : i32, i32
  }
  func.func @transform_20(%arg0: i32) -> (i32, i32) {
    %c0_i32 = arith.constant 0 : i32
    %c0_i32_0 = arith.constant 0 : i32
    %c0_i32_1 = arith.constant 0 : i32
    return %c0_i32, %c0_i32_0 : i32, i32
  }
  func.func @transform_21(%arg0: i32) -> (i32, i32) {
    %c0_i32 = arith.constant 0 : i32
    %c0_i32_0 = arith.constant 0 : i32
    %c0_i32_1 = arith.constant 0 : i32
    return %c0_i32, %c0_i32_0 : i32, i32
  }
  func.func @transform_22(%arg0: i32) -> (i32, i32) {
    %c0_i32 = arith.constant 0 : i32
    %c0_i32_0 = arith.constant 0 : i32
    %c0_i32_1 = arith.constant 0 : i32
    return %c0_i32, %c0_i32_0 : i32, i32
  }
  func.func @transform_23(%arg0: i32) -> (i32, i32) {
    %c0_i32 = arith.constant 0 : i32
    %c0_i32_0 = arith.constant 0 : i32
    %c0_i32_1 = arith.constant 0 : i32
    return %c0_i32, %c0_i32_0 : i32, i32
  }
  func.func @transform_24(%arg0: i32) -> (i32, i32) {
    %c0_i32 = arith.constant 0 : i32
    %c0_i32_0 = arith.constant 0 : i32
    %c0_i32_1 = arith.constant 0 : i32
    return %c0_i32, %c0_i32_0 : i32, i32
  }
  func.func @transform_25(%arg0: i32) -> (i32, i32) {
    %c0_i32 = arith.constant 0 : i32
    %c0_i32_0 = arith.constant 0 : i32
    %c0_i32_1 = arith.constant 0 : i32
    return %c0_i32, %c0_i32_0 : i32, i32
  }
  func.func @transform_26(%arg0: i32) -> (i32, i32) {
    %c0_i32 = arith.constant 0 : i32
    %c0_i32_0 = arith.constant 0 : i32
    %c0_i32_1 = arith.constant 0 : i32
    return %c0_i32, %c0_i32_0 : i32, i32
  }
  func.func @transform_27(%arg0: i32) -> (i32, i32) {
    %c0_i32 = arith.constant 0 : i32
    %c0_i32_0 = arith.constant 0 : i32
    %c0_i32_1 = arith.constant 0 : i32
    return %c0_i32, %c0_i32_0 : i32, i32
  }
  func.func @transform_28(%arg0: i32) -> (i32, i32) {
    %c0_i32 = arith.constant 0 : i32
    %c0_i32_0 = arith.constant 0 : i32
    %c0_i32_1 = arith.constant 0 : i32
    return %c0_i32, %c0_i32_0 : i32, i32
  }
  func.func @transform_29(%arg0: i32) -> (i32, i32) {
    %c0_i32 = arith.constant 0 : i32
    %c0_i32_0 = arith.constant 0 : i32
    %c0_i32_1 = arith.constant 0 : i32
    return %c0_i32, %c0_i32_0 : i32, i32
  }
  func.func @transform_30(%arg0: i32) -> (i32, i32) {
    %c0_i32 = arith.constant 0 : i32
    %c0_i32_0 = arith.constant 0 : i32
    return %c0_i32, %arg0 : i32, i32
  }
  func.func @transform_31(%arg0: i32) -> (i32, i32) {
    %c0_i32 = arith.constant 0 : i32
    %c0_i32_0 = arith.constant 0 : i32
    return %c0_i32, %arg0 : i32, i32
  }
}

</mosaic_0001>

<bundles_post_ra>
// kernel: tile.19
= control target key start
LH: loop header
LB: loop body
LE: loop exit
PB: predicated region body
PF: predicated region fallthrough
CT: control target
= control target key end

     0   :  { %vm52_vm0 = vcmask 1047556   ;;  %vm54_vm1 = vcmask 523264   ;;  %s57_s26 = smov 3  ;;  %s100_s27 = smov 64   ;;  %vm70_vm2 = vcmask 1048064   ;;  %s153_s0 = inlined_call_operand.vmem [shape: f32[10,2,64], index: 0, kind: input, shape index: {}]   ;;  %s154_s1 = inlined_call_operand.vmem [shape: f32[10,128], index: 1, kind: output, shape index: {}]  }
   0x1   :  { %v90_v0 = vld [vmem:[%s153_s0 + $0xe] sm:$0x3]  ;;  %v91_v1 = vld [vmem:[%s153_s0 + $0xc] sm:$0x3]  ;;  %v92_v2 = vld [vmem:[%s153_s0 + $0xa] sm:$0x3] }
   0x2   :  { %18 = vst [vmem:[#allocation0 + $0x38] sm:$0x3] %v90_v0  ;;  %23 = vst [vmem:[#allocation0 + $0x30] sm:$0x3] %v91_v1  ;;  %v93_v3 = vld [vmem:[%s153_s0 + $0x8] sm:$0x3] }
   0x3   :  { %28 = vst [vmem:[#allocation0 + $0x28] sm:$0x3] %v92_v2  ;;  %v94_v4 = vld [vmem:[%s153_s0 + $0x6] sm:$0x3]  ;;  %v95_v5 = vld [vmem:[%s153_s0 + $0x4] sm:$0x3] }
   0x4   :  { %33 = vst [vmem:[#allocation0 + $0x20] sm:$0x3] %v93_v3  ;;  %38 = vst [vmem:[#allocation0 + $0x18] sm:$0x3] %v94_v4  ;;  %v96_v6 = vld [vmem:[%s153_s0 + $0x2] sm:$0x3] }
   0x5   :  { %43 = vst [vmem:[#allocation0 + $0x10] sm:$0x3] %v95_v5  ;;  %v48_v7 = vld [vmem:[%s153_s0] sm:$0x3]  ;;  %47 = vst [vmem:[#allocation0 + $0x8] sm:$0x3] %v96_v6 }
   0x6   :  { %49 = vst [vmem:[#allocation0] sm:$0x3] %v48_v7  ;;  %v88_v8 = vld [vmem:[%s153_s0 + $0x12] sm:$0x3]  ;;  %v89_v9 = vld [vmem:[%s153_s0 + $0x10] sm:$0x3] }
   0x7   :  { %8 = vst [vmem:[#allocation0 + $0x48] sm:$0x3] %v88_v8  ;;  %13 = vst [vmem:[#allocation0 + $0x40] sm:$0x3] %v89_v9  ;;  %s73_s0 = smov 3 }
   0xb   :  { %v65_v10 = vld [vmem:[#allocation0 + $0x1] ss:$8 sm:$0xf0]   ;;  %v51_v11 = vld [vmem:[#allocation0] ss:$8 sm:$0xf0]  }
   0xd   :  { %v50_v12 = vld [vmem:[#allocation0] ss:$8 sm:$0xf]   ;;  %v63_v13 = vld [vmem:[#allocation0 + $0x1] ss:$8 sm:$0xf]  }
   0xe   :  { %v67_v14 = vsel %vm52_vm0, %v65_v10, %v63_v13  ;;  %v53_v15 = vsel %vm52_vm0, %v51_v11, %v50_v12  ;;  %v58_v16 = vld [vmem:[#allocation0 + $0x40] ss:$8 sm:%s57_s26]   ;;  %v74_v17 = vld [vmem:[#allocation0 + $0x41] ss:$8 sm:%s73_s0]  }
   0xf   :  { %68 = vrot.lane.b32.xlu0 %v67_v14, %s100_s27  ;;  %55 = vst.msk [vmem:[%s154_s1] sm:$0xff] %vm54_vm1, %v53_v15   ;;  %97 = vst.msk [vmem:[%s154_s1 + $0x8] sm:$0x3] %vm54_vm1, %v58_v16  }
  0x13   :  { %75 = vrot.lane.b32.xlu0 %v74_v17, %s100_s27 }
  0x81   :  { %v69_v18 = vpop.permute.xlu0 %68  }
  0x82   :  { %71 = vst.msk [vmem:[%s154_s1] sm:$0xff] %vm70_vm2, %v69_v18  }
  0x85   :  { %v76_v19 = vpop.permute.xlu0 %75  }
  0x86   :  { %98 = vst.msk [vmem:[%s154_s1 + $0x8] sm:$0x3] %vm70_vm2, %v76_v19  }

// kernel: flow_forward.4
= control target key start
LH: loop header
LB: loop body
LE: loop exit
PB: predicated region body
PF: predicated region fallthrough
CT: control target
= control target key end

     0   :  { %s2787_s28 = smov 7   ;;  %s2791_s29 = smov 8   ;;  %vm168_vm0 = vcmask 588800   ;;  %v2048_v2 = vmov 0   ;;  %v82_v5 = vlaneseq  ;;  %v2049_v45 = vmov 0.0|0.0   ;;  %s2744_s1 = inlined_call_operand.vmem [shape: f32[16,128], index: 1, kind: input, shape index: {}]   ;;  %s2745_s2 = inlined_call_operand.vmem [shape: f32[16,72], index: 2, kind: input, shape index: {}]   ;;  %s2746_s3 = inlined_call_operand.vmem [shape: f32[16,1], index: 3, kind: input, shape index: {}]   ;;  %s2747_s0 = inlined_call_operand.vmem [shape: f32[10,128], index: 0, kind: input, shape index: {}]   ;;  %s2748_s4 = inlined_call_operand.vmem [shape: f32[16,144], index: 4, kind: input, shape index: {}]   ;;  %s2749_s5 = inlined_call_operand.vmem [shape: f32[16,1], index: 5, kind: input, shape index: {}]   ;;  %s2750_s7 = inlined_call_operand.vmem [shape: f32[16,1], index: 7, kind: input, shape index: {}]   ;;  %s2751_s6 = inlined_call_operand.vmem [shape: f32[16,144], index: 6, kind: input, shape index: {}]   ;;  %s2752_s8 = inlined_call_operand.vmem [shape: f32[8,1], index: 8, kind: input, shape index: {}]   ;;  %s2753_s9 = inlined_call_operand.vmem [shape: f32[16,72], index: 9, kind: input, shape index: {}]   ;;  %s2754_s10 = inlined_call_operand.vmem [shape: f32[16,1], index: 10, kind: input, shape index: {}]   ;;  %s2755_s11 = inlined_call_operand.vmem [shape: f32[16,144], index: 11, kind: input, shape index: {}]   ;;  %s2756_s12 = inlined_call_operand.vmem [shape: f32[16,1], index: 12, kind: input, shape index: {}]   ;;  %s2757_s14 = inlined_call_operand.vmem [shape: f32[16,1], index: 14, kind: input, shape index: {}]   ;;  %s2758_s13 = inlined_call_operand.vmem [shape: f32[16,144], index: 13, kind: input, shape index: {}]   ;;  %s2759_s15 = inlined_call_operand.vmem [shape: f32[8,1], index: 15, kind: input, shape index: {}]   ;;  %s2760_s23 = inlined_call_operand.vmem [shape: f32[16,128], index: 23, kind: output, shape index: {0}]   ;;  %s2761_s16 = inlined_call_operand.vmem [shape: f32[16,72], index: 16, kind: input, shape index: {}]   ;;  %s2762_s17 = inlined_call_operand.vmem [shape: f32[16,1], index: 17, kind: input, shape index: {}]   ;;  %s2763_s18 = inlined_call_operand.vmem [shape: f32[16,144], index: 18, kind: input, shape index: {}]   ;;  %s2764_s19 = inlined_call_operand.vmem [shape: f32[16,1], index: 19, kind: input, shape index: {}]   ;;  %s2765_s21 = inlined_call_operand.vmem [shape: f32[16,1], index: 21, kind: input, shape index: {}]   ;;  %s2766_s20 = inlined_call_operand.vmem [shape: f32[16,144], index: 20, kind: input, shape index: {}]   ;;  %s2767_s22 = inlined_call_operand.vmem [shape: f32[8,1], index: 22, kind: input, shape index: {}]   ;;  %s2768_s24 = inlined_call_operand.vmem [shape: f32[1,128], index: 24, kind: output, shape index: {1}]  }
   0x1   :  { %2793 = sst [smem:[#allocation3_spill]] %s2744_s1  ;;  %2026 = vset.pattern.permute.xlu1 %v2048_v2  ;;  %2025 = vset.pattern.permute.xlu0 %v2048_v2  ;;  %vm352_vm1 = vcmask 130048  }
   0x2   :  { %2794 = sst [smem:[#allocation4_spill]] %s2745_s2  ;;  %s2804_s27 = sld [smem:[#allocation3_spill]]  ;;  %v83_v6 = vshrl.u32 %v82_v5, 7  ;;  %1821 = vmatprep.subr.bf16.mxu1 %v2049_v45 }
   0x3   :  { %2795 = sst [smem:[#allocation5_spill]] %s2746_s3  ;;  %s2785_s3 = smov 1  }
   0x4   :  { %2796 = sst [smem:[#allocation6_spill]] %s2747_s0  ;;  %s2783_s0 = smov 127   ;;  %v100_v7 = vsub.s32 3, %v83_v6  ;;  %v84_v8 = vsub.s32 1, %v83_v6  ;;  %v108_v9 = vsub.s32 4, %v83_v6  ;;  %v92_v10 = vsub.s32 2, %v83_v6 }
   0x5   :  { %2797 = sst [smem:[#allocation7_spill]] %s2748_s4  ;;  %s2805_s25 = sld [smem:[#allocation4_spill]]  ;;  %v117_v14 = vsub.s32 6, %v83_v6  ;;  %v125_v19 = vsub.s32 7, %v83_v6  ;;  %v133_v23 = vsub.s32 0, %v83_v6 }
   0x6   :  { %2798 = sst [smem:[#allocation8_spill]] %s2749_s5  ;;  %s2777_s4 = smov 119  }
   0x7   :  { %2799 = sst [smem:[#allocation9_spill]] %s2750_s7  ;;  %s2789_s7 = smov 9  }
   0x8   :  { %2800 = sst [smem:[#allocation10_spill]] %s2751_s6  ;;  %v2178_v0 = vld [vmem:[%s2804_s27 + $0x8] sm:$0xff]  ;;  %s2781_s6 = smov 121  }
   0x9   :  { %2801 = sst [smem:[#allocation11_spill]] %s2752_s8  ;;  %96 = vrot.lane.b32.xlu1 %v2178_v0, %s2787_s28  ;;  %80 = vrot.lane.b32.xlu0 %v2178_v0, %s2789_s7  ;;  %s2779_s8 = smov 120  }
   0xa   :  { %2802 = sst [smem:[#allocation12_spill]] %s2767_s22  ;;  %s2806_s26 = sld [smem:[#allocation5_spill]] }
   0xb   :  { %2803 = sst [smem:[#allocation13_spill]] %s2768_s24  ;;  %v145_v1 = vld [vmem:[%s2805_s25] sm:$0xff]  ;;  %v146_v44 = vld [vmem:[%s2805_s25 + $0x8] sm:$0xff]  ;;  %s2808_s25 = smov 121  }
   0xc   :  { %1760 = vmatprep.mubr.msk.f32.mxu0 %vm168_vm0, %v145_v1  ;;  %s2809_s5 = smov 120   ;;  %s2810_s1 = sld [smem:[#allocation7_spill]] }
   0xd   :  { %104 = vrot.lane.b32.xlu1 %v2178_v0, %s2785_s3  ;;  %88 = vrot.lane.b32.xlu0 %v2178_v0, %s2791_s29  ;;  %s2812_s2 = sld [smem:[#allocation8_spill]] }
  0x10   :  { %v157_v3 = vld [vmem:[%s2806_s26 + $0x8] sm:$0xff]  ;;  %v156_v4 = vld [vmem:[%s2806_s26] sm:$0xff]  ;;  %s2815_s26 = sld [smem:[#allocation10_spill]] }
  0x11   :  { %113 = vrot.lane.b32.xlu0 %v2178_v0, %s2783_s0  ;;  %121 = vrot.lane.b32.xlu1 %v2178_v0, %s2781_s6  ;;  %s2807_s6 = sld [smem:[#allocation6_spill]] }
  0x12   :  { %v319_v55 = vld [vmem:[%s2810_s1 + $0x8] sm:$0xff] }
  0x13   :  { %1693 = vmatprep.mubr.msk.f32.mxu1 %vm352_vm1, %v319_v55  ;;  %v341_v56 = vld [vmem:[%s2812_s2 + $0x8] sm:$0xff]  ;;  %v340_v57 = vld [vmem:[%s2812_s2] sm:$0xff]  ;;  %s2814_s2 = smov 127  }
  0x15   :  { %129 = vrot.lane.b32.xlu0 %v2178_v0, %s2779_s8  ;;  %137 = vrot.lane.b32.xlu1 %v2178_v0, %s2777_s4  ;;  %s2811_s8 = smov 119   ;;  %s2819_s4 = smov 9  }
  0x17   :  { %v76_v11 = vld [vmem:[%s2807_s6] sm:$0xff]  ;;  %v77_v28 = vld [vmem:[%s2807_s6 + $0x8] sm:$0x3]  ;;  %s2816_s6 = sld [smem:[#allocation9_spill]] }
  0x18   :  { %v2209_v15 = vrot.slane %v76_v11, %v100_v7  ;;  %v2211_v16 = vrot.slane %v76_v11, %v84_v8  ;;  %v2213_v17 = vrot.slane %v76_v11, %v108_v9  ;;  %v2215_v18 = vrot.slane %v76_v11, %v92_v10 }
  0x19   :  { %165 = vperm.xlu1 %2026, %v157_v3   ;;  %160 = vperm.xlu0 %2025, %v156_v4   ;;  %v2217_v22 = vrot.slane %v76_v11, %v117_v14  ;;  %v2226_v30 = vrot.slane %v76_v11, %v125_v19  ;;  %v2229_v35 = vrot.slane %v77_v28, %v133_v23 }
  0x1a   :  { %v2234_v41 = vrot.slane %v77_v28, %v84_v8 }
  0x7b   :  { %v97_v12 = vpop.permute.xlu1 %96  ;;  %v81_v13 = vpop.permute.xlu0 %80 }
  0x7c   :  { %v102_v24 = vmul.f32 %v2209_v15, %v97_v12  ;;  %v86_v25 = vmul.f32 %v2211_v16, %v81_v13 }
  0x7f   :  { %v105_v20 = vpop.permute.xlu1 %104  ;;  %v89_v21 = vpop.permute.xlu0 %88 }
  0x80   :  { %v110_v26 = vmul.f32 %v2213_v17, %v105_v20  ;;  %v94_v27 = vmul.f32 %v2215_v18, %v89_v21 }
  0x82   :  { %v1805_v29 = vpack.c.bf16 %v94_v27, %v86_v25  ;;  %v1809_v33 = vpack.c.bf16 %v110_v26, %v102_v24 }
  0x83   :  { %v114_v31 = vpop.permute.xlu0 %113  ;;  %v122_v32 = vpop.permute.xlu1 %121 }
  0x84   :  { %1806 = vmatprep.subr.bf16.mxu0 %v1805_v29  ;;  %v119_v34 = vmul.f32 %v2217_v22, %v114_v31  ;;  %v127_v37 = vmul.f32 %v2226_v30, %v122_v32 }
  0x85   :  { %1808 = vmatpush3.bf16.msra.mxu0 %v1805_v29 }
  0x86   :  { %1810 = vmatprep.subr.bf16.mxu0 %v1809_v33  ;;  %v1813_v36 = vpack.c.bf16 %v119_v34, %v2178_v0 }
  0x87   :  { %v130_v38 = vpop.permute.xlu0 %129  ;;  %v138_v42 = vpop.permute.xlu1 %137 }
  0x88   :  { %v135_v39 = vmul.f32 %v2229_v35, %v130_v38  ;;  %v143_v43 = vmul.f32 %v2234_v41, %v138_v42  ;;  %v318_v42 = vld [vmem:[%s2810_s1] sm:$0xff] }
  0x89   :  { %1812 = vmatpush3.bf16.msra.mxu0 %v1809_v33 }
  0x8a   :  { %v1817_v40 = vpack.c.bf16 %v135_v39, %v127_v37  ;;  %1814 = vmatprep.subr.bf16.mxu0 %v1813_v36 }
  0x8d   :  { %1816 = vmatpush3.bf16.msra.mxu0 %v1813_v36 }
  0x8e   :  { %1818 = vmatprep.subr.bf16.mxu0 %v1817_v40 }
  0x91   :  { %1820 = vmatpush3.bf16.msra.mxu0 %v1817_v40 }
  0x92   :  { %1758 = vmatprep.subr.mxu0 %v143_v43 }
  0x95   :  { %1759 = vmatpush3.msra.mxu0 %v143_v43  ;;  %v321_v43 = vld [vmem:[%s2810_s1 + $0x18] sm:$0xff] }
  0x96   :  { %1761 = vmatmul.mubr.msk.f32.vlgmr.msra.gmra.mrb[0].mxu0 %vm168_vm0, %v146_v44  ;;  %1848 = vmatprep.subr.bf16.mxu0 %v2049_v45  ;;  %v320_v44 = vld [vmem:[%s2810_s1 + $0x10] sm:$0xff]  ;;  %s2813_s1 = smov 1  }
  0x98   :  { %v166_v46 = vpop.permute.xlu1 %165  ;;  %v161_v47 = vpop.permute.xlu0 %160 }
 0x169   :  { %v1762_v48 = vpop.f32.mrb[0].mxu0 }
 0x16a   :  { %v247_v49 = vadd.f32 %v1762_v48, %v166_v46  ;;  %v241_v50 = vpop.f32.mrb[1].mxu0 }
 0x16b   :  { %v242_v51 = vadd.f32 %v241_v50, %v161_v47 }
 0x16c   :  { %v251_v52 = vmax.f32 %v247_v49, 0.0 }
 0x16d   :  { %v250_v53 = vmax.f32 %v242_v51, 0.0 }
 0x16e   :  { %254 = vrot.lane.b32.xlu0 %v251_v52, %s2789_s7 }
 0x16f   :  { %252 = vrot.lane.b32.xlu1 %v250_v53, %s2789_s7  ;;  %v1834_v54 = vpack.c.bf16 %v251_v52, %v250_v53 }
 0x172   :  { %262 = vrot.lane.b32.xlu0 %v251_v52, %s2791_s29 }
 0x173   :  { %260 = vrot.lane.b32.xlu1 %v250_v53, %s2791_s29 }
 0x176   :  { %270 = vrot.lane.b32.xlu0 %v251_v52, %s2787_s28 }
 0x177   :  { %268 = vrot.lane.b32.xlu1 %v250_v53, %s2787_s28 }
 0x17a   :  { %278 = vrot.lane.b32.xlu0 %v251_v52, %s2785_s3 }
 0x17b   :  { %276 = vrot.lane.b32.xlu1 %v250_v53, %s2785_s3 }
 0x17e   :  { %288 = vrot.lane.b32.xlu0 %v251_v52, %s2783_s0 }
 0x17f   :  { %286 = vrot.lane.b32.xlu1 %v250_v53, %s2783_s0 }
 0x182   :  { %296 = vrot.lane.b32.xlu0 %v251_v52, %s2808_s25 }
 0x183   :  { %294 = vrot.lane.b32.xlu1 %v250_v53, %s2808_s25 }
 0x186   :  { %304 = vrot.lane.b32.xlu0 %v251_v52, %s2809_s5 }
 0x187   :  { %302 = vrot.lane.b32.xlu1 %v250_v53, %s2809_s5 }
 0x18a   :  { %312 = vrot.lane.b32.xlu0 %v251_v52, %s2811_s8 }
 0x18b   :  { %310 = vrot.lane.b32.xlu1 %v250_v53, %s2811_s8 }
 0x18e   :  { %349 = vperm.xlu0 %2025, %v341_v56  }
 0x18f   :  { %344 = vperm.xlu1 %2026, %v340_v57   ;;  %v503_v57 = vld [vmem:[%s2815_s26 + $0x8] sm:$0xff] }
 0x190   :  { %1695 = vmatprep.mubr.msk.f32.mxu0 %vm352_vm1, %v503_v57 }
 0x1e0   :  { %v255_v58 = vpop.permute.xlu0 %254 }
 0x1e1   :  { %v257_v59 = vmul.f32 %v255_v58, %v2211_v16  ;;  %v253_v60 = vpop.permute.xlu1 %252  ;;  %v524_v58 = vld [vmem:[%s2816_s6] sm:$0xff] }
 0x1e2   :  { %v256_v61 = vmul.f32 %v253_v60, %v2211_v16  ;;  %v525_v60 = vld [vmem:[%s2816_s6 + $0x8] sm:$0xff]  ;;  %s2820_s6 = smov 7  }
 0x1e4   :  { %v263_v62 = vpop.permute.xlu0 %262  ;;  %v1822_v63 = vpack.c.bf16 %v257_v59, %v256_v61 }
 0x1e5   :  { %v265_v0 = vmul.f32 %v263_v62, %v2215_v18  ;;  %v261_v1 = vpop.permute.xlu1 %260 }
 0x1e6   :  { %v264_v2 = vmul.f32 %v261_v1, %v2215_v18  ;;  %1823 = vmatpush1.bf16.msra.mxu1 %v1822_v63 }
 0x1e7   :  { %1824 = vmatprep.subr.bf16.mxu1 %v2049_v45 }
 0x1e8   :  { %v1825_v3 = vpack.c.bf16 %v265_v0, %v264_v2  ;;  %v271_v4 = vpop.permute.xlu0 %270 }
 0x1e9   :  { %v273_v5 = vmul.f32 %v271_v4, %v2209_v15  ;;  %v269_v6 = vpop.permute.xlu1 %268 }
 0x1ea   :  { %v272_v7 = vmul.f32 %v269_v6, %v2209_v15  ;;  %1826 = vmatpush1.bf16.msra.mxu1 %v1825_v3 }
 0x1eb   :  { %1827 = vmatprep.subr.bf16.mxu1 %v2049_v45 }
 0x1ec   :  { %v1828_v8 = vpack.c.bf16 %v273_v5, %v272_v7  ;;  %v279_v9 = vpop.permute.xlu0 %278 }
 0x1ed   :  { %v281_v10 = vmul.f32 %v279_v9, %v2213_v17  ;;  %v277_v11 = vpop.permute.xlu1 %276 }
 0x1ee   :  { %v280_v12 = vmul.f32 %v277_v11, %v2213_v17  ;;  %1829 = vmatpush1.bf16.msra.mxu1 %v1828_v8 }
 0x1ef   :  { %1830 = vmatprep.subr.bf16.mxu1 %v2049_v45 }
 0x1f0   :  { %v1831_v13 = vpack.c.bf16 %v281_v10, %v280_v12  ;;  %v289_v14 = vpop.permute.xlu0 %288 }
 0x1f1   :  { %v287_v19 = vpop.permute.xlu1 %286  ;;  %v291_v20 = vmul.f32 %v289_v14, %v2217_v22 }
 0x1f2   :  { %1832 = vmatpush1.bf16.msra.mxu1 %v1831_v13  ;;  %v290_v21 = vmul.f32 %v287_v19, %v2217_v22 }
 0x1f3   :  { %1833 = vmatprep.subr.bf16.mxu1 %v2049_v45 }
 0x1f4   :  { %v297_v23 = vpop.permute.xlu0 %296  ;;  %v1837_v25 = vpack.c.bf16 %v291_v20, %v290_v21 }
 0x1f5   :  { %v295_v24 = vpop.permute.xlu1 %294  ;;  %v299_v26 = vmul.f32 %v297_v23, %v2226_v30 }
 0x1f6   :  { %1835 = vmatpush1.bf16.msra.mxu1 %v1834_v54  ;;  %v298_v27 = vmul.f32 %v295_v24, %v2226_v30 }
 0x1f7   :  { %1836 = vmatprep.subr.bf16.mxu1 %v2049_v45 }
 0x1f8   :  { %v305_v28 = vpop.permute.xlu0 %304  ;;  %v1840_v31 = vpack.c.bf16 %v299_v26, %v298_v27 }
 0x1f9   :  { %v303_v29 = vpop.permute.xlu1 %302  ;;  %v307_v32 = vmul.f32 %v305_v28, %v2229_v35 }
 0x1fa   :  { %1838 = vmatpush1.bf16.msra.mxu1 %v1837_v25  ;;  %v306_v33 = vmul.f32 %v303_v29, %v2229_v35 }
 0x1fb   :  { %1839 = vmatprep.subr.bf16.mxu1 %v2049_v45 }
 0x1fc   :  { %v313_v34 = vpop.permute.xlu0 %312  ;;  %v1843_v37 = vpack.c.bf16 %v307_v32, %v306_v33 }
 0x1fd   :  { %v311_v36 = vpop.permute.xlu1 %310  ;;  %v315_v38 = vmul.f32 %v313_v34, %v2234_v41 }
 0x1fe   :  { %1841 = vmatpush1.bf16.msra.mxu1 %v1840_v31  ;;  %v314_v39 = vmul.f32 %v311_v36, %v2234_v41 }
 0x1ff   :  { %1842 = vmatprep.subr.bf16.mxu1 %v2049_v45 }
 0x200   :  { %v1846_v40 = vpack.c.bf16 %v315_v38, %v314_v39 }
 0x202   :  { %1844 = vmatpush1.bf16.msra.mxu1 %v1843_v37 }
 0x203   :  { %1845 = vmatprep.subr.bf16.mxu1 %v2049_v45 }
 0x206   :  { %1847 = vmatpush1.bf16.msra.mxu1 %v1846_v40 }
 0x209   :  { %424 = vmatmul.mubr.f32.vlgmr.msra.gmra.mrb[0].mxu1 %v318_v42 }
 0x20a   :  { %1694 = vmatprep.mubr.msk.f32.mxu1 %vm352_vm1, %v321_v43 }
 0x20d   :  { %429 = vmatmul.mubr.f32.gmra.mrb[2].mxu1 %v320_v44  ;;  %v350_v51 = vpop.permute.xlu0 %349 }
 0x20e   :  { %v345_v46 = vpop.permute.xlu1 %344 }
 0x2dc   :  { %v425_v47 = vpop.f32.mrb[0].mxu1 }
 0x2dd   :  { %v426_v48 = vadd.f32 %v425_v47, %v345_v46  ;;  %v427_v49 = vpop.f32.mrb[1].mxu1  ;;  %v502_v46 = vld [vmem:[%s2815_s26] sm:$0xff]  ;;  %v505_v47 = vld [vmem:[%s2815_s26 + $0x18] sm:$0xff] }
 0x2df   :  { %v2303_v50 = vmax.f32 %v426_v48, 0.0  ;;  %v504_v48 = vld [vmem:[%s2815_s26 + $0x10] sm:$0xff]  ;;  %s2818_s26 = smov 8  }
 0x2e0   :  { %v430_v52 = vpop.f32.mrb[2].mxu1 }
 0x2e1   :  { %v431_v53 = vadd.f32 %v430_v52, %v350_v51  ;;  %v432_v54 = vpop.f32.mrb[3].mxu1  ;;  %436 = vrot.lane.b32.xlu1 %v2303_v50, %s2789_s7 }
 0x2e3   :  { %v435_v55 = vmax.f32 %v431_v53, 0.0 }
 0x2e5   :  { %438 = vrot.lane.b32.xlu0 %v435_v55, %s2789_s7  ;;  %444 = vrot.lane.b32.xlu1 %v2303_v50, %s2791_s29  ;;  %v1861_v56 = vpack.c.bf16 %v435_v55, %v2303_v50 }
 0x2e9   :  { %446 = vrot.lane.b32.xlu0 %v435_v55, %s2791_s29  ;;  %452 = vrot.lane.b32.xlu1 %v2303_v50, %s2787_s28  ;;  %s2817_s29 = sld [smem:[#allocation11_spill]] }
 0x2ed   :  { %454 = vrot.lane.b32.xlu0 %v435_v55, %s2787_s28  ;;  %460 = vrot.lane.b32.xlu1 %v2303_v50, %s2813_s1 }
 0x2ef   :  { %v617_v59 = vld [vmem:[%s2817_s29] sm:$0xff] }
 0x2f1   :  { %462 = vrot.lane.b32.xlu0 %v435_v55, %s2813_s1  ;;  %470 = vrot.lane.b32.xlu1 %v2303_v50, %s2814_s2 }
 0x2f5   :  { %472 = vrot.lane.b32.xlu0 %v435_v55, %s2814_s2  ;;  %478 = vrot.lane.b32.xlu1 %v2303_v50, %s2808_s25 }
 0x2f9   :  { %480 = vrot.lane.b32.xlu0 %v435_v55, %s2808_s25  ;;  %486 = vrot.lane.b32.xlu1 %v2303_v50, %s2809_s5 }
 0x2fd   :  { %488 = vrot.lane.b32.xlu0 %v435_v55, %s2809_s5  ;;  %494 = vrot.lane.b32.xlu1 %v2303_v50, %s2811_s8 }
 0x301   :  { %496 = vrot.lane.b32.xlu0 %v435_v55, %s2811_s8  ;;  %528 = vperm.xlu1 %2026, %v524_v58  }
 0x305   :  { %621 = vperm.xlu0 %2025, %v617_v59   ;;  %533 = vperm.xlu1 %2026, %v525_v60  }
 0x353   :  { %v437_v61 = vpop.permute.xlu1 %436 }
 0x354   :  { %v440_v0 = vmul.f32 %v437_v61, %v2211_v16  ;;  %v78_v61 = vld [vmem:[%s2804_s27] sm:$0xff] }
 0x357   :  { %v439_v62 = vpop.permute.xlu0 %438  ;;  %v445_v63 = vpop.permute.xlu1 %444 }
 0x358   :  { %v441_v1 = vmul.f32 %v439_v62, %v2211_v16  ;;  %v448_v5 = vmul.f32 %v445_v63, %v2215_v18 }
 0x35a   :  { %v1849_v2 = vpack.c.bf16 %v441_v1, %v440_v0  ;;  %v669_v1 = vld [vmem:[%s2753_s9] sm:$0xff] }
 0x35b   :  { %v447_v3 = vpop.permute.xlu0 %446  ;;  %v453_v4 = vpop.permute.xlu1 %452  ;;  %1781 = vmatprep.mubr.msk.f32.mxu1 %vm168_vm0, %v669_v1 }
 0x35c   :  { %v449_v6 = vmul.f32 %v447_v3, %v2215_v18  ;;  %1850 = vmatpush1.bf16.msra.mxu0 %v1849_v2  ;;  %v456_v10 = vmul.f32 %v453_v4, %v2209_v15  ;;  %v681_v2 = vld [vmem:[%s2754_s10 + $0x8] sm:$0xff]  ;;  %v680_v3 = vld [vmem:[%s2754_s10] sm:$0xff] }
 0x35d   :  { %1851 = vmatprep.subr.bf16.mxu0 %v2049_v45 }
 0x35e   :  { %v1852_v7 = vpack.c.bf16 %v449_v6, %v448_v5 }
 0x35f   :  { %v455_v8 = vpop.permute.xlu0 %454  ;;  %v461_v9 = vpop.permute.xlu1 %460 }
 0x360   :  { %v457_v11 = vmul.f32 %v455_v8, %v2209_v15  ;;  %1853 = vmatpush1.bf16.msra.mxu0 %v1852_v7  ;;  %v464_v19 = vmul.f32 %v461_v9, %v2213_v17 }
 0x361   :  { %1854 = vmatprep.subr.bf16.mxu0 %v2049_v45 }
 0x362   :  { %v1855_v12 = vpack.c.bf16 %v457_v11, %v456_v10 }
 0x363   :  { %v463_v13 = vpop.permute.xlu0 %462  ;;  %v471_v14 = vpop.permute.xlu1 %470 }
 0x364   :  { %v465_v20 = vmul.f32 %v463_v13, %v2213_v17  ;;  %1856 = vmatpush1.bf16.msra.mxu0 %v1855_v12  ;;  %v474_v27 = vmul.f32 %v471_v14, %v2217_v22 }
 0x365   :  { %1857 = vmatprep.subr.bf16.mxu0 %v2049_v45 }
 0x366   :  { %v1858_v21 = vpack.c.bf16 %v465_v20, %v464_v19 }
 0x367   :  { %v473_v23 = vpop.permute.xlu0 %472  ;;  %v479_v24 = vpop.permute.xlu1 %478 }
 0x368   :  { %1859 = vmatpush1.bf16.msra.mxu0 %v1858_v21  ;;  %v475_v25 = vmul.f32 %v473_v23, %v2217_v22  ;;  %v482_v33 = vmul.f32 %v479_v24, %v2226_v30 }
 0x369   :  { %1860 = vmatprep.subr.bf16.mxu0 %v2049_v45 }
 0x36a   :  { %v1864_v28 = vpack.c.bf16 %v475_v25, %v474_v27 }
 0x36b   :  { %v481_v26 = vpop.permute.xlu0 %480  ;;  %v487_v31 = vpop.permute.xlu1 %486 }
 0x36c   :  { %1862 = vmatpush1.bf16.msra.mxu0 %v1861_v56  ;;  %v483_v29 = vmul.f32 %v481_v26, %v2226_v30  ;;  %v490_v38 = vmul.f32 %v487_v31, %v2229_v35 }
 0x36d   :  { %1863 = vmatprep.subr.bf16.mxu0 %v2049_v45 }
 0x36e   :  { %v1867_v34 = vpack.c.bf16 %v483_v29, %v482_v33  ;;  %v670_v29 = vld [vmem:[%s2753_s9 + $0x8] sm:$0xff] }
 0x36f   :  { %v489_v32 = vpop.permute.xlu0 %488  ;;  %v495_v39 = vpop.permute.xlu1 %494 }
 0x370   :  { %1865 = vmatpush1.bf16.msra.mxu0 %v1864_v28  ;;  %v491_v36 = vmul.f32 %v489_v32, %v2229_v35  ;;  %v498_v43 = vmul.f32 %v495_v39, %v2234_v41 }
 0x371   :  { %1866 = vmatprep.subr.bf16.mxu0 %v2049_v45 }
 0x372   :  { %v1870_v40 = vpack.c.bf16 %v491_v36, %v490_v38 }
 0x373   :  { %v497_v37 = vpop.permute.xlu0 %496 }
 0x374   :  { %1868 = vmatpush1.bf16.msra.mxu0 %v1867_v34  ;;  %v499_v42 = vmul.f32 %v497_v37, %v2234_v41 }
 0x375   :  { %1869 = vmatprep.subr.bf16.mxu0 %v2049_v45 }
 0x376   :  { %v1873_v44 = vpack.c.bf16 %v499_v42, %v498_v43  ;;  %v842_v42 = vld [vmem:[%s2755_s11 + $0x8] sm:$0xff] }
 0x377   :  { %v864_v43 = vld [vmem:[%s2756_s12 + $0x8] sm:$0xff] }
 0x378   :  { %1871 = vmatpush1.bf16.msra.mxu0 %v1870_v40 }
 0x379   :  { %1872 = vmatprep.subr.bf16.mxu0 %v2049_v45 }
 0x37c   :  { %1874 = vmatpush1.bf16.msra.mxu0 %v1873_v44  ;;  %v863_v44 = vld [vmem:[%s2756_s12] sm:$0xff] }
 0x37d   :  { %1891 = vmatprep.subr.bf16.mxu0 %v2049_v45 }
 0x37f   :  { %607 = vmatmul.mubr.f32.vlgmr.msra.gmra.mrb[2].mxu0 %v502_v46 }
 0x380   :  { %1696 = vmatprep.mubr.msk.f32.mxu0 %vm352_vm1, %v505_v47  ;;  %v529_v49 = vpop.permute.xlu1 %528 }
 0x383   :  { %612 = vmatmul.mubr.f32.gmra.mrb[4].mxu0 %v504_v48 }
 0x384   :  { %v622_v56 = vpop.permute.xlu0 %621  ;;  %v534_v59 = vpop.permute.xlu1 %533  ;;  %1699 = vmatprep.mubr.msk.f32.mxu0 %vm352_vm1, %v842_v42 }
 0x452   :  { %v608_v50 = vpop.f32.mrb[2].mxu0 }
 0x453   :  { %v609_v51 = vadd.f32 %v608_v50, %v529_v49  ;;  %v610_v52 = vpop.f32.mrb[3].mxu0 }
 0x455   :  { %2027 = vtanh.f32 %v609_v51 }
 0x456   :  { %v613_v53 = vpop.f32.mrb[4].mxu0 }
 0x457   :  { %v615_v54 = vpop.f32.mrb[5].mxu0  ;;  %v614_v60 = vadd.f32 %v613_v53, %v534_v59 }
 0x459   :  { %v625_v62 = vadd.f32 %v614_v60, %v78_v61 }
 0x45f   :  { %v2028_v55 = vpop.eup %2027 }
 0x460   :  { %v2378_v57 = vmul.f32 %v2028_v55, %v622_v56 }
 0x462   :  { %v626_v58 = vmul.f32 1.442695, %v2378_v57 }
 0x464   :  { %2029 = vpow2.f32 %v626_v58 }
 0x46e   :  { %v2030_v63 = vpop.eup %2029 }
 0x46f   :  { %v2384_v0 = vmul.f32 %v2030_v63, %v625_v62 }
 0x471   :  { %640 = vrot.lane.b32.xlu1 %v2384_v0, %s2818_s26  ;;  %636 = vrot.lane.b32.xlu0 %v2384_v0, %s2819_s4 }
 0x475   :  { %648 = vrot.lane.b32.xlu1 %v2384_v0, %s2813_s1  ;;  %644 = vrot.lane.b32.xlu0 %v2384_v0, %s2820_s6 }
 0x479   :  { %657 = vrot.lane.b32.xlu1 %v2384_v0, %s2808_s25  ;;  %653 = vrot.lane.b32.xlu0 %v2384_v0, %s2814_s2 }
 0x47d   :  { %665 = vrot.lane.b32.xlu1 %v2384_v0, %s2811_s8  ;;  %661 = vrot.lane.b32.xlu0 %v2384_v0, %s2809_s5 }
 0x481   :  { %689 = vperm.xlu1 %2026, %v681_v2   ;;  %684 = vperm.xlu0 %2025, %v680_v3  }
 0x4e3   :  { %v641_v4 = vpop.permute.xlu1 %640  ;;  %v637_v5 = vpop.permute.xlu0 %636 }
 0x4e4   :  { %v642_v6 = vmul.f32 %v641_v4, %v2215_v18  ;;  %v638_v7 = vmul.f32 %v637_v5, %v2211_v16 }
 0x4e6   :  { %v1875_v8 = vpack.c.bf16 %v642_v6, %v638_v7 }
 0x4e7   :  { %v649_v9 = vpop.permute.xlu1 %648  ;;  %v645_v10 = vpop.permute.xlu0 %644 }
 0x4e8   :  { %v650_v11 = vmul.f32 %v649_v9, %v2213_v17  ;;  %v646_v12 = vmul.f32 %v645_v10, %v2209_v15  ;;  %1876 = vmatprep.subr.bf16.mxu1 %v1875_v8 }
 0x4e9   :  { %1878 = vmatpush3.bf16.msra.mxu1 %v1875_v8 }
 0x4ea   :  { %v1879_v13 = vpack.c.bf16 %v650_v11, %v646_v12 }
 0x4eb   :  { %v658_v14 = vpop.permute.xlu1 %657  ;;  %v654_v19 = vpop.permute.xlu0 %653 }
 0x4ec   :  { %v655_v20 = vmul.f32 %v654_v19, %v2217_v22  ;;  %1880 = vmatprep.subr.bf16.mxu1 %v1879_v13  ;;  %v659_v24 = vmul.f32 %v658_v14, %v2226_v30 }
 0x4ed   :  { %1882 = vmatpush3.bf16.msra.mxu1 %v1879_v13 }
 0x4ee   :  { %v1883_v21 = vpack.c.bf16 %v655_v20, %v2384_v0 }
 0x4ef   :  { %v662_v23 = vpop.permute.xlu0 %661  ;;  %v666_v26 = vpop.permute.xlu1 %665 }
 0x4f0   :  { %v663_v25 = vmul.f32 %v662_v23, %v2229_v35  ;;  %1884 = vmatprep.subr.bf16.mxu1 %v1883_v21  ;;  %v667_v28 = vmul.f32 %v666_v26, %v2234_v41 }
 0x4f1   :  { %1886 = vmatpush3.bf16.msra.mxu1 %v1883_v21 }
 0x4f2   :  { %v1887_v27 = vpack.c.bf16 %v663_v25, %v659_v24 }
 0x4f4   :  { %1888 = vmatprep.subr.bf16.mxu1 %v1887_v27 }
 0x4f5   :  { %1890 = vmatpush3.bf16.msra.mxu1 %v1887_v27 }
 0x4f6   :  { %1779 = vmatprep.subr.mxu1 %v667_v28 }
 0x4f9   :  { %1780 = vmatpush3.msra.mxu1 %v667_v28 }
 0x4fa   :  { %1782 = vmatmul.mubr.msk.f32.vlgmr.msra.gmra.mrb[4].mxu1 %vm168_vm0, %v670_v29  ;;  %1918 = vmatprep.subr.bf16.mxu1 %v2049_v45  ;;  %v841_v29 = vld [vmem:[%s2755_s11] sm:$0xff] }
 0x500   :  { %v690_v31 = vpop.permute.xlu1 %689  ;;  %v685_v33 = vpop.permute.xlu0 %684 }
 0x5cd   :  { %v1783_v32 = vpop.f32.mrb[4].mxu1 }
 0x5ce   :  { %v770_v34 = vadd.f32 %v1783_v32, %v690_v31  ;;  %v764_v36 = vpop.f32.mrb[5].mxu1  ;;  %v844_v31 = vld [vmem:[%s2755_s11 + $0x18] sm:$0xff]  ;;  %v843_v32 = vld [vmem:[%s2755_s11 + $0x10] sm:$0xff] }
 0x5cf   :  { %v765_v37 = vadd.f32 %v764_v36, %v685_v33 }
 0x5d0   :  { %v774_v38 = vmax.f32 %v770_v34, 0.0 }
 0x5d1   :  { %v773_v39 = vmax.f32 %v765_v37, 0.0 }
 0x5d2   :  { %777 = vrot.lane.b32.xlu1 %v774_v38, %s2819_s4 }
 0x5d3   :  { %775 = vrot.lane.b32.xlu0 %v773_v39, %s2819_s4  ;;  %v1904_v40 = vpack.c.bf16 %v774_v38, %v773_v39 }
 0x5d6   :  { %785 = vrot.lane.b32.xlu1 %v774_v38, %s2818_s26 }
 0x5d7   :  { %783 = vrot.lane.b32.xlu0 %v773_v39, %s2818_s26 }
 0x5da   :  { %793 = vrot.lane.b32.xlu1 %v774_v38, %s2820_s6 }
 0x5db   :  { %791 = vrot.lane.b32.xlu0 %v773_v39, %s2820_s6 }
 0x5de   :  { %801 = vrot.lane.b32.xlu1 %v774_v38, %s2813_s1 }
 0x5df   :  { %799 = vrot.lane.b32.xlu0 %v773_v39, %s2813_s1 }
 0x5e2   :  { %811 = vrot.lane.b32.xlu1 %v774_v38, %s2814_s2 }
 0x5e3   :  { %809 = vrot.lane.b32.xlu0 %v773_v39, %s2814_s2 }
 0x5e6   :  { %819 = vrot.lane.b32.xlu1 %v774_v38, %s2808_s25 }
 0x5e7   :  { %817 = vrot.lane.b32.xlu0 %v773_v39, %s2808_s25 }
 0x5ea   :  { %827 = vrot.lane.b32.xlu1 %v774_v38, %s2809_s5 }
 0x5eb   :  { %825 = vrot.lane.b32.xlu0 %v773_v39, %s2809_s5 }
 0x5ee   :  { %835 = vrot.lane.b32.xlu1 %v774_v38, %s2811_s8 }
 0x5ef   :  { %833 = vrot.lane.b32.xlu0 %v773_v39, %s2811_s8 }
 0x5f2   :  { %872 = vperm.xlu1 %2026, %v864_v43  }
 0x5f3   :  { %867 = vperm.xlu0 %2025, %v863_v44  }
 0x644   :  { %v778_v46 = vpop.permute.xlu1 %777 }
 0x645   :  { %v780_v47 = vmul.f32 %v778_v46, %v2211_v16  ;;  %v776_v48 = vpop.permute.xlu0 %775 }
 0x646   :  { %v779_v49 = vmul.f32 %v776_v48, %v2211_v16  ;;  %v1046_v48 = vld [vmem:[%s2757_s14] sm:$0xff] }
 0x648   :  { %v1892_v50 = vpack.c.bf16 %v780_v47, %v779_v49  ;;  %v786_v51 = vpop.permute.xlu1 %785  ;;  %v1025_v47 = vld [vmem:[%s2758_s13 + $0x8] sm:$0xff]  ;;  %v1139_v49 = vld [vmem:[%s2759_s15] sm:$0xff] }
 0x649   :  { %v788_v52 = vmul.f32 %v786_v51, %v2215_v18  ;;  %v784_v53 = vpop.permute.xlu0 %783  ;;  %1701 = vmatprep.mubr.msk.f32.mxu1 %vm352_vm1, %v1025_v47  ;;  %v629_v47 = vrot.slane %v2378_v57, 4 }
 0x64a   :  { %v787_v54 = vmul.f32 %v784_v53, %v2215_v18  ;;  %1893 = vmatpush1.bf16.msra.mxu0 %v1892_v50  ;;  %v1047_v50 = vld [vmem:[%s2757_s14 + $0x8] sm:$0xff]  ;;  %s2822_s14 = sld [smem:[#allocation13_spill]] }
 0x64b   :  { %1894 = vmatprep.subr.bf16.mxu0 %v2049_v45 }
 0x64c   :  { %v1895_v55 = vpack.c.bf16 %v788_v52, %v787_v54  ;;  %v794_v56 = vpop.permute.xlu1 %793 }
 0x64d   :  { %v796_v58 = vmul.f32 %v794_v56, %v2209_v15  ;;  %v792_v59 = vpop.permute.xlu0 %791 }
 0x64e   :  { %v795_v60 = vmul.f32 %v792_v59, %v2209_v15  ;;  %1896 = vmatpush1.bf16.msra.mxu0 %v1895_v55 }
 0x64f   :  { %1897 = vmatprep.subr.bf16.mxu0 %v2049_v45 }
 0x650   :  { %v1898_v61 = vpack.c.bf16 %v796_v58, %v795_v60  ;;  %v802_v62 = vpop.permute.xlu1 %801 }
 0x651   :  { %v804_v63 = vmul.f32 %v802_v62, %v2213_v17  ;;  %v800_v1 = vpop.permute.xlu0 %799 }
 0x652   :  { %v803_v2 = vmul.f32 %v800_v1, %v2213_v17  ;;  %1899 = vmatpush1.bf16.msra.mxu0 %v1898_v61 }
 0x653   :  { %1900 = vmatprep.subr.bf16.mxu0 %v2049_v45 }
 0x654   :  { %v1901_v3 = vpack.c.bf16 %v804_v63, %v803_v2  ;;  %v812_v4 = vpop.permute.xlu1 %811 }
 0x655   :  { %v810_v5 = vpop.permute.xlu0 %809  ;;  %v814_v6 = vmul.f32 %v812_v4, %v2217_v22 }
 0x656   :  { %1902 = vmatpush1.bf16.msra.mxu0 %v1901_v3  ;;  %v813_v7 = vmul.f32 %v810_v5, %v2217_v22 }
 0x657   :  { %1903 = vmatprep.subr.bf16.mxu0 %v2049_v45 }
 0x658   :  { %v820_v8 = vpop.permute.xlu1 %819  ;;  %v1907_v10 = vpack.c.bf16 %v814_v6, %v813_v7 }
 0x659   :  { %v818_v9 = vpop.permute.xlu0 %817  ;;  %v822_v11 = vmul.f32 %v820_v8, %v2226_v30 }
 0x65a   :  { %1905 = vmatpush1.bf16.msra.mxu0 %v1904_v40  ;;  %v821_v12 = vmul.f32 %v818_v9, %v2226_v30 }
 0x65b   :  { %1906 = vmatprep.subr.bf16.mxu0 %v2049_v45 }
 0x65c   :  { %v828_v13 = vpop.permute.xlu1 %827  ;;  %v1910_v19 = vpack.c.bf16 %v822_v11, %v821_v12 }
 0x65d   :  { %v826_v14 = vpop.permute.xlu0 %825  ;;  %v830_v20 = vmul.f32 %v828_v13, %v2229_v35 }
 0x65e   :  { %1908 = vmatpush1.bf16.msra.mxu0 %v1907_v10  ;;  %v829_v21 = vmul.f32 %v826_v14, %v2229_v35 }
 0x65f   :  { %1909 = vmatprep.subr.bf16.mxu0 %v2049_v45 }
 0x660   :  { %v836_v23 = vpop.permute.xlu1 %835  ;;  %v1913_v25 = vpack.c.bf16 %v830_v20, %v829_v21 }
 0x661   :  { %v834_v24 = vpop.permute.xlu0 %833  ;;  %v838_v26 = vmul.f32 %v836_v23, %v2234_v41 }
 0x662   :  { %1911 = vmatpush1.bf16.msra.mxu0 %v1910_v19  ;;  %v837_v27 = vmul.f32 %v834_v24, %v2234_v41 }
 0x663   :  { %1912 = vmatprep.subr.bf16.mxu0 %v2049_v45 }
 0x664   :  { %v1916_v28 = vpack.c.bf16 %v838_v26, %v837_v27 }
 0x666   :  { %1914 = vmatpush1.bf16.msra.mxu0 %v1913_v25 }
 0x667   :  { %1915 = vmatprep.subr.bf16.mxu0 %v2049_v45 }
 0x66a   :  { %1917 = vmatpush1.bf16.msra.mxu0 %v1916_v28 }
 0x66d   :  { %946 = vmatmul.mubr.f32.vlgmr.msra.gmra.mrb[6].mxu0 %v841_v29 }
 0x66e   :  { %1700 = vmatprep.mubr.msk.f32.mxu0 %vm352_vm1, %v844_v31 }
 0x671   :  { %951 = vmatmul.mubr.f32.gmra.mrb[8].mxu0 %v843_v32  ;;  %v873_v39 = vpop.permute.xlu1 %872 }
 0x672   :  { %v868_v33 = vpop.permute.xlu0 %867 }
 0x740   :  { %v947_v34 = vpop.f32.mrb[6].mxu0 }
 0x741   :  { %v948_v36 = vadd.f32 %v947_v34, %v868_v33  ;;  %v949_v37 = vpop.f32.mrb[7].mxu0 }
 0x742   :  { %v1027_v37 = vld [vmem:[%s2758_s13 + $0x18] sm:$0xff] }
 0x743   :  { %v2486_v38 = vmax.f32 %v948_v36, 0.0  ;;  %v1024_v36 = vld [vmem:[%s2758_s13] sm:$0xff] }
 0x744   :  { %v952_v40 = vpop.f32.mrb[8].mxu0 }
 0x745   :  { %v953_v42 = vadd.f32 %v952_v40, %v873_v39  ;;  %v954_v43 = vpop.f32.mrb[9].mxu0  ;;  %958 = vrot.lane.b32.xlu0 %v2486_v38, %s2819_s4 }
 0x747   :  { %v957_v44 = vmax.f32 %v953_v42, 0.0 }
 0x749   :  { %960 = vrot.lane.b32.xlu1 %v957_v44, %s2819_s4  ;;  %966 = vrot.lane.b32.xlu0 %v2486_v38, %s2818_s26  ;;  %v1931_v46 = vpack.c.bf16 %v957_v44, %v2486_v38 }
 0x74d   :  { %968 = vrot.lane.b32.xlu1 %v957_v44, %s2818_s26  ;;  %974 = vrot.lane.b32.xlu0 %v2486_v38, %s2820_s6 }
 0x751   :  { %976 = vrot.lane.b32.xlu1 %v957_v44, %s2820_s6  ;;  %982 = vrot.lane.b32.xlu0 %v2486_v38, %s2813_s1 }
 0x755   :  { %984 = vrot.lane.b32.xlu1 %v957_v44, %s2813_s1  ;;  %992 = vrot.lane.b32.xlu0 %v2486_v38, %s2814_s2 }
 0x759   :  { %994 = vrot.lane.b32.xlu1 %v957_v44, %s2814_s2  ;;  %1000 = vrot.lane.b32.xlu0 %v2486_v38, %s2808_s25 }
 0x75d   :  { %1002 = vrot.lane.b32.xlu1 %v957_v44, %s2808_s25  ;;  %1008 = vrot.lane.b32.xlu0 %v2486_v38, %s2809_s5 }
 0x761   :  { %1010 = vrot.lane.b32.xlu1 %v957_v44, %s2809_s5  ;;  %1016 = vrot.lane.b32.xlu0 %v2486_v38, %s2811_s8  ;;  %v1026_v38 = vld [vmem:[%s2758_s13 + $0x10] sm:$0xff] }
 0x765   :  { %1018 = vrot.lane.b32.xlu1 %v957_v44, %s2811_s8  ;;  %1050 = vperm.xlu0 %2025, %v1046_v48   ;;  %v630_v48 = vadd.f32 %v629_v47, %v2378_v57  ;;  %v2039_v57 = vld [vmem:[%s2804_s27 + $0x8] sm:$0xff] }
 0x769   :  { %1143 = vperm.xlu1 %2026, %v1139_v49   ;;  %1055 = vperm.xlu0 %2025, %v1047_v50  }
 0x7b7   :  { %v959_v51 = vpop.permute.xlu0 %958 }
 0x7b8   :  { %v962_v54 = vmul.f32 %v959_v51, %v2211_v16  ;;  %v631_v51 = vrot.slane %v630_v48, 2 }
 0x7bb   :  { %v961_v52 = vpop.permute.xlu1 %960  ;;  %v967_v53 = vpop.permute.xlu0 %966 }
 0x7bc   :  { %v963_v55 = vmul.f32 %v961_v52, %v2211_v16  ;;  %v970_v60 = vmul.f32 %v967_v53, %v2215_v18 }
 0x7be   :  { %v1919_v56 = vpack.c.bf16 %v963_v55, %v962_v54  ;;  %v632_v55 = vadd.f32 %v631_v51, %v630_v48  ;;  %v1385_v51 = vld [vmem:[%s2764_s19] sm:$0xff] }
 0x7bf   :  { %v969_v58 = vpop.permute.xlu1 %968  ;;  %v975_v59 = vpop.permute.xlu0 %974 }
 0x7c0   :  { %v971_v61 = vmul.f32 %v969_v58, %v2215_v18  ;;  %1920 = vmatpush1.bf16.msra.mxu1 %v1919_v56  ;;  %v978_v2 = vmul.f32 %v975_v59, %v2209_v15  ;;  %v633_v59 = vrot.slane %v632_v55, 1 }
 0x7c1   :  { %1921 = vmatprep.subr.bf16.mxu1 %v2049_v45 }
 0x7c2   :  { %v1922_v62 = vpack.c.bf16 %v971_v61, %v970_v60 }
 0x7c3   :  { %v977_v63 = vpop.permute.xlu1 %976  ;;  %v983_v1 = vpop.permute.xlu0 %982 }
 0x7c4   :  { %v979_v3 = vmul.f32 %v977_v63, %v2209_v15  ;;  %1923 = vmatpush1.bf16.msra.mxu1 %v1922_v62  ;;  %v986_v7 = vmul.f32 %v983_v1, %v2213_v17  ;;  %v634_v1 = vadd.f32 %v633_v59, %v632_v55 }
 0x7c5   :  { %1924 = vmatprep.subr.bf16.mxu1 %v2049_v45 }
 0x7c6   :  { %v1925_v4 = vpack.c.bf16 %v979_v3, %v978_v2 }
 0x7c7   :  { %v985_v5 = vpop.permute.xlu1 %984  ;;  %v993_v6 = vpop.permute.xlu0 %992 }
 0x7c8   :  { %v987_v8 = vmul.f32 %v985_v5, %v2213_v17  ;;  %1926 = vmatpush1.bf16.msra.mxu1 %v1925_v4  ;;  %v996_v14 = vmul.f32 %v993_v6, %v2217_v22 }
 0x7c9   :  { %1927 = vmatprep.subr.bf16.mxu1 %v2049_v45 }
 0x7ca   :  { %v1928_v9 = vpack.c.bf16 %v987_v8, %v986_v7  ;;  %v1191_v7 = vld [vmem:[%s2761_s16] sm:$0xff]  ;;  %v1203_v8 = vld [vmem:[%s2762_s17 + $0x8] sm:$0xff] }
 0x7cb   :  { %v995_v10 = vpop.permute.xlu1 %994  ;;  %v1001_v11 = vpop.permute.xlu0 %1000  ;;  %1802 = vmatprep.mubr.msk.f32.mxu0 %vm168_vm0, %v1191_v7 }
 0x7cc   :  { %1929 = vmatpush1.bf16.msra.mxu1 %v1928_v9  ;;  %v997_v12 = vmul.f32 %v995_v10, %v2217_v22  ;;  %v1004_v24 = vmul.f32 %v1001_v11, %v2226_v30  ;;  %v1202_v9 = vld [vmem:[%s2762_s17] sm:$0xff] }
 0x7cd   :  { %1930 = vmatprep.subr.bf16.mxu1 %v2049_v45 }
 0x7ce   :  { %v1934_v19 = vpack.c.bf16 %v997_v12, %v996_v14 }
 0x7cf   :  { %v1003_v13 = vpop.permute.xlu1 %1002  ;;  %v1009_v21 = vpop.permute.xlu0 %1008 }
 0x7d0   :  { %1932 = vmatpush1.bf16.msra.mxu1 %v1931_v46  ;;  %v1005_v20 = vmul.f32 %v1003_v13, %v2226_v30  ;;  %v1012_v28 = vmul.f32 %v1009_v21, %v2229_v35 }
 0x7d1   :  { %1933 = vmatprep.subr.bf16.mxu1 %v2049_v45 }
 0x7d2   :  { %v1937_v25 = vpack.c.bf16 %v1005_v20, %v1004_v24 }
 0x7d3   :  { %v1011_v23 = vpop.permute.xlu1 %1010  ;;  %v1017_v29 = vpop.permute.xlu0 %1016 }
 0x7d4   :  { %1935 = vmatpush1.bf16.msra.mxu1 %v1934_v19  ;;  %v1013_v26 = vmul.f32 %v1011_v23, %v2229_v35  ;;  %v1020_v33 = vmul.f32 %v1017_v29, %v2234_v41 }
 0x7d5   :  { %1936 = vmatprep.subr.bf16.mxu1 %v2049_v45 }
 0x7d6   :  { %v1940_v31 = vpack.c.bf16 %v1013_v26, %v1012_v28 }
 0x7d7   :  { %v1019_v27 = vpop.permute.xlu1 %1018 }
 0x7d8   :  { %1938 = vmatpush1.bf16.msra.mxu1 %v1937_v25  ;;  %v1021_v32 = vmul.f32 %v1019_v27, %v2234_v41 }
 0x7d9   :  { %1939 = vmatprep.subr.bf16.mxu1 %v2049_v45 }
 0x7da   :  { %v1943_v34 = vpack.c.bf16 %v1021_v32, %v1020_v33 }
 0x7dc   :  { %1941 = vmatpush1.bf16.msra.mxu1 %v1940_v31 }
 0x7dd   :  { %1942 = vmatprep.subr.bf16.mxu1 %v2049_v45 }
 0x7e0   :  { %1944 = vmatpush1.bf16.msra.mxu1 %v1943_v34 }
 0x7e1   :  { %1961 = vmatprep.subr.bf16.mxu1 %v2049_v45 }
 0x7e3   :  { %1129 = vmatmul.mubr.f32.vlgmr.msra.gmra.mrb[6].mxu1 %v1024_v36 }
 0x7e4   :  { %1702 = vmatprep.mubr.msk.f32.mxu1 %vm352_vm1, %v1027_v37  ;;  %v1051_v39 = vpop.permute.xlu0 %1050  ;;  %v1192_v37 = vld [vmem:[%s2761_s16 + $0x8] sm:$0xff] }
 0x7e7   :  { %1134 = vmatmul.mubr.f32.gmra.mrb[8].mxu1 %v1026_v38 }
 0x7e8   :  { %v1144_v50 = vpop.permute.xlu1 %1143  ;;  %v1056_v60 = vpop.permute.xlu0 %1055 }
 0x8b6   :  { %v1130_v40 = vpop.f32.mrb[6].mxu1 }
 0x8b7   :  { %v1131_v42 = vadd.f32 %v1130_v40, %v1051_v39  ;;  %v1132_v43 = vpop.f32.mrb[7].mxu1 }
 0x8b9   :  { %2031 = vtanh.f32 %v1131_v42 }
 0x8ba   :  { %v1135_v44 = vpop.f32.mrb[8].mxu1 }
 0x8bb   :  { %v1137_v46 = vpop.f32.mrb[9].mxu1  ;;  %v1136_v62 = vadd.f32 %v1135_v44, %v1056_v60 }
 0x8bd   :  { %v1147_v3 = vadd.f32 %v2039_v57, %v1136_v62 }
 0x8c3   :  { %v2032_v49 = vpop.eup %2031 }
 0x8c4   :  { %v1146_v52 = vmul.f32 %v2032_v49, %v1144_v50  ;;  %v1364_v49 = vld [vmem:[%s2763_s18 + $0x8] sm:$0xff] }
 0x8c5   :  { %1705 = vmatprep.mubr.msk.f32.mxu1 %vm352_vm1, %v1364_v49  ;;  %v1386_v50 = vld [vmem:[%s2764_s19 + $0x8] sm:$0xff] }
 0x8c6   :  { %v1151_v53 = vrot.slane %v1146_v52, 4  ;;  %v1148_v54 = vmul.f32 1.442695, %v1146_v52 }
 0x8c8   :  { %v1152_v56 = vadd.f32 %v1151_v53, %v1146_v52  ;;  %2033 = vpow2.f32 %v1148_v54 }
 0x8ca   :  { %v1153_v58 = vrot.slane %v1152_v56, 2 }
 0x8cc   :  { %v1154_v61 = vadd.f32 %v1153_v58, %v1152_v56 }
 0x8ce   :  { %v1155_v63 = vrot.slane %v1154_v61, 1 }
 0x8d0   :  { %v1156_v2 = vadd.f32 %v1155_v63, %v1154_v61 }
 0x8d2   :  { %v2034_v4 = vpop.eup %2033  ;;  %v2566_v5 = vadd.f32 %v1156_v2, %v634_v1 }
 0x8d3   :  { %v1150_v6 = vmul.f32 %v2034_v4, %v1147_v3 }
 0x8d5   :  { %1162 = vrot.lane.b32.xlu0 %v1150_v6, %s2818_s26  ;;  %1158 = vrot.lane.b32.xlu1 %v1150_v6, %s2819_s4  ;;  %1681 = vst [vmem:[%s2760_s23 + $0x8] sm:$0xff] %v1150_v6 }
 0x8d9   :  { %1170 = vrot.lane.b32.xlu0 %v1150_v6, %s2813_s1  ;;  %1166 = vrot.lane.b32.xlu1 %v1150_v6, %s2820_s6 }
 0x8dd   :  { %1179 = vrot.lane.b32.xlu0 %v1150_v6, %s2808_s25  ;;  %1175 = vrot.lane.b32.xlu1 %v1150_v6, %s2814_s2 }
 0x8e1   :  { %1187 = vrot.lane.b32.xlu0 %v1150_v6, %s2811_s8  ;;  %1183 = vrot.lane.b32.xlu1 %v1150_v6, %s2809_s5 }
 0x8e5   :  { %1211 = vperm.xlu0 %2025, %v1203_v8   ;;  %1206 = vperm.xlu1 %2026, %v1202_v9  }
 0x947   :  { %v1163_v10 = vpop.permute.xlu0 %1162  ;;  %v1159_v11 = vpop.permute.xlu1 %1158 }
 0x948   :  { %v1164_v12 = vmul.f32 %v1163_v10, %v2215_v18  ;;  %v1160_v13 = vmul.f32 %v1159_v11, %v2211_v16 }
 0x94a   :  { %v1945_v14 = vpack.c.bf16 %v1164_v12, %v1160_v13 }
 0x94b   :  { %v1171_v19 = vpop.permute.xlu0 %1170  ;;  %v1167_v20 = vpop.permute.xlu1 %1166 }
 0x94c   :  { %v1172_v21 = vmul.f32 %v1171_v19, %v2213_v17  ;;  %v1168_v23 = vmul.f32 %v1167_v20, %v2209_v15  ;;  %1946 = vmatprep.subr.bf16.mxu0 %v1945_v14 }
 0x94d   :  { %1948 = vmatpush3.bf16.msra.mxu0 %v1945_v14 }
 0x94e   :  { %v1949_v24 = vpack.c.bf16 %v1172_v21, %v1168_v23 }
 0x94f   :  { %v1180_v25 = vpop.permute.xlu0 %1179  ;;  %v1176_v26 = vpop.permute.xlu1 %1175 }
 0x950   :  { %v1177_v27 = vmul.f32 %v1176_v26, %v2217_v22  ;;  %1950 = vmatprep.subr.bf16.mxu0 %v1949_v24  ;;  %v1181_v31 = vmul.f32 %v1180_v25, %v2226_v30 }
 0x951   :  { %1952 = vmatpush3.bf16.msra.mxu0 %v1949_v24 }
 0x952   :  { %v1953_v28 = vpack.c.bf16 %v1177_v27, %v1150_v6 }
 0x953   :  { %v1184_v29 = vpop.permute.xlu1 %1183  ;;  %v1188_v33 = vpop.permute.xlu0 %1187 }
 0x954   :  { %v1185_v32 = vmul.f32 %v1184_v29, %v2229_v35  ;;  %1954 = vmatprep.subr.bf16.mxu0 %v1953_v28  ;;  %v1189_v36 = vmul.f32 %v1188_v33, %v2234_v41 }
 0x955   :  { %1956 = vmatpush3.bf16.msra.mxu0 %v1953_v28 }
 0x956   :  { %v1957_v34 = vpack.c.bf16 %v1185_v32, %v1181_v31 }
 0x958   :  { %1958 = vmatprep.subr.bf16.mxu0 %v1957_v34 }
 0x959   :  { %1960 = vmatpush3.bf16.msra.mxu0 %v1957_v34 }
 0x95a   :  { %1800 = vmatprep.subr.mxu0 %v1189_v36 }
 0x95d   :  { %1801 = vmatpush3.msra.mxu0 %v1189_v36 }
 0x95e   :  { %1803 = vmatmul.mubr.msk.f32.vlgmr.msra.gmra.mrb[10].mxu0 %vm168_vm0, %v1192_v37  ;;  %1988 = vmatprep.subr.bf16.mxu0 %v2049_v45  ;;  %v1363_v37 = vld [vmem:[%s2763_s18] sm:$0xff] }
 0x964   :  { %v1212_v38 = vpop.permute.xlu0 %1211  ;;  %v1207_v40 = vpop.permute.xlu1 %1206 }
 0xa31   :  { %v1804_v39 = vpop.f32.mrb[10].mxu0 }
 0xa32   :  { %v1292_v42 = vadd.f32 %v1804_v39, %v1212_v38  ;;  %v1286_v43 = vpop.f32.mrb[11].mxu0  ;;  %v1366_v38 = vld [vmem:[%s2763_s18 + $0x18] sm:$0xff]  ;;  %v1365_v39 = vld [vmem:[%s2763_s18 + $0x10] sm:$0xff] }
 0xa33   :  { %v1287_v44 = vadd.f32 %v1286_v43, %v1207_v40 }
 0xa34   :  { %v1296_v46 = vmax.f32 %v1292_v42, 0.0 }
 0xa35   :  { %v1295_v47 = vmax.f32 %v1287_v44, 0.0 }
 0xa36   :  { %1299 = vrot.lane.b32.xlu0 %v1296_v46, %s2819_s4 }
 0xa37   :  { %1297 = vrot.lane.b32.xlu1 %v1295_v47, %s2819_s4  ;;  %v1974_v48 = vpack.c.bf16 %v1296_v46, %v1295_v47 }
 0xa3a   :  { %1307 = vrot.lane.b32.xlu0 %v1296_v46, %s2818_s26 }
 0xa3b   :  { %1305 = vrot.lane.b32.xlu1 %v1295_v47, %s2818_s26 }
 0xa3e   :  { %1315 = vrot.lane.b32.xlu0 %v1296_v46, %s2820_s6 }
 0xa3f   :  { %1313 = vrot.lane.b32.xlu1 %v1295_v47, %s2820_s6 }
 0xa42   :  { %1323 = vrot.lane.b32.xlu0 %v1296_v46, %s2813_s1 }
 0xa43   :  { %1321 = vrot.lane.b32.xlu1 %v1295_v47, %s2813_s1 }
 0xa46   :  { %1333 = vrot.lane.b32.xlu0 %v1296_v46, %s2814_s2 }
 0xa47   :  { %1331 = vrot.lane.b32.xlu1 %v1295_v47, %s2814_s2 }
 0xa4a   :  { %1341 = vrot.lane.b32.xlu0 %v1296_v46, %s2808_s25 }
 0xa4b   :  { %1339 = vrot.lane.b32.xlu1 %v1295_v47, %s2808_s25 }
 0xa4e   :  { %1349 = vrot.lane.b32.xlu0 %v1296_v46, %s2809_s5 }
 0xa4f   :  { %1347 = vrot.lane.b32.xlu1 %v1295_v47, %s2809_s5 }
 0xa52   :  { %1357 = vrot.lane.b32.xlu0 %v1296_v46, %s2811_s8 }
 0xa53   :  { %1355 = vrot.lane.b32.xlu1 %v1295_v47, %s2811_s8 }
 0xa56   :  { %1394 = vperm.xlu0 %2025, %v1386_v50  }
 0xa57   :  { %1389 = vperm.xlu1 %2026, %v1385_v51  }
 0xaa8   :  { %v1300_v52 = vpop.permute.xlu0 %1299 }
 0xaa9   :  { %v1302_v53 = vmul.f32 %v1300_v52, %v2211_v16  ;;  %v1298_v54 = vpop.permute.xlu1 %1297 }
 0xaaa   :  { %v1301_v55 = vmul.f32 %v1298_v54, %v2211_v16  ;;  %v1568_v54 = vld [vmem:[%s2765_s21] sm:$0xff] }
 0xaac   :  { %v1962_v56 = vpack.c.bf16 %v1302_v53, %v1301_v55  ;;  %v1308_v58 = vpop.permute.xlu0 %1307  ;;  %v1547_v53 = vld [vmem:[%s2766_s20 + $0x8] sm:$0xff] }
 0xaad   :  { %v1310_v59 = vmul.f32 %v1308_v58, %v2215_v18  ;;  %v1306_v60 = vpop.permute.xlu1 %1305  ;;  %1707 = vmatprep.mubr.msk.f32.mxu0 %vm352_vm1, %v1547_v53 }
 0xaae   :  { %v1309_v61 = vmul.f32 %v1306_v60, %v2215_v18  ;;  %1963 = vmatpush1.bf16.msra.mxu1 %v1962_v56  ;;  %v1569_v56 = vld [vmem:[%s2765_s21 + $0x8] sm:$0xff] }
 0xaaf   :  { %1964 = vmatprep.subr.bf16.mxu1 %v2049_v45 }
 0xab0   :  { %v1965_v62 = vpack.c.bf16 %v1310_v59, %v1309_v61  ;;  %v1316_v63 = vpop.permute.xlu0 %1315 }
 0xab1   :  { %v1318_v1 = vmul.f32 %v1316_v63, %v2209_v15  ;;  %v1314_v2 = vpop.permute.xlu1 %1313 }
 0xab2   :  { %v1317_v57 = vmul.f32 %v1314_v2, %v2209_v15  ;;  %1966 = vmatpush1.bf16.msra.mxu1 %v1965_v62 }
 0xab3   :  { %1967 = vmatprep.subr.bf16.mxu1 %v2049_v45 }
 0xab4   :  { %v1968_v3 = vpack.c.bf16 %v1318_v1, %v1317_v57  ;;  %v1324_v4 = vpop.permute.xlu0 %1323 }
 0xab5   :  { %v1326_v6 = vmul.f32 %v1324_v4, %v2213_v17  ;;  %v1322_v7 = vpop.permute.xlu1 %1321 }
 0xab6   :  { %v1325_v8 = vmul.f32 %v1322_v7, %v2213_v17  ;;  %1969 = vmatpush1.bf16.msra.mxu1 %v1968_v3 }
 0xab7   :  { %1970 = vmatprep.subr.bf16.mxu1 %v2049_v45 }
 0xab8   :  { %v1971_v9 = vpack.c.bf16 %v1326_v6, %v1325_v8  ;;  %v1334_v10 = vpop.permute.xlu0 %1333 }
 0xab9   :  { %v1332_v11 = vpop.permute.xlu1 %1331  ;;  %v1336_v12 = vmul.f32 %v1334_v10, %v2217_v22 }
 0xaba   :  { %1972 = vmatpush1.bf16.msra.mxu1 %v1971_v9  ;;  %v1335_v13 = vmul.f32 %v1332_v11, %v2217_v22 }
 0xabb   :  { %1973 = vmatprep.subr.bf16.mxu1 %v2049_v45 }
 0xabc   :  { %v1342_v14 = vpop.permute.xlu0 %1341  ;;  %v1977_v20 = vpack.c.bf16 %v1336_v12, %v1335_v13 }
 0xabd   :  { %v1340_v19 = vpop.permute.xlu1 %1339  ;;  %v1344_v21 = vmul.f32 %v1342_v14, %v2226_v30 }
 0xabe   :  { %1975 = vmatpush1.bf16.msra.mxu1 %v1974_v48  ;;  %v1343_v23 = vmul.f32 %v1340_v19, %v2226_v30 }
 0xabf   :  { %1976 = vmatprep.subr.bf16.mxu1 %v2049_v45 }
 0xac0   :  { %v1350_v24 = vpop.permute.xlu0 %1349  ;;  %v1980_v26 = vpack.c.bf16 %v1344_v21, %v1343_v23 }
 0xac1   :  { %v1348_v25 = vpop.permute.xlu1 %1347  ;;  %v1352_v27 = vmul.f32 %v1350_v24, %v2229_v35 }
 0xac2   :  { %1978 = vmatpush1.bf16.msra.mxu1 %v1977_v20  ;;  %v1351_v28 = vmul.f32 %v1348_v25, %v2229_v35 }
 0xac3   :  { %1979 = vmatprep.subr.bf16.mxu1 %v2049_v45 }
 0xac4   :  { %v1358_v29 = vpop.permute.xlu0 %1357  ;;  %v1983_v32 = vpack.c.bf16 %v1352_v27, %v1351_v28 }
 0xac5   :  { %v1356_v31 = vpop.permute.xlu1 %1355  ;;  %v1360_v33 = vmul.f32 %v1358_v29, %v2234_v41 }
 0xac6   :  { %1981 = vmatpush1.bf16.msra.mxu1 %v1980_v26  ;;  %v1359_v34 = vmul.f32 %v1356_v31, %v2234_v41 }
 0xac7   :  { %1982 = vmatprep.subr.bf16.mxu1 %v2049_v45 }
 0xac8   :  { %v1986_v36 = vpack.c.bf16 %v1360_v33, %v1359_v34 }
 0xaca   :  { %1984 = vmatpush1.bf16.msra.mxu1 %v1983_v32 }
 0xacb   :  { %1985 = vmatprep.subr.bf16.mxu1 %v2049_v45 }
 0xace   :  { %1987 = vmatpush1.bf16.msra.mxu1 %v1986_v36  ;;  %v1546_v36 = vld [vmem:[%s2766_s20] sm:$0xff] }
 0xad1   :  { %1468 = vmatmul.mubr.f32.vlgmr.msra.gmra.mrb[10].mxu1 %v1363_v37 }
 0xad2   :  { %1706 = vmatprep.mubr.msk.f32.mxu1 %vm352_vm1, %v1366_v38 }
 0xad5   :  { %1473 = vmatmul.mubr.f32.gmra.mrb[12].mxu1 %v1365_v39  ;;  %v1395_v47 = vpop.permute.xlu0 %1394 }
 0xad6   :  { %v1390_v40 = vpop.permute.xlu1 %1389 }
 0xba4   :  { %v1469_v42 = vpop.f32.mrb[10].mxu1 }
 0xba5   :  { %v1470_v43 = vadd.f32 %v1469_v42, %v1390_v40  ;;  %v1471_v44 = vpop.f32.mrb[11].mxu1 }
 0xba7   :  { %v2662_v46 = vmax.f32 %v1470_v43, 0.0 }
 0xba8   :  { %v1474_v48 = vpop.f32.mrb[12].mxu1 }
 0xba9   :  { %v1475_v49 = vadd.f32 %v1474_v48, %v1395_v47  ;;  %v1476_v50 = vpop.f32.mrb[13].mxu1  ;;  %1480 = vrot.lane.b32.xlu1 %v2662_v46, %s2819_s4 }
 0xbab   :  { %v1479_v51 = vmax.f32 %v1475_v49, 0.0 }
 0xbad   :  { %1482 = vrot.lane.b32.xlu0 %v1479_v51, %s2819_s4  ;;  %1488 = vrot.lane.b32.xlu1 %v2662_v46, %s2818_s26  ;;  %v2001_v52 = vpack.c.bf16 %v1479_v51, %v2662_v46 }
 0xbb1   :  { %1490 = vrot.lane.b32.xlu0 %v1479_v51, %s2818_s26  ;;  %1496 = vrot.lane.b32.xlu1 %v2662_v46, %s2820_s6 }
 0xbb5   :  { %1498 = vrot.lane.b32.xlu0 %v1479_v51, %s2820_s6  ;;  %1504 = vrot.lane.b32.xlu1 %v2662_v46, %s2813_s1  ;;  %s2821_s6 = sld [smem:[#allocation12_spill]] }
 0xbb9   :  { %1506 = vrot.lane.b32.xlu0 %v1479_v51, %s2813_s1  ;;  %1514 = vrot.lane.b32.xlu1 %v2662_v46, %s2814_s2 }
 0xbbb   :  { %v1661_v55 = vld [vmem:[%s2821_s6] sm:$0xff] }
 0xbbd   :  { %1516 = vrot.lane.b32.xlu0 %v1479_v51, %s2814_s2  ;;  %1522 = vrot.lane.b32.xlu1 %v2662_v46, %s2808_s25 }
 0xbc1   :  { %1524 = vrot.lane.b32.xlu0 %v1479_v51, %s2808_s25  ;;  %1530 = vrot.lane.b32.xlu1 %v2662_v46, %s2809_s5 }
 0xbc5   :  { %1532 = vrot.lane.b32.xlu0 %v1479_v51, %s2809_s5  ;;  %1538 = vrot.lane.b32.xlu1 %v2662_v46, %s2811_s8 }
 0xbc9   :  { %1540 = vrot.lane.b32.xlu0 %v1479_v51, %s2811_s8  ;;  %1572 = vperm.xlu1 %2026, %v1568_v54  }
 0xbcd   :  { %1665 = vperm.xlu0 %2025, %v1661_v55   ;;  %1577 = vperm.xlu1 %2026, %v1569_v56  }
 0xc1b   :  { %v1481_v58 = vpop.permute.xlu1 %1480 }
 0xc1c   :  { %v1484_v61 = vmul.f32 %v1481_v58, %v2211_v16 }
 0xc1f   :  { %v1483_v59 = vpop.permute.xlu0 %1482  ;;  %v1489_v60 = vpop.permute.xlu1 %1488 }
 0xc20   :  { %v1485_v62 = vmul.f32 %v1483_v59, %v2211_v16  ;;  %v1492_v57 = vmul.f32 %v1489_v60, %v2215_v18 }
 0xc22   :  { %v1989_v63 = vpack.c.bf16 %v1485_v62, %v1484_v61 }
 0xc23   :  { %v1491_v1 = vpop.permute.xlu0 %1490  ;;  %v1497_v2 = vpop.permute.xlu1 %1496 }
 0xc24   :  { %v1493_v3 = vmul.f32 %v1491_v1, %v2215_v18  ;;  %1990 = vmatpush1.bf16.msra.mxu0 %v1989_v63  ;;  %v1500_v8 = vmul.f32 %v1497_v2, %v2209_v15 }
 0xc25   :  { %1991 = vmatprep.subr.bf16.mxu0 %v2049_v45 }
 0xc26   :  { %v1992_v4 = vpack.c.bf16 %v1493_v3, %v1492_v57 }
 0xc27   :  { %v1499_v6 = vpop.permute.xlu0 %1498  ;;  %v1505_v7 = vpop.permute.xlu1 %1504 }
 0xc28   :  { %v1501_v9 = vmul.f32 %v1499_v6, %v2209_v15  ;;  %1993 = vmatpush1.bf16.msra.mxu0 %v1992_v4  ;;  %v1508_v12 = vmul.f32 %v1505_v7, %v2213_v17 }
 0xc29   :  { %1994 = vmatprep.subr.bf16.mxu0 %v2049_v45 }
 0xc2a   :  { %v1995_v16 = vpack.c.bf16 %v1501_v9, %v1500_v8 }
 0xc2b   :  { %v1507_v10 = vpop.permute.xlu0 %1506  ;;  %v1515_v11 = vpop.permute.xlu1 %1514 }
 0xc2c   :  { %v1509_v18 = vmul.f32 %v1507_v10, %v2213_v17  ;;  %1996 = vmatpush1.bf16.msra.mxu0 %v1995_v16  ;;  %v1518_v21 = vmul.f32 %v1515_v11, %v2217_v22 }
 0xc2d   :  { %1997 = vmatprep.subr.bf16.mxu0 %v2049_v45 }
 0xc2e   :  { %v1998_v13 = vpack.c.bf16 %v1509_v18, %v1508_v12 }
 0xc2f   :  { %v1517_v14 = vpop.permute.xlu0 %1516  ;;  %v1523_v19 = vpop.permute.xlu1 %1522 }
 0xc30   :  { %1999 = vmatpush1.bf16.msra.mxu0 %v1998_v13  ;;  %v1519_v15 = vmul.f32 %v1517_v14, %v2217_v22  ;;  %v1526_v26 = vmul.f32 %v1523_v19, %v2226_v30 }
 0xc31   :  { %2000 = vmatprep.subr.bf16.mxu0 %v2049_v45 }
 0xc32   :  { %v2004_v23 = vpack.c.bf16 %v1519_v15, %v1518_v21 }
 0xc33   :  { %v1525_v20 = vpop.permute.xlu0 %1524  ;;  %v1531_v24 = vpop.permute.xlu1 %1530 }
 0xc34   :  { %2002 = vmatpush1.bf16.msra.mxu0 %v2001_v52  ;;  %v1527_v17 = vmul.f32 %v1525_v20, %v2226_v30  ;;  %v1534_v31 = vmul.f32 %v1531_v24, %v2229_v35 }
 0xc35   :  { %2003 = vmatprep.subr.bf16.mxu0 %v2049_v45 }
 0xc36   :  { %v2007_v27 = vpack.c.bf16 %v1527_v17, %v1526_v26 }
 0xc37   :  { %v1533_v25 = vpop.permute.xlu0 %1532  ;;  %v1539_v22 = vpop.permute.xlu1 %1538 }
 0xc38   :  { %2005 = vmatpush1.bf16.msra.mxu0 %v2004_v23  ;;  %v1535_v28 = vmul.f32 %v1533_v25, %v2229_v35  ;;  %v1542_v34 = vmul.f32 %v1539_v22, %v2234_v41  ;;  %v1549_v35 = vld [vmem:[%s2766_s20 + $0x18] sm:$0xff] }
 0xc39   :  { %2006 = vmatprep.subr.bf16.mxu0 %v2049_v45 }
 0xc3a   :  { %v2010_v32 = vpack.c.bf16 %v1535_v28, %v1534_v31 }
 0xc3b   :  { %v1541_v29 = vpop.permute.xlu0 %1540 }
 0xc3c   :  { %2008 = vmatpush1.bf16.msra.mxu0 %v2007_v27  ;;  %v1543_v33 = vmul.f32 %v1541_v29, %v2234_v41  ;;  %v1548_v41 = vld [vmem:[%s2766_s20 + $0x10] sm:$0xff] }
 0xc3d   :  { %2009 = vmatprep.subr.bf16.mxu0 %v2049_v45 }
 0xc3e   :  { %v2013_v30 = vpack.c.bf16 %v1543_v33, %v1542_v34 }
 0xc40   :  { %2011 = vmatpush1.bf16.msra.mxu0 %v2010_v32 }
 0xc41   :  { %2012 = vmatprep.subr.bf16.mxu0 %v2049_v45 }
 0xc44   :  { %2014 = vmatpush1.bf16.msra.mxu0 %v2013_v30 }
 0xc47   :  { %1651 = vmatmul.mubr.f32.vlgmr.msra.gmra.mrb[12].mxu0 %v1546_v36 }
 0xc48   :  { %1708 = vmatprep.mubr.msk.f32.mxu0 %vm352_vm1, %v1549_v35  ;;  %v1573_v37 = vpop.permute.xlu1 %1572 }
 0xc4b   :  { %1656 = vmatmul.mubr.f32.gmra.mrb[14].mxu0 %v1548_v41 }
 0xc4c   :  { %v1666_v44 = vpop.permute.xlu0 %1665  ;;  %v1578_v51 = vpop.permute.xlu1 %1577 }
 0xd1a   :  { %v1652_v45 = vpop.f32.mrb[12].mxu0 }
 0xd1b   :  { %v1653_v38 = vadd.f32 %v1652_v45, %v1573_v37  ;;  %v1654_v39 = vpop.f32.mrb[13].mxu0 }
 0xd1d   :  { %2035 = vtanh.f32 %v1653_v38 }
 0xd1e   :  { %v1657_v40 = vpop.f32.mrb[14].mxu0 }
 0xd1f   :  { %v1659_v42 = vpop.f32.mrb[15].mxu0  ;;  %v1658_v53 = vadd.f32 %v1657_v40, %v1578_v51 }
 0xd21   :  { %v1669_v56 = vadd.f32 %v1658_v53, %v2384_v0 }
 0xd27   :  { %v2036_v43 = vpop.eup %2035 }
 0xd28   :  { %v1668_v46 = vmul.f32 %v2036_v43, %v1666_v44 }
 0xd2a   :  { %v1673_v47 = vrot.slane %v1668_v46, 4  ;;  %v1670_v48 = vmul.f32 1.442695, %v1668_v46 }
 0xd2c   :  { %v1674_v49 = vadd.f32 %v1673_v47, %v1668_v46  ;;  %2037 = vpow2.f32 %v1670_v48 }
 0xd2e   :  { %v1675_v50 = vrot.slane %v1674_v49, 2 }
 0xd30   :  { %v1676_v52 = vadd.f32 %v1675_v50, %v1674_v49 }
 0xd32   :  { %v1677_v54 = vrot.slane %v1676_v52, 1 }
 0xd34   :  { %v1678_v55 = vadd.f32 %v1677_v54, %v1676_v52 }
 0xd36   :  { %v2038_v58 = vpop.eup %2037  ;;  %v1679_v59 = vadd.f32 %v1678_v55, %v2566_v5 }
 0xd37   :  { %v1672_v60 = vmul.f32 %v2038_v58, %v1669_v56 }
 0xd38   :  { %1682 = vst [vmem:[%s2822_s14] sm:$0x1] %v1679_v59 }
 0xd39   :  { %1680 = vst [vmem:[%s2760_s23] sm:$0xff] %v1672_v60 }

// kernel: flow_forward.3
= control target key start
LH: loop header
LB: loop body
LE: loop exit
PB: predicated region body
PF: predicated region fallthrough
CT: control target
= control target key end

     0   :  { %s4304_s0 = inlined_call_operand.vmem [shape: f32[10,256], index: 0, kind: input, shape index: {}]   ;;  %s4305_s1 = inlined_call_operand.vmem [shape: f32[4,512], index: 1, kind: input, shape index: {}]   ;;  %s4306_s2 = inlined_call_operand.vmem [shape: f32[8,72], index: 2, kind: input, shape index: {}]   ;;  %s4307_s3 = inlined_call_operand.vmem [shape: f32[8,1], index: 3, kind: input, shape index: {}]   ;;  %s4308_s4 = inlined_call_operand.vmem [shape: f32[8,72], index: 4, kind: input, shape index: {}]   ;;  %s4309_s5 = inlined_call_operand.vmem [shape: f32[8,1], index: 5, kind: input, shape index: {}]   ;;  %s4310_s6 = inlined_call_operand.vmem [shape: f32[8,72], index: 6, kind: input, shape index: {}]   ;;  %s4311_s7 = inlined_call_operand.vmem [shape: f32[8,1], index: 7, kind: input, shape index: {}]   ;;  %s4312_s8 = inlined_call_operand.vmem [shape: f32[4,1], index: 8, kind: input, shape index: {}]   ;;  %s4313_s9 = inlined_call_operand.vmem [shape: f32[8,72], index: 9, kind: input, shape index: {}]   ;;  %s4314_s10 = inlined_call_operand.vmem [shape: f32[8,1], index: 10, kind: input, shape index: {}]   ;;  %s4315_s11 = inlined_call_operand.vmem [shape: f32[8,72], index: 11, kind: input, shape index: {}]   ;;  %s4316_s12 = inlined_call_operand.vmem [shape: f32[8,1], index: 12, kind: input, shape index: {}]   ;;  %s4317_s13 = inlined_call_operand.vmem [shape: f32[8,72], index: 13, kind: input, shape index: {}]   ;;  %s4318_s14 = inlined_call_operand.vmem [shape: f32[8,1], index: 14, kind: input, shape index: {}]   ;;  %s4319_s15 = inlined_call_operand.vmem [shape: f32[4,1], index: 15, kind: input, shape index: {}]   ;;  %s4320_s16 = inlined_call_operand.vmem [shape: f32[8,72], index: 16, kind: input, shape index: {}]   ;;  %s4321_s17 = inlined_call_operand.vmem [shape: f32[8,1], index: 17, kind: input, shape index: {}]   ;;  %s4322_s18 = inlined_call_operand.vmem [shape: f32[8,72], index: 18, kind: input, shape index: {}]   ;;  %s4323_s19 = inlined_call_operand.vmem [shape: f32[8,1], index: 19, kind: input, shape index: {}]   ;;  %s4324_s20 = inlined_call_operand.vmem [shape: f32[8,72], index: 20, kind: input, shape index: {}]   ;;  %s4325_s21 = inlined_call_operand.vmem [shape: f32[8,1], index: 21, kind: input, shape index: {}]   ;;  %s4326_s22 = inlined_call_operand.vmem [shape: f32[4,1], index: 22, kind: input, shape index: {}]   ;;  %s4327_s23 = inlined_call_operand.vmem [shape: f32[4,512], index: 23, kind: output, shape index: {0}]   ;;  %s4328_s24 = inlined_call_operand.vmem [shape: f32[1,512], index: 24, kind: output, shape index: {1}]  }
   0x1   :  { %4335 = sst [smem:[#allocation3_spill]] %s4304_s0 }
   0x2   :  { %4336 = sst [smem:[#allocation4_spill]] %s4305_s1 }
   0x3   :  { %4337 = sst [smem:[#allocation5_spill]] %s4306_s2 }
   0x4   :  { %4338 = sst [smem:[#allocation6_spill]] %s4307_s3 }
   0x5   :  { %4339 = sst [smem:[#allocation7_spill]] %s4308_s4 }
   0x6   :  { %4340 = sst [smem:[#allocation8_spill]] %s4309_s5  ;;  %s3249_s5 = smov 0  }
   0x7   :  { %4341 = sst [smem:[#allocation9_spill]] %s4310_s6 }
   0x8   :  { %4342 = sst [smem:[#allocation10_spill]] %s4311_s7 }
   0x9   :  { %4343 = sst [smem:[#allocation11_spill]] %s4312_s8 }
   0xa LB: > { %s2817_s26 = sadd.s32 4294967295, %s3111_s5   ;;  %p2821_p0 = scmp.ge.s32.totalorder %s3111_s5, 1  ;;  %s3111_s5 = sphi %s3249_s5, %s35_s5  }
   0xb   : > { %p666_p1 = scmp.lt.s32.totalorder %s3111_s5, 3 }
   0xd   : > { %p667_p2 = pnand %p2821_p0, %p666_p1 }
   0xe   : > { %s2822_s27 = sshll.u32 (!%p667_p2), %s2817_s26, 1  ;;  %v760_v0 = vlaneseq (!%p667_p2)  ;;  %s4344_s2 = sld [smem:[#allocation3_spill]] (!%p667_p2)  ;;  %v3119_v11 = vmov (!%p667_p2), 0.0   ;;  %v3120_v12 = vmov (!%p667_p2), 0   ;;  %vm795_vm5 = vcmask (!%p667_p2), 1043456  }
   0xf   : > { %670 = sbr.rel (%p667_p2) target bundleno = 3437 (0xd6d), region = 112  ;;  %p737_p3 = scmp.lt.s32.totalorder (!%p667_p2), %s2822_s27, 3  ;;  %1044 = vmatprep.mubr.f32.mxu0 (!%p667_p2), %v3119_v11  ;;  %1227 = vmatprep.mubr.f32.mxu1 (!%p667_p2), %v3119_v11  ;;  %vm3399_vm6 = vmpackc.low (!%p667_p2), %vm795_vm5, %vm795_vm5  ;;  %vm976_vm10 = vcmask (!%p667_p2), 588800  }
  0x10   : > { %v3258_v1 = vshrl.u32 (!%p667_p2), %v760_v0, 7  ;;  %s4345_s25 = sld [smem:[#allocation4_spill]] (!%p667_p2)  ;;  %s3113_s4 = smov (!%p667_p2), 16   ;;  %3079 = vset.pattern.permute.xlu0 (!%p667_p2), %v3120_v12  ;;  %3080 = vset.pattern.permute.xlu1 (!%p667_p2), %v3120_v12  ;;  %v3335_v16 = vand.u32 (!%p667_p2), 127, %v760_v0  ;;  %vm2730_vm11 = vcmp.lt.s32.totalorder (!%p667_p2), %v760_v0, 256 }
  0x11   : > { %s3114_s1 = smov (!%p667_p2), 17   ;;  %s3115_s26 = smov (!%p667_p2), 15  }
  0x12   : > { %v3273_v4 = vsub.s32 (!%p667_p2), 0, %v3258_v1  ;;  %s4333_s28 = smov (!%p667_p2), 1   ;;  %s4331_s6 = smov (!%p667_p2), 127   ;;  %v809_v18 = vsub.s32 (!%p667_p2), 2, %v3258_v1  ;;  %vm804_vm0 = vcmp.lt.s32.totalorder (!%p667_p2), %v3335_v16, 16  ;;  %v851_v20 = vsub.s32 (!%p667_p2), 4, %v3258_v1 }
  0x13   : > { %s3118_s29 = smov (!%p667_p2), 113   ;;  %s3121_s0 = smov (!%p667_p2), 112   ;;  %v3341_v21 = vsub.s32 (!%p667_p2), 1, %v3258_v1  ;;  %v830_v22 = vsub.s32 (!%p667_p2), 3, %v3258_v1  ;;  %v876_v26 = vsub.s32 (!%p667_p2), 6, %v3258_v1  ;;  %vm825_vm1 = vcmp.lt.s32.totalorder (!%p667_p2), %v3335_v16, 15 }
  0x14   : > { %v3265_v2 = vld [vmem:[%s4344_s2] sm:$0xff] (!%p667_p2)  ;;  %v3270_v3 = vld [vmem:[%s4344_s2 + $0x8] sm:$0xff] (!%p667_p2)  ;;  %s3122_s30 = smov (!%p667_p2), 111   ;;  %vm846_vm2 = vcmp.lt.s32.totalorder (!%p667_p2), %v3335_v16, 1  ;;  %vm782_vm3 = vcmp.lt.s32.totalorder (!%p667_p2), %v3335_v16, 17  ;;  %vm871_vm4 = vcmp.lt.s32.totalorder (!%p667_p2), %v3335_v16, 127 }
  0x15   : > { %v763_v5 = vrot.slane (!%p667_p2), %v3265_v2, %v3273_v4  ;;  %v767_v6 = vrot.slane (!%p667_p2), %v3270_v3, %v3273_v4  ;;  %v3345_v23 = vrot.slane (!%p667_p2), %v3265_v2, %v809_v18  ;;  %v3349_v27 = vrot.slane (!%p667_p2), %v3270_v3, %v809_v18  ;;  %s4350_s3 = sld [smem:[#allocation8_spill]] (!%p667_p2) }
  0x16   : > { %s4359_s27 = smov (!%p737_p3, %s2822_s27), 3  ;;  %v3358_v30 = vrot.slane %v3270_v3, %v851_v20  ;;  %v3363_v31 = vrot.slane %v3265_v2, %v3341_v21  ;;  %v3367_v32 = vrot.slane %v3270_v3, %v3341_v21  ;;  %v3370_v33 = vrot.slane %v3270_v3, %v830_v22 }
  0x17   : > { %s4330_s7 = sshll.u32 %s4359_s27, 2  ;;  %v3287_v8 = vcombine.low %v763_v5, %v767_v6  ;;  %v3373_v34 = vrot.slane %v3265_v2, %v851_v20  ;;  %v3378_v38 = vrot.slane %v3270_v3, %v876_v26  ;;  %v3395_v48 = vrot.slane %v3265_v2, %v830_v22  ;;  %v755_v5 = vld [vmem:[%s4344_s2 + $0x10] sm:$0x3]  ;;  %v756_v6 = vld [vmem:[%s4344_s2 + $0x18] sm:$0x3] }
  0x18   : > { %s740_s8 = scalar_lea.vmem %s4345_s25, %s4330_s7  ;;  %v3408_v57 = vrot.slane %v3265_v2, %v876_v26  ;;  %v897_v59 = vsub.s32 7, %v3258_v1  ;;  %vm892_vm7 = vcmp.lt.s32.totalorder %v3335_v16, 113  ;;  %vm913_vm8 = vcmp.lt.s32.totalorder %v3335_v16, 112  ;;  %s4349_s25 = sld [smem:[#allocation5_spill]] }
  0x19   : > { %v3285_v7 = vld [vmem:[%s740_s8] sm:$0xff]  ;;  %s4346_s8 = sld [smem:[#allocation6_spill]]  ;;  %v3440_v20 = vrot.slane %v755_v5, %v3273_v4  ;;  %v3443_v22 = vrot.slane %v756_v6, %v3273_v4  ;;  %vm934_vm9 = vcmp.lt.s32.totalorder %v3335_v16, 111  ;;  %s4351_s7 = sld [smem:[#allocation7_spill]] }
  0x1a   : > { %v3291_v9 = vmul.f32 %v3287_v8, %v3285_v7  ;;  %v3435_v18 = vrot.slane %v3270_v3, %v897_v59 }
  0x1c   : > { %800 = vrot.lane.b32.xlu1 %v3291_v9, %s3113_s4  ;;  %776 = vrot.lane.b32.xlu0 %v3291_v9, %s3114_s1  ;;  %v3299_v10 = vcombine.high %v3291_v9, %v3291_v9 }
  0x1f   : > { %v970_v13 = vld [vmem:[%s4346_s8] sm:$0xff]  ;;  %s4352_s8 = sld [smem:[#allocation11_spill]] }
  0x20   : > { %821 = vrot.lane.b32.xlu0 %v3291_v9, %s3115_s26  ;;  %802 = vrot.lane.b32.xlu1 %v3299_v10, %s3113_s4 }
  0x24   : > { %842 = vrot.lane.b32.xlu0 %v3291_v9, %s4333_s28  ;;  %823 = vrot.lane.b32.xlu1 %v3299_v10, %s3115_s26 }
  0x28   : > { %844 = vrot.lane.b32.xlu1 %v3299_v10, %s4333_s28  ;;  %778 = vrot.lane.b32.xlu0 %v3299_v10, %s3114_s1 }
  0x2c   : > { %869 = vrot.lane.b32.xlu1 %v3299_v10, %s4331_s6  ;;  %867 = vrot.lane.b32.xlu0 %v3291_v9, %s4331_s6 }
  0x30   : > { %890 = vrot.lane.b32.xlu1 %v3299_v10, %s3118_s29  ;;  %888 = vrot.lane.b32.xlu0 %v3291_v9, %s3118_s29 }
  0x34   : > { %911 = vrot.lane.b32.xlu1 %v3299_v10, %s3121_s0  ;;  %909 = vrot.lane.b32.xlu0 %v3291_v9, %s3121_s0 }
  0x38   : > { %932 = vrot.lane.b32.xlu1 %v3299_v10, %s3122_s30  ;;  %930 = vrot.lane.b32.xlu0 %v3291_v9, %s3122_s30 }
  0x3c   : > { %973 = vperm.xlu0 %3079, %v970_v13  }
  0x8e   : > { %v801_v14 = vpop.permute.xlu1 %800  ;;  %v777_v15 = vpop.permute.xlu0 %776 }
  0x92   : > { %v822_v17 = vpop.permute.xlu0 %821  ;;  %v803_v19 = vpop.permute.xlu1 %802 }
  0x93   : > { %v805_v28 = vsel %vm804_vm0, %v801_v14, %v803_v19  ;;  %v806_v29 = vsel %vm804_vm0, %v803_v19, %v801_v14 }
  0x94   : > { %v815_v35 = vmul.f32 %v3345_v23, %v806_v29  ;;  %v816_v39 = vmul.f32 %v3349_v27, %v805_v28 }
  0x96   : > { %v843_v24 = vpop.permute.xlu0 %842  ;;  %v824_v25 = vpop.permute.xlu1 %823 }
  0x97   : > { %v826_v40 = vsel %vm825_vm1, %v822_v17, %v824_v25  ;;  %v827_v50 = vsel %vm825_vm1, %v824_v25, %v822_v17  ;;  %v3432_v17 = vrot.slane %v3265_v2, %v897_v59 }
  0x98   : > { %v837_v51 = vmul.f32 %v3370_v33, %v826_v40  ;;  %v836_v63 = vmul.f32 %v3395_v48, %v827_v50 }
  0x9a   : > { %v845_v36 = vpop.permute.xlu1 %844  ;;  %v779_v37 = vpop.permute.xlu0 %778 }
  0x9b   : > { %v847_v41 = vsel %vm846_vm2, %v843_v24, %v845_v36  ;;  %v783_v42 = vsel %vm782_vm3, %v777_v15, %v779_v37  ;;  %v784_v43 = vsel %vm782_vm3, %v779_v37, %v777_v15  ;;  %v848_v44 = vsel %vm846_vm2, %v845_v36, %v843_v24 }
  0x9c   : > { %v858_v45 = vmul.f32 %v3358_v30, %v847_v41  ;;  %v793_v46 = vmul.f32 %v3363_v31, %v784_v43  ;;  %v794_v47 = vmul.f32 %v3367_v32, %v783_v42  ;;  %v857_v56 = vmul.f32 %v3373_v34, %v848_v44 }
  0x9d   : > { %v3460_v36 = vrot.slane %v756_v6, %v3341_v21 }
  0x9e   : > { %v870_v52 = vpop.permute.xlu1 %869  ;;  %v868_v53 = vpop.permute.xlu0 %867  ;;  %v2892_v54 = vpack.c.bf16 %v816_v39, %v794_v47  ;;  %v2895_v55 = vpack.c.bf16 %v815_v35, %v793_v46  ;;  %v2898_v60 = vpack.c.bf16 %v858_v45, %v837_v51  ;;  %v2901_v14 = vpack.c.bf16 %v857_v56, %v836_v63 }
  0x9f   : > { %v873_v58 = vsel %vm871_vm4, %v870_v52, %v868_v53  ;;  %v872_v61 = vsel %vm871_vm4, %v868_v53, %v870_v52 }
  0xa0   : > { %v883_v62 = vmul.f32 %v3378_v38, %v873_v58  ;;  %2894 = vmatprep.subr.msk.bf16.mxu0 %vm3399_vm6, %v2892_v54  ;;  %v882_v15 = vmul.f32 %v3408_v57, %v872_v61 }
  0xa1   : > { %2897 = vmatpush1.bf16.msk.msra.mxu0 %vm3399_vm6, %v2895_v55 }
  0xa2   : > { %v891_v12 = vpop.permute.xlu1 %890  ;;  %2900 = vmatprep.subr.msk.bf16.mxu0 %vm3399_vm6, %v2898_v60  ;;  %v889_v13 = vpop.permute.xlu0 %888  ;;  %v2904_v19 = vpack.c.bf16 %v883_v62, %v3299_v10  ;;  %v2907_v28 = vpack.c.bf16 %v882_v15, %v3291_v9  ;;  %v3469_v9 = vrot.slane %v755_v5, %v3341_v21  ;;  %v951_v21 = vld [vmem:[%s4349_s25] sm:$0xff]  ;;  %s4355_s25 = smov 1  }
  0xa3   : > { %v893_v24 = vsel %vm892_vm7, %v889_v13, %v891_v12  ;;  %v894_v25 = vsel %vm892_vm7, %v891_v12, %v889_v13  ;;  %v1154_v60 = vld [vmem:[%s4350_s3] sm:$0xff]  ;;  %s4354_s3 = sld [smem:[#allocation9_spill]] }
  0xa4   : > { %v903_v37 = vmul.f32 %v3432_v17, %v893_v24  ;;  %v904_v39 = vmul.f32 %v3435_v18, %v894_v25 }
  0xa5   : > { %2903 = vmatpush1.bf16.msk.msra.mxu0 %vm3399_vm6, %v2901_v14 }
  0xa6   : > { %v912_v26 = vpop.permute.xlu1 %911  ;;  %2906 = vmatprep.subr.msk.bf16.mxu0 %vm3399_vm6, %v2904_v19  ;;  %v910_v10 = vpop.permute.xlu0 %909 }
  0xa7   : > { %v914_v29 = vsel %vm913_vm8, %v910_v10, %v912_v26  ;;  %v915_v35 = vsel %vm913_vm8, %v912_v26, %v910_v10 }
  0xa8   : > { %v924_v40 = vmul.f32 %v3440_v20, %v914_v29  ;;  %v925_v41 = vmul.f32 %v3443_v22, %v915_v35 }
  0xa9   : > { %2909 = vmatpush1.bf16.msk.msra.mxu0 %vm3399_vm6, %v2907_v28 }
  0xaa   : > { %v2910_v42 = vpack.c.bf16 %v925_v41, %v904_v39  ;;  %v2913_v43 = vpack.c.bf16 %v924_v40, %v903_v37  ;;  %v933_v44 = vpop.permute.xlu1 %932  ;;  %v931_v45 = vpop.permute.xlu0 %930 }
  0xab   : > { %v935_v46 = vsel %vm934_vm9, %v931_v45, %v933_v44  ;;  %v936_v47 = vsel %vm934_vm9, %v933_v44, %v931_v45 }
  0xac   : > { %2912 = vmatprep.subr.msk.bf16.mxu0 %vm3399_vm6, %v2910_v42  ;;  %v946_v50 = vmul.f32 %v3460_v36, %v936_v47  ;;  %v945_v51 = vmul.f32 %v3469_v9, %v935_v46 }
  0xad   : > { %2915 = vmatpush1.bf16.msk.msra.mxu0 %vm3399_vm6, %v2913_v43 }
  0xae   : > { %2854 = vmatprep.subr.msk.mxu0 %vm795_vm5, %v946_v50 }
  0xb1   : > { %2855 = vmatpush1.msk.msra.mxu0 %vm795_vm5, %v945_v51 }
  0xb2   : > { %2827 = vmatmul.mubr.msk.f32.vlgmr.msra.gmra.mrb[0].mxu0 %vm976_vm10, %v951_v21 }
  0xb3   : > { %1410 = vmatprep.mubr.f32.mxu0 %v3119_v11 }
  0xbb   : > { %v974_v52 = vpop.permute.xlu0 %973 }
 0x185   : > { %v1046_v53 = vpop.f32.mrb[0].mxu0 }
 0x186   : > { %v1047_v54 = vadd.f32 %v1046_v53, %v974_v52  ;;  %v1048_v55 = vpop.f32.mrb[1].mxu0 }
 0x187   : > { %v1049_v58 = vadd.f32 %v1048_v55, %v974_v52 }
 0x188   : > { %v3488_v56 = vmax.f32 %v1047_v54, 0.0 }
 0x189   : > { %v1052_v59 = vmax.f32 %v1049_v58, 0.0 }
 0x18a   : > { %1063 = vrot.lane.b32.xlu0 %v3488_v56, %s3113_s4  ;;  %1053 = vrot.lane.b32.xlu1 %v3488_v56, %s3114_s1 }
 0x18e   : > { %1073 = vrot.lane.b32.xlu0 %v3488_v56, %s3115_s26  ;;  %1055 = vrot.lane.b32.xlu1 %v1052_v59, %s3114_s1 }
 0x192   : > { %1083 = vrot.lane.b32.xlu0 %v3488_v56, %s4333_s28  ;;  %1065 = vrot.lane.b32.xlu1 %v1052_v59, %s3113_s4 }
 0x196   : > { %1095 = vrot.lane.b32.xlu0 %v3488_v56, %s4331_s6  ;;  %1075 = vrot.lane.b32.xlu1 %v1052_v59, %s3115_s26 }
 0x19a   : > { %1105 = vrot.lane.b32.xlu0 %v3488_v56, %s3118_s29  ;;  %1085 = vrot.lane.b32.xlu1 %v1052_v59, %s4333_s28 }
 0x19e   : > { %1115 = vrot.lane.b32.xlu0 %v3488_v56, %s3121_s0  ;;  %1097 = vrot.lane.b32.xlu1 %v1052_v59, %s4331_s6 }
 0x1a2   : > { %1125 = vrot.lane.b32.xlu0 %v3488_v56, %s3122_s30  ;;  %1107 = vrot.lane.b32.xlu1 %v1052_v59, %s3118_s29 }
 0x1a6   : > { %1157 = vperm.xlu0 %3079, %v1154_v60   ;;  %1117 = vrot.lane.b32.xlu1 %v1052_v59, %s3121_s0 }
 0x1aa   : > { %1127 = vrot.lane.b32.xlu1 %v1052_v59, %s3122_s30 }
 0x1fc   : > { %v1064_v61 = vpop.permute.xlu0 %1063  ;;  %v1054_v62 = vpop.permute.xlu1 %1053 }
 0x200   : > { %v1074_v63 = vpop.permute.xlu0 %1073  ;;  %v1056_v5 = vpop.permute.xlu1 %1055 }
 0x201   : > { %v1058_v6 = vsel %vm782_vm3, %v1056_v5, %v1054_v62  ;;  %v1057_v12 = vsel %vm782_vm3, %v1054_v62, %v1056_v5 }
 0x202   : > { %v1060_v24 = vmul.f32 %v1057_v12, %v3367_v32  ;;  %v1059_v26 = vmul.f32 %v1058_v6, %v3363_v31 }
 0x204   : > { %v1084_v13 = vpop.permute.xlu0 %1083  ;;  %v1066_v14 = vpop.permute.xlu1 %1065 }
 0x205   : > { %v1068_v15 = vsel %vm804_vm0, %v1066_v14, %v1064_v61  ;;  %v1067_v19 = vsel %vm804_vm0, %v1064_v61, %v1066_v14 }
 0x206   : > { %v1070_v25 = vmul.f32 %v1067_v19, %v3349_v27  ;;  %v1069_v10 = vmul.f32 %v1068_v15, %v3345_v23 }
 0x208   : > { %v1076_v28 = vpop.permute.xlu1 %1075  ;;  %v2916_v29 = vpack.c.bf16 %v1070_v25, %v1060_v24  ;;  %v2918_v35 = vpack.c.bf16 %v1069_v10, %v1059_v26  ;;  %v1096_v37 = vpop.permute.xlu0 %1095 }
 0x209   : > { %v1077_v39 = vsel %vm825_vm1, %v1074_v63, %v1076_v28  ;;  %v1078_v40 = vsel %vm825_vm1, %v1076_v28, %v1074_v63 }
 0x20a   : > { %2917 = vmatprep.subr.bf16.mxu1 %v2916_v29  ;;  %v1079_v44 = vmul.f32 %v1078_v40, %v3395_v48  ;;  %v1080_v45 = vmul.f32 %v1077_v39, %v3370_v33  ;;  %v1135_v39 = vld [vmem:[%s4351_s7] sm:$0xff] }
 0x20b   : > { %2919 = vmatpush1.bf16.msra.mxu1 %v2918_v35 }
 0x20c   : > { %v1086_v41 = vpop.permute.xlu1 %1085  ;;  %v1106_v50 = vpop.permute.xlu0 %1105 }
 0x20d   : > { %v1087_v42 = vsel %vm846_vm2, %v1084_v13, %v1086_v41  ;;  %v1088_v43 = vsel %vm846_vm2, %v1086_v41, %v1084_v13 }
 0x20e   : > { %v1089_v46 = vmul.f32 %v1088_v43, %v3373_v34  ;;  %v1090_v47 = vmul.f32 %v1087_v42, %v3358_v30 }
 0x210   : > { %v1098_v51 = vpop.permute.xlu1 %1097  ;;  %v2920_v21 = vpack.c.bf16 %v1090_v47, %v1080_v45  ;;  %v2922_v52 = vpack.c.bf16 %v1089_v46, %v1079_v44  ;;  %v1116_v63 = vpop.permute.xlu0 %1115  ;;  %v1417_v47 = vld [vmem:[%s4352_s8] sm:$0xf]  ;;  %s4356_s8 = smov 127  }
 0x211   : > { %v1099_v53 = vsel %vm871_vm4, %v1096_v37, %v1098_v51  ;;  %v1100_v54 = vsel %vm871_vm4, %v1098_v51, %v1096_v37 }
 0x212   : > { %v1101_v55 = vmul.f32 %v1099_v53, %v3408_v57  ;;  %v1102_v58 = vmul.f32 %v1100_v54, %v3378_v38  ;;  %2921 = vmatprep.subr.bf16.mxu1 %v2920_v21 }
 0x213   : > { %2923 = vmatpush1.bf16.msra.mxu1 %v2922_v52 }
 0x214   : > { %v1108_v60 = vpop.permute.xlu1 %1107  ;;  %v2924_v61 = vpack.c.bf16 %v1102_v58, %v1052_v59  ;;  %v2926_v62 = vpack.c.bf16 %v1101_v55, %v3488_v56  ;;  %v1126_v24 = vpop.permute.xlu0 %1125 }
 0x215   : > { %v1109_v5 = vsel %vm892_vm7, %v1106_v50, %v1108_v60  ;;  %v1110_v6 = vsel %vm892_vm7, %v1108_v60, %v1106_v50 }
 0x216   : > { %2925 = vmatprep.subr.bf16.mxu1 %v2924_v61  ;;  %v1111_v59 = vmul.f32 %v1109_v5, %v3432_v17  ;;  %v1112_v56 = vmul.f32 %v1110_v6, %v3435_v18 }
 0x217   : > { %2927 = vmatpush1.bf16.msra.mxu1 %v2926_v62 }
 0x218   : > { %v1118_v12 = vpop.permute.xlu1 %1117 }
 0x219   : > { %v1119_v13 = vsel %vm913_vm8, %v1116_v63, %v1118_v12  ;;  %v1120_v14 = vsel %vm913_vm8, %v1118_v12, %v1116_v63 }
 0x21a   : > { %v1121_v15 = vmul.f32 %v1119_v13, %v3440_v20  ;;  %v1122_v19 = vmul.f32 %v1120_v14, %v3443_v22 }
 0x21c   : > { %v1128_v25 = vpop.permute.xlu1 %1127  ;;  %v2928_v26 = vpack.c.bf16 %v1122_v19, %v1112_v56  ;;  %v2930_v10 = vpack.c.bf16 %v1121_v15, %v1111_v59 }
 0x21d   : > { %v1130_v28 = vsel %vm934_vm9, %v1128_v25, %v1126_v24  ;;  %v1129_v29 = vsel %vm934_vm9, %v1126_v24, %v1128_v25 }
 0x21e   : > { %2929 = vmatprep.subr.bf16.mxu1 %v2928_v26  ;;  %v1132_v35 = vmul.f32 %v1130_v28, %v3460_v36  ;;  %v1131_v37 = vmul.f32 %v1129_v29, %v3469_v9 }
 0x21f   : > { %2931 = vmatpush1.bf16.msra.mxu1 %v2930_v10 }
 0x220   : > { %1179 = vmatprep.subr.mxu1 %v1132_v35 }
 0x223   : > { %1180 = vmatpush1.msra.mxu1 %v1131_v37 }
 0x224   : > { %2828 = vmatmul.mubr.msk.f32.vlgmr.msra.gmra.mrb[0].mxu1 %vm976_vm10, %v1135_v39 }
 0x225   : > { %1671 = vmatprep.mubr.f32.mxu1 %v3119_v11  ;;  %v1158_v40 = vpop.permute.xlu0 %1157 }
 0x2f7   : > { %v1229_v41 = vpop.f32.mrb[0].mxu1 }
 0x2f8   : > { %v1230_v42 = vadd.f32 %v1229_v41, %v1158_v40  ;;  %v1231_v43 = vpop.f32.mrb[1].mxu1 }
 0x2f9   : > { %v1232_v44 = vadd.f32 %v1231_v43, %v1158_v40 }
 0x2fa   : > { %v3571_v45 = vmax.f32 %v1230_v42, 0.0 }
 0x2fb   : > { %v3573_v46 = vmax.f32 %v1232_v44, 0.0 }
 0x2fc   : > { %1236 = vrot.lane.b32.xlu1 %v3571_v45, %s3114_s1 }
 0x2fd   : > { %1238 = vrot.lane.b32.xlu0 %v3573_v46, %s3114_s1 }
 0x300   : > { %1246 = vrot.lane.b32.xlu1 %v3571_v45, %s3113_s4 }
 0x301   : > { %1248 = vrot.lane.b32.xlu0 %v3573_v46, %s3113_s4 }
 0x304   : > { %1256 = vrot.lane.b32.xlu1 %v3571_v45, %s3115_s26 }
 0x305   : > { %1258 = vrot.lane.b32.xlu0 %v3573_v46, %s3115_s26 }
 0x308   : > { %1266 = vrot.lane.b32.xlu1 %v3571_v45, %s4333_s28 }
 0x309   : > { %1268 = vrot.lane.b32.xlu0 %v3573_v46, %s4333_s28  ;;  %s4353_s28 = sld [smem:[#allocation10_spill]] }
 0x30c   : > { %1278 = vrot.lane.b32.xlu1 %v3571_v45, %s4331_s6 }
 0x30d   : > { %1280 = vrot.lane.b32.xlu0 %v3573_v46, %s4331_s6 }
 0x30f   : > { %v1337_v50 = vld [vmem:[%s4353_s28] sm:$0xff] }
 0x310   : > { %1288 = vrot.lane.b32.xlu1 %v3571_v45, %s3118_s29 }
 0x311   : > { %1290 = vrot.lane.b32.xlu0 %v3573_v46, %s3118_s29 }
 0x314   : > { %1298 = vrot.lane.b32.xlu1 %v3571_v45, %s3121_s0 }
 0x315   : > { %1300 = vrot.lane.b32.xlu0 %v3573_v46, %s3121_s0 }
 0x318   : > { %1308 = vrot.lane.b32.xlu1 %v3571_v45, %s3122_s30 }
 0x319   : > { %1310 = vrot.lane.b32.xlu0 %v3573_v46, %s3122_s30 }
 0x31c   : > { %1340 = vperm.xlu1 %3080, %v1337_v50  }
 0x31d   : > { %1422 = vperm.xlu0 %3079, %v1417_v47  }
 0x36e   : > { %v1237_v51 = vpop.permute.xlu1 %1236 }
 0x36f   : > { %v1239_v21 = vpop.permute.xlu0 %1238 }
 0x370   : > { %v1240_v52 = vsel %vm782_vm3, %v1237_v51, %v1239_v21  ;;  %v1241_v53 = vsel %vm782_vm3, %v1239_v21, %v1237_v51 }
 0x371   : > { %v1242_v61 = vmul.f32 %v1241_v53, %v3363_v31  ;;  %v1243_v62 = vmul.f32 %v1240_v52, %v3367_v32 }
 0x372   : > { %v1247_v54 = vpop.permute.xlu1 %1246 }
 0x373   : > { %v1249_v55 = vpop.permute.xlu0 %1248 }
 0x374   : > { %v1250_v58 = vsel %vm804_vm0, %v1247_v54, %v1249_v55  ;;  %v1251_v60 = vsel %vm804_vm0, %v1249_v55, %v1247_v54 }
 0x375   : > { %v1252_v63 = vmul.f32 %v1251_v60, %v3345_v23  ;;  %v1253_v5 = vmul.f32 %v1250_v58, %v3349_v27 }
 0x376   : > { %v1257_v6 = vpop.permute.xlu1 %1256 }
 0x377   : > { %v2934_v12 = vpack.c.bf16 %v1252_v63, %v1242_v61  ;;  %v1259_v13 = vpop.permute.xlu0 %1258  ;;  %v2932_v14 = vpack.c.bf16 %v1253_v5, %v1243_v62 }
 0x378   : > { %v1260_v59 = vsel %vm825_vm1, %v1257_v6, %v1259_v13  ;;  %v1261_v56 = vsel %vm825_vm1, %v1259_v13, %v1257_v6 }
 0x379   : > { %2933 = vmatprep.subr.bf16.mxu0 %v2932_v14  ;;  %v1262_v26 = vmul.f32 %v1261_v56, %v3395_v48  ;;  %v1263_v10 = vmul.f32 %v1260_v59, %v3370_v33 }
 0x37a   : > { %2935 = vmatpush1.bf16.msra.mxu0 %v2934_v12  ;;  %v1267_v15 = vpop.permute.xlu1 %1266 }
 0x37b   : > { %v1269_v19 = vpop.permute.xlu0 %1268 }
 0x37c   : > { %v1270_v24 = vsel %vm846_vm2, %v1267_v15, %v1269_v19  ;;  %v1271_v25 = vsel %vm846_vm2, %v1269_v19, %v1267_v15  ;;  %v1318_v15 = vld [vmem:[%s4354_s3] sm:$0xff]  ;;  %v758_v19 = vsub.f32 1.0, %v3265_v2 }
 0x37d   : > { %v1272_v28 = vmul.f32 %v1271_v25, %v3373_v34  ;;  %v1273_v29 = vmul.f32 %v1270_v24, %v3358_v30  ;;  %v759_v24 = vsub.f32 1.0, %v3270_v3 }
 0x37e   : > { %v1279_v35 = vpop.permute.xlu1 %1278 }
 0x37f   : > { %v2938_v37 = vpack.c.bf16 %v1272_v28, %v1262_v26  ;;  %v1281_v39 = vpop.permute.xlu0 %1280  ;;  %v2936_v40 = vpack.c.bf16 %v1273_v29, %v1263_v10  ;;  %v3673_v26 = vrot.slane %v758_v19, %v3273_v4  ;;  %v3678_v28 = vrot.slane %v759_v24, %v3273_v4 }
 0x380   : > { %v1282_v41 = vsel %vm871_vm4, %v1279_v35, %v1281_v39  ;;  %v1283_v42 = vsel %vm871_vm4, %v1281_v39, %v1279_v35 }
 0x381   : > { %v1284_v43 = vmul.f32 %v1282_v41, %v3408_v57  ;;  %v1285_v44 = vmul.f32 %v1283_v42, %v3378_v38  ;;  %2937 = vmatprep.subr.bf16.mxu0 %v2936_v40 }
 0x382   : > { %2939 = vmatpush1.bf16.msra.mxu0 %v2938_v37  ;;  %v1289_v47 = vpop.permute.xlu1 %1288 }
 0x383   : > { %v2942_v50 = vpack.c.bf16 %v1284_v43, %v3571_v45  ;;  %v1291_v51 = vpop.permute.xlu0 %1290  ;;  %v2940_v21 = vpack.c.bf16 %v1285_v44, %v3573_v46 }
 0x384   : > { %v1292_v52 = vsel %vm892_vm7, %v1289_v47, %v1291_v51  ;;  %v1293_v53 = vsel %vm892_vm7, %v1291_v51, %v1289_v47 }
 0x385   : > { %2941 = vmatprep.subr.bf16.mxu0 %v2940_v21  ;;  %v1294_v45 = vmul.f32 %v1292_v52, %v3432_v17  ;;  %v1295_v46 = vmul.f32 %v1293_v53, %v3435_v18 }
 0x386   : > { %2943 = vmatpush1.bf16.msra.mxu0 %v2942_v50  ;;  %v1299_v54 = vpop.permute.xlu1 %1298 }
 0x387   : > { %v1301_v55 = vpop.permute.xlu0 %1300 }
 0x388   : > { %v1302_v58 = vsel %vm913_vm8, %v1299_v54, %v1301_v55  ;;  %v1303_v60 = vsel %vm913_vm8, %v1301_v55, %v1299_v54 }
 0x389   : > { %v1304_v61 = vmul.f32 %v1302_v58, %v3440_v20  ;;  %v1305_v62 = vmul.f32 %v1303_v60, %v3443_v22 }
 0x38a   : > { %v1309_v63 = vpop.permute.xlu1 %1308 }
 0x38b   : > { %v2946_v5 = vpack.c.bf16 %v1304_v61, %v1294_v45  ;;  %v1311_v6 = vpop.permute.xlu0 %1310  ;;  %v2944_v12 = vpack.c.bf16 %v1305_v62, %v1295_v46  ;;  %v1473_v45 = vcombine.low %v3673_v26, %v3678_v28 }
 0x38c   : > { %v1313_v13 = vsel %vm934_vm9, %v1311_v6, %v1309_v63  ;;  %v1312_v14 = vsel %vm934_vm9, %v1309_v63, %v1311_v6 }
 0x38d   : > { %2945 = vmatprep.subr.bf16.mxu0 %v2944_v12  ;;  %v1315_v59 = vmul.f32 %v1313_v13, %v3460_v36  ;;  %v1314_v56 = vmul.f32 %v1312_v14, %v3469_v9 }
 0x38e   : > { %2947 = vmatpush1.bf16.msra.mxu0 %v2946_v5 }
 0x38f   : > { %1362 = vmatprep.subr.mxu0 %v1315_v59 }
 0x392   : > { %1363 = vmatpush1.msra.mxu0 %v1314_v56 }
 0x393   : > { %2829 = vmatmul.mubr.msk.f32.vlgmr.msra.gmra.mrb[2].mxu0 %vm976_vm10, %v1318_v15 }
 0x394   : > { %1854 = vmatprep.mubr.f32.mxu0 %v3119_v11 }
 0x39b   : > { %v1341_v25 = vpop.permute.xlu1 %1340 }
 0x39c   : > { %v1423_v43 = vpop.permute.xlu0 %1422 }
 0x466   : > { %v1412_v10 = vpop.f32.mrb[2].mxu0 }
 0x467   : > { %v1413_v29 = vadd.f32 %v1412_v10, %v1341_v25  ;;  %v1414_v35 = vpop.f32.mrb[3].mxu0 }
 0x468   : > { %v1415_v37 = vadd.f32 %v1414_v35, %v1341_v25 }
 0x469   : > { %3081 = vtanh.f32 %v1413_v29  ;;  %v1437_v39 = vmul.f32 %v3673_v26, %v1413_v29 }
 0x46a   : > { %3083 = vtanh.f32 %v1415_v37  ;;  %v1438_v40 = vmul.f32 %v3678_v28, %v1415_v37 }
 0x46c   : > { %v1441_v41 = vcombine.high %v1437_v39, %v1438_v40 }
 0x46e   : > { %v1443_v58 = vadd.f32 %v1441_v41, %v3285_v7  ;;  %v1598_v7 = vld [vmem:[%s4314_s10] sm:$0xff] }
 0x473   : > { %v3082_v42 = vpop.eup %3081 }
 0x474   : > { %v3084_v44 = vpop.eup %3083  ;;  %v1425_v47 = vmul.f32 %v3082_v42, %v1423_v43 }
 0x475   : > { %v1426_v50 = vmul.f32 %v3084_v44, %v1423_v43 }
 0x476   : > { %v3683_v51 = vmul.f32 %v3673_v26, %v1425_v47 }
 0x477   : > { %v3686_v21 = vmul.f32 %v3678_v28, %v1426_v50 }
 0x478   : > { %v1444_v52 = vmul.f32 1.442695, %v3683_v51  ;;  %v1453_v2 = vsel %vm795_vm5, %v3683_v51, 0.0 }
 0x479   : > { %v1446_v53 = vmul.f32 1.442695, %v3686_v21  ;;  %v1460_v3 = vsel %vm795_vm5, %v3686_v21, 0.0 }
 0x47a   : > { %3085 = vpow2.f32 %v1444_v52 }
 0x47b   : > { %3087 = vpow2.f32 %v1446_v53 }
 0x484   : > { %v3086_v54 = vpop.eup %3085 }
 0x485   : > { %v3088_v55 = vpop.eup %3087 }
 0x486   : > { %v1450_v60 = vcombine.low %v3086_v54, %v3088_v55 }
 0x488   : > { %v3693_v46 = vmul.f32 %v1450_v60, %v1443_v58 }
 0x48a   : > { %v3696_v61 = vmul.f32 %v1473_v45, %v3693_v46 }
 0x48c   : > { %1479 = vrot.lane.b32.xlu1 %v3696_v61, %s3114_s1  ;;  %v1477_v62 = vcombine.high %v3696_v61, %v3696_v61 }
 0x48e   : > { %1481 = vrot.lane.b32.xlu0 %v1477_v62, %s3114_s1 }
 0x490   : > { %1491 = vrot.lane.b32.xlu1 %v3696_v61, %s3113_s4 }
 0x492   : > { %1493 = vrot.lane.b32.xlu0 %v1477_v62, %s3113_s4 }
 0x494   : > { %1503 = vrot.lane.b32.xlu1 %v3696_v61, %s3115_s26 }
 0x496   : > { %1505 = vrot.lane.b32.xlu0 %v1477_v62, %s3115_s26 }
 0x498   : > { %1515 = vrot.lane.b32.xlu1 %v3696_v61, %s4355_s25 }
 0x49a   : > { %1517 = vrot.lane.b32.xlu0 %v1477_v62, %s4355_s25 }
 0x49c   : > { %1531 = vrot.lane.b32.xlu1 %v3696_v61, %s4356_s8 }
 0x49e   : > { %1533 = vrot.lane.b32.xlu0 %v1477_v62, %s4356_s8 }
 0x4a0   : > { %1543 = vrot.lane.b32.xlu1 %v3696_v61, %s3118_s29 }
 0x4a2   : > { %1545 = vrot.lane.b32.xlu0 %v1477_v62, %s3118_s29 }
 0x4a4   : > { %1555 = vrot.lane.b32.xlu1 %v3696_v61, %s3121_s0 }
 0x4a6   : > { %1557 = vrot.lane.b32.xlu0 %v1477_v62, %s3121_s0 }
 0x4a8   : > { %1567 = vrot.lane.b32.xlu1 %v3696_v61, %s3122_s30 }
 0x4aa   : > { %1569 = vrot.lane.b32.xlu0 %v1477_v62, %s3122_s30 }
 0x4ac   : > { %1601 = vperm.xlu1 %3080, %v1598_v7  }
 0x4fe   : > { %v1480_v63 = vpop.permute.xlu1 %1479 }
 0x500   : > { %v1482_v5 = vpop.permute.xlu0 %1481 }
 0x501   : > { %v1483_v12 = vsel %vm782_vm3, %v1480_v63, %v1482_v5  ;;  %v1484_v13 = vsel %vm782_vm3, %v1482_v5, %v1480_v63 }
 0x502   : > { %v1492_v6 = vpop.permute.xlu1 %1491  ;;  %v1485_v15 = vmul.f32 %v1484_v13, %v3363_v31  ;;  %v1486_v25 = vmul.f32 %v1483_v12, %v3367_v32 }
 0x504   : > { %v1494_v14 = vpop.permute.xlu0 %1493 }
 0x505   : > { %v1495_v59 = vsel %vm804_vm0, %v1492_v6, %v1494_v14  ;;  %v1496_v56 = vsel %vm804_vm0, %v1494_v14, %v1492_v6 }
 0x506   : > { %v1497_v10 = vmul.f32 %v1496_v56, %v3345_v23  ;;  %v1498_v29 = vmul.f32 %v1495_v59, %v3349_v27  ;;  %v1504_v35 = vpop.permute.xlu1 %1503 }
 0x508   : > { %v2948_v37 = vpack.c.bf16 %v1498_v29, %v1486_v25  ;;  %v2951_v39 = vpack.c.bf16 %v1497_v10, %v1485_v15  ;;  %v1506_v40 = vpop.permute.xlu0 %1505 }
 0x509   : > { %v1507_v42 = vsel %vm825_vm1, %v1504_v35, %v1506_v40  ;;  %v1508_v43 = vsel %vm825_vm1, %v1506_v40, %v1504_v35 }
 0x50a   : > { %v1516_v41 = vpop.permute.xlu1 %1515  ;;  %2950 = vmatprep.subr.msk.bf16.mxu1 %vm3399_vm6, %v2948_v37  ;;  %v1509_v52 = vmul.f32 %v1508_v43, %v3395_v48  ;;  %v1510_v53 = vmul.f32 %v1507_v42, %v3370_v33 }
 0x50b   : > { %2953 = vmatpush1.bf16.msk.msra.mxu1 %vm3399_vm6, %v2951_v39 }
 0x50c   : > { %v1518_v44 = vpop.permute.xlu0 %1517 }
 0x50d   : > { %v1519_v47 = vsel %vm846_vm2, %v1516_v41, %v1518_v44  ;;  %v1520_v50 = vsel %vm846_vm2, %v1518_v44, %v1516_v41 }
 0x50e   : > { %v1521_v54 = vmul.f32 %v1520_v50, %v3373_v34  ;;  %v1522_v55 = vmul.f32 %v1519_v47, %v3358_v30  ;;  %v1532_v58 = vpop.permute.xlu1 %1531 }
 0x510   : > { %v2954_v60 = vpack.c.bf16 %v1522_v55, %v1510_v53  ;;  %v2957_v45 = vpack.c.bf16 %v1521_v54, %v1509_v52  ;;  %v1534_v7 = vpop.permute.xlu0 %1533  ;;  %v1579_v54 = vld [vmem:[%s4313_s9] sm:$0xff] }
 0x511   : > { %v1535_v63 = vsel %vm871_vm4, %v1532_v58, %v1534_v7  ;;  %v1536_v5 = vsel %vm871_vm4, %v1534_v7, %v1532_v58 }
 0x512   : > { %v1537_v6 = vmul.f32 %v1535_v63, %v3408_v57  ;;  %v1538_v12 = vmul.f32 %v1536_v5, %v3378_v38  ;;  %v1544_v13 = vpop.permute.xlu1 %1543  ;;  %2956 = vmatprep.subr.msk.bf16.mxu1 %vm3399_vm6, %v2954_v60 }
 0x513   : > { %2959 = vmatpush1.bf16.msk.msra.mxu1 %vm3399_vm6, %v2957_v45 }
 0x514   : > { %v2960_v14 = vpack.c.bf16 %v1538_v12, %v1477_v62  ;;  %v2963_v59 = vpack.c.bf16 %v1537_v6, %v3696_v61  ;;  %v1546_v56 = vpop.permute.xlu0 %1545  ;;  %v1781_v6 = vld [vmem:[%s4316_s12] sm:$0xff] }
 0x515   : > { %v1547_v25 = vsel %vm892_vm7, %v1544_v13, %v1546_v56  ;;  %v1548_v10 = vsel %vm892_vm7, %v1546_v56, %v1544_v13 }
 0x516   : > { %v1556_v15 = vpop.permute.xlu1 %1555  ;;  %2962 = vmatprep.subr.msk.bf16.mxu1 %vm3399_vm6, %v2960_v14  ;;  %v1549_v35 = vmul.f32 %v1547_v25, %v3432_v17  ;;  %v1550_v37 = vmul.f32 %v1548_v10, %v3435_v18 }
 0x517   : > { %2965 = vmatpush1.bf16.msk.msra.mxu1 %vm3399_vm6, %v2963_v59 }
 0x518   : > { %v1558_v29 = vpop.permute.xlu0 %1557 }
 0x519   : > { %v1559_v62 = vsel %vm913_vm8, %v1556_v15, %v1558_v29  ;;  %v1560_v61 = vsel %vm913_vm8, %v1558_v29, %v1556_v15 }
 0x51a   : > { %v1561_v39 = vmul.f32 %v1559_v62, %v3440_v20  ;;  %v1562_v40 = vmul.f32 %v1560_v61, %v3443_v22  ;;  %v1568_v43 = vpop.permute.xlu1 %1567 }
 0x51c   : > { %v2966_v41 = vpack.c.bf16 %v1562_v40, %v1550_v37  ;;  %v2969_v42 = vpack.c.bf16 %v1561_v39, %v1549_v35  ;;  %v1570_v44 = vpop.permute.xlu0 %1569 }
 0x51d   : > { %v1572_v47 = vsel %vm934_vm9, %v1570_v44, %v1568_v43  ;;  %v1571_v50 = vsel %vm934_vm9, %v1568_v43, %v1570_v44 }
 0x51e   : > { %v1574_v52 = vmul.f32 %v1572_v47, %v3460_v36  ;;  %2968 = vmatprep.subr.msk.bf16.mxu1 %vm3399_vm6, %v2966_v41  ;;  %v1573_v53 = vmul.f32 %v1571_v50, %v3469_v9 }
 0x51f   : > { %2971 = vmatpush1.bf16.msk.msra.mxu1 %vm3399_vm6, %v2969_v42 }
 0x520   : > { %2872 = vmatprep.subr.msk.mxu1 %vm795_vm5, %v1574_v52 }
 0x523   : > { %2873 = vmatpush1.msk.msra.mxu1 %vm795_vm5, %v1573_v53 }
 0x524   : > { %2830 = vmatmul.mubr.msk.f32.vlgmr.msra.gmra.mrb[2].mxu1 %vm976_vm10, %v1579_v54 }
 0x525   : > { %2037 = vmatprep.mubr.f32.mxu1 %v3119_v11 }
 0x52b   : > { %v1602_v55 = vpop.permute.xlu1 %1601 }
 0x5f7   : > { %v1673_v58 = vpop.f32.mrb[2].mxu1 }
 0x5f8   : > { %v1674_v60 = vadd.f32 %v1673_v58, %v1602_v55  ;;  %v1675_v45 = vpop.f32.mrb[3].mxu1 }
 0x5f9   : > { %v1676_v7 = vadd.f32 %v1675_v45, %v1602_v55 }
 0x5fa   : > { %v3799_v63 = vmax.f32 %v1674_v60, 0.0 }
 0x5fb   : > { %v1679_v5 = vmax.f32 %v1676_v7, 0.0 }
 0x5fc   : > { %1680 = vrot.lane.b32.xlu0 %v3799_v63, %s3114_s1 }
 0x5fd   : > { %1682 = vrot.lane.b32.xlu1 %v1679_v5, %s3114_s1 }
 0x600   : > { %1690 = vrot.lane.b32.xlu0 %v3799_v63, %s3113_s4 }
 0x601   : > { %1692 = vrot.lane.b32.xlu1 %v1679_v5, %s3113_s4 }
 0x604   : > { %1700 = vrot.lane.b32.xlu0 %v3799_v63, %s3115_s26 }
 0x605   : > { %1702 = vrot.lane.b32.xlu1 %v1679_v5, %s3115_s26 }
 0x608   : > { %1710 = vrot.lane.b32.xlu0 %v3799_v63, %s4355_s25 }
 0x609   : > { %1712 = vrot.lane.b32.xlu1 %v1679_v5, %s4355_s25 }
 0x60c   : > { %1722 = vrot.lane.b32.xlu0 %v3799_v63, %s4356_s8 }
 0x60d   : > { %1724 = vrot.lane.b32.xlu1 %v1679_v5, %s4356_s8 }
 0x610   : > { %1732 = vrot.lane.b32.xlu0 %v3799_v63, %s3118_s29 }
 0x611   : > { %1734 = vrot.lane.b32.xlu1 %v1679_v5, %s3118_s29 }
 0x614   : > { %1742 = vrot.lane.b32.xlu0 %v3799_v63, %s3121_s0 }
 0x615   : > { %1744 = vrot.lane.b32.xlu1 %v1679_v5, %s3121_s0 }
 0x618   : > { %1752 = vrot.lane.b32.xlu0 %v3799_v63, %s3122_s30 }
 0x619   : > { %1754 = vrot.lane.b32.xlu1 %v1679_v5, %s3122_s30 }
 0x61c   : > { %1784 = vperm.xlu0 %3079, %v1781_v6  }
 0x66e   : > { %v1681_v12 = vpop.permute.xlu0 %1680 }
 0x66f   : > { %v1683_v13 = vpop.permute.xlu1 %1682 }
 0x670   : > { %v1684_v14 = vsel %vm782_vm3, %v1681_v12, %v1683_v13  ;;  %v1685_v59 = vsel %vm782_vm3, %v1683_v13, %v1681_v12 }
 0x671   : > { %v1686_v29 = vmul.f32 %v1685_v59, %v3363_v31  ;;  %v1687_v62 = vmul.f32 %v1684_v14, %v3367_v32 }
 0x672   : > { %v1691_v56 = vpop.permute.xlu0 %1690 }
 0x673   : > { %v1693_v15 = vpop.permute.xlu1 %1692 }
 0x674   : > { %v1694_v25 = vsel %vm804_vm0, %v1691_v56, %v1693_v15  ;;  %v1695_v10 = vsel %vm804_vm0, %v1693_v15, %v1691_v56 }
 0x675   : > { %v1696_v61 = vmul.f32 %v1695_v10, %v3345_v23  ;;  %v1697_v35 = vmul.f32 %v1694_v25, %v3349_v27 }
 0x676   : > { %v1701_v37 = vpop.permute.xlu0 %1700 }
 0x677   : > { %v2974_v39 = vpack.c.bf16 %v1696_v61, %v1686_v29  ;;  %v1703_v40 = vpop.permute.xlu1 %1702  ;;  %v2972_v41 = vpack.c.bf16 %v1697_v35, %v1687_v62 }
 0x678   : > { %v1704_v42 = vsel %vm825_vm1, %v1701_v37, %v1703_v40  ;;  %v1705_v43 = vsel %vm825_vm1, %v1703_v40, %v1701_v37 }
 0x679   : > { %2973 = vmatprep.subr.bf16.mxu0 %v2972_v41  ;;  %v1706_v53 = vmul.f32 %v1705_v43, %v3395_v48  ;;  %v1707_v54 = vmul.f32 %v1704_v42, %v3370_v33 }
 0x67a   : > { %2975 = vmatpush1.bf16.msra.mxu0 %v2974_v39  ;;  %v1711_v44 = vpop.permute.xlu0 %1710 }
 0x67b   : > { %v1713_v47 = vpop.permute.xlu1 %1712 }
 0x67c   : > { %v1714_v50 = vsel %vm846_vm2, %v1711_v44, %v1713_v47  ;;  %v1715_v52 = vsel %vm846_vm2, %v1713_v47, %v1711_v44 }
 0x67d   : > { %v1716_v55 = vmul.f32 %v1715_v52, %v3373_v34  ;;  %v1717_v58 = vmul.f32 %v1714_v50, %v3358_v30 }
 0x67e   : > { %v1723_v60 = vpop.permute.xlu0 %1722 }
 0x67f   : > { %v2978_v45 = vpack.c.bf16 %v1716_v55, %v1706_v53  ;;  %v1725_v7 = vpop.permute.xlu1 %1724  ;;  %v2976_v6 = vpack.c.bf16 %v1717_v58, %v1707_v54  ;;  %v1762_v55 = vld [vmem:[%s4315_s11] sm:$0xff] }
 0x680   : > { %v1726_v12 = vsel %vm871_vm4, %v1723_v60, %v1725_v7  ;;  %v1727_v13 = vsel %vm871_vm4, %v1725_v7, %v1723_v60 }
 0x681   : > { %v1728_v14 = vmul.f32 %v1726_v12, %v3408_v57  ;;  %v1729_v59 = vmul.f32 %v1727_v13, %v3378_v38  ;;  %2977 = vmatprep.subr.bf16.mxu0 %v2976_v6 }
 0x682   : > { %2979 = vmatpush1.bf16.msra.mxu0 %v2978_v45  ;;  %v1733_v56 = vpop.permute.xlu0 %1732 }
 0x683   : > { %v2982_v15 = vpack.c.bf16 %v1728_v14, %v3799_v63  ;;  %v1735_v25 = vpop.permute.xlu1 %1734  ;;  %v2980_v10 = vpack.c.bf16 %v1729_v59, %v1679_v5  ;;  %v1964_v14 = vld [vmem:[%s4318_s14] sm:$0xff] }
 0x684   : > { %v1736_v29 = vsel %vm892_vm7, %v1733_v56, %v1735_v25  ;;  %v1737_v62 = vsel %vm892_vm7, %v1735_v25, %v1733_v56  ;;  %v2044_v59 = vld [vmem:[%s4319_s15] sm:$0xf] }
 0x685   : > { %2981 = vmatprep.subr.bf16.mxu0 %v2980_v10  ;;  %v1738_v63 = vmul.f32 %v1736_v29, %v3432_v17  ;;  %v1739_v5 = vmul.f32 %v1737_v62, %v3435_v18 }
 0x686   : > { %2983 = vmatpush1.bf16.msra.mxu0 %v2982_v15  ;;  %v1743_v61 = vpop.permute.xlu0 %1742 }
 0x687   : > { %v1745_v35 = vpop.permute.xlu1 %1744 }
 0x688   : > { %v1746_v37 = vsel %vm913_vm8, %v1743_v61, %v1745_v35  ;;  %v1747_v39 = vsel %vm913_vm8, %v1745_v35, %v1743_v61 }
 0x689   : > { %v1748_v40 = vmul.f32 %v1746_v37, %v3440_v20  ;;  %v1749_v41 = vmul.f32 %v1747_v39, %v3443_v22 }
 0x68a   : > { %v1753_v42 = vpop.permute.xlu0 %1752 }
 0x68b   : > { %v2986_v43 = vpack.c.bf16 %v1748_v40, %v1738_v63  ;;  %v1755_v44 = vpop.permute.xlu1 %1754  ;;  %v2984_v47 = vpack.c.bf16 %v1749_v41, %v1739_v5 }
 0x68c   : > { %v1757_v50 = vsel %vm934_vm9, %v1755_v44, %v1753_v42  ;;  %v1756_v52 = vsel %vm934_vm9, %v1753_v42, %v1755_v44 }
 0x68d   : > { %v1759_v53 = vmul.f32 %v1757_v50, %v3460_v36  ;;  %2985 = vmatprep.subr.bf16.mxu0 %v2984_v47  ;;  %v1758_v54 = vmul.f32 %v1756_v52, %v3469_v9 }
 0x68e   : > { %2987 = vmatpush1.bf16.msra.mxu0 %v2986_v43 }
 0x68f   : > { %1806 = vmatprep.subr.mxu0 %v1759_v53 }
 0x692   : > { %1807 = vmatpush1.msra.mxu0 %v1758_v54 }
 0x693   : > { %2831 = vmatmul.mubr.msk.f32.vlgmr.msra.gmra.mrb[4].mxu0 %vm976_vm10, %v1762_v55 }
 0x694   : > { %2292 = vmatprep.mubr.f32.mxu0 %v3119_v11 }
 0x69b   : > { %v1785_v58 = vpop.permute.xlu0 %1784 }
 0x766   : > { %v1856_v60 = vpop.f32.mrb[4].mxu0 }
 0x767   : > { %v1857_v45 = vadd.f32 %v1856_v60, %v1785_v58  ;;  %v1858_v7 = vpop.f32.mrb[5].mxu0 }
 0x768   : > { %v1859_v6 = vadd.f32 %v1858_v7, %v1785_v58 }
 0x769   : > { %v3882_v12 = vmax.f32 %v1857_v45, 0.0 }
 0x76a   : > { %v3884_v13 = vmax.f32 %v1859_v6, 0.0 }
 0x76b   : > { %1863 = vrot.lane.b32.xlu1 %v3882_v12, %s3114_s1 }
 0x76c   : > { %1865 = vrot.lane.b32.xlu0 %v3884_v13, %s3114_s1 }
 0x76f   : > { %1873 = vrot.lane.b32.xlu1 %v3882_v12, %s3113_s4 }
 0x770   : > { %1875 = vrot.lane.b32.xlu0 %v3884_v13, %s3113_s4 }
 0x773   : > { %1883 = vrot.lane.b32.xlu1 %v3882_v12, %s3115_s26 }
 0x774   : > { %1885 = vrot.lane.b32.xlu0 %v3884_v13, %s3115_s26 }
 0x777   : > { %1893 = vrot.lane.b32.xlu1 %v3882_v12, %s4355_s25 }
 0x778   : > { %1895 = vrot.lane.b32.xlu0 %v3884_v13, %s4355_s25 }
 0x77b   : > { %1905 = vrot.lane.b32.xlu1 %v3882_v12, %s4356_s8 }
 0x77c   : > { %1907 = vrot.lane.b32.xlu0 %v3884_v13, %s4356_s8 }
 0x77f   : > { %1915 = vrot.lane.b32.xlu1 %v3882_v12, %s3118_s29 }
 0x780   : > { %1917 = vrot.lane.b32.xlu0 %v3884_v13, %s3118_s29 }
 0x783   : > { %1925 = vrot.lane.b32.xlu1 %v3882_v12, %s3121_s0 }
 0x784   : > { %1927 = vrot.lane.b32.xlu0 %v3884_v13, %s3121_s0 }
 0x787   : > { %1935 = vrot.lane.b32.xlu1 %v3882_v12, %s3122_s30 }
 0x788   : > { %1937 = vrot.lane.b32.xlu0 %v3884_v13, %s3122_s30 }
 0x78b   : > { %1967 = vperm.xlu1 %3080, %v1964_v14  }
 0x78c   : > { %2049 = vperm.xlu0 %3079, %v2044_v59  }
 0x7dd   : > { %v1864_v56 = vpop.permute.xlu1 %1863 }
 0x7de   : > { %v1866_v15 = vpop.permute.xlu0 %1865 }
 0x7df   : > { %v1867_v25 = vsel %vm782_vm3, %v1864_v56, %v1866_v15  ;;  %v1868_v10 = vsel %vm782_vm3, %v1866_v15, %v1864_v56 }
 0x7e0   : > { %v1869_v37 = vmul.f32 %v1868_v10, %v3363_v31  ;;  %v1870_v39 = vmul.f32 %v1867_v25, %v3367_v32 }
 0x7e1   : > { %v1874_v29 = vpop.permute.xlu1 %1873 }
 0x7e2   : > { %v1876_v62 = vpop.permute.xlu0 %1875 }
 0x7e3   : > { %v1877_v61 = vsel %vm804_vm0, %v1874_v29, %v1876_v62  ;;  %v1878_v35 = vsel %vm804_vm0, %v1876_v62, %v1874_v29 }
 0x7e4   : > { %v1879_v63 = vmul.f32 %v1878_v35, %v3345_v23  ;;  %v1880_v5 = vmul.f32 %v1877_v61, %v3349_v27 }
 0x7e5   : > { %v1884_v40 = vpop.permute.xlu1 %1883 }
 0x7e6   : > { %v2990_v41 = vpack.c.bf16 %v1879_v63, %v1869_v37  ;;  %v1886_v42 = vpop.permute.xlu0 %1885  ;;  %v2988_v43 = vpack.c.bf16 %v1880_v5, %v1870_v39 }
 0x7e7   : > { %v1887_v44 = vsel %vm825_vm1, %v1884_v40, %v1886_v42  ;;  %v1888_v47 = vsel %vm825_vm1, %v1886_v42, %v1884_v40 }
 0x7e8   : > { %2989 = vmatprep.subr.bf16.mxu1 %v2988_v43  ;;  %v1889_v55 = vmul.f32 %v1888_v47, %v3395_v48  ;;  %v1890_v58 = vmul.f32 %v1887_v44, %v3370_v33 }
 0x7e9   : > { %2991 = vmatpush1.bf16.msra.mxu1 %v2990_v41  ;;  %v1894_v50 = vpop.permute.xlu1 %1893 }
 0x7ea   : > { %v1896_v52 = vpop.permute.xlu0 %1895 }
 0x7eb   : > { %v1897_v53 = vsel %vm846_vm2, %v1894_v50, %v1896_v52  ;;  %v1898_v54 = vsel %vm846_vm2, %v1896_v52, %v1894_v50 }
 0x7ec   : > { %v1899_v60 = vmul.f32 %v1898_v54, %v3373_v34  ;;  %v1900_v45 = vmul.f32 %v1897_v53, %v3358_v30 }
 0x7ed   : > { %v1906_v7 = vpop.permute.xlu1 %1905 }
 0x7ee   : > { %v2994_v6 = vpack.c.bf16 %v1899_v60, %v1889_v55  ;;  %v1908_v14 = vpop.permute.xlu0 %1907  ;;  %v2992_v59 = vpack.c.bf16 %v1900_v45, %v1890_v58  ;;  %v1945_v60 = vld [vmem:[%s4317_s13] sm:$0xff]  ;;  %v1469_v45 = vsub.f32 1.0, %v758_v19 }
 0x7ef   : > { %v1909_v56 = vsel %vm871_vm4, %v1906_v7, %v1908_v14  ;;  %v1910_v15 = vsel %vm871_vm4, %v1908_v14, %v1906_v7  ;;  %v1470_v7 = vsub.f32 1.0, %v759_v24  ;;  %v1454_v24 = vrot.slane %v1453_v2, 4 }
 0x7f0   : > { %v1911_v25 = vmul.f32 %v1909_v56, %v3408_v57  ;;  %v1912_v10 = vmul.f32 %v1910_v15, %v3378_v38  ;;  %2993 = vmatprep.subr.bf16.mxu1 %v2992_v59 }
 0x7f1   : > { %2995 = vmatpush1.bf16.msra.mxu1 %v2994_v6  ;;  %v1916_v29 = vpop.permute.xlu1 %1915  ;;  %v2057_v6 = vrot.slane %v1469_v45, %v3273_v4  ;;  %v2061_v56 = vrot.slane %v1470_v7, %v3273_v4 }
 0x7f2   : > { %v2998_v62 = vpack.c.bf16 %v1911_v25, %v3882_v12  ;;  %v1918_v61 = vpop.permute.xlu0 %1917  ;;  %v2996_v35 = vpack.c.bf16 %v1912_v10, %v3884_v13 }
 0x7f3   : > { %v1919_v37 = vsel %vm892_vm7, %v1916_v29, %v1918_v61  ;;  %v1920_v39 = vsel %vm892_vm7, %v1918_v61, %v1916_v29  ;;  %v1461_v61 = vrot.slane %v1460_v3, 4 }
 0x7f4   : > { %2997 = vmatprep.subr.bf16.mxu1 %v2996_v35  ;;  %v1921_v12 = vmul.f32 %v1919_v37, %v3432_v17  ;;  %v1922_v13 = vmul.f32 %v1920_v39, %v3435_v18  ;;  %v1455_v39 = vadd.f32 %v1454_v24, %v1453_v2 }
 0x7f5   : > { %2999 = vmatpush1.bf16.msra.mxu1 %v2998_v62  ;;  %v1926_v63 = vpop.permute.xlu1 %1925 }
 0x7f6   : > { %v1928_v5 = vpop.permute.xlu0 %1927 }
 0x7f7   : > { %v1929_v40 = vsel %vm913_vm8, %v1926_v63, %v1928_v5  ;;  %v1930_v41 = vsel %vm913_vm8, %v1928_v5, %v1926_v63  ;;  %v1462_v63 = vadd.f32 %v1461_v61, %v1460_v3 }
 0x7f8   : > { %v1931_v42 = vmul.f32 %v1929_v40, %v3440_v20  ;;  %v1932_v43 = vmul.f32 %v1930_v41, %v3443_v22 }
 0x7f9   : > { %v1936_v44 = vpop.permute.xlu1 %1935 }
 0x7fa   : > { %v3002_v47 = vpack.c.bf16 %v1931_v42, %v1921_v12  ;;  %v1938_v50 = vpop.permute.xlu0 %1937  ;;  %v3000_v52 = vpack.c.bf16 %v1932_v43, %v1922_v13  ;;  %v1456_v12 = vrot.slane %v1455_v39, 2  ;;  %v1463_v42 = vrot.slane %v1462_v63, 2 }
 0x7fb   : > { %v1940_v53 = vsel %vm934_vm9, %v1938_v50, %v1936_v44  ;;  %v1939_v54 = vsel %vm934_vm9, %v1936_v44, %v1938_v50 }
 0x7fc   : > { %v1942_v55 = vmul.f32 %v1940_v53, %v3460_v36  ;;  %3001 = vmatprep.subr.bf16.mxu1 %v3000_v52  ;;  %v1941_v58 = vmul.f32 %v1939_v54, %v3469_v9  ;;  %v1457_v52 = vadd.f32 %v1456_v12, %v1455_v39  ;;  %v1464_v54 = vadd.f32 %v1463_v42, %v1462_v63 }
 0x7fd   : > { %3003 = vmatpush1.bf16.msra.mxu1 %v3002_v47 }
 0x7fe   : > { %1989 = vmatprep.subr.mxu1 %v1942_v55  ;;  %v1458_v45 = vrot.slane %v1457_v52, 1 }
 0x801   : > { %1990 = vmatpush1.msra.mxu1 %v1941_v58 }
 0x802   : > { %2832 = vmatmul.mubr.msk.f32.vlgmr.msra.gmra.mrb[4].mxu1 %vm976_vm10, %v1945_v60 }
 0x803   : > { %2475 = vmatprep.mubr.f32.mxu1 %v3119_v11 }
 0x80a   : > { %v1968_v14 = vpop.permute.xlu1 %1967 }
 0x80b   : > { %v2050_v37 = vpop.permute.xlu0 %2049 }
 0x8d5   : > { %v2039_v59 = vpop.f32.mrb[4].mxu1 }
 0x8d6   : > { %v2040_v15 = vadd.f32 %v2039_v59, %v1968_v14  ;;  %v2041_v25 = vpop.f32.mrb[5].mxu1 }
 0x8d7   : > { %v2042_v10 = vadd.f32 %v2041_v25, %v1968_v14 }
 0x8d8   : > { %3089 = vtanh.f32 %v2040_v15  ;;  %v2064_v29 = vmul.f32 %v2057_v6, %v2040_v15  ;;  %v1459_v15 = vadd.f32 %v1458_v45, %v1457_v52 }
 0x8d9   : > { %3091 = vtanh.f32 %v2042_v10  ;;  %v2065_v62 = vmul.f32 %v2061_v56, %v2042_v10 }
 0x8db   : > { %v2068_v19 = vcombine.high %v2064_v29, %v2065_v62 }
 0x8dd   : > { %v2070_v24 = vadd.f32 %v2068_v19, %v3693_v46 }
 0x8e2   : > { %v3090_v35 = vpop.eup %3089 }
 0x8e3   : > { %v3092_v4 = vpop.eup %3091  ;;  %v2052_v5 = vmul.f32 %v3090_v35, %v2050_v37 }
 0x8e4   : > { %v2053_v40 = vmul.f32 %v3092_v4, %v2050_v37 }
 0x8e5   : > { %v2062_v41 = vmul.f32 %v2057_v6, %v2052_v5  ;;  %v1465_v6 = vrot.slane %v1464_v54, 1 }
 0x8e6   : > { %v2063_v13 = vmul.f32 %v2061_v56, %v2053_v40 }
 0x8e7   : > { %v2071_v43 = vmul.f32 1.442695, %v2062_v41  ;;  %v2080_v51 = vsel %vm795_vm5, %v2062_v41, 0.0  ;;  %v1466_v29 = vadd.f32 %v1465_v6, %v1464_v54 }
 0x8e8   : > { %v2081_v44 = vrot.slane %v2080_v51, 4  ;;  %v2073_v47 = vmul.f32 1.442695, %v2063_v13  ;;  %v2087_v21 = vsel %vm795_vm5, %v2063_v13, 0.0 }
 0x8e9   : > { %3093 = vpow2.f32 %v2071_v43  ;;  %v2088_v50 = vrot.slane %v2087_v21, 4 }
 0x8ea   : > { %v2082_v53 = vadd.f32 %v2081_v44, %v2080_v51  ;;  %3095 = vpow2.f32 %v2073_v47 }
 0x8eb   : > { %v2089_v55 = vadd.f32 %v2088_v50, %v2087_v21 }
 0x8ec   : > { %v2083_v58 = vrot.slane %v2082_v53, 2 }
 0x8ed   : > { %v2090_v60 = vrot.slane %v2089_v55, 2 }
 0x8ee   : > { %v2084_v7 = vadd.f32 %v2083_v58, %v2082_v53 }
 0x8ef   : > { %v2091_v14 = vadd.f32 %v2090_v60, %v2089_v55 }
 0x8f0   : > { %v2085_v59 = vrot.slane %v2084_v7, 1 }
 0x8f1   : > { %v2092_v56 = vrot.slane %v2091_v14, 1 }
 0x8f2   : > { %v2086_v25 = vadd.f32 %v2085_v59, %v2084_v7 }
 0x8f3   : > { %v3094_v10 = vpop.eup %3093  ;;  %v2093_v62 = vadd.f32 %v2092_v56, %v2091_v14 }
 0x8f4   : > { %v3096_v2 = vpop.eup %3095  ;;  %v3991_v3 = vadd.f32 %v2086_v25, %v1459_v15 }
 0x8f5   : > { %v2077_v61 = vcombine.low %v3094_v10, %v3096_v2  ;;  %v3994_v35 = vadd.f32 %v2093_v62, %v1466_v29 }
 0x8f7   : > { %v3996_v37 = vmul.f32 %v2077_v61, %v2070_v24 }
 0x8f9   : > { %v4000_v39 = vmul.f32 %v3996_v37, %v3287_v8  ;;  %v2219_v8 = vld [vmem:[%s4321_s17] sm:$0xff] }
 0x8fb   : > { %2100 = vrot.lane.b32.xlu1 %v4000_v39, %s3114_s1  ;;  %v2098_v4 = vcombine.high %v4000_v39, %v4000_v39 }
 0x8fd   : > { %2102 = vrot.lane.b32.xlu0 %v2098_v4, %s3114_s1 }
 0x8ff   : > { %2112 = vrot.lane.b32.xlu1 %v4000_v39, %s3113_s4 }
 0x901   : > { %2114 = vrot.lane.b32.xlu0 %v2098_v4, %s3113_s4 }
 0x903   : > { %2124 = vrot.lane.b32.xlu1 %v4000_v39, %s3115_s26 }
 0x905   : > { %2126 = vrot.lane.b32.xlu0 %v2098_v4, %s3115_s26 }
 0x907   : > { %2136 = vrot.lane.b32.xlu1 %v4000_v39, %s4355_s25 }
 0x909   : > { %2138 = vrot.lane.b32.xlu0 %v2098_v4, %s4355_s25 }
 0x90b   : > { %2152 = vrot.lane.b32.xlu1 %v4000_v39, %s4356_s8 }
 0x90d   : > { %2154 = vrot.lane.b32.xlu0 %v2098_v4, %s4356_s8 }
 0x90f   : > { %2164 = vrot.lane.b32.xlu1 %v4000_v39, %s3118_s29 }
 0x911   : > { %2166 = vrot.lane.b32.xlu0 %v2098_v4, %s3118_s29 }
 0x913   : > { %2176 = vrot.lane.b32.xlu1 %v4000_v39, %s3121_s0 }
 0x915   : > { %2178 = vrot.lane.b32.xlu0 %v2098_v4, %s3121_s0 }
 0x917   : > { %2188 = vrot.lane.b32.xlu1 %v4000_v39, %s3122_s30 }
 0x919   : > { %2190 = vrot.lane.b32.xlu0 %v2098_v4, %s3122_s30 }
 0x91b   : > { %2222 = vperm.xlu1 %3080, %v2219_v8  }
 0x96d   : > { %v2101_v46 = vpop.permute.xlu1 %2100 }
 0x96f   : > { %v2103_v19 = vpop.permute.xlu0 %2102 }
 0x970   : > { %v2104_v5 = vsel %vm782_vm3, %v2101_v46, %v2103_v19  ;;  %v2105_v40 = vsel %vm782_vm3, %v2103_v19, %v2101_v46 }
 0x971   : > { %v2113_v63 = vpop.permute.xlu1 %2112  ;;  %v2106_v42 = vmul.f32 %v2105_v40, %v3363_v31  ;;  %v2107_v43 = vmul.f32 %v2104_v5, %v3367_v32 }
 0x973   : > { %v2115_v41 = vpop.permute.xlu0 %2114 }
 0x974   : > { %v2116_v12 = vsel %vm804_vm0, %v2113_v63, %v2115_v41  ;;  %v2117_v13 = vsel %vm804_vm0, %v2115_v41, %v2113_v63 }
 0x975   : > { %v2118_v51 = vmul.f32 %v2117_v13, %v3345_v23  ;;  %v2119_v44 = vmul.f32 %v2116_v12, %v3349_v27  ;;  %v2125_v47 = vpop.permute.xlu1 %2124 }
 0x977   : > { %v3004_v21 = vpack.c.bf16 %v2119_v44, %v2107_v43  ;;  %v3007_v50 = vpack.c.bf16 %v2118_v51, %v2106_v42  ;;  %v2127_v52 = vpop.permute.xlu0 %2126 }
 0x978   : > { %v2128_v54 = vsel %vm825_vm1, %v2125_v47, %v2127_v52  ;;  %v2129_v55 = vsel %vm825_vm1, %v2127_v52, %v2125_v47 }
 0x979   : > { %v2137_v53 = vpop.permute.xlu1 %2136  ;;  %3006 = vmatprep.subr.msk.bf16.mxu0 %vm3399_vm6, %v3004_v21  ;;  %v2130_v7 = vmul.f32 %v2129_v55, %v3395_v48  ;;  %v2131_v6 = vmul.f32 %v2128_v54, %v3370_v33  ;;  %v2200_v55 = vld [vmem:[%s4320_s16] sm:$0xff] }
 0x97a   : > { %3009 = vmatpush1.bf16.msk.msra.mxu0 %vm3399_vm6, %v3007_v50 }
 0x97b   : > { %v2139_v58 = vpop.permute.xlu0 %2138 }
 0x97c   : > { %v2140_v60 = vsel %vm846_vm2, %v2137_v53, %v2139_v58  ;;  %v2141_v45 = vsel %vm846_vm2, %v2139_v58, %v2137_v53 }
 0x97d   : > { %v2142_v14 = vmul.f32 %v2141_v45, %v3373_v34  ;;  %v2143_v59 = vmul.f32 %v2140_v60, %v3358_v30  ;;  %v2153_v56 = vpop.permute.xlu1 %2152 }
 0x97f   : > { %v3010_v15 = vpack.c.bf16 %v2143_v59, %v2131_v6  ;;  %v3013_v25 = vpack.c.bf16 %v2142_v14, %v2130_v7  ;;  %v2155_v10 = vpop.permute.xlu0 %2154 }
 0x980   : > { %v2156_v29 = vsel %vm871_vm4, %v2153_v56, %v2155_v10  ;;  %v2157_v62 = vsel %vm871_vm4, %v2155_v10, %v2153_v56 }
 0x981   : > { %v2158_v2 = vmul.f32 %v2156_v29, %v3408_v57  ;;  %v2159_v24 = vmul.f32 %v2157_v62, %v3378_v38  ;;  %v2165_v61 = vpop.permute.xlu1 %2164  ;;  %3012 = vmatprep.subr.msk.bf16.mxu0 %vm3399_vm6, %v3010_v15 }
 0x982   : > { %3015 = vmatpush1.bf16.msk.msra.mxu0 %vm3399_vm6, %v3013_v25 }
 0x983   : > { %v3016_v8 = vpack.c.bf16 %v2159_v24, %v2098_v4  ;;  %v3019_v46 = vpack.c.bf16 %v2158_v2, %v4000_v39  ;;  %v2167_v19 = vpop.permute.xlu0 %2166 }
 0x984   : > { %v2168_v5 = vsel %vm892_vm7, %v2165_v61, %v2167_v19  ;;  %v2169_v40 = vsel %vm892_vm7, %v2167_v19, %v2165_v61 }
 0x985   : > { %v2177_v63 = vpop.permute.xlu1 %2176  ;;  %3018 = vmatprep.subr.msk.bf16.mxu0 %vm3399_vm6, %v3016_v8  ;;  %v2170_v12 = vmul.f32 %v2168_v5, %v3432_v17  ;;  %v2171_v13 = vmul.f32 %v2169_v40, %v3435_v18 }
 0x986   : > { %3021 = vmatpush1.bf16.msk.msra.mxu0 %vm3399_vm6, %v3019_v46 }
 0x987   : > { %v2179_v41 = vpop.permute.xlu0 %2178 }
 0x988   : > { %v2180_v4 = vsel %vm913_vm8, %v2177_v63, %v2179_v41  ;;  %v2181_v39 = vsel %vm913_vm8, %v2179_v41, %v2177_v63 }
 0x989   : > { %v2182_v42 = vmul.f32 %v2180_v4, %v3440_v20  ;;  %v2183_v43 = vmul.f32 %v2181_v39, %v3443_v22  ;;  %v2189_v47 = vpop.permute.xlu1 %2188 }
 0x98b   : > { %v3022_v51 = vpack.c.bf16 %v2183_v43, %v2171_v13  ;;  %v3025_v44 = vpack.c.bf16 %v2182_v42, %v2170_v12  ;;  %v2191_v21 = vpop.permute.xlu0 %2190 }
 0x98c   : > { %v2193_v50 = vsel %vm934_vm9, %v2191_v21, %v2189_v47  ;;  %v2192_v52 = vsel %vm934_vm9, %v2189_v47, %v2191_v21 }
 0x98d   : > { %v2195_v53 = vmul.f32 %v2193_v50, %v3460_v36  ;;  %3024 = vmatprep.subr.msk.bf16.mxu0 %vm3399_vm6, %v3022_v51  ;;  %v2194_v54 = vmul.f32 %v2192_v52, %v3469_v9 }
 0x98e   : > { %3027 = vmatpush1.bf16.msk.msra.mxu0 %vm3399_vm6, %v3025_v44 }
 0x98f   : > { %2890 = vmatprep.subr.msk.mxu0 %vm795_vm5, %v2195_v53 }
 0x992   : > { %2891 = vmatpush1.msk.msra.mxu0 %vm795_vm5, %v2194_v54 }
 0x993   : > { %2833 = vmatmul.mubr.msk.f32.vlgmr.msra.gmra.mrb[6].mxu0 %vm976_vm10, %v2200_v55 }
 0x994   : > { %2658 = vmatprep.mubr.f32.mxu0 %v3119_v11  ;;  %v2402_v11 = vld [vmem:[%s4323_s19] sm:$0xff] }
 0x99a   : > { %v2223_v58 = vpop.permute.xlu1 %2222 }
 0xa66   : > { %v2294_v60 = vpop.f32.mrb[6].mxu0 }
 0xa67   : > { %v2295_v45 = vadd.f32 %v2294_v60, %v2223_v58  ;;  %v2296_v7 = vpop.f32.mrb[7].mxu0 }
 0xa68   : > { %v2297_v49 = vadd.f32 %v2296_v7, %v2223_v58 }
 0xa69   : > { %v4103_v6 = vmax.f32 %v2295_v45, 0.0 }
 0xa6a   : > { %v2300_v14 = vmax.f32 %v2297_v49, 0.0 }
 0xa6b   : > { %2301 = vrot.lane.b32.xlu0 %v4103_v6, %s3114_s1 }
 0xa6c   : > { %2303 = vrot.lane.b32.xlu1 %v2300_v14, %s3114_s1 }
 0xa6f   : > { %2311 = vrot.lane.b32.xlu0 %v4103_v6, %s3113_s4 }
 0xa70   : > { %2313 = vrot.lane.b32.xlu1 %v2300_v14, %s3113_s4 }
 0xa73   : > { %2321 = vrot.lane.b32.xlu0 %v4103_v6, %s3115_s26 }
 0xa74   : > { %2323 = vrot.lane.b32.xlu1 %v2300_v14, %s3115_s26 }
 0xa77   : > { %2331 = vrot.lane.b32.xlu0 %v4103_v6, %s4355_s25 }
 0xa78   : > { %2333 = vrot.lane.b32.xlu1 %v2300_v14, %s4355_s25 }
 0xa7b   : > { %2343 = vrot.lane.b32.xlu0 %v4103_v6, %s4356_s8 }
 0xa7c   : > { %2345 = vrot.lane.b32.xlu1 %v2300_v14, %s4356_s8 }
 0xa7f   : > { %2353 = vrot.lane.b32.xlu0 %v4103_v6, %s3118_s29 }
 0xa80   : > { %2355 = vrot.lane.b32.xlu1 %v2300_v14, %s3118_s29 }
 0xa83   : > { %2363 = vrot.lane.b32.xlu0 %v4103_v6, %s3121_s0 }
 0xa84   : > { %2365 = vrot.lane.b32.xlu1 %v2300_v14, %s3121_s0 }
 0xa87   : > { %2373 = vrot.lane.b32.xlu0 %v4103_v6, %s3122_s30 }
 0xa88   : > { %2375 = vrot.lane.b32.xlu1 %v2300_v14, %s3122_s30 }
 0xa8b   : > { %2405 = vperm.xlu0 %3079, %v2402_v11  }
 0xadd   : > { %v2302_v59 = vpop.permute.xlu0 %2301 }
 0xade   : > { %v2304_v56 = vpop.permute.xlu1 %2303 }
 0xadf   : > { %v2305_v15 = vsel %vm782_vm3, %v2302_v59, %v2304_v56  ;;  %v2306_v25 = vsel %vm782_vm3, %v2304_v56, %v2302_v59 }
 0xae0   : > { %v2307_v24 = vmul.f32 %v2306_v25, %v3363_v31  ;;  %v2308_v61 = vmul.f32 %v2305_v15, %v3367_v32 }
 0xae1   : > { %v2312_v10 = vpop.permute.xlu0 %2311 }
 0xae2   : > { %v2314_v29 = vpop.permute.xlu1 %2313 }
 0xae3   : > { %v2315_v62 = vsel %vm804_vm0, %v2312_v10, %v2314_v29  ;;  %v2316_v2 = vsel %vm804_vm0, %v2314_v29, %v2312_v10 }
 0xae4   : > { %v2317_v8 = vmul.f32 %v2316_v2, %v3345_v23  ;;  %v2318_v46 = vmul.f32 %v2315_v62, %v3349_v27 }
 0xae5   : > { %v2322_v19 = vpop.permute.xlu0 %2321 }
 0xae6   : > { %v3030_v63 = vpack.c.bf16 %v2317_v8, %v2307_v24  ;;  %v2324_v5 = vpop.permute.xlu1 %2323  ;;  %v3028_v40 = vpack.c.bf16 %v2318_v46, %v2308_v61 }
 0xae7   : > { %v2325_v41 = vsel %vm825_vm1, %v2322_v19, %v2324_v5  ;;  %v2326_v4 = vsel %vm825_vm1, %v2324_v5, %v2322_v19 }
 0xae8   : > { %3029 = vmatprep.subr.bf16.mxu1 %v3028_v40  ;;  %v2327_v43 = vmul.f32 %v2326_v4, %v3395_v48  ;;  %v2328_v51 = vmul.f32 %v2325_v41, %v3370_v33  ;;  %v2383_v41 = vld [vmem:[%s4322_s18] sm:$0xff] }
 0xae9   : > { %3031 = vmatpush1.bf16.msra.mxu1 %v3030_v63  ;;  %v2332_v39 = vpop.permute.xlu0 %2331 }
 0xaea   : > { %v2334_v12 = vpop.permute.xlu1 %2333 }
 0xaeb   : > { %v2335_v13 = vsel %vm846_vm2, %v2332_v39, %v2334_v12  ;;  %v2336_v42 = vsel %vm846_vm2, %v2334_v12, %v2332_v39 }
 0xaec   : > { %v2337_v44 = vmul.f32 %v2336_v42, %v3373_v34  ;;  %v2338_v47 = vmul.f32 %v2335_v13, %v3358_v30 }
 0xaed   : > { %v2344_v21 = vpop.permute.xlu0 %2343 }
 0xaee   : > { %v3034_v50 = vpack.c.bf16 %v2337_v44, %v2327_v43  ;;  %v2346_v52 = vpop.permute.xlu1 %2345  ;;  %v3032_v53 = vpack.c.bf16 %v2338_v47, %v2328_v51  ;;  %v2585_v44 = vld [vmem:[%s4325_s21] sm:$0xff] }
 0xaef   : > { %v2347_v54 = vsel %vm871_vm4, %v2344_v21, %v2346_v52  ;;  %v2348_v55 = vsel %vm871_vm4, %v2346_v52, %v2344_v21  ;;  %v2665_v47 = vld [vmem:[%s4326_s22] sm:$0xf] }
 0xaf0   : > { %v2349_v58 = vmul.f32 %v2347_v54, %v3408_v57  ;;  %v2350_v60 = vmul.f32 %v2348_v55, %v3378_v38  ;;  %3033 = vmatprep.subr.bf16.mxu1 %v3032_v53 }
 0xaf1   : > { %3035 = vmatpush1.bf16.msra.mxu1 %v3034_v50  ;;  %v2354_v45 = vpop.permute.xlu0 %2353 }
 0xaf2   : > { %v3038_v7 = vpack.c.bf16 %v2349_v58, %v4103_v6  ;;  %v2356_v49 = vpop.permute.xlu1 %2355  ;;  %v3036_v11 = vpack.c.bf16 %v2350_v60, %v2300_v14 }
 0xaf3   : > { %v2357_v59 = vsel %vm892_vm7, %v2354_v45, %v2356_v49  ;;  %v2358_v56 = vsel %vm892_vm7, %v2356_v49, %v2354_v45 }
 0xaf4   : > { %3037 = vmatprep.subr.bf16.mxu1 %v3036_v11  ;;  %v2359_v6 = vmul.f32 %v2357_v59, %v3432_v17  ;;  %v2360_v14 = vmul.f32 %v2358_v56, %v3435_v18 }
 0xaf5   : > { %3039 = vmatpush1.bf16.msra.mxu1 %v3038_v7  ;;  %v2364_v15 = vpop.permute.xlu0 %2363 }
 0xaf6   : > { %v2366_v25 = vpop.permute.xlu1 %2365 }
 0xaf7   : > { %v2367_v10 = vsel %vm913_vm8, %v2364_v15, %v2366_v25  ;;  %v2368_v29 = vsel %vm913_vm8, %v2366_v25, %v2364_v15 }
 0xaf8   : > { %v2369_v62 = vmul.f32 %v2367_v10, %v3440_v20  ;;  %v2370_v2 = vmul.f32 %v2368_v29, %v3443_v22 }
 0xaf9   : > { %v2374_v24 = vpop.permute.xlu0 %2373 }
 0xafa   : > { %v3042_v61 = vpack.c.bf16 %v2369_v62, %v2359_v6  ;;  %v2376_v8 = vpop.permute.xlu1 %2375  ;;  %v3040_v46 = vpack.c.bf16 %v2370_v2, %v2360_v14 }
 0xafb   : > { %v2378_v19 = vsel %vm934_vm9, %v2376_v8, %v2374_v24  ;;  %v2377_v63 = vsel %vm934_vm9, %v2374_v24, %v2376_v8 }
 0xafc   : > { %v2380_v5 = vmul.f32 %v2378_v19, %v3460_v36  ;;  %3041 = vmatprep.subr.bf16.mxu1 %v3040_v46  ;;  %v2379_v40 = vmul.f32 %v2377_v63, %v3469_v9 }
 0xafd   : > { %3043 = vmatpush1.bf16.msra.mxu1 %v3042_v61 }
 0xafe   : > { %2427 = vmatprep.subr.mxu1 %v2380_v5 }
 0xb01   : > { %2428 = vmatpush1.msra.mxu1 %v2379_v40 }
 0xb02   : > { %2834 = vmatmul.mubr.msk.f32.vlgmr.msra.gmra.mrb[6].mxu1 %vm976_vm10, %v2383_v41 }
 0xb0a   : > { %v2406_v4 = vpop.permute.xlu0 %2405 }
 0xbd5   : > { %v2477_v39 = vpop.f32.mrb[6].mxu1 }
 0xbd6   : > { %v2478_v12 = vadd.f32 %v2477_v39, %v2406_v4  ;;  %v2479_v13 = vpop.f32.mrb[7].mxu1 }
 0xbd7   : > { %v2480_v42 = vadd.f32 %v2479_v13, %v2406_v4 }
 0xbd8   : > { %v4185_v43 = vmax.f32 %v2478_v12, 0.0 }
 0xbd9   : > { %v4187_v51 = vmax.f32 %v2480_v42, 0.0 }
 0xbda   : > { %2484 = vrot.lane.b32.xlu1 %v4185_v43, %s3114_s1 }
 0xbdb   : > { %2486 = vrot.lane.b32.xlu0 %v4187_v51, %s3114_s1 }
 0xbde   : > { %2494 = vrot.lane.b32.xlu1 %v4185_v43, %s3113_s4 }
 0xbdf   : > { %2496 = vrot.lane.b32.xlu0 %v4187_v51, %s3113_s4  ;;  %s751_s4 = scalar_lea.vmem %s4328_s24, %s4359_s27 }
 0xbe2   : > { %2504 = vrot.lane.b32.xlu1 %v4185_v43, %s3115_s26 }
 0xbe3   : > { %2506 = vrot.lane.b32.xlu0 %v4187_v51, %s3115_s26 }
 0xbe6   : > { %2514 = vrot.lane.b32.xlu1 %v4185_v43, %s4355_s25 }
 0xbe7   : > { %2516 = vrot.lane.b32.xlu0 %v4187_v51, %s4355_s25 }
 0xbea   : > { %2526 = vrot.lane.b32.xlu1 %v4185_v43, %s4356_s8 }
 0xbeb   : > { %2528 = vrot.lane.b32.xlu0 %v4187_v51, %s4356_s8 }
 0xbee   : > { %2536 = vrot.lane.b32.xlu1 %v4185_v43, %s3118_s29 }
 0xbef   : > { %2538 = vrot.lane.b32.xlu0 %v4187_v51, %s3118_s29 }
 0xbf2   : > { %2546 = vrot.lane.b32.xlu1 %v4185_v43, %s3121_s0 }
 0xbf3   : > { %2548 = vrot.lane.b32.xlu0 %v4187_v51, %s3121_s0 }
 0xbf6   : > { %2556 = vrot.lane.b32.xlu1 %v4185_v43, %s3122_s30 }
 0xbf7   : > { %2558 = vrot.lane.b32.xlu0 %v4187_v51, %s3122_s30  ;;  %s4357_s30 = sshll.u32 %s4359_s27, 2 }
 0xbf8   : > { %s746_s3 = scalar_lea.vmem %s4327_s23, %s4357_s30 }
 0xbfa   : > { %2588 = vperm.xlu1 %3080, %v2585_v44  }
 0xbfb   : > { %2670 = vperm.xlu0 %3079, %v2665_v47  }
 0xc4c   : > { %v2485_v21 = vpop.permute.xlu1 %2484 }
 0xc4d   : > { %v2487_v50 = vpop.permute.xlu0 %2486 }
 0xc4e   : > { %v2488_v52 = vsel %vm782_vm3, %v2485_v21, %v2487_v50  ;;  %v2489_v53 = vsel %vm782_vm3, %v2487_v50, %v2485_v21 }
 0xc4f   : > { %v2490_v45 = vmul.f32 %v2489_v53, %v3363_v31  ;;  %v2491_v7 = vmul.f32 %v2488_v52, %v3367_v32 }
 0xc50   : > { %v2495_v54 = vpop.permute.xlu1 %2494 }
 0xc51   : > { %v2497_v55 = vpop.permute.xlu0 %2496 }
 0xc52   : > { %v2498_v58 = vsel %vm804_vm0, %v2495_v54, %v2497_v55  ;;  %v2499_v60 = vsel %vm804_vm0, %v2497_v55, %v2495_v54 }
 0xc53   : > { %v2500_v49 = vmul.f32 %v2499_v60, %v3345_v23  ;;  %v2501_v11 = vmul.f32 %v2498_v58, %v3349_v27 }
 0xc54   : > { %v2505_v59 = vpop.permute.xlu1 %2504 }
 0xc55   : > { %v3046_v56 = vpack.c.bf16 %v2500_v49, %v2490_v45  ;;  %v2507_v15 = vpop.permute.xlu0 %2506  ;;  %v3044_v25 = vpack.c.bf16 %v2501_v11, %v2491_v7 }
 0xc56   : > { %v2508_v10 = vsel %vm825_vm1, %v2505_v59, %v2507_v15  ;;  %v2509_v29 = vsel %vm825_vm1, %v2507_v15, %v2505_v59 }
 0xc57   : > { %3045 = vmatprep.subr.bf16.mxu0 %v3044_v25  ;;  %v2510_v27 = vmul.f32 %v2509_v29, %v3395_v48  ;;  %v2511_v14 = vmul.f32 %v2508_v10, %v3370_v33 }
 0xc58   : > { %3047 = vmatpush1.bf16.msra.mxu0 %v3046_v56  ;;  %v2515_v6 = vpop.permute.xlu1 %2514 }
 0xc59   : > { %v2517_v31 = vpop.permute.xlu0 %2516 }
 0xc5a   : > { %v2518_v32 = vsel %vm846_vm2, %v2515_v6, %v2517_v31  ;;  %v2519_v23 = vsel %vm846_vm2, %v2517_v31, %v2515_v6 }
 0xc5b   : > { %v2520_v62 = vmul.f32 %v2519_v23, %v3373_v34  ;;  %v2521_v2 = vmul.f32 %v2518_v32, %v3358_v30 }
 0xc5c   : > { %v2527_v24 = vpop.permute.xlu1 %2526 }
 0xc5d   : > { %v3050_v61 = vpack.c.bf16 %v2520_v62, %v2510_v27  ;;  %v2529_v8 = vpop.permute.xlu0 %2528  ;;  %v3048_v46 = vpack.c.bf16 %v2521_v2, %v2511_v14  ;;  %v3123_v2 = vmov 1966171168  }
 0xc5e   : > { %v2530_v19 = vsel %vm871_vm4, %v2527_v24, %v2529_v8  ;;  %v2531_v63 = vsel %vm871_vm4, %v2529_v8, %v2527_v24  ;;  %v2714_v24 = vunpack.c.l.s4 %v3123_v2 }
 0xc5f   : > { %v2532_v5 = vmul.f32 %v2530_v19, %v3408_v57  ;;  %v2533_v48 = vmul.f32 %v2531_v63, %v3378_v38  ;;  %3049 = vmatprep.subr.bf16.mxu0 %v3048_v46 }
 0xc60   : > { %3051 = vmatpush1.bf16.msra.mxu0 %v3050_v61  ;;  %v2537_v33 = vpop.permute.xlu1 %2536  ;;  %v2715_v46 = vunpack.c.0.s8 %v2714_v24 }
 0xc61   : > { %v3054_v34 = vpack.c.bf16 %v2532_v5, %v4185_v43  ;;  %v2539_v30 = vpop.permute.xlu0 %2538  ;;  %v3052_v40 = vpack.c.bf16 %v2533_v48, %v4187_v51 }
 0xc62   : > { %v2540_v41 = vsel %vm892_vm7, %v2537_v33, %v2539_v30  ;;  %v2541_v4 = vsel %vm892_vm7, %v2539_v30, %v2537_v33 }
 0xc63   : > { %3053 = vmatprep.subr.bf16.mxu0 %v3052_v40  ;;  %v2542_v13 = vmul.f32 %v2540_v41, %v3432_v17  ;;  %v2543_v42 = vmul.f32 %v2541_v4, %v3435_v18  ;;  %v2566_v18 = vld [vmem:[%s4324_s20] sm:$0xff]  ;;  %v2718_v41 = vsub.s32 %v2715_v46, %v3258_v1 }
 0xc64   : > { %3055 = vmatpush1.bf16.msra.mxu0 %v3054_v34  ;;  %v2547_v39 = vpop.permute.xlu1 %2546 }
 0xc65   : > { %v2549_v57 = vpop.permute.xlu0 %2548 }
 0xc66   : > { %v2550_v38 = vsel %vm913_vm8, %v2547_v39, %v2549_v57  ;;  %v2551_v12 = vsel %vm913_vm8, %v2549_v57, %v2547_v39 }
 0xc67   : > { %v2552_v43 = vmul.f32 %v2550_v38, %v3440_v20  ;;  %v2553_v51 = vmul.f32 %v2551_v12, %v3443_v22 }
 0xc68   : > { %v2557_v44 = vpop.permute.xlu1 %2556 }
 0xc69   : > { %v3058_v47 = vpack.c.bf16 %v2552_v43, %v2542_v13  ;;  %v2559_v21 = vpop.permute.xlu0 %2558  ;;  %v3056_v50 = vpack.c.bf16 %v2553_v51, %v2543_v42 }
 0xc6a   : > { %v2561_v52 = vsel %vm934_vm9, %v2559_v21, %v2557_v44  ;;  %v2560_v53 = vsel %vm934_vm9, %v2557_v44, %v2559_v21 }
 0xc6b   : > { %v2563_v54 = vmul.f32 %v2561_v52, %v3460_v36  ;;  %3057 = vmatprep.subr.bf16.mxu0 %v3056_v50  ;;  %v2562_v17 = vmul.f32 %v2560_v53, %v3469_v9 }
 0xc6c   : > { %3059 = vmatpush1.bf16.msra.mxu0 %v3058_v47 }
 0xc6d   : > { %2610 = vmatprep.subr.mxu0 %v2563_v54 }
 0xc70   : > { %2611 = vmatpush1.msra.mxu0 %v2562_v17 }
 0xc71   : > { %2835 = vmatmul.mubr.msk.f32.vlgmr.msra.gmra.mrb[8].mxu0 %vm976_vm10, %v2566_v18 }
 0xc79   : > { %v2589_v20 = vpop.permute.xlu1 %2588 }
 0xc7a   : > { %v2671_v7 = vpop.permute.xlu0 %2670 }
 0xd44   : > { %v2660_v22 = vpop.f32.mrb[8].mxu0 }
 0xd45   : > { %v2661_v55 = vadd.f32 %v2660_v22, %v2589_v20  ;;  %v2662_v58 = vpop.f32.mrb[9].mxu0 }
 0xd46   : > { %v2663_v16 = vadd.f32 %v2662_v58, %v2589_v20 }
 0xd47   : > { %3097 = vtanh.f32 %v2661_v55  ;;  %v2677_v36 = vmul.f32 %v2661_v55, %v3673_v26 }
 0xd48   : > { %3099 = vtanh.f32 %v2663_v16  ;;  %v2678_v60 = vmul.f32 %v2663_v16, %v3678_v28 }
 0xd4a   : > { %v2681_v45 = vcombine.high %v2677_v36, %v2678_v60 }
 0xd4c   : > { %v2683_v34 = vadd.f32 %v2681_v45, %v3996_v37 }
 0xd51   : > { %v3098_v9 = vpop.eup %3097 }
 0xd52   : > { %v3100_v49 = vpop.eup %3099  ;;  %v2673_v11 = vmul.f32 %v3098_v9, %v2671_v7 }
 0xd53   : > { %v2674_v59 = vmul.f32 %v3100_v49, %v2671_v7 }
 0xd54   : > { %v2675_v56 = vmul.f32 %v2673_v11, %v3673_v26 }
 0xd55   : > { %v2676_v15 = vmul.f32 %v2674_v59, %v3678_v28 }
 0xd56   : > { %v2684_v25 = vmul.f32 1.442695, %v2675_v56  ;;  %v2693_v10 = vsel %vm795_vm5, %v2675_v56, 0.0 }
 0xd57   : > { %v2694_v29 = vrot.slane %v2693_v10, 4  ;;  %v2686_v6 = vmul.f32 1.442695, %v2676_v15  ;;  %v2700_v31 = vsel %vm795_vm5, %v2676_v15, 0.0 }
 0xd58   : > { %3101 = vpow2.f32 %v2684_v25  ;;  %v2701_v32 = vrot.slane %v2700_v31, 4 }
 0xd59   : > { %v2695_v23 = vadd.f32 %v2694_v29, %v2693_v10  ;;  %3103 = vpow2.f32 %v2686_v6 }
 0xd5a   : > { %v2702_v27 = vadd.f32 %v2701_v32, %v2700_v31 }
 0xd5b   : > { %v2696_v14 = vrot.slane %v2695_v23, 2 }
 0xd5c   : > { %v2703_v62 = vrot.slane %v2702_v27, 2 }
 0xd5d   : > { %v2697_v26 = vadd.f32 %v2696_v14, %v2695_v23 }
 0xd5e   : > { %v2704_v61 = vadd.f32 %v2703_v62, %v2702_v27 }
 0xd5f   : > { %v2698_v28 = vrot.slane %v2697_v26, 1 }
 0xd60   : > { %v2705_v8 = vrot.slane %v2704_v61, 1 }
 0xd61   : > { %v2699_v19 = vadd.f32 %v2698_v28, %v2697_v26 }
 0xd62   : > { %v3102_v63 = vpop.eup %3101  ;;  %v2706_v5 = vadd.f32 %v2705_v8, %v2704_v61 }
 0xd63   : > { %v3104_v48 = vpop.eup %3103  ;;  %v2707_v33 = vadd.f32 %v2699_v19, %v3991_v3 }
 0xd64   : > { %v2690_v30 = vcombine.low %v3102_v63, %v3104_v48  ;;  %v2708_v40 = vadd.f32 %v2706_v5, %v3994_v35 }
 0xd66   : > { %v2692_v4 = vmul.f32 %v2690_v30, %v2683_v34  ;;  %v2712_v39 = vcombine.low %v2707_v33, %v2708_v40 }
 0xd68   : > { %2709 = vst [vmem:[%s746_s3] sm:$0xff] %v2692_v4  ;;  %v2719_v57 = vrot.slane %v2712_v39, %v2718_v41 }
 0xd6a   : > { %v2726_v3 = vrot.slane %v2719_v57, %v2718_v41 }
 0xd6c   : > { %2732 = vst.msk [vmem:[%s751_s4] sm:$0x3] %vm2730_vm11, %v2726_v3 }
 0xd6d PF: > { %s35_s5 = sadd.s32 1, %s3111_s5  }
 0xd6e   : > { %p32_p4 = scmp.ge.s32.totalorder %s35_s5, 4  }
 0xd70   :  { %34 = sbr.rel (!%p32_p4) target bundleno = 10 (0xa), region = 154 }

// kernel: flow_forward.5
= control target key start
LH: loop header
LB: loop body
LE: loop exit
PB: predicated region body
PF: predicated region fallthrough
CT: control target
= control target key end

     0   :  { %v133_v0 = vlaneseq  ;;  %s2808_s6 = smov 1   ;;  %s2809_s10 = smov 7   ;;  %vm226_vm0 = vcmask 588800   ;;  %v2817_v11 = vmov 0   ;;  %v2819_v47 = vmov 0.0|0.0   ;;  %s3654_s0 = inlined_call_operand.smem [shape: u32[32], index: -1, kind: input, shape index: {}] }
   0x1   :  { %s1_s5 = sld [smem:[%s3654_s0]]   ;;  %s2810_s11 = smov 9   ;;  %2791 = vset.pattern.permute.xlu1 %v2817_v11  ;;  %2790 = vset.pattern.permute.xlu0 %v2817_v11  ;;  %vm410_vm1 = vcmask 130048  }
   0x2   :  { %s2290_s9 = sld [smem:[%s3654_s0 + %s2808_s6]]   ;;  %v134_v1 = vshrl.u32 %v133_v0, 7  ;;  %s2811_s12 = smov 8   ;;  %2489 = vmatprep.subr.bf16.mxu1 %v2819_v47 }
   0x3   :  { %s2812_s13 = smov 2   ;;  %s2813_s17 = smov 127  }
   0x4   :  { %v2857_v2 = vsub.s32 0, %v134_v1  ;;  %v142_v6 = vsub.s32 1, %v134_v1  ;;  %s2878_s16 = sld [smem:[%s3654_s0 + %s2812_s13]]   ;;  %s2814_s18 = smov 121   ;;  %v150_v14 = vsub.s32 2, %v134_v1  ;;  %v158_v15 = vsub.s32 3, %v134_v1 }
   0x5   :  { %s2815_s19 = smov 120   ;;  %s2816_s20 = smov 119   ;;  %v166_v16 = vsub.s32 4, %v134_v1  ;;  %v175_v17 = vsub.s32 6, %v134_v1  ;;  %v183_v24 = vsub.s32 7, %v134_v1 }
   0x6   :  { %s2818_s21 = smov 3   ;;  %s2820_s25 = smov 4  }
   0x7   :  { %v2859_v3 = vld [vmem:[%s1_s5] sm:$0xff]  ;;  %v130_v7 = vld [vmem:[%s1_s5 + $0x8] sm:$0x3]  ;;  %s2292_s24 = sld [smem:[%s3654_s0 + %s2818_s21]]   ;;  %s2821_s29 = smov 5  }
   0x8   :  { %v2861_v4 = vld [vmem:[%s2290_s9] sm:$0xff]  ;;  %v2865_v5 = vrot.slane %v2859_v3, %v2857_v2  ;;  %v2869_v9 = vrot.slane %v130_v7, %v142_v6  ;;  %v2890_v20 = vrot.slane %v2859_v3, %v142_v6  ;;  %v2893_v21 = vrot.slane %v2859_v3, %v150_v14  ;;  %s2951_s28 = sld [smem:[%s3654_s0 + %s2820_s25]]   ;;  %s2822_s7 = smov 6  }
   0x9   :  { %v2896_v22 = vrot.slane %v2859_v3, %v158_v15  ;;  %v2899_v23 = vrot.slane %v2859_v3, %v166_v16  ;;  %v2902_v25 = vrot.slane %v2859_v3, %v175_v17  ;;  %v2909_v32 = vrot.slane %v2859_v3, %v183_v24  ;;  %s2294_s2 = sld [smem:[%s3654_s0 + %s2821_s29]]   ;;  %s2827_s14 = smov 13  }
   0xa   :  { %v137_v8 = vmul.f32 %v2865_v5, %v2861_v4  ;;  %v203_v10 = vld [vmem:[%s2878_s16] sm:$0xff]  ;;  %v2912_v36 = vrot.slane %v130_v7, %v2857_v2  ;;  %v204_v46 = vld [vmem:[%s2878_s16 + $0x8] sm:$0xff]  ;;  %s2296_s5 = sld [smem:[%s3654_s0 + %s2809_s10]]   ;;  %s2828_s22 = smov 15  }
   0xb   :  { %2407 = vmatprep.mubr.msk.f32.mxu0 %vm226_vm0, %v203_v10  ;;  %s3033_s13 = sld [smem:[%s3654_s0 + %s2822_s7]]   ;;  %s2826_s7 = smov 14  }
   0xc   :  { %154 = vrot.lane.b32.xlu1 %v137_v8, %s2809_s10  ;;  %138 = vrot.lane.b32.xlu0 %v137_v8, %s2810_s11  ;;  %s2297_s16 = sld [smem:[%s3654_s0 + %s2811_s12]]   ;;  %s2829_s26 = smov 16  }
   0xd   :  { %v215_v12 = vld [vmem:[%s2292_s24 + $0x8] sm:$0xff]  ;;  %v214_v13 = vld [vmem:[%s2292_s24] sm:$0xff]  ;;  %s3102_s23 = sld [smem:[%s3654_s0 + %s2810_s11]]   ;;  %s2823_s24 = smov 10  }
   0xe   :  { %v377_v57 = vld [vmem:[%s2951_s28 + $0x8] sm:$0xff]  ;;  %s2299_s27 = sld [smem:[%s3654_s0 + %s2823_s24]]   ;;  %s2830_s30 = smov 17  }
   0xf   :  { %2323 = vmatprep.mubr.msk.f32.mxu1 %vm410_vm1, %v377_v57  ;;  %v399_v58 = vld [vmem:[%s2294_s2 + $0x8] sm:$0xff]  ;;  %v398_v59 = vld [vmem:[%s2294_s2] sm:$0xff]  ;;  %s2825_s2 = smov 12   ;;  %s3225_s21 = sld [smem:[%s3654_s0 + %s2827_s14]]  }
  0x10   :  { %162 = vrot.lane.b32.xlu1 %v137_v8, %s2808_s6  ;;  %146 = vrot.lane.b32.xlu0 %v137_v8, %s2811_s12  ;;  %s2304_s25 = sld [smem:[%s3654_s0 + %s2828_s22]]   ;;  %s2831_s4 = smov 18  }
  0x11   :  { %s3292_s29 = sld [smem:[%s3654_s0 + %s2829_s26]]   ;;  %s2832_s9 = smov 19  }
  0x12   :  { %s2306_s3 = sld [smem:[%s3654_s0 + %s2830_s30]]   ;;  %s2834_s24 = smov 20  }
  0x13   :  { %s3337_s8 = sld [smem:[%s3654_s0 + %s2831_s4]]   ;;  %s2838_s14 = smov 25  }
  0x14   :  { %171 = vrot.lane.b32.xlu0 %v137_v8, %s2813_s17  ;;  %179 = vrot.lane.b32.xlu1 %v137_v8, %s2814_s18  ;;  %s2308_s15 = sld [smem:[%s3654_s0 + %s2832_s9]]   ;;  %s2839_s22 = smov 26  }
  0x15   :  { %s2844_s4 = smov 30  }
  0x18   :  { %187 = vrot.lane.b32.xlu0 %v137_v8, %s2815_s19  ;;  %195 = vrot.lane.b32.xlu1 %v137_v8, %s2816_s20 }
  0x1c   :  { %223 = vperm.xlu1 %2791, %v215_v12   ;;  %218 = vperm.xlu0 %2790, %v214_v13  }
  0x7e   :  { %v155_v18 = vpop.permute.xlu1 %154  ;;  %v139_v19 = vpop.permute.xlu0 %138 }
  0x7f   :  { %v160_v28 = vmul.f32 %v2896_v22, %v155_v18  ;;  %v144_v29 = vmul.f32 %v2890_v20, %v139_v19 }
  0x82   :  { %v163_v26 = vpop.permute.xlu1 %162  ;;  %v147_v27 = vpop.permute.xlu0 %146 }
  0x83   :  { %v168_v30 = vmul.f32 %v2899_v23, %v163_v26  ;;  %v152_v31 = vmul.f32 %v2893_v21, %v147_v27 }
  0x85   :  { %v2473_v33 = vpack.c.bf16 %v152_v31, %v144_v29  ;;  %v2477_v37 = vpack.c.bf16 %v168_v30, %v160_v28 }
  0x86   :  { %v172_v34 = vpop.permute.xlu0 %171  ;;  %v180_v35 = vpop.permute.xlu1 %179 }
  0x87   :  { %2474 = vmatprep.subr.bf16.mxu0 %v2473_v33  ;;  %v177_v38 = vmul.f32 %v2902_v25, %v172_v34  ;;  %v185_v40 = vmul.f32 %v2909_v32, %v180_v35 }
  0x88   :  { %2476 = vmatpush3.bf16.msra.mxu0 %v2473_v33 }
  0x89   :  { %2478 = vmatprep.subr.bf16.mxu0 %v2477_v37  ;;  %v2481_v39 = vpack.c.bf16 %v177_v38, %v137_v8 }
  0x8a   :  { %v188_v41 = vpop.permute.xlu0 %187  ;;  %v196_v44 = vpop.permute.xlu1 %195 }
  0x8b   :  { %v193_v42 = vmul.f32 %v2912_v36, %v188_v41  ;;  %v201_v45 = vmul.f32 %v2869_v9, %v196_v44 }
  0x8c   :  { %2480 = vmatpush3.bf16.msra.mxu0 %v2477_v37 }
  0x8d   :  { %v2485_v43 = vpack.c.bf16 %v193_v42, %v185_v40  ;;  %2482 = vmatprep.subr.bf16.mxu0 %v2481_v39 }
  0x90   :  { %2484 = vmatpush3.bf16.msra.mxu0 %v2481_v39 }
  0x91   :  { %2486 = vmatprep.subr.bf16.mxu0 %v2485_v43 }
  0x94   :  { %2488 = vmatpush3.bf16.msra.mxu0 %v2485_v43 }
  0x95   :  { %2405 = vmatprep.subr.mxu0 %v201_v45 }
  0x98   :  { %2406 = vmatpush3.msra.mxu0 %v201_v45 }
  0x99   :  { %2408 = vmatmul.mubr.msk.f32.vlgmr.msra.gmra.mrb[0].mxu0 %vm226_vm0, %v204_v46  ;;  %2516 = vmatprep.subr.bf16.mxu0 %v2819_v47 }
  0x9b   :  { %v224_v48 = vpop.permute.xlu1 %223  ;;  %v219_v49 = vpop.permute.xlu0 %218 }
 0x16c   :  { %v2409_v50 = vpop.f32.mrb[0].mxu0 }
 0x16d   :  { %v305_v51 = vadd.f32 %v2409_v50, %v224_v48  ;;  %v299_v52 = vpop.f32.mrb[1].mxu0  ;;  %v379_v50 = vld [vmem:[%s2951_s28 + $0x18] sm:$0xff] }
 0x16e   :  { %v300_v53 = vadd.f32 %v299_v52, %v219_v49  ;;  %v376_v49 = vld [vmem:[%s2951_s28] sm:$0xff] }
 0x16f   :  { %v2922_v54 = vmax.f32 %v305_v51, 0.0  ;;  %v378_v51 = vld [vmem:[%s2951_s28 + $0x10] sm:$0xff]  ;;  %s2824_s28 = smov 11  }
 0x170   :  { %v2924_v55 = vmax.f32 %v300_v53, 0.0  ;;  %s3147_s1 = sld [smem:[%s3654_s0 + %s2824_s28]]   ;;  %s2835_s28 = smov 22  }
 0x171   :  { %312 = vrot.lane.b32.xlu0 %v2922_v54, %s2810_s11 }
 0x172   :  { %310 = vrot.lane.b32.xlu1 %v2924_v55, %s2810_s11  ;;  %v2502_v56 = vpack.c.bf16 %v2922_v54, %v2924_v55 }
 0x175   :  { %320 = vrot.lane.b32.xlu0 %v2922_v54, %s2811_s12 }
 0x176   :  { %318 = vrot.lane.b32.xlu1 %v2924_v55, %s2811_s12 }
 0x179   :  { %328 = vrot.lane.b32.xlu0 %v2922_v54, %s2809_s10 }
 0x17a   :  { %326 = vrot.lane.b32.xlu1 %v2924_v55, %s2809_s10 }
 0x17d   :  { %336 = vrot.lane.b32.xlu0 %v2922_v54, %s2808_s6 }
 0x17e   :  { %334 = vrot.lane.b32.xlu1 %v2924_v55, %s2808_s6 }
 0x181   :  { %346 = vrot.lane.b32.xlu0 %v2922_v54, %s2813_s17 }
 0x182   :  { %344 = vrot.lane.b32.xlu1 %v2924_v55, %s2813_s17 }
 0x185   :  { %354 = vrot.lane.b32.xlu0 %v2922_v54, %s2814_s18 }
 0x186   :  { %352 = vrot.lane.b32.xlu1 %v2924_v55, %s2814_s18 }
 0x189   :  { %362 = vrot.lane.b32.xlu0 %v2922_v54, %s2815_s19 }
 0x18a   :  { %360 = vrot.lane.b32.xlu1 %v2924_v55, %s2815_s19 }
 0x18d   :  { %370 = vrot.lane.b32.xlu0 %v2922_v54, %s2816_s20 }
 0x18e   :  { %368 = vrot.lane.b32.xlu1 %v2924_v55, %s2816_s20 }
 0x191   :  { %407 = vperm.xlu0 %2790, %v399_v58  }
 0x192   :  { %402 = vperm.xlu1 %2791, %v398_v59  }
 0x1e3   :  { %v313_v60 = vpop.permute.xlu0 %312 }
 0x1e4   :  { %v315_v61 = vmul.f32 %v313_v60, %v2890_v20  ;;  %v311_v62 = vpop.permute.xlu1 %310 }
 0x1e5   :  { %v314_v63 = vmul.f32 %v311_v62, %v2890_v20 }
 0x1e7   :  { %v321_v0 = vpop.permute.xlu0 %320  ;;  %v2490_v1 = vpack.c.bf16 %v315_v61, %v314_v63  ;;  %v561_v63 = vld [vmem:[%s3033_s13 + $0x8] sm:$0xff] }
 0x1e8   :  { %v323_v6 = vmul.f32 %v321_v0, %v2893_v21  ;;  %v319_v7 = vpop.permute.xlu1 %318  ;;  %v582_v0 = vld [vmem:[%s2296_s5] sm:$0xff]  ;;  %2325 = vmatprep.mubr.msk.f32.mxu0 %vm410_vm1, %v561_v63 }
 0x1e9   :  { %v322_v8 = vmul.f32 %v319_v7, %v2893_v21  ;;  %2491 = vmatpush1.bf16.msra.mxu1 %v2490_v1  ;;  %v583_v1 = vld [vmem:[%s2296_s5 + $0x8] sm:$0xff]  ;;  %s2301_s5 = sld [smem:[%s3654_s0 + %s2825_s2]]   ;;  %s2836_s2 = smov 23  }
 0x1ea   :  { %2492 = vmatprep.subr.bf16.mxu1 %v2819_v47 }
 0x1eb   :  { %v2493_v10 = vpack.c.bf16 %v323_v6, %v322_v8  ;;  %v329_v11 = vpop.permute.xlu0 %328  ;;  %v675_v6 = vld [vmem:[%s2297_s16] sm:$0xff]  ;;  %s2833_s16 = smov 21  }
 0x1ec   :  { %v331_v12 = vmul.f32 %v329_v11, %v2896_v22  ;;  %v327_v13 = vpop.permute.xlu1 %326 }
 0x1ed   :  { %v330_v14 = vmul.f32 %v327_v13, %v2896_v22  ;;  %2494 = vmatpush1.bf16.msra.mxu1 %v2493_v10 }
 0x1ee   :  { %2495 = vmatprep.subr.bf16.mxu1 %v2819_v47 }
 0x1ef   :  { %v2496_v15 = vpack.c.bf16 %v331_v12, %v330_v14  ;;  %v337_v16 = vpop.permute.xlu0 %336 }
 0x1f0   :  { %v339_v17 = vmul.f32 %v337_v16, %v2899_v23  ;;  %v335_v18 = vpop.permute.xlu1 %334 }
 0x1f1   :  { %v338_v19 = vmul.f32 %v335_v18, %v2899_v23  ;;  %2497 = vmatpush1.bf16.msra.mxu1 %v2496_v15 }
 0x1f2   :  { %2498 = vmatprep.subr.bf16.mxu1 %v2819_v47 }
 0x1f3   :  { %v2499_v24 = vpack.c.bf16 %v339_v17, %v338_v19  ;;  %v347_v26 = vpop.permute.xlu0 %346 }
 0x1f4   :  { %v345_v27 = vpop.permute.xlu1 %344  ;;  %v349_v28 = vmul.f32 %v347_v26, %v2902_v25 }
 0x1f5   :  { %2500 = vmatpush1.bf16.msra.mxu1 %v2499_v24  ;;  %v348_v29 = vmul.f32 %v345_v27, %v2902_v25 }
 0x1f6   :  { %2501 = vmatprep.subr.bf16.mxu1 %v2819_v47 }
 0x1f7   :  { %v355_v30 = vpop.permute.xlu0 %354  ;;  %v2505_v33 = vpack.c.bf16 %v349_v28, %v348_v29 }
 0x1f8   :  { %v353_v31 = vpop.permute.xlu1 %352  ;;  %v357_v34 = vmul.f32 %v355_v30, %v2909_v32 }
 0x1f9   :  { %2503 = vmatpush1.bf16.msra.mxu1 %v2502_v56  ;;  %v356_v35 = vmul.f32 %v353_v31, %v2909_v32 }
 0x1fa   :  { %2504 = vmatprep.subr.bf16.mxu1 %v2819_v47 }
 0x1fb   :  { %v363_v37 = vpop.permute.xlu0 %362  ;;  %v2508_v39 = vpack.c.bf16 %v357_v34, %v356_v35 }
 0x1fc   :  { %v361_v38 = vpop.permute.xlu1 %360  ;;  %v365_v40 = vmul.f32 %v363_v37, %v2912_v36 }
 0x1fd   :  { %2506 = vmatpush1.bf16.msra.mxu1 %v2505_v33  ;;  %v364_v41 = vmul.f32 %v361_v38, %v2912_v36 }
 0x1fe   :  { %2507 = vmatprep.subr.bf16.mxu1 %v2819_v47 }
 0x1ff   :  { %v371_v42 = vpop.permute.xlu0 %370  ;;  %v2511_v44 = vpack.c.bf16 %v365_v40, %v364_v41 }
 0x200   :  { %v369_v43 = vpop.permute.xlu1 %368  ;;  %v373_v45 = vmul.f32 %v371_v42, %v2869_v9 }
 0x201   :  { %2509 = vmatpush1.bf16.msra.mxu1 %v2508_v39  ;;  %v372_v46 = vmul.f32 %v369_v43, %v2869_v9 }
 0x202   :  { %2510 = vmatprep.subr.bf16.mxu1 %v2819_v47 }
 0x203   :  { %v2514_v48 = vpack.c.bf16 %v373_v45, %v372_v46 }
 0x205   :  { %2512 = vmatpush1.bf16.msra.mxu1 %v2511_v44 }
 0x206   :  { %2513 = vmatprep.subr.bf16.mxu1 %v2819_v47 }
 0x209   :  { %2515 = vmatpush1.bf16.msra.mxu1 %v2514_v48 }
 0x20c   :  { %482 = vmatmul.mubr.f32.vlgmr.msra.gmra.mrb[0].mxu1 %v376_v49 }
 0x20d   :  { %2324 = vmatprep.mubr.msk.f32.mxu1 %vm410_vm1, %v379_v50 }
 0x210   :  { %487 = vmatmul.mubr.f32.gmra.mrb[2].mxu1 %v378_v51  ;;  %v408_v57 = vpop.permute.xlu0 %407 }
 0x211   :  { %v403_v52 = vpop.permute.xlu1 %402 }
 0x2df   :  { %v483_v53 = vpop.f32.mrb[0].mxu1 }
 0x2e0   :  { %v484_v54 = vadd.f32 %v483_v53, %v403_v52  ;;  %v485_v55 = vpop.f32.mrb[1].mxu1 }
 0x2e2   :  { %v2998_v56 = vmax.f32 %v484_v54, 0.0 }
 0x2e3   :  { %v488_v58 = vpop.f32.mrb[2].mxu1 }
 0x2e4   :  { %v489_v59 = vadd.f32 %v488_v58, %v408_v57  ;;  %v490_v60 = vpop.f32.mrb[3].mxu1  ;;  %494 = vrot.lane.b32.xlu1 %v2998_v56, %s2810_s11  ;;  %v563_v57 = vld [vmem:[%s3033_s13 + $0x18] sm:$0xff]  ;;  %v562_v58 = vld [vmem:[%s3033_s13 + $0x10] sm:$0xff] }
 0x2e6   :  { %v3002_v61 = vmax.f32 %v489_v59, 0.0 }
 0x2e8   :  { %502 = vrot.lane.b32.xlu1 %v2998_v56, %s2811_s12  ;;  %496 = vrot.lane.b32.xlu0 %v3002_v61, %s2810_s11  ;;  %v2529_v62 = vpack.c.bf16 %v3002_v61, %v2998_v56 }
 0x2ec   :  { %510 = vrot.lane.b32.xlu1 %v2998_v56, %s2809_s10  ;;  %504 = vrot.lane.b32.xlu0 %v3002_v61, %s2811_s12 }
 0x2f0   :  { %518 = vrot.lane.b32.xlu1 %v2998_v56, %s2808_s6  ;;  %512 = vrot.lane.b32.xlu0 %v3002_v61, %s2809_s10 }
 0x2f4   :  { %528 = vrot.lane.b32.xlu1 %v2998_v56, %s2813_s17  ;;  %520 = vrot.lane.b32.xlu0 %v3002_v61, %s2808_s6 }
 0x2f8   :  { %536 = vrot.lane.b32.xlu1 %v2998_v56, %s2814_s18  ;;  %530 = vrot.lane.b32.xlu0 %v3002_v61, %s2813_s17 }
 0x2fc   :  { %544 = vrot.lane.b32.xlu1 %v2998_v56, %s2815_s19  ;;  %538 = vrot.lane.b32.xlu0 %v3002_v61, %s2814_s18 }
 0x300   :  { %552 = vrot.lane.b32.xlu1 %v2998_v56, %s2816_s20  ;;  %546 = vrot.lane.b32.xlu0 %v3002_v61, %s2815_s19  ;;  %v560_v56 = vld [vmem:[%s3033_s13] sm:$0xff]  ;;  %s2303_s13 = sld [smem:[%s3654_s0 + %s2826_s7]]   ;;  %s2837_s7 = smov 24  }
 0x304   :  { %586 = vperm.xlu1 %2791, %v582_v0   ;;  %554 = vrot.lane.b32.xlu0 %v3002_v61, %s2816_s20 }
 0x308   :  { %591 = vperm.xlu1 %2791, %v583_v1   ;;  %679 = vperm.xlu0 %2790, %v675_v6   ;;  %v132_v1 = vsub.f32 1.0, %v2859_v3 }
 0x356   :  { %v495_v7 = vpop.permute.xlu1 %494 }
 0x357   :  { %v498_v11 = vmul.f32 %v495_v7, %v2890_v20 }
 0x35a   :  { %v503_v8 = vpop.permute.xlu1 %502  ;;  %v497_v10 = vpop.permute.xlu0 %496 }
 0x35b   :  { %v499_v12 = vmul.f32 %v497_v10, %v2890_v20  ;;  %v506_v16 = vmul.f32 %v503_v8, %v2893_v21  ;;  %v3084_v10 = vrot.slane %v132_v1, %v2857_v2 }
 0x35d   :  { %v2517_v13 = vpack.c.bf16 %v499_v12, %v498_v11 }
 0x35e   :  { %v511_v14 = vpop.permute.xlu1 %510  ;;  %v505_v15 = vpop.permute.xlu0 %504 }
 0x35f   :  { %v507_v17 = vmul.f32 %v505_v15, %v2893_v21  ;;  %2518 = vmatpush1.bf16.msra.mxu0 %v2517_v13  ;;  %v514_v26 = vmul.f32 %v511_v14, %v2896_v22 }
 0x360   :  { %2519 = vmatprep.subr.bf16.mxu0 %v2819_v47 }
 0x361   :  { %v2520_v18 = vpack.c.bf16 %v507_v17, %v506_v16 }
 0x362   :  { %v519_v19 = vpop.permute.xlu1 %518  ;;  %v513_v24 = vpop.permute.xlu0 %512 }
 0x363   :  { %v515_v27 = vmul.f32 %v513_v24, %v2896_v22  ;;  %2521 = vmatpush1.bf16.msra.mxu0 %v2520_v18  ;;  %v522_v31 = vmul.f32 %v519_v19, %v2899_v23  ;;  %v747_v24 = vld [vmem:[%s2299_s27 + $0x8] sm:$0xff] }
 0x364   :  { %2522 = vmatprep.subr.bf16.mxu0 %v2819_v47 }
 0x365   :  { %v2523_v28 = vpack.c.bf16 %v515_v27, %v514_v26  ;;  %v746_v26 = vld [vmem:[%s2299_s27] sm:$0xff]  ;;  %s3415_s27 = sld [smem:[%s3654_s0 + %s2834_s24]]  }
 0x366   :  { %v529_v29 = vpop.permute.xlu1 %528  ;;  %v521_v30 = vpop.permute.xlu0 %520 }
 0x367   :  { %v523_v33 = vmul.f32 %v521_v30, %v2899_v23  ;;  %2524 = vmatpush1.bf16.msra.mxu0 %v2523_v28  ;;  %v532_v40 = vmul.f32 %v529_v29, %v2902_v25 }
 0x368   :  { %2525 = vmatprep.subr.bf16.mxu0 %v2819_v47 }
 0x369   :  { %v2526_v34 = vpack.c.bf16 %v523_v33, %v522_v31 }
 0x36a   :  { %v531_v35 = vpop.permute.xlu0 %530  ;;  %v537_v37 = vpop.permute.xlu1 %536 }
 0x36b   :  { %2527 = vmatpush1.bf16.msra.mxu0 %v2526_v34  ;;  %v533_v38 = vmul.f32 %v531_v35, %v2902_v25  ;;  %v540_v45 = vmul.f32 %v537_v37, %v2909_v32 }
 0x36c   :  { %2528 = vmatprep.subr.bf16.mxu0 %v2819_v47 }
 0x36d   :  { %v2532_v41 = vpack.c.bf16 %v533_v38, %v532_v40 }
 0x36e   :  { %v539_v39 = vpop.permute.xlu0 %538  ;;  %v545_v43 = vpop.permute.xlu1 %544 }
 0x36f   :  { %2530 = vmatpush1.bf16.msra.mxu0 %v2529_v62  ;;  %v541_v42 = vmul.f32 %v539_v39, %v2909_v32  ;;  %v548_v50 = vmul.f32 %v545_v43, %v2912_v36 }
 0x370   :  { %2531 = vmatprep.subr.bf16.mxu0 %v2819_v47 }
 0x371   :  { %v2535_v46 = vpack.c.bf16 %v541_v42, %v540_v45 }
 0x372   :  { %v547_v44 = vpop.permute.xlu0 %546  ;;  %v553_v51 = vpop.permute.xlu1 %552 }
 0x373   :  { %2533 = vmatpush1.bf16.msra.mxu0 %v2532_v41  ;;  %v549_v48 = vmul.f32 %v547_v44, %v2912_v36  ;;  %v556_v54 = vmul.f32 %v553_v51, %v2869_v9 }
 0x374   :  { %2534 = vmatprep.subr.bf16.mxu0 %v2819_v47 }
 0x375   :  { %v2538_v52 = vpack.c.bf16 %v549_v48, %v548_v50  ;;  %v736_v50 = vld [vmem:[%s3102_s23 + $0x8] sm:$0xff] }
 0x376   :  { %v555_v49 = vpop.permute.xlu0 %554 }
 0x377   :  { %2536 = vmatpush1.bf16.msra.mxu0 %v2535_v46  ;;  %v557_v53 = vmul.f32 %v555_v49, %v2869_v9 }
 0x378   :  { %2537 = vmatprep.subr.bf16.mxu0 %v2819_v47 }
 0x379   :  { %v2541_v55 = vpack.c.bf16 %v557_v53, %v556_v54 }
 0x37b   :  { %2539 = vmatpush1.bf16.msra.mxu0 %v2538_v52 }
 0x37c   :  { %2540 = vmatprep.subr.bf16.mxu0 %v2819_v47 }
 0x37f   :  { %2542 = vmatpush1.bf16.msra.mxu0 %v2541_v55 }
 0x380   :  { %2559 = vmatprep.subr.bf16.mxu0 %v2819_v47 }
 0x382   :  { %665 = vmatmul.mubr.f32.vlgmr.msra.gmra.mrb[2].mxu0 %v560_v56 }
 0x383   :  { %2326 = vmatprep.mubr.msk.f32.mxu0 %vm410_vm1, %v563_v57  ;;  %v587_v59 = vpop.permute.xlu1 %586 }
 0x386   :  { %670 = vmatmul.mubr.f32.gmra.mrb[4].mxu0 %v562_v58 }
 0x387   :  { %v680_v7 = vpop.permute.xlu0 %679  ;;  %v592_v13 = vpop.permute.xlu1 %591 }
 0x455   :  { %v666_v60 = vpop.f32.mrb[2].mxu0 }
 0x456   :  { %v667_v61 = vadd.f32 %v666_v60, %v587_v59  ;;  %v668_v62 = vpop.f32.mrb[3].mxu0  ;;  %v908_v60 = vld [vmem:[%s3147_s1 + $0x8] sm:$0xff] }
 0x457   :  { %2329 = vmatprep.mubr.msk.f32.mxu0 %vm410_vm1, %v908_v60  ;;  %v929_v62 = vld [vmem:[%s2301_s5] sm:$0xff] }
 0x458   :  { %2792 = vtanh.f32 %v667_v61  ;;  %v930_v61 = vld [vmem:[%s2301_s5 + $0x8] sm:$0xff]  ;;  %s3476_s5 = sld [smem:[%s3654_s0 + %s2836_s2]]  }
 0x459   :  { %v671_v63 = vpop.f32.mrb[4].mxu0 }
 0x45a   :  { %v673_v0 = vpop.f32.mrb[5].mxu0  ;;  %v672_v14 = vadd.f32 %v671_v63, %v592_v13 }
 0x45c   :  { %v688_v15 = vmul.f32 %v3084_v10, %v672_v14 }
 0x45e   :  { %v689_v16 = vadd.f32 %v688_v15, %v2861_v4  ;;  %v735_v4 = vld [vmem:[%s3102_s23] sm:$0xff]  ;;  %s2310_s23 = sld [smem:[%s3654_s0 + %s2833_s16]]  }
 0x45f   :  { %2428 = vmatprep.mubr.msk.f32.mxu1 %vm226_vm0, %v735_v4 }
 0x462   :  { %v2793_v6 = vpop.eup %2792 }
 0x463   :  { %v682_v8 = vmul.f32 %v2793_v6, %v680_v7 }
 0x465   :  { %v3087_v11 = vmul.f32 %v3084_v10, %v682_v8 }
 0x467   :  { %v690_v12 = vmul.f32 1.442695, %v3087_v11 }
 0x469   :  { %2794 = vpow2.f32 %v690_v12 }
 0x473   :  { %v2795_v17 = vpop.eup %2794 }
 0x474   :  { %v3092_v18 = vmul.f32 %v2795_v17, %v689_v16 }
 0x476   :  { %v701_v19 = vmul.f32 %v3092_v18, %v3084_v10 }
 0x478   :  { %706 = vrot.lane.b32.xlu1 %v701_v19, %s2811_s12  ;;  %702 = vrot.lane.b32.xlu0 %v701_v19, %s2810_s11 }
 0x47c   :  { %714 = vrot.lane.b32.xlu1 %v701_v19, %s2808_s6  ;;  %710 = vrot.lane.b32.xlu0 %v701_v19, %s2809_s10 }
 0x480   :  { %723 = vrot.lane.b32.xlu1 %v701_v19, %s2814_s18  ;;  %719 = vrot.lane.b32.xlu0 %v701_v19, %s2813_s17 }
 0x484   :  { %731 = vrot.lane.b32.xlu1 %v701_v19, %s2816_s20  ;;  %727 = vrot.lane.b32.xlu0 %v701_v19, %s2815_s19 }
 0x488   :  { %755 = vperm.xlu1 %2791, %v747_v24   ;;  %750 = vperm.xlu0 %2790, %v746_v26  }
 0x4ea   :  { %v707_v27 = vpop.permute.xlu1 %706  ;;  %v703_v28 = vpop.permute.xlu0 %702 }
 0x4eb   :  { %v708_v29 = vmul.f32 %v707_v27, %v2893_v21  ;;  %v704_v30 = vmul.f32 %v703_v28, %v2890_v20 }
 0x4ed   :  { %v2543_v31 = vpack.c.bf16 %v708_v29, %v704_v30 }
 0x4ee   :  { %v715_v33 = vpop.permute.xlu1 %714  ;;  %v711_v34 = vpop.permute.xlu0 %710 }
 0x4ef   :  { %v716_v35 = vmul.f32 %v715_v33, %v2899_v23  ;;  %v712_v37 = vmul.f32 %v711_v34, %v2896_v22  ;;  %2544 = vmatprep.subr.bf16.mxu1 %v2543_v31 }
 0x4f0   :  { %2546 = vmatpush3.bf16.msra.mxu1 %v2543_v31 }
 0x4f1   :  { %v2547_v38 = vpack.c.bf16 %v716_v35, %v712_v37 }
 0x4f2   :  { %v724_v39 = vpop.permute.xlu1 %723  ;;  %v720_v40 = vpop.permute.xlu0 %719 }
 0x4f3   :  { %v721_v41 = vmul.f32 %v720_v40, %v2902_v25  ;;  %2548 = vmatprep.subr.bf16.mxu1 %v2547_v38  ;;  %v725_v44 = vmul.f32 %v724_v39, %v2909_v32 }
 0x4f4   :  { %2550 = vmatpush3.bf16.msra.mxu1 %v2547_v38 }
 0x4f5   :  { %v2551_v42 = vpack.c.bf16 %v721_v41, %v701_v19 }
 0x4f6   :  { %v728_v43 = vpop.permute.xlu0 %727  ;;  %v732_v46 = vpop.permute.xlu1 %731 }
 0x4f7   :  { %v729_v45 = vmul.f32 %v728_v43, %v2912_v36  ;;  %2552 = vmatprep.subr.bf16.mxu1 %v2551_v42  ;;  %v733_v49 = vmul.f32 %v732_v46, %v2869_v9 }
 0x4f8   :  { %2554 = vmatpush3.bf16.msra.mxu1 %v2551_v42 }
 0x4f9   :  { %v2555_v48 = vpack.c.bf16 %v729_v45, %v725_v44 }
 0x4fb   :  { %2556 = vmatprep.subr.bf16.mxu1 %v2555_v48 }
 0x4fc   :  { %2558 = vmatpush3.bf16.msra.mxu1 %v2555_v48 }
 0x4fd   :  { %2426 = vmatprep.subr.mxu1 %v733_v49 }
 0x500   :  { %2427 = vmatpush3.msra.mxu1 %v733_v49 }
 0x501   :  { %2429 = vmatmul.mubr.msk.f32.vlgmr.msra.gmra.mrb[4].mxu1 %vm226_vm0, %v736_v50  ;;  %2586 = vmatprep.subr.bf16.mxu1 %v2819_v47 }
 0x507   :  { %v756_v51 = vpop.permute.xlu1 %755  ;;  %v751_v53 = vpop.permute.xlu0 %750 }
 0x5d4   :  { %v2430_v52 = vpop.f32.mrb[4].mxu1 }
 0x5d5   :  { %v836_v54 = vadd.f32 %v2430_v52, %v756_v51  ;;  %v830_v55 = vpop.f32.mrb[5].mxu1 }
 0x5d6   :  { %v831_v56 = vadd.f32 %v830_v55, %v751_v53  ;;  %v907_v55 = vld [vmem:[%s3147_s1] sm:$0xff] }
 0x5d7   :  { %v3126_v57 = vmax.f32 %v836_v54, 0.0 }
 0x5d8   :  { %v839_v58 = vmax.f32 %v831_v56, 0.0  ;;  %v910_v56 = vld [vmem:[%s3147_s1 + $0x18] sm:$0xff] }
 0x5d9   :  { %843 = vrot.lane.b32.xlu1 %v3126_v57, %s2810_s11 }
 0x5da   :  { %841 = vrot.lane.b32.xlu0 %v839_v58, %s2810_s11  ;;  %v2572_v59 = vpack.c.bf16 %v3126_v57, %v839_v58 }
 0x5dd   :  { %851 = vrot.lane.b32.xlu1 %v3126_v57, %s2811_s12 }
 0x5de   :  { %849 = vrot.lane.b32.xlu0 %v839_v58, %s2811_s12 }
 0x5e1   :  { %859 = vrot.lane.b32.xlu1 %v3126_v57, %s2809_s10 }
 0x5e2   :  { %857 = vrot.lane.b32.xlu0 %v839_v58, %s2809_s10 }
 0x5e5   :  { %867 = vrot.lane.b32.xlu1 %v3126_v57, %s2808_s6 }
 0x5e6   :  { %865 = vrot.lane.b32.xlu0 %v839_v58, %s2808_s6 }
 0x5e9   :  { %877 = vrot.lane.b32.xlu1 %v3126_v57, %s2813_s17 }
 0x5ea   :  { %875 = vrot.lane.b32.xlu0 %v839_v58, %s2813_s17 }
 0x5ed   :  { %885 = vrot.lane.b32.xlu1 %v3126_v57, %s2814_s18 }
 0x5ee   :  { %883 = vrot.lane.b32.xlu0 %v839_v58, %s2814_s18 }
 0x5f1   :  { %893 = vrot.lane.b32.xlu1 %v3126_v57, %s2815_s19 }
 0x5f2   :  { %891 = vrot.lane.b32.xlu0 %v839_v58, %s2815_s19 }
 0x5f5   :  { %901 = vrot.lane.b32.xlu1 %v3126_v57, %s2816_s20  ;;  %v909_v57 = vld [vmem:[%s3147_s1 + $0x10] sm:$0xff]  ;;  %s2311_s1 = sld [smem:[%s3654_s0 + %s2835_s28]]  }
 0x5f6   :  { %899 = vrot.lane.b32.xlu0 %v839_v58, %s2816_s20 }
 0x5f9   :  { %938 = vperm.xlu1 %2791, %v930_v61  }
 0x5fa   :  { %933 = vperm.xlu0 %2790, %v929_v62  }
 0x64b   :  { %v844_v63 = vpop.permute.xlu1 %843 }
 0x64c   :  { %v846_v0 = vmul.f32 %v844_v63, %v2890_v20  ;;  %v842_v6 = vpop.permute.xlu0 %841 }
 0x64d   :  { %v845_v7 = vmul.f32 %v842_v6, %v2890_v20 }
 0x64f   :  { %v2560_v8 = vpack.c.bf16 %v846_v0, %v845_v7  ;;  %v852_v12 = vpop.permute.xlu1 %851 }
 0x650   :  { %v854_v13 = vmul.f32 %v852_v12, %v2893_v21  ;;  %v850_v14 = vpop.permute.xlu0 %849 }
 0x651   :  { %v853_v15 = vmul.f32 %v850_v14, %v2893_v21  ;;  %2561 = vmatpush1.bf16.msra.mxu0 %v2560_v8  ;;  %v1112_v14 = vld [vmem:[%s2303_s13] sm:$0xff] }
 0x652   :  { %2562 = vmatprep.subr.bf16.mxu0 %v2819_v47 }
 0x653   :  { %v2563_v16 = vpack.c.bf16 %v854_v13, %v853_v15  ;;  %v860_v17 = vpop.permute.xlu1 %859  ;;  %v1091_v13 = vld [vmem:[%s3225_s21 + $0x8] sm:$0xff]  ;;  %v1205_v15 = vld [vmem:[%s2304_s25] sm:$0xff]  ;;  %s2315_s25 = sld [smem:[%s3654_s0 + %s2839_s22]]  }
 0x654   :  { %v862_v19 = vmul.f32 %v860_v17, %v2896_v22  ;;  %v858_v4 = vpop.permute.xlu0 %857  ;;  %2331 = vmatprep.mubr.msk.f32.mxu1 %vm410_vm1, %v1091_v13 }
 0x655   :  { %v861_v24 = vmul.f32 %v858_v4, %v2896_v22  ;;  %2564 = vmatpush1.bf16.msra.mxu0 %v2563_v16  ;;  %v1113_v16 = vld [vmem:[%s2303_s13 + $0x8] sm:$0xff]  ;;  %s2313_s13 = sld [smem:[%s3654_s0 + %s2837_s7]]  }
 0x656   :  { %2565 = vmatprep.subr.bf16.mxu0 %v2819_v47 }
 0x657   :  { %v2566_v26 = vpack.c.bf16 %v862_v19, %v861_v24  ;;  %v868_v27 = vpop.permute.xlu1 %867 }
 0x658   :  { %v870_v28 = vmul.f32 %v868_v27, %v2899_v23  ;;  %v866_v29 = vpop.permute.xlu0 %865 }
 0x659   :  { %v869_v30 = vmul.f32 %v866_v29, %v2899_v23  ;;  %2567 = vmatpush1.bf16.msra.mxu0 %v2566_v26 }
 0x65a   :  { %2568 = vmatprep.subr.bf16.mxu0 %v2819_v47 }
 0x65b   :  { %v2569_v31 = vpack.c.bf16 %v870_v28, %v869_v30  ;;  %v878_v33 = vpop.permute.xlu1 %877 }
 0x65c   :  { %v876_v34 = vpop.permute.xlu0 %875  ;;  %v880_v35 = vmul.f32 %v878_v33, %v2902_v25 }
 0x65d   :  { %2570 = vmatpush1.bf16.msra.mxu0 %v2569_v31  ;;  %v879_v37 = vmul.f32 %v876_v34, %v2902_v25 }
 0x65e   :  { %2571 = vmatprep.subr.bf16.mxu0 %v2819_v47 }
 0x65f   :  { %v886_v38 = vpop.permute.xlu1 %885  ;;  %v2575_v40 = vpack.c.bf16 %v880_v35, %v879_v37 }
 0x660   :  { %v884_v39 = vpop.permute.xlu0 %883  ;;  %v888_v41 = vmul.f32 %v886_v38, %v2909_v32 }
 0x661   :  { %2573 = vmatpush1.bf16.msra.mxu0 %v2572_v59  ;;  %v887_v42 = vmul.f32 %v884_v39, %v2909_v32 }
 0x662   :  { %2574 = vmatprep.subr.bf16.mxu0 %v2819_v47 }
 0x663   :  { %v894_v43 = vpop.permute.xlu1 %893  ;;  %v2578_v45 = vpack.c.bf16 %v888_v41, %v887_v42 }
 0x664   :  { %v892_v44 = vpop.permute.xlu0 %891  ;;  %v896_v46 = vmul.f32 %v894_v43, %v2912_v36 }
 0x665   :  { %2576 = vmatpush1.bf16.msra.mxu0 %v2575_v40  ;;  %v895_v48 = vmul.f32 %v892_v44, %v2912_v36 }
 0x666   :  { %2577 = vmatprep.subr.bf16.mxu0 %v2819_v47 }
 0x667   :  { %v902_v49 = vpop.permute.xlu1 %901  ;;  %v2581_v51 = vpack.c.bf16 %v896_v46, %v895_v48 }
 0x668   :  { %v900_v50 = vpop.permute.xlu0 %899  ;;  %v904_v52 = vmul.f32 %v902_v49, %v2869_v9 }
 0x669   :  { %2579 = vmatpush1.bf16.msra.mxu0 %v2578_v45  ;;  %v903_v53 = vmul.f32 %v900_v50, %v2869_v9 }
 0x66a   :  { %2580 = vmatprep.subr.bf16.mxu0 %v2819_v47 }
 0x66b   :  { %v2584_v54 = vpack.c.bf16 %v904_v52, %v903_v53 }
 0x66d   :  { %2582 = vmatpush1.bf16.msra.mxu0 %v2581_v51 }
 0x66e   :  { %2583 = vmatprep.subr.bf16.mxu0 %v2819_v47 }
 0x671   :  { %2585 = vmatpush1.bf16.msra.mxu0 %v2584_v54 }
 0x674   :  { %1012 = vmatmul.mubr.f32.vlgmr.msra.gmra.mrb[6].mxu0 %v907_v55 }
 0x675   :  { %2330 = vmatprep.mubr.msk.f32.mxu0 %vm410_vm1, %v910_v56 }
 0x678   :  { %1017 = vmatmul.mubr.f32.gmra.mrb[8].mxu0 %v909_v57  ;;  %v939_v63 = vpop.permute.xlu1 %938 }
 0x679   :  { %v934_v58 = vpop.permute.xlu0 %933 }
 0x747   :  { %v1013_v59 = vpop.f32.mrb[6].mxu0 }
 0x748   :  { %v1014_v60 = vadd.f32 %v1013_v59, %v934_v58  ;;  %v1015_v61 = vpop.f32.mrb[7].mxu0 }
 0x74a   :  { %v3191_v62 = vmax.f32 %v1014_v60, 0.0 }
 0x74b   :  { %v1018_v0 = vpop.f32.mrb[8].mxu0 }
 0x74c   :  { %v1019_v6 = vadd.f32 %v1018_v0, %v939_v63  ;;  %v1020_v7 = vpop.f32.mrb[9].mxu0  ;;  %1024 = vrot.lane.b32.xlu0 %v3191_v62, %s2810_s11 }
 0x74d   :  { %v1093_v7 = vld [vmem:[%s3225_s21 + $0x18] sm:$0xff] }
 0x74e   :  { %v3195_v8 = vmax.f32 %v1019_v6, 0.0  ;;  %v1090_v6 = vld [vmem:[%s3225_s21] sm:$0xff] }
 0x750   :  { %1026 = vrot.lane.b32.xlu1 %v3195_v8, %s2810_s11  ;;  %1032 = vrot.lane.b32.xlu0 %v3191_v62, %s2811_s12  ;;  %v2599_v12 = vpack.c.bf16 %v3195_v8, %v3191_v62 }
 0x754   :  { %1034 = vrot.lane.b32.xlu1 %v3195_v8, %s2811_s12  ;;  %1040 = vrot.lane.b32.xlu0 %v3191_v62, %s2809_s10 }
 0x758   :  { %1042 = vrot.lane.b32.xlu1 %v3195_v8, %s2809_s10  ;;  %1048 = vrot.lane.b32.xlu0 %v3191_v62, %s2808_s6 }
 0x75c   :  { %1050 = vrot.lane.b32.xlu1 %v3195_v8, %s2808_s6  ;;  %1058 = vrot.lane.b32.xlu0 %v3191_v62, %s2813_s17 }
 0x760   :  { %1060 = vrot.lane.b32.xlu1 %v3195_v8, %s2813_s17  ;;  %1066 = vrot.lane.b32.xlu0 %v3191_v62, %s2814_s18 }
 0x764   :  { %1068 = vrot.lane.b32.xlu1 %v3195_v8, %s2814_s18  ;;  %1074 = vrot.lane.b32.xlu0 %v3191_v62, %s2815_s19 }
 0x768   :  { %1076 = vrot.lane.b32.xlu1 %v3195_v8, %s2815_s19  ;;  %1082 = vrot.lane.b32.xlu0 %v3191_v62, %s2816_s20 }
 0x76c   :  { %1084 = vrot.lane.b32.xlu1 %v3195_v8, %s2816_s20  ;;  %1116 = vperm.xlu0 %2790, %v1112_v14   ;;  %v1092_v8 = vld [vmem:[%s3225_s21 + $0x10] sm:$0xff]  ;;  %s3521_s21 = sld [smem:[%s3654_s0 + %s2838_s14]]  }
 0x770   :  { %1209 = vperm.xlu1 %2791, %v1205_v15   ;;  %1121 = vperm.xlu0 %2790, %v1113_v16  }
 0x7be   :  { %v1025_v17 = vpop.permute.xlu0 %1024 }
 0x7bf   :  { %v1028_v24 = vmul.f32 %v1025_v17, %v2890_v20 }
 0x7c2   :  { %v1027_v19 = vpop.permute.xlu1 %1026  ;;  %v1033_v4 = vpop.permute.xlu0 %1032 }
 0x7c3   :  { %v1029_v26 = vmul.f32 %v1027_v19, %v2890_v20  ;;  %v1036_v30 = vmul.f32 %v1033_v4, %v2893_v21  ;;  %v693_v19 = vrot.slane %v3087_v11, 4  ;;  %v700_v4 = vsub.f32 1.0, %v132_v1 }
 0x7c5   :  { %v2587_v27 = vpack.c.bf16 %v1029_v26, %v1028_v24  ;;  %v694_v24 = vadd.f32 %v693_v19, %v3087_v11 }
 0x7c6   :  { %v1035_v28 = vpop.permute.xlu1 %1034  ;;  %v1041_v29 = vpop.permute.xlu0 %1040 }
 0x7c7   :  { %v1037_v31 = vmul.f32 %v1035_v28, %v2893_v21  ;;  %2588 = vmatpush1.bf16.msra.mxu1 %v2587_v27  ;;  %v1044_v37 = vmul.f32 %v1041_v29, %v2896_v22  ;;  %v3276_v29 = vrot.slane %v700_v4, %v2857_v2 }
 0x7c8   :  { %2589 = vmatprep.subr.bf16.mxu1 %v2819_v47 }
 0x7c9   :  { %v2590_v33 = vpack.c.bf16 %v1037_v31, %v1036_v30  ;;  %v695_v30 = vrot.slane %v694_v24, 2 }
 0x7ca   :  { %v1043_v34 = vpop.permute.xlu1 %1042  ;;  %v1049_v35 = vpop.permute.xlu0 %1048 }
 0x7cb   :  { %v1045_v38 = vmul.f32 %v1043_v34, %v2896_v22  ;;  %2591 = vmatpush1.bf16.msra.mxu1 %v2590_v33  ;;  %v1052_v42 = vmul.f32 %v1049_v35, %v2899_v23  ;;  %v696_v35 = vadd.f32 %v695_v30, %v694_v24  ;;  %v1437_v30 = vld [vmem:[%s3337_s8 + $0x8] sm:$0xff] }
 0x7cc   :  { %2592 = vmatprep.subr.bf16.mxu1 %v2819_v47 }
 0x7cd   :  { %v2593_v39 = vpack.c.bf16 %v1045_v38, %v1044_v37  ;;  %v697_v1 = vrot.slane %v696_v35, 1 }
 0x7ce   :  { %v1051_v40 = vpop.permute.xlu1 %1050  ;;  %v1059_v41 = vpop.permute.xlu0 %1058 }
 0x7cf   :  { %v1053_v43 = vmul.f32 %v1051_v40, %v2899_v23  ;;  %2594 = vmatpush1.bf16.msra.mxu1 %v2593_v39  ;;  %v1062_v50 = vmul.f32 %v1059_v41, %v2902_v25 }
 0x7d0   :  { %2595 = vmatprep.subr.bf16.mxu1 %v2819_v47 }
 0x7d1   :  { %v2596_v44 = vpack.c.bf16 %v1053_v43, %v1052_v42  ;;  %v698_v42 = vadd.f32 %v697_v1, %v696_v35 }
 0x7d2   :  { %v1061_v45 = vpop.permute.xlu1 %1060  ;;  %v1067_v46 = vpop.permute.xlu0 %1066 }
 0x7d3   :  { %2597 = vmatpush1.bf16.msra.mxu1 %v2596_v44  ;;  %v1063_v48 = vmul.f32 %v1061_v45, %v2902_v25  ;;  %v1070_v55 = vmul.f32 %v1067_v46, %v2909_v32 }
 0x7d4   :  { %2598 = vmatprep.subr.bf16.mxu1 %v2819_v47 }
 0x7d5   :  { %v2602_v51 = vpack.c.bf16 %v1063_v48, %v1062_v50 }
 0x7d6   :  { %v1069_v49 = vpop.permute.xlu1 %1068  ;;  %v1075_v53 = vpop.permute.xlu0 %1074 }
 0x7d7   :  { %2600 = vmatpush1.bf16.msra.mxu1 %v2599_v12  ;;  %v1071_v52 = vmul.f32 %v1069_v49, %v2909_v32  ;;  %v1078_v59 = vmul.f32 %v1075_v53, %v2912_v36  ;;  %v1275_v49 = vld [vmem:[%s2306_s3] sm:$0xff] }
 0x7d8   :  { %2601 = vmatprep.subr.bf16.mxu1 %v2819_v47 }
 0x7d9   :  { %v2605_v56 = vpack.c.bf16 %v1071_v52, %v1070_v55 }
 0x7da   :  { %v1077_v54 = vpop.permute.xlu1 %1076  ;;  %v1083_v60 = vpop.permute.xlu0 %1082 }
 0x7db   :  { %2603 = vmatpush1.bf16.msra.mxu1 %v2602_v51  ;;  %v1079_v57 = vmul.f32 %v1077_v54, %v2912_v36  ;;  %v1086_v63 = vmul.f32 %v1083_v60, %v2869_v9 }
 0x7dc   :  { %2604 = vmatprep.subr.bf16.mxu1 %v2819_v47 }
 0x7dd   :  { %v2608_v61 = vpack.c.bf16 %v1079_v57, %v1078_v59 }
 0x7de   :  { %v1085_v58 = vpop.permute.xlu1 %1084 }
 0x7df   :  { %2606 = vmatpush1.bf16.msra.mxu1 %v2605_v56  ;;  %v1087_v62 = vmul.f32 %v1085_v58, %v2869_v9 }
 0x7e0   :  { %2607 = vmatprep.subr.bf16.mxu1 %v2819_v47 }
 0x7e1   :  { %v2611_v0 = vpack.c.bf16 %v1087_v62, %v1086_v63 }
 0x7e3   :  { %2609 = vmatpush1.bf16.msra.mxu1 %v2608_v61 }
 0x7e4   :  { %2610 = vmatprep.subr.bf16.mxu1 %v2819_v47 }
 0x7e7   :  { %2612 = vmatpush1.bf16.msra.mxu1 %v2611_v0 }
 0x7e8   :  { %2629 = vmatprep.subr.bf16.mxu1 %v2819_v47 }
 0x7ea   :  { %1195 = vmatmul.mubr.f32.vlgmr.msra.gmra.mrb[6].mxu1 %v1090_v6 }
 0x7eb   :  { %2332 = vmatprep.mubr.msk.f32.mxu1 %vm410_vm1, %v1093_v7  ;;  %v1117_v12 = vpop.permute.xlu0 %1116 }
 0x7ee   :  { %1200 = vmatmul.mubr.f32.gmra.mrb[8].mxu1 %v1092_v8 }
 0x7ef   :  { %v1210_v27 = vpop.permute.xlu1 %1209  ;;  %v1122_v37 = vpop.permute.xlu0 %1121  ;;  %2335 = vmatprep.mubr.msk.f32.mxu1 %vm410_vm1, %v1437_v30 }
 0x8bd   :  { %v1196_v13 = vpop.f32.mrb[6].mxu1 }
 0x8be   :  { %v1197_v14 = vadd.f32 %v1196_v13, %v1117_v12  ;;  %v1198_v15 = vpop.f32.mrb[7].mxu1 }
 0x8c0   :  { %2796 = vtanh.f32 %v1197_v14  ;;  %v1265_v14 = vld [vmem:[%s3292_s29 + $0x8] sm:$0xff] }
 0x8c1   :  { %v1201_v16 = vpop.f32.mrb[8].mxu1 }
 0x8c2   :  { %v1203_v17 = vpop.f32.mrb[9].mxu1  ;;  %v1202_v39 = vadd.f32 %v1201_v16, %v1122_v37 }
 0x8c4   :  { %v1218_v11 = vmul.f32 %v3276_v29, %v1202_v39 }
 0x8c6   :  { %v1219_v2 = vadd.f32 %v1218_v11, %v3092_v18  ;;  %v1276_v18 = vld [vmem:[%s2306_s3 + $0x8] sm:$0xff] }
 0x8ca   :  { %v2797_v26 = vpop.eup %2796 }
 0x8cb   :  { %v1212_v28 = vmul.f32 %v2797_v26, %v1210_v27 }
 0x8cd   :  { %v1217_v31 = vmul.f32 %v3276_v29, %v1212_v28 }
 0x8cf   :  { %v1220_v33 = vmul.f32 1.442695, %v1217_v31  ;;  %v1223_v34 = vrot.slane %v1217_v31, 4 }
 0x8d1   :  { %2798 = vpow2.f32 %v1220_v33  ;;  %v1224_v38 = vadd.f32 %v1223_v34, %v1217_v31  ;;  %v1459_v31 = vld [vmem:[%s2308_s15 + $0x8] sm:$0xff]  ;;  %v1458_v33 = vld [vmem:[%s2308_s15] sm:$0xff] }
 0x8d3   :  { %v1225_v3 = vrot.slane %v1224_v38, 2 }
 0x8d5   :  { %v1226_v40 = vadd.f32 %v1225_v3, %v1224_v38 }
 0x8d7   :  { %v1227_v41 = vrot.slane %v1226_v40, 1 }
 0x8d9   :  { %v1228_v43 = vadd.f32 %v1227_v41, %v1226_v40 }
 0x8db   :  { %v2799_v44 = vpop.eup %2798  ;;  %v3281_v45 = vadd.f32 %v1228_v43, %v698_v42 }
 0x8dc   :  { %v3283_v46 = vmul.f32 %v2799_v44, %v1219_v2 }
 0x8de   :  { %v1230_v48 = vmul.f32 %v3283_v46, %v2865_v5  ;;  %v1264_v5 = vld [vmem:[%s3292_s29] sm:$0xff] }
 0x8df   :  { %2449 = vmatprep.mubr.msk.f32.mxu0 %vm226_vm0, %v1264_v5 }
 0x8e0   :  { %1235 = vrot.lane.b32.xlu0 %v1230_v48, %s2811_s12  ;;  %1231 = vrot.lane.b32.xlu1 %v1230_v48, %s2810_s11 }
 0x8e4   :  { %1243 = vrot.lane.b32.xlu0 %v1230_v48, %s2808_s6  ;;  %1239 = vrot.lane.b32.xlu1 %v1230_v48, %s2809_s10 }
 0x8e8   :  { %1252 = vrot.lane.b32.xlu0 %v1230_v48, %s2814_s18  ;;  %1248 = vrot.lane.b32.xlu1 %v1230_v48, %s2813_s17 }
 0x8ec   :  { %1260 = vrot.lane.b32.xlu0 %v1230_v48, %s2816_s20  ;;  %1256 = vrot.lane.b32.xlu1 %v1230_v48, %s2815_s19 }
 0x8f0   :  { %1284 = vperm.xlu0 %2790, %v1276_v18   ;;  %1279 = vperm.xlu1 %2791, %v1275_v49  }
 0x952   :  { %v1236_v50 = vpop.permute.xlu0 %1235  ;;  %v1232_v51 = vpop.permute.xlu1 %1231 }
 0x953   :  { %v1237_v52 = vmul.f32 %v1236_v50, %v2893_v21  ;;  %v1233_v53 = vmul.f32 %v1232_v51, %v2890_v20 }
 0x955   :  { %v2613_v54 = vpack.c.bf16 %v1237_v52, %v1233_v53 }
 0x956   :  { %v1244_v55 = vpop.permute.xlu0 %1243  ;;  %v1240_v56 = vpop.permute.xlu1 %1239 }
 0x957   :  { %v1245_v57 = vmul.f32 %v1244_v55, %v2899_v23  ;;  %v1241_v58 = vmul.f32 %v1240_v56, %v2896_v22  ;;  %2614 = vmatprep.subr.bf16.mxu0 %v2613_v54 }
 0x958   :  { %2616 = vmatpush3.bf16.msra.mxu0 %v2613_v54 }
 0x959   :  { %v2617_v59 = vpack.c.bf16 %v1245_v57, %v1241_v58 }
 0x95a   :  { %v1253_v60 = vpop.permute.xlu0 %1252  ;;  %v1249_v61 = vpop.permute.xlu1 %1248 }
 0x95b   :  { %v1250_v62 = vmul.f32 %v1249_v61, %v2902_v25  ;;  %2618 = vmatprep.subr.bf16.mxu0 %v2617_v59  ;;  %v1254_v6 = vmul.f32 %v1253_v60, %v2909_v32 }
 0x95c   :  { %2620 = vmatpush3.bf16.msra.mxu0 %v2617_v59 }
 0x95d   :  { %v2621_v63 = vpack.c.bf16 %v1250_v62, %v1230_v48 }
 0x95e   :  { %v1257_v0 = vpop.permute.xlu1 %1256  ;;  %v1261_v8 = vpop.permute.xlu0 %1260 }
 0x95f   :  { %v1258_v7 = vmul.f32 %v1257_v0, %v2912_v36  ;;  %2622 = vmatprep.subr.bf16.mxu0 %v2621_v63  ;;  %v1262_v13 = vmul.f32 %v1261_v8, %v2869_v9 }
 0x960   :  { %2624 = vmatpush3.bf16.msra.mxu0 %v2621_v63 }
 0x961   :  { %v2625_v12 = vpack.c.bf16 %v1258_v7, %v1254_v6 }
 0x963   :  { %2626 = vmatprep.subr.bf16.mxu0 %v2625_v12 }
 0x964   :  { %2628 = vmatpush3.bf16.msra.mxu0 %v2625_v12 }
 0x965   :  { %2447 = vmatprep.subr.mxu0 %v1262_v13 }
 0x968   :  { %2448 = vmatpush3.msra.mxu0 %v1262_v13 }
 0x969   :  { %2450 = vmatmul.mubr.msk.f32.vlgmr.msra.gmra.mrb[10].mxu0 %vm226_vm0, %v1265_v14  ;;  %2656 = vmatprep.subr.bf16.mxu0 %v2819_v47 }
 0x96f   :  { %v1285_v15 = vpop.permute.xlu0 %1284  ;;  %v1280_v17 = vpop.permute.xlu1 %1279 }
 0xa3c   :  { %v2451_v16 = vpop.f32.mrb[10].mxu0 }
 0xa3d   :  { %v1365_v19 = vadd.f32 %v2451_v16, %v1285_v15  ;;  %v1359_v4 = vpop.f32.mrb[11].mxu0  ;;  %v1436_v16 = vld [vmem:[%s3337_s8] sm:$0xff] }
 0xa3e   :  { %v1360_v24 = vadd.f32 %v1359_v4, %v1280_v17  ;;  %v1439_v17 = vld [vmem:[%s3337_s8 + $0x18] sm:$0xff] }
 0xa3f   :  { %v3316_v26 = vmax.f32 %v1365_v19, 0.0  ;;  %v1438_v19 = vld [vmem:[%s3337_s8 + $0x10] sm:$0xff]  ;;  %s2319_s8 = sld [smem:[%s3654_s0 + %s2844_s4]]  }
 0xa40   :  { %v1368_v27 = vmax.f32 %v1360_v24, 0.0 }
 0xa41   :  { %1372 = vrot.lane.b32.xlu0 %v3316_v26, %s2810_s11 }
 0xa42   :  { %1370 = vrot.lane.b32.xlu1 %v1368_v27, %s2810_s11  ;;  %v2642_v28 = vpack.c.bf16 %v3316_v26, %v1368_v27 }
 0xa45   :  { %1380 = vrot.lane.b32.xlu0 %v3316_v26, %s2811_s12 }
 0xa46   :  { %1378 = vrot.lane.b32.xlu1 %v1368_v27, %s2811_s12 }
 0xa49   :  { %1388 = vrot.lane.b32.xlu0 %v3316_v26, %s2809_s10 }
 0xa4a   :  { %1386 = vrot.lane.b32.xlu1 %v1368_v27, %s2809_s10 }
 0xa4d   :  { %1396 = vrot.lane.b32.xlu0 %v3316_v26, %s2808_s6 }
 0xa4e   :  { %1394 = vrot.lane.b32.xlu1 %v1368_v27, %s2808_s6 }
 0xa51   :  { %1406 = vrot.lane.b32.xlu0 %v3316_v26, %s2813_s17 }
 0xa52   :  { %1404 = vrot.lane.b32.xlu1 %v1368_v27, %s2813_s17 }
 0xa55   :  { %1414 = vrot.lane.b32.xlu0 %v3316_v26, %s2814_s18 }
 0xa56   :  { %1412 = vrot.lane.b32.xlu1 %v1368_v27, %s2814_s18 }
 0xa59   :  { %1422 = vrot.lane.b32.xlu0 %v3316_v26, %s2815_s19 }
 0xa5a   :  { %1420 = vrot.lane.b32.xlu1 %v1368_v27, %s2815_s19 }
 0xa5d   :  { %1430 = vrot.lane.b32.xlu0 %v3316_v26, %s2816_s20 }
 0xa5e   :  { %1428 = vrot.lane.b32.xlu1 %v1368_v27, %s2816_s20 }
 0xa61   :  { %1467 = vperm.xlu0 %2790, %v1459_v31  }
 0xa62   :  { %1462 = vperm.xlu1 %2791, %v1458_v33  }
 0xab3   :  { %v1373_v34 = vpop.permute.xlu0 %1372 }
 0xab4   :  { %v1375_v35 = vmul.f32 %v1373_v34, %v2890_v20  ;;  %v1371_v37 = vpop.permute.xlu1 %1370 }
 0xab5   :  { %v1374_v38 = vmul.f32 %v1371_v37, %v2890_v20 }
 0xab7   :  { %v2630_v39 = vpack.c.bf16 %v1375_v35, %v1374_v38  ;;  %v1381_v3 = vpop.permute.xlu0 %1380  ;;  %v1620_v38 = vld [vmem:[%s3415_s27 + $0x8] sm:$0xff] }
 0xab8   :  { %v1383_v1 = vmul.f32 %v1381_v3, %v2893_v21  ;;  %v1379_v40 = vpop.permute.xlu1 %1378  ;;  %2337 = vmatprep.mubr.msk.f32.mxu0 %vm410_vm1, %v1620_v38  ;;  %v1734_v3 = vld [vmem:[%s2311_s1] sm:$0xff] }
 0xab9   :  { %v1382_v11 = vmul.f32 %v1379_v40, %v2893_v21  ;;  %2631 = vmatpush1.bf16.msra.mxu1 %v2630_v39  ;;  %v1641_v39 = vld [vmem:[%s2310_s23] sm:$0xff] }
 0xaba   :  { %2632 = vmatprep.subr.bf16.mxu1 %v2819_v47 }
 0xabb   :  { %v2633_v41 = vpack.c.bf16 %v1383_v1, %v1382_v11  ;;  %v1389_v42 = vpop.permute.xlu0 %1388  ;;  %v1642_v1 = vld [vmem:[%s2310_s23 + $0x8] sm:$0xff] }
 0xabc   :  { %v1391_v43 = vmul.f32 %v1389_v42, %v2896_v22  ;;  %v1387_v2 = vpop.permute.xlu1 %1386 }
 0xabd   :  { %v1390_v44 = vmul.f32 %v1387_v2, %v2896_v22  ;;  %2634 = vmatpush1.bf16.msra.mxu1 %v2633_v41 }
 0xabe   :  { %2635 = vmatprep.subr.bf16.mxu1 %v2819_v47 }
 0xabf   :  { %v2636_v48 = vpack.c.bf16 %v1391_v43, %v1390_v44  ;;  %v1397_v5 = vpop.permute.xlu0 %1396 }
 0xac0   :  { %v1399_v18 = vmul.f32 %v1397_v5, %v2899_v23  ;;  %v1395_v49 = vpop.permute.xlu1 %1394 }
 0xac1   :  { %v1398_v50 = vmul.f32 %v1395_v49, %v2899_v23  ;;  %2637 = vmatpush1.bf16.msra.mxu1 %v2636_v48 }
 0xac2   :  { %2638 = vmatprep.subr.bf16.mxu1 %v2819_v47 }
 0xac3   :  { %v2639_v51 = vpack.c.bf16 %v1399_v18, %v1398_v50  ;;  %v1407_v52 = vpop.permute.xlu0 %1406 }
 0xac4   :  { %v1405_v53 = vpop.permute.xlu1 %1404  ;;  %v1409_v54 = vmul.f32 %v1407_v52, %v2902_v25 }
 0xac5   :  { %2640 = vmatpush1.bf16.msra.mxu1 %v2639_v51  ;;  %v1408_v55 = vmul.f32 %v1405_v53, %v2902_v25 }
 0xac6   :  { %2641 = vmatprep.subr.bf16.mxu1 %v2819_v47 }
 0xac7   :  { %v1415_v56 = vpop.permute.xlu0 %1414  ;;  %v2645_v58 = vpack.c.bf16 %v1409_v54, %v1408_v55 }
 0xac8   :  { %v1413_v57 = vpop.permute.xlu1 %1412  ;;  %v1417_v59 = vmul.f32 %v1415_v56, %v2909_v32 }
 0xac9   :  { %2643 = vmatpush1.bf16.msra.mxu1 %v2642_v28  ;;  %v1416_v60 = vmul.f32 %v1413_v57, %v2909_v32 }
 0xaca   :  { %2644 = vmatprep.subr.bf16.mxu1 %v2819_v47 }
 0xacb   :  { %v1423_v61 = vpop.permute.xlu0 %1422  ;;  %v2648_v63 = vpack.c.bf16 %v1417_v59, %v1416_v60 }
 0xacc   :  { %v1421_v62 = vpop.permute.xlu1 %1420  ;;  %v1425_v0 = vmul.f32 %v1423_v61, %v2912_v36 }
 0xacd   :  { %2646 = vmatpush1.bf16.msra.mxu1 %v2645_v58  ;;  %v1424_v6 = vmul.f32 %v1421_v62, %v2912_v36 }
 0xace   :  { %2647 = vmatprep.subr.bf16.mxu1 %v2819_v47 }
 0xacf   :  { %v1431_v7 = vpop.permute.xlu0 %1430  ;;  %v2651_v12 = vpack.c.bf16 %v1425_v0, %v1424_v6 }
 0xad0   :  { %v1429_v8 = vpop.permute.xlu1 %1428  ;;  %v1433_v13 = vmul.f32 %v1431_v7, %v2869_v9 }
 0xad1   :  { %2649 = vmatpush1.bf16.msra.mxu1 %v2648_v63  ;;  %v1432_v14 = vmul.f32 %v1429_v8, %v2869_v9 }
 0xad2   :  { %2650 = vmatprep.subr.bf16.mxu1 %v2819_v47 }
 0xad3   :  { %v2654_v15 = vpack.c.bf16 %v1433_v13, %v1432_v14 }
 0xad5   :  { %2652 = vmatpush1.bf16.msra.mxu1 %v2651_v12 }
 0xad6   :  { %2653 = vmatprep.subr.bf16.mxu1 %v2819_v47 }
 0xad9   :  { %2655 = vmatpush1.bf16.msra.mxu1 %v2654_v15 }
 0xadc   :  { %1541 = vmatmul.mubr.f32.vlgmr.msra.gmra.mrb[10].mxu1 %v1436_v16 }
 0xadd   :  { %2336 = vmatprep.mubr.msk.f32.mxu1 %vm410_vm1, %v1439_v17 }
 0xae0   :  { %1546 = vmatmul.mubr.f32.gmra.mrb[12].mxu1 %v1438_v19  ;;  %v1468_v30 = vpop.permute.xlu0 %1467 }
 0xae1   :  { %v1463_v4 = vpop.permute.xlu1 %1462 }
 0xbaf   :  { %v1542_v24 = vpop.f32.mrb[10].mxu1 }
 0xbb0   :  { %v1543_v26 = vadd.f32 %v1542_v24, %v1463_v4  ;;  %v1544_v27 = vpop.f32.mrb[11].mxu1 }
 0xbb2   :  { %v3381_v28 = vmax.f32 %v1543_v26, 0.0 }
 0xbb3   :  { %v1547_v31 = vpop.f32.mrb[12].mxu1 }
 0xbb4   :  { %v1548_v33 = vadd.f32 %v1547_v31, %v1468_v30  ;;  %v1549_v34 = vpop.f32.mrb[13].mxu1  ;;  %1553 = vrot.lane.b32.xlu1 %v3381_v28, %s2810_s11  ;;  %v1622_v30 = vld [vmem:[%s3415_s27 + $0x18] sm:$0xff]  ;;  %v1621_v31 = vld [vmem:[%s3415_s27 + $0x10] sm:$0xff] }
 0xbb6   :  { %v3385_v35 = vmax.f32 %v1548_v33, 0.0 }
 0xbb8   :  { %1555 = vrot.lane.b32.xlu0 %v3385_v35, %s2810_s11  ;;  %1561 = vrot.lane.b32.xlu1 %v3381_v28, %s2811_s12  ;;  %v2669_v37 = vpack.c.bf16 %v3385_v35, %v3381_v28 }
 0xbbc   :  { %1563 = vrot.lane.b32.xlu0 %v3385_v35, %s2811_s12  ;;  %1569 = vrot.lane.b32.xlu1 %v3381_v28, %s2809_s10 }
 0xbc0   :  { %1571 = vrot.lane.b32.xlu0 %v3385_v35, %s2809_s10  ;;  %1577 = vrot.lane.b32.xlu1 %v3381_v28, %s2808_s6 }
 0xbc4   :  { %1579 = vrot.lane.b32.xlu0 %v3385_v35, %s2808_s6  ;;  %1587 = vrot.lane.b32.xlu1 %v3381_v28, %s2813_s17 }
 0xbc8   :  { %1589 = vrot.lane.b32.xlu0 %v3385_v35, %s2813_s17  ;;  %1595 = vrot.lane.b32.xlu1 %v3381_v28, %s2814_s18 }
 0xbcc   :  { %1597 = vrot.lane.b32.xlu0 %v3385_v35, %s2814_s18  ;;  %1603 = vrot.lane.b32.xlu1 %v3381_v28, %s2815_s19 }
 0xbd0   :  { %1605 = vrot.lane.b32.xlu0 %v3385_v35, %s2815_s19  ;;  %1611 = vrot.lane.b32.xlu1 %v3381_v28, %s2816_s20  ;;  %v1619_v28 = vld [vmem:[%s3415_s27] sm:$0xff]  ;;  %s2841_s27 = smov 27  }
 0xbd1   :  { %s3599_s30 = sld [smem:[%s3654_s0 + %s2841_s27]]  }
 0xbd4   :  { %1613 = vrot.lane.b32.xlu0 %v3385_v35, %s2816_s20  ;;  %1645 = vperm.xlu1 %2791, %v1641_v39  }
 0xbd8   :  { %1738 = vperm.xlu0 %2790, %v1734_v3   ;;  %1650 = vperm.xlu1 %2791, %v1642_v1  }
 0xc26   :  { %v1554_v40 = vpop.permute.xlu1 %1553 }
 0xc27   :  { %v1557_v42 = vmul.f32 %v1554_v40, %v2890_v20 }
 0xc2a   :  { %v1556_v11 = vpop.permute.xlu0 %1555  ;;  %v1562_v41 = vpop.permute.xlu1 %1561 }
 0xc2b   :  { %v1558_v43 = vmul.f32 %v1556_v11, %v2890_v20  ;;  %v1565_v5 = vmul.f32 %v1562_v41, %v2893_v21 }
 0xc2d   :  { %v2657_v2 = vpack.c.bf16 %v1558_v43, %v1557_v42 }
 0xc2e   :  { %v1564_v44 = vpop.permute.xlu0 %1563  ;;  %v1570_v48 = vpop.permute.xlu1 %1569 }
 0xc2f   :  { %v1566_v18 = vmul.f32 %v1564_v44, %v2893_v21  ;;  %2658 = vmatpush1.bf16.msra.mxu0 %v2657_v2  ;;  %v1573_v52 = vmul.f32 %v1570_v48, %v2896_v22 }
 0xc30   :  { %2659 = vmatprep.subr.bf16.mxu0 %v2819_v47 }
 0xc31   :  { %v2660_v49 = vpack.c.bf16 %v1566_v18, %v1565_v5 }
 0xc32   :  { %v1572_v50 = vpop.permute.xlu0 %1571  ;;  %v1578_v51 = vpop.permute.xlu1 %1577 }
 0xc33   :  { %v1574_v53 = vmul.f32 %v1572_v50, %v2896_v22  ;;  %2661 = vmatpush1.bf16.msra.mxu0 %v2660_v49  ;;  %v1581_v57 = vmul.f32 %v1578_v51, %v2899_v23 }
 0xc34   :  { %2662 = vmatprep.subr.bf16.mxu0 %v2819_v47 }
 0xc35   :  { %v2663_v54 = vpack.c.bf16 %v1574_v53, %v1573_v52 }
 0xc36   :  { %v1580_v55 = vpop.permute.xlu0 %1579  ;;  %v1588_v56 = vpop.permute.xlu1 %1587 }
 0xc37   :  { %v1582_v58 = vmul.f32 %v1580_v55, %v2899_v23  ;;  %2664 = vmatpush1.bf16.msra.mxu0 %v2663_v54  ;;  %v1591_v0 = vmul.f32 %v1588_v56, %v2902_v25 }
 0xc38   :  { %2665 = vmatprep.subr.bf16.mxu0 %v2819_v47 }
 0xc39   :  { %v2666_v59 = vpack.c.bf16 %v1582_v58, %v1581_v57 }
 0xc3a   :  { %v1590_v60 = vpop.permute.xlu0 %1589  ;;  %v1596_v61 = vpop.permute.xlu1 %1595 }
 0xc3b   :  { %2667 = vmatpush1.bf16.msra.mxu0 %v2666_v59  ;;  %v1592_v62 = vmul.f32 %v1590_v60, %v2902_v25  ;;  %v1599_v13 = vmul.f32 %v1596_v61, %v2909_v32 }
 0xc3c   :  { %2668 = vmatprep.subr.bf16.mxu0 %v2819_v47 }
 0xc3d   :  { %v2672_v6 = vpack.c.bf16 %v1592_v62, %v1591_v0 }
 0xc3e   :  { %v1598_v63 = vpop.permute.xlu0 %1597  ;;  %v1604_v8 = vpop.permute.xlu1 %1603 }
 0xc3f   :  { %2670 = vmatpush1.bf16.msra.mxu0 %v2669_v37  ;;  %v1600_v7 = vmul.f32 %v1598_v63, %v2909_v32  ;;  %v1607_v17 = vmul.f32 %v1604_v8, %v2912_v36 }
 0xc40   :  { %2671 = vmatprep.subr.bf16.mxu0 %v2819_v47 }
 0xc41   :  { %v2675_v14 = vpack.c.bf16 %v1600_v7, %v1599_v13 }
 0xc42   :  { %v1606_v12 = vpop.permute.xlu0 %1605  ;;  %v1612_v19 = vpop.permute.xlu1 %1611 }
 0xc43   :  { %2673 = vmatpush1.bf16.msra.mxu0 %v2672_v6  ;;  %v1608_v15 = vmul.f32 %v1606_v12, %v2912_v36  ;;  %v1615_v26 = vmul.f32 %v1612_v19, %v2869_v9 }
 0xc44   :  { %2674 = vmatprep.subr.bf16.mxu0 %v2819_v47 }
 0xc45   :  { %v2678_v4 = vpack.c.bf16 %v1608_v15, %v1607_v17 }
 0xc46   :  { %v1614_v16 = vpop.permute.xlu0 %1613 }
 0xc47   :  { %2676 = vmatpush1.bf16.msra.mxu0 %v2675_v14  ;;  %v1616_v24 = vmul.f32 %v1614_v16, %v2869_v9 }
 0xc48   :  { %2677 = vmatprep.subr.bf16.mxu0 %v2819_v47 }
 0xc49   :  { %v2681_v27 = vpack.c.bf16 %v1616_v24, %v1615_v26  ;;  %v1790_v24 = vld [vmem:[%s3476_s5 + $0x8] sm:$0xff] }
 0xc4b   :  { %2679 = vmatpush1.bf16.msra.mxu0 %v2678_v4 }
 0xc4c   :  { %2680 = vmatprep.subr.bf16.mxu0 %v2819_v47 }
 0xc4f   :  { %2682 = vmatpush1.bf16.msra.mxu0 %v2681_v27 }
 0xc50   :  { %2699 = vmatprep.subr.bf16.mxu0 %v2819_v47 }
 0xc52   :  { %1724 = vmatmul.mubr.f32.vlgmr.msra.gmra.mrb[12].mxu0 %v1619_v28 }
 0xc53   :  { %2338 = vmatprep.mubr.msk.f32.mxu0 %vm410_vm1, %v1622_v30  ;;  %v1646_v33 = vpop.permute.xlu1 %1645 }
 0xc56   :  { %1729 = vmatmul.mubr.f32.gmra.mrb[14].mxu0 %v1621_v31 }
 0xc57   :  { %v1739_v1 = vpop.permute.xlu0 %1738  ;;  %v1651_v43 = vpop.permute.xlu1 %1650 }
 0xd25   :  { %v1725_v34 = vpop.f32.mrb[12].mxu0 }
 0xd26   :  { %v1726_v35 = vadd.f32 %v1725_v34, %v1646_v33  ;;  %v1727_v37 = vpop.f32.mrb[13].mxu0 }
 0xd28   :  { %2800 = vtanh.f32 %v1726_v35 }
 0xd29   :  { %v1730_v38 = vpop.f32.mrb[14].mxu0 }
 0xd2a   :  { %v1732_v39 = vpop.f32.mrb[15].mxu0  ;;  %v1731_v44 = vadd.f32 %v1730_v38, %v1651_v43  ;;  %v1962_v38 = vld [vmem:[%s3521_s21 + $0x8] sm:$0xff] }
 0xd2b   :  { %2341 = vmatprep.mubr.msk.f32.mxu0 %vm410_vm1, %v1962_v38  ;;  %v1984_v39 = vld [vmem:[%s2315_s25 + $0x8] sm:$0xff] }
 0xd2c   :  { %v1743_v18 = vmul.f32 %v1731_v44, %v3084_v10 }
 0xd2e   :  { %v1744_v51 = vadd.f32 %v1743_v18, %v3283_v46  ;;  %v1800_v46 = vld [vmem:[%s2313_s13] sm:$0xff] }
 0xd32   :  { %v2801_v3 = vpop.eup %2800 }
 0xd33   :  { %v1741_v40 = vmul.f32 %v2801_v3, %v1739_v1  ;;  %v1983_v3 = vld [vmem:[%s2315_s25] sm:$0xff] }
 0xd35   :  { %v1742_v11 = vmul.f32 %v1741_v40, %v3084_v10 }
 0xd37   :  { %v1748_v41 = vrot.slane %v1742_v11, 4  ;;  %v1745_v42 = vmul.f32 1.442695, %v1742_v11 }
 0xd39   :  { %v1749_v2 = vadd.f32 %v1748_v41, %v1742_v11  ;;  %2802 = vpow2.f32 %v1745_v42 }
 0xd3b   :  { %v1750_v48 = vrot.slane %v1749_v2, 2 }
 0xd3d   :  { %v1751_v5 = vadd.f32 %v1750_v48, %v1749_v2 }
 0xd3f   :  { %v1752_v49 = vrot.slane %v1751_v5, 1 }
 0xd41   :  { %v1753_v50 = vadd.f32 %v1752_v49, %v1751_v5 }
 0xd43   :  { %v2803_v52 = vpop.eup %2802  ;;  %v3465_v53 = vadd.f32 %v1753_v50, %v3281_v45  ;;  %v1801_v45 = vld [vmem:[%s2313_s13 + $0x8] sm:$0xff] }
 0xd44   :  { %v3467_v54 = vmul.f32 %v2803_v52, %v1744_v51 }
 0xd46   :  { %v1755_v55 = vmul.f32 %v3467_v54, %v3084_v10  ;;  %v1789_v10 = vld [vmem:[%s3476_s5] sm:$0xff] }
 0xd47   :  { %2470 = vmatprep.mubr.msk.f32.mxu1 %vm226_vm0, %v1789_v10 }
 0xd48   :  { %1760 = vrot.lane.b32.xlu1 %v1755_v55, %s2811_s12  ;;  %1756 = vrot.lane.b32.xlu0 %v1755_v55, %s2810_s11 }
 0xd4c   :  { %1768 = vrot.lane.b32.xlu1 %v1755_v55, %s2808_s6  ;;  %1764 = vrot.lane.b32.xlu0 %v1755_v55, %s2809_s10 }
 0xd50   :  { %1777 = vrot.lane.b32.xlu1 %v1755_v55, %s2814_s18  ;;  %1773 = vrot.lane.b32.xlu0 %v1755_v55, %s2813_s17 }
 0xd54   :  { %1785 = vrot.lane.b32.xlu1 %v1755_v55, %s2816_s20  ;;  %1781 = vrot.lane.b32.xlu0 %v1755_v55, %s2815_s19 }
 0xd58   :  { %1809 = vperm.xlu1 %2791, %v1801_v45   ;;  %1804 = vperm.xlu0 %2790, %v1800_v46  }
 0xdba   :  { %v1761_v56 = vpop.permute.xlu1 %1760  ;;  %v1757_v57 = vpop.permute.xlu0 %1756 }
 0xdbb   :  { %v1762_v58 = vmul.f32 %v1761_v56, %v2893_v21  ;;  %v1758_v59 = vmul.f32 %v1757_v57, %v2890_v20 }
 0xdbd   :  { %v2683_v60 = vpack.c.bf16 %v1762_v58, %v1758_v59 }
 0xdbe   :  { %v1769_v61 = vpop.permute.xlu1 %1768  ;;  %v1765_v62 = vpop.permute.xlu0 %1764 }
 0xdbf   :  { %v1770_v63 = vmul.f32 %v1769_v61, %v2899_v23  ;;  %v1766_v0 = vmul.f32 %v1765_v62, %v2896_v22  ;;  %2684 = vmatprep.subr.bf16.mxu1 %v2683_v60 }
 0xdc0   :  { %2686 = vmatpush3.bf16.msra.mxu1 %v2683_v60 }
 0xdc1   :  { %v2687_v6 = vpack.c.bf16 %v1770_v63, %v1766_v0 }
 0xdc2   :  { %v1778_v7 = vpop.permute.xlu1 %1777  ;;  %v1774_v8 = vpop.permute.xlu0 %1773 }
 0xdc3   :  { %v1775_v12 = vmul.f32 %v1774_v8, %v2902_v25  ;;  %2688 = vmatprep.subr.bf16.mxu1 %v2687_v6  ;;  %v1779_v15 = vmul.f32 %v1778_v7, %v2909_v32 }
 0xdc4   :  { %2690 = vmatpush3.bf16.msra.mxu1 %v2687_v6 }
 0xdc5   :  { %v2691_v13 = vpack.c.bf16 %v1775_v12, %v1755_v55 }
 0xdc6   :  { %v1782_v14 = vpop.permute.xlu0 %1781  ;;  %v1786_v17 = vpop.permute.xlu1 %1785 }
 0xdc7   :  { %v1783_v16 = vmul.f32 %v1782_v14, %v2912_v36  ;;  %2692 = vmatprep.subr.bf16.mxu1 %v2691_v13  ;;  %v1787_v4 = vmul.f32 %v1786_v17, %v2869_v9 }
 0xdc8   :  { %2694 = vmatpush3.bf16.msra.mxu1 %v2691_v13 }
 0xdc9   :  { %v2695_v19 = vpack.c.bf16 %v1783_v16, %v1779_v15 }
 0xdcb   :  { %2696 = vmatprep.subr.bf16.mxu1 %v2695_v19 }
 0xdcc   :  { %2698 = vmatpush3.bf16.msra.mxu1 %v2695_v19 }
 0xdcd   :  { %2468 = vmatprep.subr.mxu1 %v1787_v4 }
 0xdd0   :  { %2469 = vmatpush3.msra.mxu1 %v1787_v4 }
 0xdd1   :  { %2471 = vmatmul.mubr.msk.f32.vlgmr.msra.gmra.mrb[14].mxu1 %vm226_vm0, %v1790_v24  ;;  %2726 = vmatprep.subr.bf16.mxu1 %v2819_v47 }
 0xdd7   :  { %v1810_v26 = vpop.permute.xlu1 %1809  ;;  %v1805_v28 = vpop.permute.xlu0 %1804 }
 0xea4   :  { %v2472_v27 = vpop.f32.mrb[14].mxu1 }
 0xea5   :  { %v1890_v30 = vadd.f32 %v2472_v27, %v1810_v26  ;;  %v1884_v31 = vpop.f32.mrb[15].mxu1  ;;  %v1961_v26 = vld [vmem:[%s3521_s21] sm:$0xff]  ;;  %v1964_v27 = vld [vmem:[%s3521_s21 + $0x18] sm:$0xff] }
 0xea6   :  { %v1885_v33 = vadd.f32 %v1884_v31, %v1805_v28  ;;  %v1963_v28 = vld [vmem:[%s3521_s21 + $0x10] sm:$0xff] }
 0xea7   :  { %v3500_v34 = vmax.f32 %v1890_v30, 0.0 }
 0xea8   :  { %v1893_v35 = vmax.f32 %v1885_v33, 0.0 }
 0xea9   :  { %1897 = vrot.lane.b32.xlu1 %v3500_v34, %s2810_s11 }
 0xeaa   :  { %1895 = vrot.lane.b32.xlu0 %v1893_v35, %s2810_s11  ;;  %v2712_v37 = vpack.c.bf16 %v3500_v34, %v1893_v35 }
 0xead   :  { %1905 = vrot.lane.b32.xlu1 %v3500_v34, %s2811_s12 }
 0xeae   :  { %1903 = vrot.lane.b32.xlu0 %v1893_v35, %s2811_s12 }
 0xeb1   :  { %1913 = vrot.lane.b32.xlu1 %v3500_v34, %s2809_s10 }
 0xeb2   :  { %1911 = vrot.lane.b32.xlu0 %v1893_v35, %s2809_s10 }
 0xeb5   :  { %1921 = vrot.lane.b32.xlu1 %v3500_v34, %s2808_s6 }
 0xeb6   :  { %1919 = vrot.lane.b32.xlu0 %v1893_v35, %s2808_s6 }
 0xeb9   :  { %1931 = vrot.lane.b32.xlu1 %v3500_v34, %s2813_s17 }
 0xeba   :  { %1929 = vrot.lane.b32.xlu0 %v1893_v35, %s2813_s17 }
 0xebd   :  { %1939 = vrot.lane.b32.xlu1 %v3500_v34, %s2814_s18 }
 0xebe   :  { %1937 = vrot.lane.b32.xlu0 %v1893_v35, %s2814_s18 }
 0xec1   :  { %1947 = vrot.lane.b32.xlu1 %v3500_v34, %s2815_s19 }
 0xec2   :  { %1945 = vrot.lane.b32.xlu0 %v1893_v35, %s2815_s19 }
 0xec5   :  { %1955 = vrot.lane.b32.xlu1 %v3500_v34, %s2816_s20 }
 0xec6   :  { %1953 = vrot.lane.b32.xlu0 %v1893_v35, %s2816_s20 }
 0xec9   :  { %1992 = vperm.xlu1 %2791, %v1984_v39  }
 0xeca   :  { %1987 = vperm.xlu0 %2790, %v1983_v3  }
 0xf1b   :  { %v1898_v1 = vpop.permute.xlu1 %1897 }
 0xf1c   :  { %v1900_v40 = vmul.f32 %v1898_v1, %v2890_v20  ;;  %v1896_v11 = vpop.permute.xlu0 %1895 }
 0xf1d   :  { %v1899_v41 = vmul.f32 %v1896_v11, %v2890_v20  ;;  %v2145_v11 = vld [vmem:[%s3599_s30 + $0x8] sm:$0xff] }
 0xf1e   :  { %2343 = vmatprep.mubr.msk.f32.mxu1 %vm410_vm1, %v2145_v11 }
 0xf1f   :  { %v2700_v42 = vpack.c.bf16 %v1900_v40, %v1899_v41  ;;  %v1906_v43 = vpop.permute.xlu1 %1905 }
 0xf20   :  { %v1908_v2 = vmul.f32 %v1906_v43, %v2893_v21  ;;  %v1904_v44 = vpop.permute.xlu0 %1903 }
 0xf21   :  { %v1907_v48 = vmul.f32 %v1904_v44, %v2893_v21  ;;  %2701 = vmatpush1.bf16.msra.mxu0 %v2700_v42 }
 0xf22   :  { %2702 = vmatprep.subr.bf16.mxu0 %v2819_v47 }
 0xf23   :  { %v2703_v5 = vpack.c.bf16 %v1908_v2, %v1907_v48  ;;  %v1914_v18 = vpop.permute.xlu1 %1913 }
 0xf24   :  { %v1916_v49 = vmul.f32 %v1914_v18, %v2896_v22  ;;  %v1912_v50 = vpop.permute.xlu0 %1911 }
 0xf25   :  { %v1915_v51 = vmul.f32 %v1912_v50, %v2896_v22  ;;  %2704 = vmatpush1.bf16.msra.mxu0 %v2703_v5 }
 0xf26   :  { %2705 = vmatprep.subr.bf16.mxu0 %v2819_v47 }
 0xf27   :  { %v2706_v52 = vpack.c.bf16 %v1916_v49, %v1915_v51  ;;  %v1922_v55 = vpop.permute.xlu1 %1921 }
 0xf28   :  { %v1924_v10 = vmul.f32 %v1922_v55, %v2899_v23  ;;  %v1920_v45 = vpop.permute.xlu0 %1919 }
 0xf29   :  { %v1923_v46 = vmul.f32 %v1920_v45, %v2899_v23  ;;  %2707 = vmatpush1.bf16.msra.mxu0 %v2706_v52 }
 0xf2a   :  { %2708 = vmatprep.subr.bf16.mxu0 %v2819_v47 }
 0xf2b   :  { %v2709_v56 = vpack.c.bf16 %v1924_v10, %v1923_v46  ;;  %v1932_v57 = vpop.permute.xlu1 %1931 }
 0xf2c   :  { %v1930_v58 = vpop.permute.xlu0 %1929  ;;  %v1934_v59 = vmul.f32 %v1932_v57, %v2902_v25 }
 0xf2d   :  { %2710 = vmatpush1.bf16.msra.mxu0 %v2709_v56  ;;  %v1933_v60 = vmul.f32 %v1930_v58, %v2902_v25 }
 0xf2e   :  { %2711 = vmatprep.subr.bf16.mxu0 %v2819_v47 }
 0xf2f   :  { %v1940_v61 = vpop.permute.xlu1 %1939  ;;  %v2715_v63 = vpack.c.bf16 %v1934_v59, %v1933_v60 }
 0xf30   :  { %v1938_v62 = vpop.permute.xlu0 %1937  ;;  %v1942_v0 = vmul.f32 %v1940_v61, %v2909_v32 }
 0xf31   :  { %2713 = vmatpush1.bf16.msra.mxu0 %v2712_v37  ;;  %v1941_v6 = vmul.f32 %v1938_v62, %v2909_v32 }
 0xf32   :  { %2714 = vmatprep.subr.bf16.mxu0 %v2819_v47 }
 0xf33   :  { %v1948_v7 = vpop.permute.xlu1 %1947  ;;  %v2718_v12 = vpack.c.bf16 %v1942_v0, %v1941_v6 }
 0xf34   :  { %v1946_v8 = vpop.permute.xlu0 %1945  ;;  %v1950_v13 = vmul.f32 %v1948_v7, %v2912_v36 }
 0xf35   :  { %2716 = vmatpush1.bf16.msra.mxu0 %v2715_v63  ;;  %v1949_v14 = vmul.f32 %v1946_v8, %v2912_v36 }
 0xf36   :  { %2717 = vmatprep.subr.bf16.mxu0 %v2819_v47 }
 0xf37   :  { %v1956_v15 = vpop.permute.xlu1 %1955  ;;  %v2721_v17 = vpack.c.bf16 %v1950_v13, %v1949_v14 }
 0xf38   :  { %v1954_v16 = vpop.permute.xlu0 %1953  ;;  %v1958_v19 = vmul.f32 %v1956_v15, %v2869_v9 }
 0xf39   :  { %2719 = vmatpush1.bf16.msra.mxu0 %v2718_v12  ;;  %v1957_v4 = vmul.f32 %v1954_v16, %v2869_v9 }
 0xf3a   :  { %2720 = vmatprep.subr.bf16.mxu0 %v2819_v47 }
 0xf3b   :  { %v2724_v24 = vpack.c.bf16 %v1958_v19, %v1957_v4 }
 0xf3d   :  { %2722 = vmatpush1.bf16.msra.mxu0 %v2721_v17 }
 0xf3e   :  { %2723 = vmatprep.subr.bf16.mxu0 %v2819_v47 }
 0xf41   :  { %2725 = vmatpush1.bf16.msra.mxu0 %v2724_v24 }
 0xf44   :  { %2066 = vmatmul.mubr.f32.vlgmr.msra.gmra.mrb[16].mxu0 %v1961_v26  ;;  %v2144_v26 = vld [vmem:[%s3599_s30] sm:$0xff] }
 0xf45   :  { %2342 = vmatprep.mubr.msk.f32.mxu0 %vm410_vm1, %v1964_v27  ;;  %v2147_v27 = vld [vmem:[%s3599_s30 + $0x18] sm:$0xff] }
 0xf48   :  { %2071 = vmatmul.mubr.f32.gmra.mrb[18].mxu0 %v1963_v28  ;;  %v1993_v37 = vpop.permute.xlu1 %1992 }
 0xf49   :  { %v1988_v30 = vpop.permute.xlu0 %1987 }
0x1017   :  { %v2067_v31 = vpop.f32.mrb[16].mxu0 }
0x1018   :  { %v2068_v33 = vadd.f32 %v2067_v31, %v1988_v30  ;;  %v2069_v34 = vpop.f32.mrb[17].mxu0 }
0x101a   :  { %v3565_v35 = vmax.f32 %v2068_v33, 0.0 }
0x101b   :  { %v2072_v38 = vpop.f32.mrb[18].mxu0 }
0x101c   :  { %v2073_v39 = vadd.f32 %v2072_v38, %v1993_v37  ;;  %v2074_v3 = vpop.f32.mrb[19].mxu0  ;;  %2078 = vrot.lane.b32.xlu0 %v3565_v35, %s2810_s11 }
0x101e   :  { %v3569_v1 = vmax.f32 %v2073_v39, 0.0 }
0x1020   :  { %2080 = vrot.lane.b32.xlu1 %v3569_v1, %s2810_s11  ;;  %2086 = vrot.lane.b32.xlu0 %v3565_v35, %s2811_s12  ;;  %v2739_v40 = vpack.c.bf16 %v3569_v1, %v3565_v35  ;;  %s2840_s11 = smov 28  }
0x1024   :  { %2088 = vrot.lane.b32.xlu1 %v3569_v1, %s2811_s12  ;;  %2094 = vrot.lane.b32.xlu0 %v3565_v35, %s2809_s10 }
0x1028   :  { %2096 = vrot.lane.b32.xlu1 %v3569_v1, %s2809_s10  ;;  %2102 = vrot.lane.b32.xlu0 %v3565_v35, %s2808_s6  ;;  %s2317_s10 = sld [smem:[%s3654_s0 + %s2840_s11]]  }
0x102c   :  { %2104 = vrot.lane.b32.xlu1 %v3569_v1, %s2808_s6  ;;  %2112 = vrot.lane.b32.xlu0 %v3565_v35, %s2813_s17  ;;  %s2842_s6 = smov 29  }
0x102d   :  { %s2318_s2 = sld [smem:[%s3654_s0 + %s2842_s6]]  }
0x102e   :  { %v2166_v41 = vld [vmem:[%s2317_s10] sm:$0xff]  ;;  %v2167_v43 = vld [vmem:[%s2317_s10 + $0x8] sm:$0xff] }
0x1030   :  { %2114 = vrot.lane.b32.xlu1 %v3569_v1, %s2813_s17  ;;  %2120 = vrot.lane.b32.xlu0 %v3565_v35, %s2814_s18 }
0x1033   :  { %v2259_v42 = vld [vmem:[%s2318_s2] sm:$0xff] }
0x1034   :  { %2122 = vrot.lane.b32.xlu1 %v3569_v1, %s2814_s18  ;;  %2128 = vrot.lane.b32.xlu0 %v3565_v35, %s2815_s19  ;;  %s2843_s18 = smov 31  }
0x1035   :  { %s2320_s3 = sld [smem:[%s3654_s0 + %s2843_s18]]  }
0x1038   :  { %2130 = vrot.lane.b32.xlu1 %v3569_v1, %s2815_s19  ;;  %2136 = vrot.lane.b32.xlu0 %v3565_v35, %s2816_s20 }
0x103c   :  { %2138 = vrot.lane.b32.xlu1 %v3569_v1, %s2816_s20  ;;  %2170 = vperm.xlu0 %2790, %v2166_v41  }
0x1040   :  { %2263 = vperm.xlu1 %2791, %v2259_v42   ;;  %2175 = vperm.xlu0 %2790, %v2167_v43  }
0x108e   :  { %v2079_v2 = vpop.permute.xlu0 %2078 }
0x108f   :  { %v2082_v5 = vmul.f32 %v2079_v2, %v2890_v20 }
0x1092   :  { %v2081_v44 = vpop.permute.xlu1 %2080  ;;  %v2087_v48 = vpop.permute.xlu0 %2086 }
0x1093   :  { %v2083_v18 = vmul.f32 %v2081_v44, %v2890_v20  ;;  %v2090_v52 = vmul.f32 %v2087_v48, %v2893_v21 }
0x1095   :  { %v2727_v49 = vpack.c.bf16 %v2083_v18, %v2082_v5 }
0x1096   :  { %v2089_v50 = vpop.permute.xlu1 %2088  ;;  %v2095_v51 = vpop.permute.xlu0 %2094 }
0x1097   :  { %v2091_v55 = vmul.f32 %v2089_v50, %v2893_v21  ;;  %2728 = vmatpush1.bf16.msra.mxu1 %v2727_v49  ;;  %v2098_v56 = vmul.f32 %v2095_v51, %v2896_v22 }
0x1098   :  { %2729 = vmatprep.subr.bf16.mxu1 %v2819_v47 }
0x1099   :  { %v2730_v10 = vpack.c.bf16 %v2091_v55, %v2090_v52 }
0x109a   :  { %v2097_v45 = vpop.permute.xlu1 %2096  ;;  %v2103_v46 = vpop.permute.xlu0 %2102 }
0x109b   :  { %v2099_v57 = vmul.f32 %v2097_v45, %v2896_v22  ;;  %2731 = vmatpush1.bf16.msra.mxu1 %v2730_v10  ;;  %v2106_v60 = vmul.f32 %v2103_v46, %v2899_v23 }
0x109c   :  { %2732 = vmatprep.subr.bf16.mxu1 %v2819_v47 }
0x109d   :  { %v2733_v20 = vpack.c.bf16 %v2099_v57, %v2098_v56 }
0x109e   :  { %v2105_v58 = vpop.permute.xlu1 %2104  ;;  %v2113_v59 = vpop.permute.xlu0 %2112 }
0x109f   :  { %v2107_v21 = vmul.f32 %v2105_v58, %v2899_v23  ;;  %2734 = vmatpush1.bf16.msra.mxu1 %v2733_v20  ;;  %v2116_v6 = vmul.f32 %v2113_v59, %v2902_v25 }
0x10a0   :  { %2735 = vmatprep.subr.bf16.mxu1 %v2819_v47 }
0x10a1   :  { %v2736_v61 = vpack.c.bf16 %v2107_v21, %v2106_v60 }
0x10a2   :  { %v2115_v62 = vpop.permute.xlu1 %2114  ;;  %v2121_v63 = vpop.permute.xlu0 %2120 }
0x10a3   :  { %2737 = vmatpush1.bf16.msra.mxu1 %v2736_v61  ;;  %v2117_v22 = vmul.f32 %v2115_v62, %v2902_v25  ;;  %v2124_v13 = vmul.f32 %v2121_v63, %v2909_v32 }
0x10a4   :  { %2738 = vmatprep.subr.bf16.mxu1 %v2819_v47 }
0x10a5   :  { %v2742_v7 = vpack.c.bf16 %v2117_v22, %v2116_v6 }
0x10a6   :  { %v2123_v0 = vpop.permute.xlu1 %2122  ;;  %v2129_v8 = vpop.permute.xlu0 %2128 }
0x10a7   :  { %2740 = vmatpush1.bf16.msra.mxu1 %v2739_v40  ;;  %v2125_v23 = vmul.f32 %v2123_v0, %v2909_v32  ;;  %v2132_v25 = vmul.f32 %v2129_v8, %v2912_v36 }
0x10a8   :  { %2741 = vmatprep.subr.bf16.mxu1 %v2819_v47 }
0x10a9   :  { %v2745_v14 = vpack.c.bf16 %v2125_v23, %v2124_v13 }
0x10aa   :  { %v2131_v12 = vpop.permute.xlu1 %2130  ;;  %v2137_v17 = vpop.permute.xlu0 %2136 }
0x10ab   :  { %2743 = vmatpush1.bf16.msra.mxu1 %v2742_v7  ;;  %v2133_v15 = vmul.f32 %v2131_v12, %v2912_v36  ;;  %v2140_v32 = vmul.f32 %v2137_v17, %v2869_v9  ;;  %v2146_v36 = vld [vmem:[%s3599_s30 + $0x10] sm:$0xff] }
0x10ac   :  { %2744 = vmatprep.subr.bf16.mxu1 %v2819_v47 }
0x10ad   :  { %v2748_v19 = vpack.c.bf16 %v2133_v15, %v2132_v25 }
0x10ae   :  { %v2139_v16 = vpop.permute.xlu1 %2138 }
0x10af   :  { %2746 = vmatpush1.bf16.msra.mxu1 %v2745_v14  ;;  %v2141_v4 = vmul.f32 %v2139_v16, %v2869_v9 }
0x10b0   :  { %2747 = vmatprep.subr.bf16.mxu1 %v2819_v47 }
0x10b1   :  { %v2751_v24 = vpack.c.bf16 %v2141_v4, %v2140_v32 }
0x10b3   :  { %2749 = vmatpush1.bf16.msra.mxu1 %v2748_v19 }
0x10b4   :  { %2750 = vmatprep.subr.bf16.mxu1 %v2819_v47 }
0x10b7   :  { %2752 = vmatpush1.bf16.msra.mxu1 %v2751_v24 }
0x10ba   :  { %2249 = vmatmul.mubr.f32.vlgmr.msra.gmra.mrb[16].mxu1 %v2144_v26 }
0x10bb   :  { %2344 = vmatprep.mubr.msk.f32.mxu1 %vm410_vm1, %v2147_v27  ;;  %v2171_v28 = vpop.permute.xlu0 %2170 }
0x10be   :  { %2254 = vmatmul.mubr.f32.gmra.mrb[18].mxu1 %v2146_v36 }
0x10bf   :  { %v2264_v37 = vpop.permute.xlu1 %2263  ;;  %v2176_v1 = vpop.permute.xlu0 %2175 }
0x118d   :  { %v2250_v30 = vpop.f32.mrb[16].mxu1 }
0x118e   :  { %v2251_v31 = vadd.f32 %v2250_v30, %v2171_v28  ;;  %v2252_v33 = vpop.f32.mrb[17].mxu1 }
0x1190   :  { %2804 = vtanh.f32 %v2251_v31 }
0x1191   :  { %v2255_v34 = vpop.f32.mrb[18].mxu1 }
0x1192   :  { %v2257_v35 = vpop.f32.mrb[19].mxu1  ;;  %v2256_v11 = vadd.f32 %v2255_v34, %v2176_v1 }
0x1194   :  { %v2268_v43 = vmul.f32 %v2256_v11, %v3276_v29 }
0x1196   :  { %v2269_v48 = vadd.f32 %v2268_v43, %v3467_v54 }
0x119a   :  { %v2805_v9 = vpop.eup %2804 }
0x119b   :  { %v2266_v38 = vmul.f32 %v2805_v9, %v2264_v37 }
0x119d   :  { %v2267_v47 = vmul.f32 %v2266_v38, %v3276_v29 }
0x119f   :  { %v2273_v39 = vrot.slane %v2267_v47, 4  ;;  %v2270_v3 = vmul.f32 1.442695, %v2267_v47 }
0x11a1   :  { %v2274_v40 = vadd.f32 %v2273_v39, %v2267_v47  ;;  %2806 = vpow2.f32 %v2270_v3 }
0x11a3   :  { %v2275_v41 = vrot.slane %v2274_v40, 2 }
0x11a5   :  { %v2276_v42 = vadd.f32 %v2275_v41, %v2274_v40 }
0x11a7   :  { %v2277_v2 = vrot.slane %v2276_v42, 1 }
0x11a9   :  { %v2278_v44 = vadd.f32 %v2277_v2, %v2276_v42 }
0x11ab   :  { %v2807_v5 = vpop.eup %2806  ;;  %v2279_v18 = vadd.f32 %v2278_v44, %v3465_v53 }
0x11ac   :  { %v2272_v49 = vmul.f32 %v2807_v5, %v2269_v48 }
0x11ad   :  { %2281 = vst [vmem:[%s2320_s3] sm:$0x1] %v2279_v18 }
0x11ae   :  { %2280 = vst [vmem:[%s2319_s8] sm:$0xff] %v2272_v49 }

</bundles_post_ra>
